<compile_context>
chip_gen: v5e
topology: v5e:2x2
jax: 0.10.0
libtpu: 0.0.40
codegen_flags: <defaults>
</compile_context>

<pallas_src>
import functools

import jax
import jax.numpy as jnp
from jax.experimental import pallas as pl
from jax.experimental.pallas import tpu as pltpu

groups = 32  # matches the module-level constant in the PyTorch spec

# _KSETS[a][p] = 3x3-kernel row (or col) indices that hit original-row offset
# p (0 or 1) for output parity a, under nearest 2x upsampling + zero padding.
_KSETS = (((0,), (1, 2)), ((0, 1), (2,)))


def _make_subpixel_weights(conv_w):
    """Aggregate a (Co, Ci, 3, 3) conv kernel into sub-pixel weights.

    Returns (4, 4, Ci, Co): index [2*a + b, 2*p + q] is the effective (Ci, Co)
    weight for output parity (a, b) and original-pixel tap (p, q).
    """
    par = []
    for a in range(2):
        for b in range(2):
            taps = []
            for p in range(2):
                for q in range(2):
                    w = sum(conv_w[:, :, ky, kx]
                            for ky in _KSETS[a][p] for kx in _KSETS[b][q])
                    taps.append(jnp.transpose(w))            # (Ci, Co)
            par.append(jnp.stack(taps, axis=0))              # (4, Ci, Co)
    return jnp.stack(par, axis=0)                            # (4, 4, Ci, Co)


def _patch_recover_kernel(xp_ref, w_ref, bias_ref, gamma_ref, beta_ref,
                          gmask_ref, o_ref, *, H, W, num_groups):
    """Fused (upsample2x + conv3x3 + bias) -> GroupNorm -> ReLU for one batch.

    xp_ref   : (1, H+2, W+2, C)  zero-padded original-resolution input
    w_ref    : (4, 4, C, Co)     aggregated sub-pixel weights (compute dtype)
    bias_ref : (1, Co)  f32      conv bias
    gamma_ref: (1, Co)  f32      GroupNorm weight
    beta_ref : (1, Co)  f32      GroupNorm bias
    gmask_ref: (Co, Co) f32      1.0 where channels share a group
    o_ref    : (1, 4, H*W, Co)   per-parity output (parity index = 2*a + b)
    """
    C = xp_ref.shape[-1]
    Co = o_ref.shape[-1]
    xp = xp_ref[0]                                           # (H+2, W+2, C)

    # 9 shifted full-resolution views of the zero-padded input, token-major.
    views = {}
    for dr in range(3):
        for dc in range(3):
            views[(dr, dc)] = xp[dr:dr + H, dc:dc + W, :].reshape(H * W, C)

    bias = bias_ref[...]                                     # (1, Co) f32

    # Sub-pixel conv: 4 parities x 4 taps of (H*W, C) @ (C, Co) on the MXU.
    ys = []
    for a in range(2):
        for b in range(2):
            acc = jnp.zeros((H * W, Co), jnp.float32)
            for p in range(2):
                for q in range(2):
                    acc = acc + jnp.dot(
                        views[(a + p, b + q)],
                        w_ref[2 * a + b, 2 * p + q],
                        preferred_element_type=jnp.float32)
            ys.append(acc + bias)

    # GroupNorm stats over (4 parities x H*W positions x channels-in-group).
    s = ys[0].sum(axis=0, keepdims=True)                     # (1, Co)
    ss = (ys[0] * ys[0]).sum(axis=0, keepdims=True)          # (1, Co)
    for y in ys[1:]:
        s = s + y.sum(axis=0, keepdims=True)
        ss = ss + (y * y).sum(axis=0, keepdims=True)
    gmask = gmask_ref[...]                                   # (Co, Co)
    gs = jnp.dot(s, gmask, preferred_element_type=jnp.float32)
    gss = jnp.dot(ss, gmask, preferred_element_type=jnp.float32)
    n = float(4 * H * W * (Co // num_groups))
    mean = gs / n
    var = gss / n - mean * mean
    scale = gamma_ref[...] * jax.lax.rsqrt(var + 1e-5)       # (1, Co)
    shift = beta_ref[...] - mean * scale                     # (1, Co)

    for idx, y in enumerate(ys):
        o_ref[0, idx] = jnp.maximum(y * scale + shift, 0.0).astype(o_ref.dtype)


def patch_recover_pallas(x, H, W, conv_weight, conv_bias, gn_weight, gn_bias,
                         *, num_groups=groups):
    """Pallas implementation of PatchRecover.forward.

    Args:
      x:           (B, H*W, C) input features.
      H, W:        spatial resolution of the input feature.
      conv_weight: (C//2, C, 3, 3) Conv2d weight (torch OIHW layout).
      conv_bias:   (C//2,) Conv2d bias.
      gn_weight:   (C//2,) GroupNorm gamma.
      gn_bias:     (C//2,) GroupNorm beta.
    Returns:
      (B, 4*H*W, C//2)
    """
    B, L, C = x.shape
    assert L == H * W, "input feature has wrong size"
    assert C % 2 == 0
    Co = C // 2
    assert Co % num_groups == 0, "GroupNorm channels must divide num_groups"
    assert conv_weight.shape == (Co, C, 3, 3)

    # ---- module glue (XLA): raw reshape to NCHW, then channels-last + pad ---
    xi = x.reshape(B, C, H, W)                               # module's reshape
    x_nhwc = jnp.transpose(xi, (0, 2, 3, 1))                 # (B, H, W, C)
    xp = jnp.pad(x_nhwc, ((0, 0), (1, 1), (1, 1), (0, 0)))   # (B, H+2, W+2, C)

    cdt = x.dtype  # matmul compute dtype (bf16 input -> bf16 MXU on v6e/v7x)
    w_eff = _make_subpixel_weights(conv_weight).astype(cdt)  # (4, 4, C, Co)
    bias2 = conv_bias.reshape(1, Co).astype(jnp.float32)
    gamma2 = gn_weight.reshape(1, Co).astype(jnp.float32)
    beta2 = gn_bias.reshape(1, Co).astype(jnp.float32)
    cg = Co // num_groups
    ch_group = jnp.arange(Co) // cg
    gmask = (ch_group[:, None] == ch_group[None, :]).astype(jnp.float32)

    kernel = functools.partial(_patch_recover_kernel, H=H, W=W,
                               num_groups=num_groups)

    par_out = pl.pallas_call(
        kernel,
        out_shape=jax.ShapeDtypeStruct((B, 4, H * W, Co), x.dtype),
        grid_spec=pltpu.PrefetchScalarGridSpec(
            num_scalar_prefetch=0,
            grid=(B,),
            in_specs=[
                pl.BlockSpec((1, H + 2, W + 2, C), lambda b: (b, 0, 0, 0)),
                pl.BlockSpec((4, 4, C, Co), lambda b: (0, 0, 0, 0)),
                pl.BlockSpec((1, Co), lambda b: (0, 0)),
                pl.BlockSpec((1, Co), lambda b: (0, 0)),
                pl.BlockSpec((1, Co), lambda b: (0, 0)),
                pl.BlockSpec((Co, Co), lambda b: (0, 0)),
            ],
            out_specs=pl.BlockSpec((1, 4, H * W, Co), lambda b: (b, 0, 0, 0)),
        ),
        compiler_params=pltpu.CompilerParams(
            dimension_semantics=("parallel",),
            vmem_limit_bytes=48 * 1024 * 1024,
        ),
    )(xp, w_eff, bias2, gamma2, beta2, gmask)

    # Interleave the 4 parities back into row-major (2H, 2W) token order.
    out = par_out.reshape(B, 2, 2, H, W, Co)
    out = jnp.transpose(out, (0, 3, 1, 4, 2, 5))             # (B, H, 2, W, 2, Co)
    return out.reshape(B, 4 * H * W, Co)


def _reference(x, H, W, conv_w, conv_b, gn_w, gn_b, *, num_groups=groups):
    """Pure-JAX reference mirroring the torch module."""
    B, L, C = x.shape
    Co = C // 2
    xi = x.reshape(B, C, H, W).astype(jnp.float32)
    xu = jnp.repeat(jnp.repeat(xi, 2, axis=2), 2, axis=3)     # nearest 2x
    y = jax.lax.conv_general_dilated(
        xu, conv_w.astype(jnp.float32), window_strides=(1, 1),
        padding=((1, 1), (1, 1)),
        dimension_numbers=("NCHW", "OIHW", "NCHW"))
    y = y + conv_b.reshape(1, Co, 1, 1).astype(jnp.float32)
    yg = y.reshape(B, num_groups, Co // num_groups, 2 * H, 2 * W)
    mean = yg.mean(axis=(2, 3, 4), keepdims=True)
    var = yg.var(axis=(2, 3, 4), keepdims=True)
    yn = (yg - mean) * jax.lax.rsqrt(var + 1e-5)
    yn = yn.reshape(B, Co, 2 * H, 2 * W)
    yn = yn * gn_w.reshape(1, Co, 1, 1) + gn_b.reshape(1, Co, 1, 1)
    yn = jnp.maximum(yn, 0.0)
    return yn.reshape(B, Co, -1).transpose(0, 2, 1)


if __name__ == "__main__":
    # dim must satisfy (dim // 2) % 32 == 0 for GroupNorm(32, dim // 2).
    B, H, W, dim = 2, 16, 16, 64          # x: (2, 256, 64), output (2, 1024, 32)
    key = jax.random.PRNGKey(0)
    kx, kw, kb, kg, kbt = jax.random.split(key, 5)

    x = jax.random.normal(kx, (B, H * W, dim), dtype=jnp.float32)
    Co = dim // 2
    conv_w = 0.02 * jax.random.normal(kw, (Co, dim, 3, 3), dtype=jnp.float32)
    conv_b = 0.02 * jax.random.normal(kb, (Co,), dtype=jnp.float32)
    gn_w = 1.0 + 0.1 * jax.random.normal(kg, (Co,), dtype=jnp.float32)
    gn_b = 0.1 * jax.random.normal(kbt, (Co,), dtype=jnp.float32)

    out = patch_recover_pallas(x, H, W, conv_w, conv_b, gn_w, gn_b,
                               num_groups=groups)
    out = jax.block_until_ready(out)

    ref = _reference(x, H, W, conv_w, conv_b, gn_w, gn_b, num_groups=groups)
    assert out.shape == (B, 4 * H * W, Co), out.shape
    max_err = float(jnp.max(jnp.abs(out - ref.astype(out.dtype))))
    assert jnp.allclose(out, ref.astype(out.dtype), atol=1e-3, rtol=1e-3), max_err

    print("KERNEL_OK")
</pallas_src>

<mosaic_0001>
module attributes {stable_mosaic.version = 11 : i64} {
  func.func @_patch_recover_kernel(%arg0: i32, %arg1: memref<1x18x18x64xf32, #tpu.memory_space<vmem>>, %arg2: memref<4x4x64x32xf32, #tpu.memory_space<vmem>>, %arg3: memref<1x32xf32, #tpu.memory_space<vmem>>, %arg4: memref<1x32xf32, #tpu.memory_space<vmem>>, %arg5: memref<1x32xf32, #tpu.memory_space<vmem>>, %arg6: memref<32x32xf32, #tpu.memory_space<vmem>>, %arg7: memref<1x4x256x32xf32, #tpu.memory_space<vmem>>) attributes {dimension_semantics = [#tpu.dimension_semantics<parallel>], iteration_bounds = array<i64: 2>, scalar_prefetch = 0 : i64, scratch_operands = 0 : i64, tpu.core_type = #tpu.core_type<tc>, window_params = [{transform_indices = @transform_0, window_bounds = array<i64: 1, 18, 18, 64>}, {pipeline_mode = #tpu.pipeline_mode<synchronous>, transform_indices = @transform_1, window_bounds = array<i64: 4, 4, 64, 32>}, {pipeline_mode = #tpu.pipeline_mode<synchronous>, transform_indices = @transform_2, window_bounds = array<i64: 1, 32>}, {pipeline_mode = #tpu.pipeline_mode<synchronous>, transform_indices = @transform_3, window_bounds = array<i64: 1, 32>}, {pipeline_mode = #tpu.pipeline_mode<synchronous>, transform_indices = @transform_4, window_bounds = array<i64: 1, 32>}, {pipeline_mode = #tpu.pipeline_mode<synchronous>, transform_indices = @transform_5, window_bounds = array<i64: 32, 32>}, {transform_indices = @transform_6, window_bounds = array<i64: 1, 4, 256, 32>}]} {
    %c0 = arith.constant 0 : index
    %c0_0 = arith.constant 0 : index
    %c0_1 = arith.constant 0 : index
    %c0_2 = arith.constant 0 : index
    %0 = vector.load %arg1[%c0, %c0_0, %c0_1, %c0_2] : memref<1x18x18x64xf32, #tpu.memory_space<vmem>>, vector<1x18x18x64xf32>
    %1 = vector.shape_cast %0 : vector<1x18x18x64xf32> to vector<18x18x64xf32>
    %2 = vector.extract_strided_slice %1 {offsets = [0, 0, 0], sizes = [16, 16, 64], strides = [1, 1, 1]} : vector<18x18x64xf32> to vector<16x16x64xf32>
    %3 = vector.shape_cast %2 : vector<16x16x64xf32> to vector<256x64xf32>
    %4 = vector.extract_strided_slice %1 {offsets = [0, 1, 0], sizes = [16, 16, 64], strides = [1, 1, 1]} : vector<18x18x64xf32> to vector<16x16x64xf32>
    %5 = vector.shape_cast %4 : vector<16x16x64xf32> to vector<256x64xf32>
    %6 = vector.extract_strided_slice %1 {offsets = [0, 2, 0], sizes = [16, 16, 64], strides = [1, 1, 1]} : vector<18x18x64xf32> to vector<16x16x64xf32>
    %7 = vector.shape_cast %6 : vector<16x16x64xf32> to vector<256x64xf32>
    %8 = vector.extract_strided_slice %1 {offsets = [1, 0, 0], sizes = [16, 16, 64], strides = [1, 1, 1]} : vector<18x18x64xf32> to vector<16x16x64xf32>
    %9 = vector.shape_cast %8 : vector<16x16x64xf32> to vector<256x64xf32>
    %10 = vector.extract_strided_slice %1 {offsets = [1, 1, 0], sizes = [16, 16, 64], strides = [1, 1, 1]} : vector<18x18x64xf32> to vector<16x16x64xf32>
    %11 = vector.shape_cast %10 : vector<16x16x64xf32> to vector<256x64xf32>
    %12 = vector.extract_strided_slice %1 {offsets = [1, 2, 0], sizes = [16, 16, 64], strides = [1, 1, 1]} : vector<18x18x64xf32> to vector<16x16x64xf32>
    %13 = vector.shape_cast %12 : vector<16x16x64xf32> to vector<256x64xf32>
    %14 = vector.extract_strided_slice %1 {offsets = [2, 0, 0], sizes = [16, 16, 64], strides = [1, 1, 1]} : vector<18x18x64xf32> to vector<16x16x64xf32>
    %15 = vector.shape_cast %14 : vector<16x16x64xf32> to vector<256x64xf32>
    %16 = vector.extract_strided_slice %1 {offsets = [2, 1, 0], sizes = [16, 16, 64], strides = [1, 1, 1]} : vector<18x18x64xf32> to vector<16x16x64xf32>
    %17 = vector.shape_cast %16 : vector<16x16x64xf32> to vector<256x64xf32>
    %18 = vector.extract_strided_slice %1 {offsets = [2, 2, 0], sizes = [16, 16, 64], strides = [1, 1, 1]} : vector<18x18x64xf32> to vector<16x16x64xf32>
    %19 = vector.shape_cast %18 : vector<16x16x64xf32> to vector<256x64xf32>
    %c0_3 = arith.constant 0 : index
    %c0_4 = arith.constant 0 : index
    %20 = vector.load %arg3[%c0_3, %c0_4] : memref<1x32xf32, #tpu.memory_space<vmem>>, vector<1x32xf32>
    %cst = arith.constant 0.000000e+00 : f32
    %21 = vector.broadcast %cst : f32 to vector<256x32xf32>
    %c0_5 = arith.constant 0 : index
    %c0_6 = arith.constant 0 : index
    %c0_7 = arith.constant 0 : index
    %c0_8 = arith.constant 0 : index
    %22 = vector.load %arg2[%c0_5, %c0_6, %c0_7, %c0_8] : memref<4x4x64x32xf32, #tpu.memory_space<vmem>>, vector<1x1x64x32xf32>
    %23 = vector.shape_cast %22 : vector<1x1x64x32xf32> to vector<64x32xf32>
    %cst_9 = arith.constant dense<0.000000e+00> : vector<256x32xf32>
    %24 = tpu.matmul %3, %23, %cst_9 {dimension_numbers = #tpu.dot_dimension_numbers<[1], [0], [0], [1], [0, 0, 1, 1], [], []>} : vector<256x64xf32>, vector<64x32xf32>, vector<256x32xf32> -> vector<256x32xf32>
    %25 = arith.addf %21, %24 : vector<256x32xf32>
    %c0_10 = arith.constant 0 : index
    %c1 = arith.constant 1 : index
    %c0_11 = arith.constant 0 : index
    %c0_12 = arith.constant 0 : index
    %26 = vector.load %arg2[%c0_10, %c1, %c0_11, %c0_12] : memref<4x4x64x32xf32, #tpu.memory_space<vmem>>, vector<1x1x64x32xf32>
    %27 = vector.shape_cast %26 : vector<1x1x64x32xf32> to vector<64x32xf32>
    %cst_13 = arith.constant dense<0.000000e+00> : vector<256x32xf32>
    %28 = tpu.matmul %5, %27, %cst_13 {dimension_numbers = #tpu.dot_dimension_numbers<[1], [0], [0], [1], [0, 0, 1, 1], [], []>} : vector<256x64xf32>, vector<64x32xf32>, vector<256x32xf32> -> vector<256x32xf32>
    %29 = arith.addf %25, %28 : vector<256x32xf32>
    %c0_14 = arith.constant 0 : index
    %c2 = arith.constant 2 : index
    %c0_15 = arith.constant 0 : index
    %c0_16 = arith.constant 0 : index
    %30 = vector.load %arg2[%c0_14, %c2, %c0_15, %c0_16] : memref<4x4x64x32xf32, #tpu.memory_space<vmem>>, vector<1x1x64x32xf32>
    %31 = vector.shape_cast %30 : vector<1x1x64x32xf32> to vector<64x32xf32>
    %cst_17 = arith.constant dense<0.000000e+00> : vector<256x32xf32>
    %32 = tpu.matmul %9, %31, %cst_17 {dimension_numbers = #tpu.dot_dimension_numbers<[1], [0], [0], [1], [0, 0, 1, 1], [], []>} : vector<256x64xf32>, vector<64x32xf32>, vector<256x32xf32> -> vector<256x32xf32>
    %33 = arith.addf %29, %32 : vector<256x32xf32>
    %c0_18 = arith.constant 0 : index
    %c3 = arith.constant 3 : index
    %c0_19 = arith.constant 0 : index
    %c0_20 = arith.constant 0 : index
    %34 = vector.load %arg2[%c0_18, %c3, %c0_19, %c0_20] : memref<4x4x64x32xf32, #tpu.memory_space<vmem>>, vector<1x1x64x32xf32>
    %35 = vector.shape_cast %34 : vector<1x1x64x32xf32> to vector<64x32xf32>
    %cst_21 = arith.constant dense<0.000000e+00> : vector<256x32xf32>
    %36 = tpu.matmul %11, %35, %cst_21 {dimension_numbers = #tpu.dot_dimension_numbers<[1], [0], [0], [1], [0, 0, 1, 1], [], []>} : vector<256x64xf32>, vector<64x32xf32>, vector<256x32xf32> -> vector<256x32xf32>
    %37 = arith.addf %33, %36 : vector<256x32xf32>
    %38 = vector.broadcast %20 : vector<1x32xf32> to vector<256x32xf32>
    %39 = arith.addf %37, %38 : vector<256x32xf32>
    %cst_22 = arith.constant 0.000000e+00 : f32
    %40 = vector.broadcast %cst_22 : f32 to vector<256x32xf32>
    %c1_23 = arith.constant 1 : index
    %c0_24 = arith.constant 0 : index
    %c0_25 = arith.constant 0 : index
    %c0_26 = arith.constant 0 : index
    %41 = vector.load %arg2[%c1_23, %c0_24, %c0_25, %c0_26] : memref<4x4x64x32xf32, #tpu.memory_space<vmem>>, vector<1x1x64x32xf32>
    %42 = vector.shape_cast %41 : vector<1x1x64x32xf32> to vector<64x32xf32>
    %cst_27 = arith.constant dense<0.000000e+00> : vector<256x32xf32>
    %43 = tpu.matmul %5, %42, %cst_27 {dimension_numbers = #tpu.dot_dimension_numbers<[1], [0], [0], [1], [0, 0, 1, 1], [], []>} : vector<256x64xf32>, vector<64x32xf32>, vector<256x32xf32> -> vector<256x32xf32>
    %44 = arith.addf %40, %43 : vector<256x32xf32>
    %c1_28 = arith.constant 1 : index
    %c1_29 = arith.constant 1 : index
    %c0_30 = arith.constant 0 : index
    %c0_31 = arith.constant 0 : index
    %45 = vector.load %arg2[%c1_28, %c1_29, %c0_30, %c0_31] : memref<4x4x64x32xf32, #tpu.memory_space<vmem>>, vector<1x1x64x32xf32>
    %46 = vector.shape_cast %45 : vector<1x1x64x32xf32> to vector<64x32xf32>
    %cst_32 = arith.constant dense<0.000000e+00> : vector<256x32xf32>
    %47 = tpu.matmul %7, %46, %cst_32 {dimension_numbers = #tpu.dot_dimension_numbers<[1], [0], [0], [1], [0, 0, 1, 1], [], []>} : vector<256x64xf32>, vector<64x32xf32>, vector<256x32xf32> -> vector<256x32xf32>
    %48 = arith.addf %44, %47 : vector<256x32xf32>
    %c1_33 = arith.constant 1 : index
    %c2_34 = arith.constant 2 : index
    %c0_35 = arith.constant 0 : index
    %c0_36 = arith.constant 0 : index
    %49 = vector.load %arg2[%c1_33, %c2_34, %c0_35, %c0_36] : memref<4x4x64x32xf32, #tpu.memory_space<vmem>>, vector<1x1x64x32xf32>
    %50 = vector.shape_cast %49 : vector<1x1x64x32xf32> to vector<64x32xf32>
    %cst_37 = arith.constant dense<0.000000e+00> : vector<256x32xf32>
    %51 = tpu.matmul %11, %50, %cst_37 {dimension_numbers = #tpu.dot_dimension_numbers<[1], [0], [0], [1], [0, 0, 1, 1], [], []>} : vector<256x64xf32>, vector<64x32xf32>, vector<256x32xf32> -> vector<256x32xf32>
    %52 = arith.addf %48, %51 : vector<256x32xf32>
    %c1_38 = arith.constant 1 : index
    %c3_39 = arith.constant 3 : index
    %c0_40 = arith.constant 0 : index
    %c0_41 = arith.constant 0 : index
    %53 = vector.load %arg2[%c1_38, %c3_39, %c0_40, %c0_41] : memref<4x4x64x32xf32, #tpu.memory_space<vmem>>, vector<1x1x64x32xf32>
    %54 = vector.shape_cast %53 : vector<1x1x64x32xf32> to vector<64x32xf32>
    %cst_42 = arith.constant dense<0.000000e+00> : vector<256x32xf32>
    %55 = tpu.matmul %13, %54, %cst_42 {dimension_numbers = #tpu.dot_dimension_numbers<[1], [0], [0], [1], [0, 0, 1, 1], [], []>} : vector<256x64xf32>, vector<64x32xf32>, vector<256x32xf32> -> vector<256x32xf32>
    %56 = arith.addf %52, %55 : vector<256x32xf32>
    %57 = vector.broadcast %20 : vector<1x32xf32> to vector<256x32xf32>
    %58 = arith.addf %56, %57 : vector<256x32xf32>
    %cst_43 = arith.constant 0.000000e+00 : f32
    %59 = vector.broadcast %cst_43 : f32 to vector<256x32xf32>
    %c2_44 = arith.constant 2 : index
    %c0_45 = arith.constant 0 : index
    %c0_46 = arith.constant 0 : index
    %c0_47 = arith.constant 0 : index
    %60 = vector.load %arg2[%c2_44, %c0_45, %c0_46, %c0_47] : memref<4x4x64x32xf32, #tpu.memory_space<vmem>>, vector<1x1x64x32xf32>
    %61 = vector.shape_cast %60 : vector<1x1x64x32xf32> to vector<64x32xf32>
    %cst_48 = arith.constant dense<0.000000e+00> : vector<256x32xf32>
    %62 = tpu.matmul %9, %61, %cst_48 {dimension_numbers = #tpu.dot_dimension_numbers<[1], [0], [0], [1], [0, 0, 1, 1], [], []>} : vector<256x64xf32>, vector<64x32xf32>, vector<256x32xf32> -> vector<256x32xf32>
    %63 = arith.addf %59, %62 : vector<256x32xf32>
    %c2_49 = arith.constant 2 : index
    %c1_50 = arith.constant 1 : index
    %c0_51 = arith.constant 0 : index
    %c0_52 = arith.constant 0 : index
    %64 = vector.load %arg2[%c2_49, %c1_50, %c0_51, %c0_52] : memref<4x4x64x32xf32, #tpu.memory_space<vmem>>, vector<1x1x64x32xf32>
    %65 = vector.shape_cast %64 : vector<1x1x64x32xf32> to vector<64x32xf32>
    %cst_53 = arith.constant dense<0.000000e+00> : vector<256x32xf32>
    %66 = tpu.matmul %11, %65, %cst_53 {dimension_numbers = #tpu.dot_dimension_numbers<[1], [0], [0], [1], [0, 0, 1, 1], [], []>} : vector<256x64xf32>, vector<64x32xf32>, vector<256x32xf32> -> vector<256x32xf32>
    %67 = arith.addf %63, %66 : vector<256x32xf32>
    %c2_54 = arith.constant 2 : index
    %c2_55 = arith.constant 2 : index
    %c0_56 = arith.constant 0 : index
    %c0_57 = arith.constant 0 : index
    %68 = vector.load %arg2[%c2_54, %c2_55, %c0_56, %c0_57] : memref<4x4x64x32xf32, #tpu.memory_space<vmem>>, vector<1x1x64x32xf32>
    %69 = vector.shape_cast %68 : vector<1x1x64x32xf32> to vector<64x32xf32>
    %cst_58 = arith.constant dense<0.000000e+00> : vector<256x32xf32>
    %70 = tpu.matmul %15, %69, %cst_58 {dimension_numbers = #tpu.dot_dimension_numbers<[1], [0], [0], [1], [0, 0, 1, 1], [], []>} : vector<256x64xf32>, vector<64x32xf32>, vector<256x32xf32> -> vector<256x32xf32>
    %71 = arith.addf %67, %70 : vector<256x32xf32>
    %c2_59 = arith.constant 2 : index
    %c3_60 = arith.constant 3 : index
    %c0_61 = arith.constant 0 : index
    %c0_62 = arith.constant 0 : index
    %72 = vector.load %arg2[%c2_59, %c3_60, %c0_61, %c0_62] : memref<4x4x64x32xf32, #tpu.memory_space<vmem>>, vector<1x1x64x32xf32>
    %73 = vector.shape_cast %72 : vector<1x1x64x32xf32> to vector<64x32xf32>
    %cst_63 = arith.constant dense<0.000000e+00> : vector<256x32xf32>
    %74 = tpu.matmul %17, %73, %cst_63 {dimension_numbers = #tpu.dot_dimension_numbers<[1], [0], [0], [1], [0, 0, 1, 1], [], []>} : vector<256x64xf32>, vector<64x32xf32>, vector<256x32xf32> -> vector<256x32xf32>
    %75 = arith.addf %71, %74 : vector<256x32xf32>
    %76 = vector.broadcast %20 : vector<1x32xf32> to vector<256x32xf32>
    %77 = arith.addf %75, %76 : vector<256x32xf32>
    %cst_64 = arith.constant 0.000000e+00 : f32
    %78 = vector.broadcast %cst_64 : f32 to vector<256x32xf32>
    %c3_65 = arith.constant 3 : index
    %c0_66 = arith.constant 0 : index
    %c0_67 = arith.constant 0 : index
    %c0_68 = arith.constant 0 : index
    %79 = vector.load %arg2[%c3_65, %c0_66, %c0_67, %c0_68] : memref<4x4x64x32xf32, #tpu.memory_space<vmem>>, vector<1x1x64x32xf32>
    %80 = vector.shape_cast %79 : vector<1x1x64x32xf32> to vector<64x32xf32>
    %cst_69 = arith.constant dense<0.000000e+00> : vector<256x32xf32>
    %81 = tpu.matmul %11, %80, %cst_69 {dimension_numbers = #tpu.dot_dimension_numbers<[1], [0], [0], [1], [0, 0, 1, 1], [], []>} : vector<256x64xf32>, vector<64x32xf32>, vector<256x32xf32> -> vector<256x32xf32>
    %82 = arith.addf %78, %81 : vector<256x32xf32>
    %c3_70 = arith.constant 3 : index
    %c1_71 = arith.constant 1 : index
    %c0_72 = arith.constant 0 : index
    %c0_73 = arith.constant 0 : index
    %83 = vector.load %arg2[%c3_70, %c1_71, %c0_72, %c0_73] : memref<4x4x64x32xf32, #tpu.memory_space<vmem>>, vector<1x1x64x32xf32>
    %84 = vector.shape_cast %83 : vector<1x1x64x32xf32> to vector<64x32xf32>
    %cst_74 = arith.constant dense<0.000000e+00> : vector<256x32xf32>
    %85 = tpu.matmul %13, %84, %cst_74 {dimension_numbers = #tpu.dot_dimension_numbers<[1], [0], [0], [1], [0, 0, 1, 1], [], []>} : vector<256x64xf32>, vector<64x32xf32>, vector<256x32xf32> -> vector<256x32xf32>
    %86 = arith.addf %82, %85 : vector<256x32xf32>
    %c3_75 = arith.constant 3 : index
    %c2_76 = arith.constant 2 : index
    %c0_77 = arith.constant 0 : index
    %c0_78 = arith.constant 0 : index
    %87 = vector.load %arg2[%c3_75, %c2_76, %c0_77, %c0_78] : memref<4x4x64x32xf32, #tpu.memory_space<vmem>>, vector<1x1x64x32xf32>
    %88 = vector.shape_cast %87 : vector<1x1x64x32xf32> to vector<64x32xf32>
    %cst_79 = arith.constant dense<0.000000e+00> : vector<256x32xf32>
    %89 = tpu.matmul %17, %88, %cst_79 {dimension_numbers = #tpu.dot_dimension_numbers<[1], [0], [0], [1], [0, 0, 1, 1], [], []>} : vector<256x64xf32>, vector<64x32xf32>, vector<256x32xf32> -> vector<256x32xf32>
    %90 = arith.addf %86, %89 : vector<256x32xf32>
    %c3_80 = arith.constant 3 : index
    %c3_81 = arith.constant 3 : index
    %c0_82 = arith.constant 0 : index
    %c0_83 = arith.constant 0 : index
    %91 = vector.load %arg2[%c3_80, %c3_81, %c0_82, %c0_83] : memref<4x4x64x32xf32, #tpu.memory_space<vmem>>, vector<1x1x64x32xf32>
    %92 = vector.shape_cast %91 : vector<1x1x64x32xf32> to vector<64x32xf32>
    %cst_84 = arith.constant dense<0.000000e+00> : vector<256x32xf32>
    %93 = tpu.matmul %19, %92, %cst_84 {dimension_numbers = #tpu.dot_dimension_numbers<[1], [0], [0], [1], [0, 0, 1, 1], [], []>} : vector<256x64xf32>, vector<64x32xf32>, vector<256x32xf32> -> vector<256x32xf32>
    %94 = arith.addf %90, %93 : vector<256x32xf32>
    %95 = vector.broadcast %20 : vector<1x32xf32> to vector<256x32xf32>
    %96 = arith.addf %94, %95 : vector<256x32xf32>
    %cst_85 = arith.constant dense<0.000000e+00> : vector<32xf32>
    %97 = vector.multi_reduction <add>, %39, %cst_85 [0] : vector<256x32xf32> to vector<32xf32>
    %98 = vector.shape_cast %97 : vector<32xf32> to vector<1x32xf32>
    %99 = arith.mulf %39, %39 : vector<256x32xf32>
    %cst_86 = arith.constant dense<0.000000e+00> : vector<32xf32>
    %100 = vector.multi_reduction <add>, %99, %cst_86 [0] : vector<256x32xf32> to vector<32xf32>
    %101 = vector.shape_cast %100 : vector<32xf32> to vector<1x32xf32>
    %cst_87 = arith.constant dense<0.000000e+00> : vector<32xf32>
    %102 = vector.multi_reduction <add>, %58, %cst_87 [0] : vector<256x32xf32> to vector<32xf32>
    %103 = vector.shape_cast %102 : vector<32xf32> to vector<1x32xf32>
    %104 = arith.addf %98, %103 : vector<1x32xf32>
    %105 = arith.mulf %58, %58 : vector<256x32xf32>
    %cst_88 = arith.constant dense<0.000000e+00> : vector<32xf32>
    %106 = vector.multi_reduction <add>, %105, %cst_88 [0] : vector<256x32xf32> to vector<32xf32>
    %107 = vector.shape_cast %106 : vector<32xf32> to vector<1x32xf32>
    %108 = arith.addf %101, %107 : vector<1x32xf32>
    %cst_89 = arith.constant dense<0.000000e+00> : vector<32xf32>
    %109 = vector.multi_reduction <add>, %77, %cst_89 [0] : vector<256x32xf32> to vector<32xf32>
    %110 = vector.shape_cast %109 : vector<32xf32> to vector<1x32xf32>
    %111 = arith.addf %104, %110 : vector<1x32xf32>
    %112 = arith.mulf %77, %77 : vector<256x32xf32>
    %cst_90 = arith.constant dense<0.000000e+00> : vector<32xf32>
    %113 = vector.multi_reduction <add>, %112, %cst_90 [0] : vector<256x32xf32> to vector<32xf32>
    %114 = vector.shape_cast %113 : vector<32xf32> to vector<1x32xf32>
    %115 = arith.addf %108, %114 : vector<1x32xf32>
    %cst_91 = arith.constant dense<0.000000e+00> : vector<32xf32>
    %116 = vector.multi_reduction <add>, %96, %cst_91 [0] : vector<256x32xf32> to vector<32xf32>
    %117 = vector.shape_cast %116 : vector<32xf32> to vector<1x32xf32>
    %118 = arith.addf %111, %117 : vector<1x32xf32>
    %119 = arith.mulf %96, %96 : vector<256x32xf32>
    %cst_92 = arith.constant dense<0.000000e+00> : vector<32xf32>
    %120 = vector.multi_reduction <add>, %119, %cst_92 [0] : vector<256x32xf32> to vector<32xf32>
    %121 = vector.shape_cast %120 : vector<32xf32> to vector<1x32xf32>
    %122 = arith.addf %115, %121 : vector<1x32xf32>
    %c0_93 = arith.constant 0 : index
    %c0_94 = arith.constant 0 : index
    %123 = vector.load %arg6[%c0_93, %c0_94] : memref<32x32xf32, #tpu.memory_space<vmem>>, vector<32x32xf32>
    %cst_95 = arith.constant dense<0.000000e+00> : vector<1x32xf32>
    %124 = tpu.matmul %118, %123, %cst_95 {dimension_numbers = #tpu.dot_dimension_numbers<[1], [0], [0], [1], [0, 0, 1, 1], [], []>} : vector<1x32xf32>, vector<32x32xf32>, vector<1x32xf32> -> vector<1x32xf32>
    %cst_96 = arith.constant dense<0.000000e+00> : vector<1x32xf32>
    %125 = tpu.matmul %122, %123, %cst_96 {dimension_numbers = #tpu.dot_dimension_numbers<[1], [0], [0], [1], [0, 0, 1, 1], [], []>} : vector<1x32xf32>, vector<32x32xf32>, vector<1x32xf32> -> vector<1x32xf32>
    %cst_97 = arith.constant 1.024000e+03 : f32
    %126 = vector.broadcast %cst_97 : f32 to vector<1x32xf32>
    %127 = arith.divf %124, %126 : vector<1x32xf32>
    %cst_98 = arith.constant 1.024000e+03 : f32
    %128 = vector.broadcast %cst_98 : f32 to vector<1x32xf32>
    %129 = arith.divf %125, %128 : vector<1x32xf32>
    %130 = arith.mulf %127, %127 : vector<1x32xf32>
    %131 = arith.subf %129, %130 : vector<1x32xf32>
    %c0_99 = arith.constant 0 : index
    %c0_100 = arith.constant 0 : index
    %132 = vector.load %arg4[%c0_99, %c0_100] : memref<1x32xf32, #tpu.memory_space<vmem>>, vector<1x32xf32>
    %cst_101 = arith.constant 9.99999974E-6 : f32
    %133 = vector.broadcast %cst_101 : f32 to vector<1x32xf32>
    %134 = arith.addf %131, %133 : vector<1x32xf32>
    %135 = math.rsqrt %134 : vector<1x32xf32>
    %136 = arith.mulf %132, %135 : vector<1x32xf32>
    %c0_102 = arith.constant 0 : index
    %c0_103 = arith.constant 0 : index
    %137 = vector.load %arg5[%c0_102, %c0_103] : memref<1x32xf32, #tpu.memory_space<vmem>>, vector<1x32xf32>
    %138 = arith.mulf %127, %136 : vector<1x32xf32>
    %139 = arith.subf %137, %138 : vector<1x32xf32>
    %140 = vector.broadcast %136 : vector<1x32xf32> to vector<256x32xf32>
    %141 = arith.mulf %39, %140 : vector<256x32xf32>
    %142 = vector.broadcast %139 : vector<1x32xf32> to vector<256x32xf32>
    %143 = arith.addf %141, %142 : vector<256x32xf32>
    %cst_104 = arith.constant 0.000000e+00 : f32
    %144 = vector.broadcast %cst_104 : f32 to vector<256x32xf32>
    %145 = arith.maximumf %143, %144 : vector<256x32xf32>
    %c0_105 = arith.constant 0 : index
    %c0_106 = arith.constant 0 : index
    %c0_107 = arith.constant 0 : index
    %c0_108 = arith.constant 0 : index
    %146 = vector.load %arg7[%c0_105, %c0_106, %c0_107, %c0_108] : memref<1x4x256x32xf32, #tpu.memory_space<vmem>>, vector<1x1x256x32xf32>
    %147 = vector.shape_cast %146 : vector<1x1x256x32xf32> to vector<256x32xf32>
    %148 = vector.shape_cast %145 : vector<256x32xf32> to vector<1x1x256x32xf32>
    tpu.vector_store %arg7[%c0_105, %c0_106, %c0_107, %c0_108], %148 {strides = array<i32>} : memref<1x4x256x32xf32, #tpu.memory_space<vmem>>, vector<1x1x256x32xf32>,
    %149 = vector.broadcast %136 : vector<1x32xf32> to vector<256x32xf32>
    %150 = arith.mulf %58, %149 : vector<256x32xf32>
    %151 = vector.broadcast %139 : vector<1x32xf32> to vector<256x32xf32>
    %152 = arith.addf %150, %151 : vector<256x32xf32>
    %cst_109 = arith.constant 0.000000e+00 : f32
    %153 = vector.broadcast %cst_109 : f32 to vector<256x32xf32>
    %154 = arith.maximumf %152, %153 : vector<256x32xf32>
    %c0_110 = arith.constant 0 : index
    %c1_111 = arith.constant 1 : index
    %c0_112 = arith.constant 0 : index
    %c0_113 = arith.constant 0 : index
    %155 = vector.load %arg7[%c0_110, %c1_111, %c0_112, %c0_113] : memref<1x4x256x32xf32, #tpu.memory_space<vmem>>, vector<1x1x256x32xf32>
    %156 = vector.shape_cast %155 : vector<1x1x256x32xf32> to vector<256x32xf32>
    %157 = vector.shape_cast %154 : vector<256x32xf32> to vector<1x1x256x32xf32>
    tpu.vector_store %arg7[%c0_110, %c1_111, %c0_112, %c0_113], %157 {strides = array<i32>} : memref<1x4x256x32xf32, #tpu.memory_space<vmem>>, vector<1x1x256x32xf32>,
    %158 = vector.broadcast %136 : vector<1x32xf32> to vector<256x32xf32>
    %159 = arith.mulf %77, %158 : vector<256x32xf32>
    %160 = vector.broadcast %139 : vector<1x32xf32> to vector<256x32xf32>
    %161 = arith.addf %159, %160 : vector<256x32xf32>
    %cst_114 = arith.constant 0.000000e+00 : f32
    %162 = vector.broadcast %cst_114 : f32 to vector<256x32xf32>
    %163 = arith.maximumf %161, %162 : vector<256x32xf32>
    %c0_115 = arith.constant 0 : index
    %c2_116 = arith.constant 2 : index
    %c0_117 = arith.constant 0 : index
    %c0_118 = arith.constant 0 : index
    %164 = vector.load %arg7[%c0_115, %c2_116, %c0_117, %c0_118] : memref<1x4x256x32xf32, #tpu.memory_space<vmem>>, vector<1x1x256x32xf32>
    %165 = vector.shape_cast %164 : vector<1x1x256x32xf32> to vector<256x32xf32>
    %166 = vector.shape_cast %163 : vector<256x32xf32> to vector<1x1x256x32xf32>
    tpu.vector_store %arg7[%c0_115, %c2_116, %c0_117, %c0_118], %166 {strides = array<i32>} : memref<1x4x256x32xf32, #tpu.memory_space<vmem>>, vector<1x1x256x32xf32>,
    %167 = vector.broadcast %136 : vector<1x32xf32> to vector<256x32xf32>
    %168 = arith.mulf %96, %167 : vector<256x32xf32>
    %169 = vector.broadcast %139 : vector<1x32xf32> to vector<256x32xf32>
    %170 = arith.addf %168, %169 : vector<256x32xf32>
    %cst_119 = arith.constant 0.000000e+00 : f32
    %171 = vector.broadcast %cst_119 : f32 to vector<256x32xf32>
    %172 = arith.maximumf %170, %171 : vector<256x32xf32>
    %c0_120 = arith.constant 0 : index
    %c3_121 = arith.constant 3 : index
    %c0_122 = arith.constant 0 : index
    %c0_123 = arith.constant 0 : index
    %173 = vector.load %arg7[%c0_120, %c3_121, %c0_122, %c0_123] : memref<1x4x256x32xf32, #tpu.memory_space<vmem>>, vector<1x1x256x32xf32>
    %174 = vector.shape_cast %173 : vector<1x1x256x32xf32> to vector<256x32xf32>
    %175 = vector.shape_cast %172 : vector<256x32xf32> to vector<1x1x256x32xf32>
    tpu.vector_store %arg7[%c0_120, %c3_121, %c0_122, %c0_123], %175 {strides = array<i32>} : memref<1x4x256x32xf32, #tpu.memory_space<vmem>>, vector<1x1x256x32xf32>,
    return
  }
  func.func @transform_0(%arg0: i32) -> (i32, i32, i32, i32) {
    %c0_i32 = arith.constant 0 : i32
    %c0_i32_0 = arith.constant 0 : i32
    %c0_i32_1 = arith.constant 0 : i32
    %c0_i32_2 = arith.constant 0 : i32
    return %arg0, %c0_i32, %c0_i32_0, %c0_i32_1 : i32, i32, i32, i32
  }
  func.func @transform_1(%arg0: i32) -> (i32, i32, i32, i32) {
    %c0_i32 = arith.constant 0 : i32
    %c0_i32_0 = arith.constant 0 : i32
    %c0_i32_1 = arith.constant 0 : i32
    %c0_i32_2 = arith.constant 0 : i32
    %c0_i32_3 = arith.constant 0 : i32
    return %c0_i32, %c0_i32_0, %c0_i32_1, %c0_i32_2 : i32, i32, i32, i32
  }
  func.func @transform_2(%arg0: i32) -> (i32, i32) {
    %c0_i32 = arith.constant 0 : i32
    %c0_i32_0 = arith.constant 0 : i32
    %c0_i32_1 = arith.constant 0 : i32
    return %c0_i32, %c0_i32_0 : i32, i32
  }
  func.func @transform_3(%arg0: i32) -> (i32, i32) {
    %c0_i32 = arith.constant 0 : i32
    %c0_i32_0 = arith.constant 0 : i32
    %c0_i32_1 = arith.constant 0 : i32
    return %c0_i32, %c0_i32_0 : i32, i32
  }
  func.func @transform_4(%arg0: i32) -> (i32, i32) {
    %c0_i32 = arith.constant 0 : i32
    %c0_i32_0 = arith.constant 0 : i32
    %c0_i32_1 = arith.constant 0 : i32
    return %c0_i32, %c0_i32_0 : i32, i32
  }
  func.func @transform_5(%arg0: i32) -> (i32, i32) {
    %c0_i32 = arith.constant 0 : i32
    %c0_i32_0 = arith.constant 0 : i32
    %c0_i32_1 = arith.constant 0 : i32
    return %c0_i32, %c0_i32_0 : i32, i32
  }
  func.func @transform_6(%arg0: i32) -> (i32, i32, i32, i32) {
    %c0_i32 = arith.constant 0 : i32
    %c0_i32_0 = arith.constant 0 : i32
    %c0_i32_1 = arith.constant 0 : i32
    %c0_i32_2 = arith.constant 0 : i32
    return %arg0, %c0_i32, %c0_i32_0, %c0_i32_1 : i32, i32, i32, i32
  }
}

</mosaic_0001>

<bundles_post_ra>
// kernel: tpu_custom_call.1
= control target key start
LH: loop header
LB: loop body
LE: loop exit
PB: predicated region body
PF: predicated region fallthrough
CT: control target
= control target key end

     0   :  { %s5281_s21 = smov 0   ;;  %s9336_s0 = inlined_call_operand.vmem [shape: f32[2,18,18,64], index: 0, kind: input, shape index: {}]   ;;  %s9337_s1 = inlined_call_operand.vmem [shape: f32[4,4,64,32], index: 1, kind: input, shape index: {}]   ;;  %s9338_s2 = inlined_call_operand.vmem [shape: f32[1,32], index: 2, kind: input, shape index: {}]   ;;  %s9339_s3 = inlined_call_operand.vmem [shape: f32[1,32], index: 3, kind: input, shape index: {}]   ;;  %s9340_s4 = inlined_call_operand.vmem [shape: f32[1,32], index: 4, kind: input, shape index: {}]   ;;  %s9341_s5 = inlined_call_operand.vmem [shape: f32[32,32], index: 5, kind: input, shape index: {}]   ;;  %s9342_s6 = inlined_call_operand.vmem [shape: f32[2,4,256,32], index: 6, kind: output, shape index: {}]  }
   0x1 LB: > { %s4438_s22 = sadd.s32 4294967295, %s5243_s21   ;;  %p4442_p0 = scmp.ge.s32.totalorder %s5243_s21, 1  ;;  %s5243_s21 = sphi %s5281_s21, %s16_s21  }
   0x2   : > { %p212_p1 = scmp.lt.s32.totalorder %s5243_s21, 3 }
   0x4   : > { %p213_p2 = pnand %p4442_p0, %p212_p1 }
   0x6   : > { %216 = sbr.rel (%p213_p2) target bundleno = 1491 (0x5d3), region = 44 }
   0xb   : > { %v4525_v0 = vld [vmem:[%s9337_s1 + $0xb8] sm:$0xff]  ;;  %v4524_v1 = vld [vmem:[%s9337_s1 + $0xb0] sm:$0xff]  ;;  %p242_p3 = scmp.lt.s32.totalorder %s4438_s22, 1  ;;  %v4523_v5 = vld [vmem:[%s9337_s1 + $0xa8] sm:$0xff]  ;;  %vm354_vm0 = vcmask 1046528   ;;  %vm560_vm1 = vcmask 523264  }
   0xc   : > { %v4565_v2 = vld [vmem:[%s9337_s1 + $0xf8] sm:$0xff]  ;;  %936 = vmatpush.msra.mxu2 %v4525_v0  ;;  %v4564_v6 = vld [vmem:[%s9337_s1 + $0xf0] sm:$0xff]  ;;  %v4563_v9 = vld [vmem:[%s9337_s1 + $0xe8] sm:$0xff]  ;;  %vm435_vm2 = vcmask 1045504   ;;  %vm3098_vm3 = vcmask 261120  }
   0xd   : > { %1094 = vmatpush.msra.mxu3 %v4565_v2  ;;  %v4453_v3 = vld [vmem:[%s9337_s1 + $0x78] sm:$0xff]  ;;  %v4452_v7 = vld [vmem:[%s9337_s1 + $0x70] sm:$0xff]  ;;  %s10004_s22 = smov (!%p242_p3, %s4438_s22), 1  ;;  %v4451_v10 = vld [vmem:[%s9337_s1 + $0x68] sm:$0xff] }
   0xe   : > { %v550_v4 = vld [vmem:[%s9337_s1 + $0x38] sm:$0xff]  ;;  %633 = vmatpush.msra.mxu0 %v4453_v3  ;;  %v549_v8 = vld [vmem:[%s9337_s1 + $0x30] sm:$0xff]  ;;  %937 = vmatpush.msra.mxu2 %v4524_v1  ;;  %v4522_v11 = vld [vmem:[%s9337_s1 + $0xa0] sm:$0xff]  ;;  %s5179_s29 = smul.u32 432, %s10004_s22  ;;  %s5178_s25 = sshll.u32 %s10004_s22, 10 }
   0xf   : > { %810 = vmatpush.msra.mxu1 %v550_v4  ;;  %1095 = vmatpush.msra.mxu3 %v4564_v6  ;;  %v548_v12 = vld [vmem:[%s9337_s1 + $0x28] sm:$0xff]  ;;  %v4562_v13 = vld [vmem:[%s9337_s1 + $0xe0] sm:$0xff]  ;;  %v4521_v16 = vld [vmem:[%s9337_s1 + $0x98] sm:$0xff]  ;;  %s8710_s27 = scalar_lea.vmem %s9342_s6, %s5178_s25 }
  0x10   : > { %634 = vmatpush.msra.mxu0 %v4452_v7  ;;  %938 = vmatpush.msra.mxu2 %v4523_v5  ;;  %v4450_v14 = vld [vmem:[%s9337_s1 + $0x60] sm:$0xff]  ;;  %v4561_v17 = vld [vmem:[%s9337_s1 + $0xd8] sm:$0xff]  ;;  %s5349_s16 = scalar_lea.vmem %s9336_s0, %s5179_s29  ;;  %v4520_v20 = vld [vmem:[%s9337_s1 + $0x90] sm:$0xff] }
  0x11   : > { %811 = vmatpush.msra.mxu1 %v549_v8  ;;  %1096 = vmatpush.msra.mxu3 %v4563_v9  ;;  %v547_v15 = vld [vmem:[%s9337_s1 + $0x20] sm:$0xff]  ;;  %v4449_v18 = vld [vmem:[%s9337_s1 + $0x58] sm:$0xff]  ;;  %v4560_v21 = vld [vmem:[%s9337_s1 + $0xd0] sm:$0xff] }
  0x12   : > { %635 = vmatpush.msra.mxu0 %v4451_v10  ;;  %939 = vmatpush.msra.mxu2 %v4522_v11  ;;  %v546_v19 = vld [vmem:[%s9337_s1 + $0x18] sm:$0xff]  ;;  %v4448_v22 = vld [vmem:[%s9337_s1 + $0x50] sm:$0xff]  ;;  %v4519_v25 = vld [vmem:[%s9337_s1 + $0x88] sm:$0xff] }
  0x13   : > { %812 = vmatpush.msra.mxu1 %v548_v12  ;;  %1097 = vmatpush.msra.mxu3 %v4562_v13  ;;  %v545_v23 = vld [vmem:[%s9337_s1 + $0x10] sm:$0xff]  ;;  %v5370_v24 = vld [vmem:[%s5349_s16 + $0x18] sm:$0xff]  ;;  %v4559_v26 = vld [vmem:[%s9337_s1 + $0xc8] sm:$0xff] }
  0x14   : > { %636 = vmatpush.msra.mxu0 %v4450_v14  ;;  %940 = vmatpush.msra.mxu2 %v4521_v16  ;;  %v360_v27 = vrot.slane %v5370_v24, 1  ;;  %v5380_v28 = vld [vmem:[%s5349_s16 + $0x20] sm:$0xff]  ;;  %v4447_v30 = vld [vmem:[%s9337_s1 + $0x48] sm:$0xff]  ;;  %v4685_v39 = vld [vmem:[%s9337_s1 + $0x1b8] sm:$0xff] }
  0x15   : > { %813 = vmatpush.msra.mxu1 %v547_v15  ;;  %1098 = vmatpush.msra.mxu3 %v4561_v17  ;;  %v4518_v29 = vld [vmem:[%s9337_s1 + $0x80] sm:$0xff]  ;;  %v544_v31 = vld [vmem:[%s9337_s1 + $0x8] sm:$0xff]  ;;  %v361_v32 = vrot.slane %v5380_v28, 1  ;;  %v4725_v40 = vld [vmem:[%s9337_s1 + $0x1f8] sm:$0xff] }
  0x16   : > { %637 = vmatpush.msra.mxu0 %v4449_v18  ;;  %941 = vmatpush.msra.mxu2 %v4520_v20  ;;  %v4558_v33 = vld [vmem:[%s9337_s1 + $0xc0] sm:$0xff]  ;;  %v5399_v35 = vld [vmem:[%s5349_s16 + $0x8] sm:$0xff]  ;;  %v4613_v45 = vld [vmem:[%s9337_s1 + $0x178] sm:$0xff] }
  0x17   : > { %814 = vmatpush.msra.mxu1 %v546_v19  ;;  %1099 = vmatpush.msra.mxu3 %v4560_v21  ;;  %v5396_v34 = vld [vmem:[%s5349_s16] sm:$0xff]  ;;  %v5402_v36 = vsel %vm354_vm0, %v360_v27, %v361_v32  ;;  %v356_v38 = vrot.slane %v5399_v35, 1  ;;  %v5413_v41 = vld [vmem:[%s5349_s16 + $0x28] sm:$0x3]  ;;  %v4605_v46 = vld [vmem:[%s9337_s1 + $0x138] sm:$0xff] }
  0x18   : > { %638 = vmatpush.msra.mxu0 %v4448_v22  ;;  %942 = vmatpush.msra.mxu2 %v4519_v25  ;;  %v355_v37 = vrot.slane %v5396_v34, 1  ;;  %v4446_v42 = vld [vmem:[%s9337_s1 + $0x40] sm:$0xff]  ;;  %v363_v47 = vrot.slane %v5413_v41, 1  ;;  %v5436_v48 = vld [vmem:[%s5349_s16 + $0x10] sm:$0x3]  ;;  %v5462_v56 = vld [vmem:[%s5349_s16 + $0x38] sm:$0xff] }
  0x19   : > { %815 = vmatpush.msra.mxu1 %v545_v23  ;;  %1100 = vmatpush.msra.mxu3 %v4559_v26  ;;  %v543_v43 = vld [vmem:[%s9337_s1] sm:$0xff]  ;;  %v4684_v49 = vld [vmem:[%s9337_s1 + $0x1b0] sm:$0xff]  ;;  %v358_v53 = vrot.slane %v5436_v48, 1  ;;  %v366_v59 = vrot.slane %v5462_v56, 1  ;;  %v5496_v0 = vld [vmem:[%s5349_s16 + $0x48] sm:$0xff] }
  0x1a   : > { %639 = vmatpush.msra.mxu0 %v4447_v30  ;;  %943 = vmatpush.msra.mxu2 %v4518_v29  ;;  %v5426_v44 = vsel %vm354_vm0, %v355_v37, %v356_v38  ;;  %v4724_v50 = vld [vmem:[%s9337_s1 + $0x1f0] sm:$0xff]  ;;  %v5456_v54 = vsel %vm354_vm0, %v361_v32, %v363_v47  ;;  %v5481_v61 = vld [vmem:[%s5349_s16 + $0x40] sm:$0x3]  ;;  %v370_v2 = vrot.slane %v5496_v0, 1  ;;  %v5515_v5 = vld [vmem:[%s5349_s16 + $0x58] sm:$0x3] }
  0x1b   : > { %816 = vmatpush.msra.mxu1 %v544_v31  ;;  %1101 = vmatpush.msra.mxu3 %v4558_v33  ;;  %v4612_v51 = vld [vmem:[%s9337_s1 + $0x170] sm:$0xff]  ;;  %v5469_v57 = vsel %vm354_vm0, %v356_v38, %v358_v53  ;;  %v368_v62 = vrot.slane %v5481_v61, 1  ;;  %v4683_v6 = vld [vmem:[%s9337_s1 + $0x1a8] sm:$0xff]  ;;  %v373_v8 = vrot.slane %v5515_v5, 1  ;;  %v5542_v12 = vld [vmem:[%s5349_s16 + $0x60] sm:$0xff] }
  0x1c   : > { %4526 = vmatmul.msk.f32.vlgmr.msra.gmra.mxu2 %vm560_vm1, %v5370_v24  ;;  %4566 = vmatmul.msk.f32.vlgmr.msra.gmra.mxu3 %vm560_vm1, %v5402_v36  ;;  %v4604_v52 = vld [vmem:[%s9337_s1 + $0x130] sm:$0xff]  ;;  %v4723_v7 = vld [vmem:[%s9337_s1 + $0x1e8] sm:$0xff]  ;;  %v375_v14 = vrot.slane %v5542_v12, 1  ;;  %v5576_v20 = vld [vmem:[%s5349_s16 + $0x78] sm:$0xff] }
  0x1d   : > { %1591 = vmatpush.msrb.mxu2 %v4685_v39  ;;  %1749 = vmatpush.msrb.mxu3 %v4725_v40  ;;  %v5459_v55 = vld [vmem:[%s5349_s16 + $0x30] sm:$0xff]  ;;  %v5493_v63 = vsel %vm354_vm0, %v366_v59, %v368_v62  ;;  %v4611_v9 = vld [vmem:[%s9337_s1 + $0x168] sm:$0xff]  ;;  %v5579_v21 = vld [vmem:[%s5349_s16 + $0x80] sm:$0xff]  ;;  %v380_v22 = vrot.slane %v5576_v20, 1 }
  0x1e   : > { %640 = vmatpush.msra.mxu0 %v4446_v42  ;;  %817 = vmatpush.msra.mxu1 %v543_v43  ;;  %v365_v58 = vrot.slane %v5459_v55, 1  ;;  %v5499_v1 = vld [vmem:[%s5349_s16 + $0x50] sm:$0xff]  ;;  %v4603_v10 = vld [vmem:[%s9337_s1 + $0x128] sm:$0xff]  ;;  %v381_v23 = vrot.slane %v5579_v21, 1  ;;  %v4682_v27 = vld [vmem:[%s9337_s1 + $0x1a0] sm:$0xff] }
  0x1f   : > { %4454 = vmatmul.msk.f32.vlgmr.msra.gmra.mxu0 %vm560_vm1, %v5426_v44  ;;  %4486 = vmatmul.msk.f32.vlgmr.msra.gmra.mxu1 %vm560_vm1, %v5396_v34  ;;  %v371_v3 = vrot.slane %v5499_v1, 1  ;;  %v5545_v13 = vld [vmem:[%s5349_s16 + $0x68] sm:$0xff]  ;;  %v5561_v17 = vld [vmem:[%s5349_s16 + $0x70] sm:$0x3]  ;;  %v4722_v29 = vld [vmem:[%s9337_s1 + $0x1e0] sm:$0xff] }
  0x20   : > { %1356 = vmatpush.msrb.mxu0 %v4613_v45  ;;  %1469 = vmatpush.msrb.mxu1 %v4605_v46  ;;  %v5478_v60 = vsel %vm354_vm0, %v365_v58, %v366_v59  ;;  %v376_v15 = vrot.slane %v5545_v13, 1  ;;  %v378_v18 = vrot.slane %v5561_v17, 1  ;;  %v5592_v25 = vsel %vm354_vm0, %v380_v22, %v381_v23  ;;  %v5595_v26 = vld [vmem:[%s5349_s16 + $0x88] sm:$0x3]  ;;  %v4610_v31 = vld [vmem:[%s9337_s1 + $0x160] sm:$0xff]  ;;  %v5622_v37 = vld [vmem:[%s5349_s16 + $0x90] sm:$0xff] }
  0x21   : > { %1592 = vmatpush.msrb.mxu2 %v4684_v49  ;;  %1750 = vmatpush.msrb.mxu3 %v4724_v50  ;;  %v5512_v4 = vsel %vm354_vm0, %v370_v2, %v371_v3  ;;  %v5539_v11 = vsel %vm354_vm0, %v371_v3, %v373_v8  ;;  %v383_v30 = vrot.slane %v5595_v26, 1  ;;  %v4602_v32 = vld [vmem:[%s9337_s1 + $0x120] sm:$0xff]  ;;  %v5625_v38 = vld [vmem:[%s5349_s16 + $0x98] sm:$0xff]  ;;  %v385_v39 = vrot.slane %v5622_v37, 1  ;;  %v5656_v47 = vld [vmem:[%s5349_s16 + $0xa8] sm:$0xff] }
  0x22   : > { %1357 = vmatpush.msrb.mxu0 %v4612_v51  ;;  %1470 = vmatpush.msrb.mxu1 %v4604_v52  ;;  %v5558_v16 = vsel %vm354_vm0, %v375_v14, %v376_v15  ;;  %v5573_v19 = vsel %vm354_vm0, %v376_v15, %v378_v18  ;;  %v386_v40 = vrot.slane %v5625_v38, 1  ;;  %v5641_v43 = vld [vmem:[%s5349_s16 + $0xa0] sm:$0x3]  ;;  %v5659_v49 = vld [vmem:[%s5349_s16 + $0xb0] sm:$0xff]  ;;  %v390_v50 = vrot.slane %v5656_v47, 1  ;;  %v4681_v58 = vld [vmem:[%s9337_s1 + $0x198] sm:$0xff] }
  0x23   : > { %1593 = vmatpush.msrb.mxu2 %v4683_v6  ;;  %1751 = vmatpush.msrb.mxu3 %v4723_v7  ;;  %v5619_v33 = vsel %vm354_vm0, %v381_v23, %v383_v30  ;;  %v388_v45 = vrot.slane %v5641_v43, 1  ;;  %v391_v51 = vrot.slane %v5659_v49, 1  ;;  %v5675_v53 = vld [vmem:[%s5349_s16 + $0xb8] sm:$0x3]  ;;  %v5702_v7 = vld [vmem:[%s5349_s16 + $0xc0] sm:$0xff]  ;;  %v5705_v8 = vld [vmem:[%s5349_s16 + $0xc8] sm:$0xff] }
  0x24   : > { %4527 = vmatmul.msk.f32.gmra.mxu2 %vm560_vm1, %v5380_v28  ;;  %4567 = vmatmul.msk.f32.gmra.mxu3 %vm560_vm1, %v5456_v54  ;;  %v5638_v42 = vsel %vm354_vm0, %v385_v39, %v386_v40  ;;  %v393_v59 = vrot.slane %v5675_v53, 1  ;;  %v4721_v62 = vld [vmem:[%s9337_s1 + $0x1d8] sm:$0xff]  ;;  %v5721_v15 = vld [vmem:[%s5349_s16 + $0xd0] sm:$0x3] }
  0x25   : > { %1358 = vmatpush.msrb.mxu0 %v4611_v9  ;;  %1471 = vmatpush.msrb.mxu1 %v4603_v10  ;;  %v5653_v46 = vsel %vm354_vm0, %v386_v40, %v388_v45  ;;  %v5672_v52 = vsel %vm354_vm0, %v390_v50, %v391_v51  ;;  %v4609_v2 = vld [vmem:[%s9337_s1 + $0x158] sm:$0xff]  ;;  %v395_v9 = vrot.slane %v5702_v7, 1  ;;  %v396_v10 = vrot.slane %v5705_v8, 1 }
  0x26   : > { %1594 = vmatpush.msrb.mxu2 %v4682_v27  ;;  %1752 = vmatpush.msrb.mxu3 %v4722_v29  ;;  %v4601_v3 = vld [vmem:[%s9337_s1 + $0x118] sm:$0xff]  ;;  %v5699_v6 = vsel %vm354_vm0, %v391_v51, %v393_v59  ;;  %v398_v18 = vrot.slane %v5721_v15, 1  ;;  %v5737_v27 = vld [vmem:[%s5349_s16 + $0xe0] sm:$0xff] }
  0x27   : > { %4455 = vmatmul.msk.f32.gmra.mxu0 %vm560_vm1, %v5469_v57  ;;  %4487 = vmatmul.msk.f32.gmra.mxu1 %vm560_vm1, %v5399_v35  ;;  %v5718_v14 = vsel %vm354_vm0, %v395_v9, %v396_v10  ;;  %v279_v23 = vld [vmem:[%s5349_s16 + $0xd8] sm:$0xff]  ;;  %v401_v30 = vrot.slane %v5737_v27, 1  ;;  %v4608_v9 = vld [vmem:[%s9337_s1 + $0x150] sm:$0xff] }
  0x28   : > { %1359 = vmatpush.msrb.mxu0 %v4610_v31  ;;  %1472 = vmatpush.msrb.mxu1 %v4602_v32  ;;  %v5733_v22 = vsel %vm354_vm0, %v396_v10, %v398_v18  ;;  %v400_v29 = vrot.slane %v279_v23, 1  ;;  %v281_v32 = vld [vmem:[%s5349_s16 + $0xe8] sm:$0x3]  ;;  %v282_v18 = vld [vmem:[%s5349_s16 + $0xf0] sm:$0xff] }
  0x29   : > { %1595 = vmatpush.msrb.mxu2 %v4681_v58  ;;  %1753 = vmatpush.msrb.mxu3 %v4721_v62  ;;  %9534 = vst [vmem:[#allocation2_spill] sm:$0xff] %v5733_v22  ;;  %v403_v50 = vrot.slane %v281_v32, 1 }
  0x2a   : > { %1360 = vmatpush.msrb.mxu0 %v4609_v2  ;;  %1473 = vmatpush.msrb.mxu1 %v4601_v3  ;;  %v5749_v31 = vsel %vm354_vm0, %v400_v29, %v401_v30  ;;  %v4680_v2 = vld [vmem:[%s9337_s1 + $0x190] sm:$0xff]  ;;  %v5775_v29 = vld [vmem:[%s5349_s16 + $0xf8] sm:$0xff] }
  0x2b   : > { %9535 = vst [vmem:[#allocation3_spill] sm:$0xff] %v5749_v31  ;;  %v5760_v62 = vsel %vm354_vm0, %v401_v30, %v403_v50  ;;  %v4720_v3 = vld [vmem:[%s9337_s1 + $0x1d0] sm:$0xff]  ;;  %1596 = vmatpush.msrb.mxu2 %v4680_v2  ;;  %v406_v50 = vrot.slane %v5775_v29, 1 }
  0x2c   : > { %4528 = vmatmul.msk.f32.gmra.mxu2 %vm560_vm1, %v5459_v55  ;;  %4568 = vmatmul.msk.f32.gmra.mxu3 %vm560_vm1, %v5478_v60  ;;  %9536 = vst [vmem:[#allocation4_spill] sm:$0xff] %v5760_v62  ;;  %v4600_v30 = vld [vmem:[%s9337_s1 + $0x110] sm:$0xff] }
  0x2d   : > { %1754 = vmatpush.msrb.mxu3 %v4720_v3  ;;  %1361 = vmatpush.msrb.mxu0 %v4608_v9  ;;  %v284_v9 = vld [vmem:[%s5349_s16 + $0x100] sm:$0x3] }
  0x2e   : > { %1474 = vmatpush.msrb.mxu1 %v4600_v30 }
  0x2f   : > { %4456 = vmatmul.msk.f32.gmra.mxu0 %vm560_vm1, %v5402_v36  ;;  %4488 = vmatmul.msk.f32.gmra.mxu1 %vm560_vm1, %v5370_v24 }
  0x34   : > { %4529 = vmatmul.msk.f32.gmra.mxu2 %vm560_vm1, %v5462_v56  ;;  %4569 = vmatmul.msk.f32.gmra.mxu3 %vm560_vm1, %v5493_v63 }
  0x37   : > { %4457 = vmatmul.msk.f32.gmra.mxu0 %vm560_vm1, %v5456_v54  ;;  %4489 = vmatmul.msk.f32.gmra.mxu1 %vm560_vm1, %v5380_v28 }
  0x3c   : > { %4530 = vmatmul.msk.f32.gmra.mxu2 %vm560_vm1, %v5496_v0  ;;  %4570 = vmatmul.msk.f32.gmra.mxu3 %vm560_vm1, %v5512_v4 }
  0x3f   : > { %4458 = vmatmul.msk.f32.gmra.mxu0 %vm560_vm1, %v5478_v60  ;;  %4490 = vmatmul.msk.f32.gmra.mxu1 %vm560_vm1, %v5459_v55 }
  0x44   : > { %4531 = vmatmul.msk.f32.gmra.mxu2 %vm560_vm1, %v5499_v1  ;;  %4571 = vmatmul.msk.f32.gmra.mxu3 %vm560_vm1, %v5539_v11 }
  0x47   : > { %4459 = vmatmul.msk.f32.gmra.mxu0 %vm560_vm1, %v5493_v63  ;;  %4491 = vmatmul.msk.f32.gmra.mxu1 %vm560_vm1, %v5462_v56 }
  0x4c   : > { %4532 = vmatmul.msk.f32.gmra.mxu2 %vm560_vm1, %v5542_v12  ;;  %4572 = vmatmul.msk.f32.gmra.mxu3 %vm560_vm1, %v5558_v16 }
  0x4f   : > { %4460 = vmatmul.msk.f32.gmra.mxu0 %vm560_vm1, %v5512_v4  ;;  %4492 = vmatmul.msk.f32.gmra.mxu1 %vm560_vm1, %v5496_v0 }
  0x54   : > { %4533 = vmatmul.msk.f32.gmra.mxu2 %vm560_vm1, %v5545_v13  ;;  %4573 = vmatmul.msk.f32.gmra.mxu3 %vm560_vm1, %v5573_v19 }
  0x57   : > { %4461 = vmatmul.msk.f32.gmra.mxu0 %vm560_vm1, %v5539_v11  ;;  %4493 = vmatmul.msk.f32.gmra.mxu1 %vm560_vm1, %v5499_v1 }
  0x5c   : > { %4534 = vmatmul.msk.f32.gmra.mxu2 %vm560_vm1, %v5576_v20  ;;  %4574 = vmatmul.msk.f32.gmra.mxu3 %vm560_vm1, %v5592_v25 }
  0x5f   : > { %4462 = vmatmul.msk.f32.gmra.mxu0 %vm560_vm1, %v5558_v16  ;;  %4494 = vmatmul.msk.f32.gmra.mxu1 %vm560_vm1, %v5542_v12 }
  0x64   : > { %4535 = vmatmul.msk.f32.gmra.mxu2 %vm560_vm1, %v5579_v21  ;;  %4575 = vmatmul.msk.f32.gmra.mxu3 %vm560_vm1, %v5619_v33 }
  0x67   : > { %4463 = vmatmul.msk.f32.gmra.mxu0 %vm560_vm1, %v5573_v19  ;;  %4495 = vmatmul.msk.f32.gmra.mxu1 %vm560_vm1, %v5545_v13 }
  0x6c   : > { %4536 = vmatmul.msk.f32.gmra.mxu2 %vm560_vm1, %v5622_v37  ;;  %4576 = vmatmul.msk.f32.gmra.mxu3 %vm560_vm1, %v5638_v42 }
  0x6f   : > { %4464 = vmatmul.msk.f32.gmra.mxu0 %vm560_vm1, %v5592_v25  ;;  %4496 = vmatmul.msk.f32.gmra.mxu1 %vm560_vm1, %v5576_v20 }
  0x74   : > { %4537 = vmatmul.msk.f32.gmra.mxu2 %vm560_vm1, %v5625_v38  ;;  %4577 = vmatmul.msk.f32.gmra.mxu3 %vm560_vm1, %v5653_v46 }
  0x77   : > { %4465 = vmatmul.msk.f32.gmra.mxu0 %vm560_vm1, %v5619_v33  ;;  %4497 = vmatmul.msk.f32.gmra.mxu1 %vm560_vm1, %v5579_v21 }
  0x7c   : > { %4538 = vmatmul.msk.f32.gmra.mxu2 %vm560_vm1, %v5656_v47  ;;  %4578 = vmatmul.msk.f32.gmra.mxu3 %vm560_vm1, %v5672_v52 }
  0x7f   : > { %4466 = vmatmul.msk.f32.gmra.mxu0 %vm560_vm1, %v5638_v42  ;;  %4498 = vmatmul.msk.f32.gmra.mxu1 %vm560_vm1, %v5622_v37 }
  0x84   : > { %4539 = vmatmul.msk.f32.gmra.mxu2 %vm560_vm1, %v5659_v49  ;;  %4579 = vmatmul.msk.f32.gmra.mxu3 %vm560_vm1, %v5699_v6 }
  0x87   : > { %4467 = vmatmul.msk.f32.gmra.mxu0 %vm560_vm1, %v5653_v46  ;;  %4499 = vmatmul.msk.f32.gmra.mxu1 %vm560_vm1, %v5625_v38 }
  0x8c   : > { %4540 = vmatmul.msk.f32.gmra.mxu2 %vm560_vm1, %v5702_v7  ;;  %4580 = vmatmul.msk.f32.gmra.mxu3 %vm560_vm1, %v5718_v14 }
  0x8f   : > { %4468 = vmatmul.msk.f32.gmra.mxu0 %vm560_vm1, %v5672_v52  ;;  %4500 = vmatmul.msk.f32.gmra.mxu1 %vm560_vm1, %v5656_v47 }
  0x94   : > { %4541 = vmatmul.msk.f32.gmra.mxu2 %vm560_vm1, %v5705_v8  ;;  %4581 = vmatmul.msk.f32.gmra.mxu3 %vm560_vm1, %v5733_v22 }
  0x97   : > { %4469 = vmatmul.msk.f32.gmra.mxu0 %vm560_vm1, %v5699_v6  ;;  %4501 = vmatmul.msk.f32.gmra.mxu1 %vm560_vm1, %v5659_v49 }
  0x9c   : > { %4542 = vmatmul.msk.f32.gmra.mxu2 %vm560_vm1, %v279_v23  ;;  %v642_v39 = vpop.f32.mrf.mxu0  ;;  %v819_v40 = vpop.f32.mrf.mxu1  ;;  %4582 = vmatmul.msk.f32.gmra.mxu3 %vm560_vm1, %v5749_v31 }
  0x9d   : > { %v820_v45 = vadd.f32 %v819_v40, %v642_v39 }
  0x9f   : > { %v945_v51 = vpop.f32.mrf.mxu2  ;;  %4470 = vmatmul.msk.f32.gmra.mxu0 %vm560_vm1, %v5718_v14  ;;  %4502 = vmatmul.msk.f32.gmra.mxu1 %vm560_vm1, %v5702_v7  ;;  %v1103_v58 = vpop.f32.mrf.mxu3 }
  0xa0   : > { %v1041_v59 = vadd.f32 %v945_v51, %v820_v45  ;;  %v405_v45 = vrot.slane %v282_v18, 1 }
  0xa2   : > { %v5771_v10 = vadd.f32 %v1103_v58, %v1041_v59  ;;  %v5790_v2 = vsel %vm354_vm0, %v405_v45, %v406_v50 }
  0xa3   : > { %9538 = vst [vmem:[#allocation6_spill] sm:$0xff] %v5790_v2 }
  0xa4   : > { %9537 = vst [vmem:[#allocation5_spill] sm:$0xff] %v5771_v10  ;;  %4543 = vmatmul.msk.f32.gmra.mxu2 %vm560_vm1, %v5737_v27  ;;  %v645_v32 = vpop.f32.mrf.mxu0  ;;  %v822_v39 = vpop.f32.mrf.mxu1  ;;  %4583 = vmatmul.msk.f32.gmra.mxu3 %vm560_vm1, %v5760_v62  ;;  %v408_v10 = vrot.slane %v284_v9, 1 }
  0xa5   : > { %v823_v40 = vadd.f32 %v822_v39, %v645_v32 }
  0xa7   : > { %v948_v51 = vpop.f32.mrf.mxu2  ;;  %4471 = vmatmul.msk.f32.gmra.mxu0 %vm560_vm1, %v5733_v22  ;;  %4503 = vmatmul.msk.f32.gmra.mxu1 %vm560_vm1, %v5705_v8  ;;  %v1106_v58 = vpop.f32.mrf.mxu3 }
  0xa8   : > { %v1042_v59 = vadd.f32 %v948_v51, %v823_v40  ;;  %v5802_v51 = vsel %vm354_vm0, %v406_v50, %v408_v10 }
  0xa9   : > { %9540 = vst [vmem:[#allocation8_spill] sm:$0xff] %v5802_v51 }
  0xaa   : > { %v5792_v3 = vadd.f32 %v1106_v58, %v1042_v59  ;;  %v5807_v59 = vld [vmem:[%s5349_s16 + $0x108] sm:$0xff] }
  0xac   : > { %9539 = vst [vmem:[#allocation7_spill] sm:$0xff] %v5792_v3  ;;  %4544 = vmatmul.msk.f32.gmra.mxu2 %vm560_vm1, %v282_v18  ;;  %v648_v30 = vpop.f32.mrf.mxu0  ;;  %v825_v32 = vpop.f32.mrf.mxu1  ;;  %4584 = vmatmul.msk.f32.gmra.mxu3 %vm560_vm1, %v5790_v2  ;;  %v5810_v3 = vld [vmem:[%s5349_s16 + $0x110] sm:$0xff] }
  0xad   : > { %v826_v39 = vadd.f32 %v825_v32, %v648_v30  ;;  %v411_v10 = vrot.slane %v5810_v3, 1 }
  0xaf   : > { %v951_v22 = vpop.f32.mrf.mxu2  ;;  %4472 = vmatmul.msk.f32.gmra.mxu0 %vm560_vm1, %v5749_v31  ;;  %4504 = vmatmul.msk.f32.gmra.mxu1 %vm560_vm1, %v279_v23  ;;  %v1109_v40 = vpop.f32.mrf.mxu3 }
  0xb0   : > { %v1043_v45 = vadd.f32 %v951_v22, %v826_v39  ;;  %v410_v22 = vrot.slane %v5807_v59, 1 }
  0xb2   : > { %v5804_v58 = vadd.f32 %v1109_v40, %v1043_v45  ;;  %v5823_v40 = vsel %vm354_vm0, %v410_v22, %v411_v10 }
  0xb3   : > { %9542 = vst [vmem:[#allocation10_spill] sm:$0xff] %v5823_v40 }
  0xb4   : > { %9541 = vst [vmem:[#allocation9_spill] sm:$0xff] %v5804_v58  ;;  %4545 = vmatmul.msk.f32.gmra.mxu2 %vm560_vm1, %v5775_v29  ;;  %v651_v9 = vpop.f32.mrf.mxu0  ;;  %v828_v30 = vpop.f32.mrf.mxu1  ;;  %4585 = vmatmul.msk.f32.gmra.mxu3 %vm560_vm1, %v5802_v51  ;;  %v287_v58 = vld [vmem:[%s5349_s16 + $0x118] sm:$0x3] }
  0xb5   : > { %v829_v23 = vadd.f32 %v828_v30, %v651_v9 }
  0xb7   : > { %v954_v50 = vpop.f32.mrf.mxu2  ;;  %4473 = vmatmul.msk.f32.gmra.mxu0 %vm560_vm1, %v5760_v62  ;;  %4505 = vmatmul.msk.f32.gmra.mxu1 %vm560_vm1, %v5737_v27  ;;  %v1112_v32 = vpop.f32.mrf.mxu3  ;;  %v413_v27 = vrot.slane %v287_v58, 1  ;;  %v4607_v58 = vld [vmem:[%s9337_s1 + $0x148] sm:$0xff] }
  0xb8   : > { %v1044_v39 = vadd.f32 %v954_v50, %v829_v23  ;;  %1362 = vmatpush.msrb.mxu0 %v4607_v58 }
  0xb9   : > { %v5836_v50 = vsel %vm354_vm0, %v411_v10, %v413_v27 }
  0xba   : > { %v5825_v45 = vadd.f32 %v1112_v32, %v1044_v39  ;;  %9544 = vst [vmem:[#allocation12_spill] sm:$0xff] %v5836_v50  ;;  %v4679_v32 = vld [vmem:[%s9337_s1 + $0x188] sm:$0xff] }
  0xbb   : > { %v4719_v39 = vld [vmem:[%s9337_s1 + $0x1c8] sm:$0xff]  ;;  %1597 = vmatpush.msrb.mxu2 %v4679_v32 }
  0xbc   : > { %9543 = vst [vmem:[#allocation11_spill] sm:$0xff] %v5825_v45  ;;  %4546 = vmatmul.msk.f32.gmra.mxu2 %vm560_vm1, %v5807_v59  ;;  %v654_v9 = vpop.f32.mrf.mxu0  ;;  %v831_v30 = vpop.f32.mrf.mxu1  ;;  %4586 = vmatmul.msk.f32.gmra.mxu3 %vm560_vm1, %v5823_v40 }
  0xbd   : > { %v832_v62 = vadd.f32 %v831_v30, %v654_v9  ;;  %v5851_v30 = vld [vmem:[%s5349_s16 + $0x128] sm:$0xff]  ;;  %1755 = vmatpush.msrb.mxu3 %v4719_v39 }
  0xbf   : > { %v957_v31 = vpop.f32.mrf.mxu2  ;;  %4474 = vmatmul.msk.f32.gmra.mxu0 %vm560_vm1, %v5790_v2  ;;  %4506 = vmatmul.msk.f32.gmra.mxu1 %vm560_vm1, %v282_v18  ;;  %v1115_v23 = vpop.f32.mrf.mxu3  ;;  %v288_v18 = vld [vmem:[%s5349_s16 + $0x120] sm:$0xff] }
  0xc0   : > { %v1045_v22 = vadd.f32 %v957_v31, %v832_v62  ;;  %v4599_v31 = vld [vmem:[%s9337_s1 + $0x108] sm:$0xff] }
  0xc1   : > { %1475 = vmatpush.msrb.mxu1 %v4599_v31 }
  0xc2   : > { %v5847_v9 = vadd.f32 %v1115_v23, %v1045_v22  ;;  %v415_v23 = vrot.slane %v288_v18, 1  ;;  %v416_v22 = vrot.slane %v5851_v30, 1 }
  0xc4   : > { %9545 = vst [vmem:[#allocation13_spill] sm:$0xff] %v5847_v9  ;;  %4547 = vmatmul.msk.f32.gmra.mxu2 %vm560_vm1, %v5810_v3  ;;  %v657_v62 = vpop.f32.mrf.mxu0  ;;  %v834_v10 = vpop.f32.mrf.mxu1  ;;  %4587 = vmatmul.msk.f32.gmra.mxu3 %vm560_vm1, %v5836_v50  ;;  %v5866_v31 = vsel %vm354_vm0, %v415_v23, %v416_v22 }
  0xc5   : > { %v835_v27 = vadd.f32 %v834_v10, %v657_v62  ;;  %9546 = vst [vmem:[#allocation14_spill] sm:$0xff] %v5866_v31  ;;  %v290_v62 = vld [vmem:[%s5349_s16 + $0x130] sm:$0x3] }
  0xc6   : > { %v418_v2 = vrot.slane %v290_v62, 1 }
  0xc7   : > { %v960_v32 = vpop.f32.mrf.mxu2  ;;  %4475 = vmatmul.msk.f32.gmra.mxu0 %vm560_vm1, %v5802_v51  ;;  %4507 = vmatmul.msk.f32.gmra.mxu1 %vm560_vm1, %v5775_v29  ;;  %v1118_v39 = vpop.f32.mrf.mxu3 }
  0xc8   : > { %v1046_v58 = vadd.f32 %v960_v32, %v835_v27  ;;  %v5879_v32 = vsel %vm354_vm0, %v416_v22, %v418_v2 }
  0xc9   : > { %9548 = vst [vmem:[#allocation16_spill] sm:$0xff] %v5879_v32 }
  0xca   : > { %v5868_v9 = vadd.f32 %v1118_v39, %v1046_v58  ;;  %v5884_v58 = vld [vmem:[%s5349_s16 + $0x138] sm:$0xff] }
  0xcc   : > { %9547 = vst [vmem:[#allocation15_spill] sm:$0xff] %v5868_v9  ;;  %4548 = vmatmul.msk.f32.gmra.mxu2 %vm560_vm1, %v288_v18  ;;  %v660_v10 = vpop.f32.mrf.mxu0  ;;  %v837_v45 = vpop.f32.mrf.mxu1  ;;  %4588 = vmatmul.msk.f32.gmra.mxu3 %vm560_vm1, %v5866_v31  ;;  %v5887_v9 = vld [vmem:[%s5349_s16 + $0x140] sm:$0xff] }
  0xcd   : > { %v838_v51 = vadd.f32 %v837_v45, %v660_v10  ;;  %v421_v2 = vrot.slane %v5887_v9, 1 }
  0xcf   : > { %v963_v29 = vpop.f32.mrf.mxu2  ;;  %4476 = vmatmul.msk.f32.gmra.mxu0 %vm560_vm1, %v5823_v40  ;;  %4508 = vmatmul.msk.f32.gmra.mxu1 %vm560_vm1, %v5807_v59  ;;  %v1121_v27 = vpop.f32.mrf.mxu3 }
  0xd0   : > { %v1047_v23 = vadd.f32 %v963_v29, %v838_v51  ;;  %v420_v51 = vrot.slane %v5884_v58, 1 }
  0xd2   : > { %v5881_v39 = vadd.f32 %v1121_v27, %v1047_v23  ;;  %v5900_v27 = vsel %vm354_vm0, %v420_v51, %v421_v2 }
  0xd3   : > { %9550 = vst [vmem:[#allocation18_spill] sm:$0xff] %v5900_v27 }
  0xd4   : > { %9549 = vst [vmem:[#allocation17_spill] sm:$0xff] %v5881_v39  ;;  %4549 = vmatmul.msk.f32.gmra.mxu2 %vm560_vm1, %v5851_v30  ;;  %v663_v45 = vpop.f32.mrf.mxu0  ;;  %v840_v62 = vpop.f32.mrf.mxu1  ;;  %4589 = vmatmul.msk.f32.gmra.mxu3 %vm560_vm1, %v5879_v32  ;;  %v293_v39 = vld [vmem:[%s5349_s16 + $0x148] sm:$0x3] }
  0xd5   : > { %v841_v59 = vadd.f32 %v840_v62, %v663_v45 }
  0xd7   : > { %v966_v22 = vpop.f32.mrf.mxu2  ;;  %4477 = vmatmul.msk.f32.gmra.mxu0 %vm560_vm1, %v5836_v50  ;;  %4509 = vmatmul.msk.f32.gmra.mxu1 %vm560_vm1, %v5810_v3  ;;  %v1124_v10 = vpop.f32.mrf.mxu3  ;;  %v423_v3 = vrot.slane %v293_v39, 1  ;;  %v4606_v39 = vld [vmem:[%s9337_s1 + $0x140] sm:$0xff] }
  0xd8   : > { %v1048_v29 = vadd.f32 %v966_v22, %v841_v59  ;;  %1363 = vmatpush.msrb.mxu0 %v4606_v39 }
  0xd9   : > { %v5913_v22 = vsel %vm354_vm0, %v421_v2, %v423_v3 }
  0xda   : > { %v5902_v23 = vadd.f32 %v1124_v10, %v1048_v29  ;;  %9552 = vst [vmem:[#allocation20_spill] sm:$0xff] %v5913_v22  ;;  %v4678_v10 = vld [vmem:[%s9337_s1 + $0x180] sm:$0xff] }
  0xdb   : > { %v4718_v29 = vld [vmem:[%s9337_s1 + $0x1c0] sm:$0xff]  ;;  %1598 = vmatpush.msrb.mxu2 %v4678_v10 }
  0xdc   : > { %9551 = vst [vmem:[#allocation19_spill] sm:$0xff] %v5902_v23  ;;  %4550 = vmatmul.msk.f32.gmra.mxu2 %vm560_vm1, %v5884_v58  ;;  %v666_v45 = vpop.f32.mrf.mxu0  ;;  %v843_v62 = vpop.f32.mrf.mxu1  ;;  %4590 = vmatmul.msk.f32.gmra.mxu3 %vm560_vm1, %v5900_v27 }
  0xdd   : > { %v844_v50 = vadd.f32 %v843_v62, %v666_v45  ;;  %v5928_v62 = vld [vmem:[%s5349_s16 + $0x158] sm:$0xff]  ;;  %1756 = vmatpush.msrb.mxu3 %v4718_v29 }
  0xdf   : > { %v969_v40 = vpop.f32.mrf.mxu2  ;;  %4478 = vmatmul.msk.f32.gmra.mxu0 %vm560_vm1, %v5866_v31  ;;  %4510 = vmatmul.msk.f32.gmra.mxu1 %vm560_vm1, %v288_v18  ;;  %v1127_v59 = vpop.f32.mrf.mxu3  ;;  %v294_v18 = vld [vmem:[%s5349_s16 + $0x150] sm:$0xff] }
  0xe0   : > { %v1049_v51 = vadd.f32 %v969_v40, %v844_v50  ;;  %v4598_v40 = vld [vmem:[%s9337_s1 + $0x100] sm:$0xff] }
  0xe1   : > { %1476 = vmatpush.msrb.mxu1 %v4598_v40 }
  0xe2   : > { %v5924_v45 = vadd.f32 %v1127_v59, %v1049_v51  ;;  %v425_v59 = vrot.slane %v294_v18, 1  ;;  %v426_v51 = vrot.slane %v5928_v62, 1 }
  0xe4   : > { %9553 = vst [vmem:[#allocation21_spill] sm:$0xff] %v5924_v45  ;;  %4551 = vmatmul.msk.f32.gmra.mxu2 %vm560_vm1, %v5887_v9  ;;  %v669_v50 = vpop.f32.mrf.mxu0  ;;  %v846_v2 = vpop.f32.mrf.mxu1  ;;  %4591 = vmatmul.msk.f32.gmra.mxu3 %vm560_vm1, %v5913_v22  ;;  %v5943_v40 = vsel %vm354_vm0, %v425_v59, %v426_v51 }
  0xe5   : > { %v847_v3 = vadd.f32 %v846_v2, %v669_v50  ;;  %9554 = vst [vmem:[#allocation22_spill] sm:$0xff] %v5943_v40  ;;  %v296_v50 = vld [vmem:[%s5349_s16 + $0x160] sm:$0x3] }
  0xe6   : > { %v428_v31 = vrot.slane %v296_v50, 1 }
  0xe7   : > { %v972_v10 = vpop.f32.mrf.mxu2  ;;  %4479 = vmatmul.msk.f32.gmra.mxu0 %vm560_vm1, %v5879_v32  ;;  %4511 = vmatmul.msk.f32.gmra.mxu1 %vm560_vm1, %v5851_v30  ;;  %v1130_v29 = vpop.f32.mrf.mxu3 }
  0xe8   : > { %v1050_v39 = vadd.f32 %v972_v10, %v847_v3  ;;  %v5956_v10 = vsel %vm354_vm0, %v426_v51, %v428_v31 }
  0xe9   : > { %9556 = vst [vmem:[#allocation24_spill] sm:$0xff] %v5956_v10 }
  0xea   : > { %v5945_v45 = vadd.f32 %v1130_v29, %v1050_v39  ;;  %v5961_v39 = vld [vmem:[%s5349_s16 + $0x168] sm:$0xff] }
  0xec   : > { %9555 = vst [vmem:[#allocation23_spill] sm:$0xff] %v5945_v45  ;;  %4552 = vmatmul.msk.f32.gmra.mxu2 %vm560_vm1, %v294_v18  ;;  %v672_v2 = vpop.f32.mrf.mxu0  ;;  %v849_v23 = vpop.f32.mrf.mxu1  ;;  %4592 = vmatmul.msk.f32.gmra.mxu3 %vm560_vm1, %v5943_v40  ;;  %v5964_v45 = vld [vmem:[%s5349_s16 + $0x170] sm:$0xff] }
  0xed   : > { %v850_v32 = vadd.f32 %v849_v23, %v672_v2  ;;  %v431_v31 = vrot.slane %v5964_v45, 1 }
  0xef   : > { %v975_v30 = vpop.f32.mrf.mxu2  ;;  %4480 = vmatmul.msk.f32.gmra.mxu0 %vm560_vm1, %v5900_v27  ;;  %4512 = vmatmul.msk.f32.gmra.mxu1 %vm560_vm1, %v5884_v58  ;;  %v1133_v3 = vpop.f32.mrf.mxu3 }
  0xf0   : > { %v1051_v59 = vadd.f32 %v975_v30, %v850_v32  ;;  %v430_v32 = vrot.slane %v5961_v39, 1 }
  0xf2   : > { %v5958_v29 = vadd.f32 %v1133_v3, %v1051_v59  ;;  %v5977_v3 = vsel %vm354_vm0, %v430_v32, %v431_v31 }
  0xf4   : > { %9557 = vst [vmem:[#allocation25_spill] sm:$0xff] %v5958_v29  ;;  %4553 = vmatmul.msk.f32.gmra.mxu2 %vm560_vm1, %v5928_v62  ;;  %v675_v23 = vpop.f32.mrf.mxu0  ;;  %v852_v50 = vpop.f32.mrf.mxu1  ;;  %4593 = vmatmul.msk.f32.gmra.mxu3 %vm560_vm1, %v5956_v10  ;;  %v5982_v29 = vld [vmem:[%s5349_s16 + $0x178] sm:$0x3] }
  0xf5   : > { %v853_v58 = vadd.f32 %v852_v50, %v675_v23  ;;  %9559 = vst [vmem:[#allocation27_spill] sm:$0xff] %v5982_v29 }
  0xf7   : > { %v978_v51 = vpop.f32.mrf.mxu2  ;;  %4481 = vmatmul.msk.f32.gmra.mxu0 %vm560_vm1, %v5913_v22  ;;  %4513 = vmatmul.msk.f32.gmra.mxu1 %vm560_vm1, %v5887_v9  ;;  %v1136_v2 = vpop.f32.mrf.mxu3  ;;  %v6025_v22 = vld [vmem:[%s5349_s16 + $0x190] sm:$0x3] }
  0xf8   : > { %v1052_v30 = vadd.f32 %v978_v51, %v853_v58  ;;  %v433_v58 = vrot.slane %v5982_v29, 1  ;;  %v522_v27 = vrot.slane %v6025_v22, 1 }
  0xfa   : > { %v5979_v59 = vadd.f32 %v1136_v2, %v1052_v30  ;;  %v5993_v30 = vsel %vm354_vm0, %v431_v31, %v433_v58  ;;  %v4765_v31 = vld [vmem:[%s9337_s1 + $0x238] sm:$0xff] }
  0xfb   : > { %2057 = vmatpush.msra.mxu1 %v4765_v31 }
  0xfc   : > { %9558 = vst [vmem:[#allocation26_spill] sm:$0xff] %v5979_v59  ;;  %4554 = vmatmul.msk.f32.gmra.mxu2 %vm560_vm1, %v5961_v39  ;;  %v678_v23 = vpop.f32.mrf.mxu0  ;;  %v855_v50 = vpop.f32.mrf.mxu1  ;;  %4594 = vmatmul.msk.f32.gmra.mxu3 %vm560_vm1, %v5977_v3  ;;  %v4845_v59 = vld [vmem:[%s9337_s1 + $0x2b8] sm:$0xff] }
  0xfd   : > { %v856_v9 = vadd.f32 %v855_v50, %v678_v23  ;;  %v4885_v23 = vld [vmem:[%s9337_s1 + $0x2f8] sm:$0xff]  ;;  %2183 = vmatpush.msra.mxu2 %v4845_v59 }
  0xfe   : > { %v4773_v50 = vld [vmem:[%s9337_s1 + $0x278] sm:$0xff]  ;;  %2341 = vmatpush.msra.mxu3 %v4885_v23 }
  0xff   : > { %v981_v51 = vpop.f32.mrf.mxu2  ;;  %4482 = vmatmul.msk.f32.gmra.mxu0 %vm560_vm1, %v5943_v40  ;;  %4514 = vmatmul.msk.f32.gmra.mxu1 %vm560_vm1, %v294_v18  ;;  %v1139_v32 = vpop.f32.mrf.mxu3  ;;  %v300_v18 = vld [vmem:[%s5349_s16 + $0x180] sm:$0xff]  ;;  %v301_v40 = vld [vmem:[%s5349_s16 + $0x188] sm:$0xff] }
 0x100   : > { %v1053_v2 = vadd.f32 %v981_v51, %v856_v9  ;;  %1944 = vmatpush.msra.mxu0 %v4773_v50 }
 0x102   : > { %v6004_v29 = vadd.f32 %v1139_v32, %v1053_v2  ;;  %v519_v32 = vrot.slane %v300_v18, 1  ;;  %v520_v2 = vrot.slane %v301_v40, 1 }
 0x104   : > { %9560 = vst [vmem:[#allocation28_spill] sm:$0xff] %v6004_v29  ;;  %4555 = vmatmul.msk.f32.gmra.mxu2 %vm560_vm1, %v5964_v45  ;;  %v681_v9 = vpop.f32.mrf.mxu0  ;;  %v858_v58 = vpop.f32.mrf.mxu1  ;;  %4595 = vmatmul.msk.f32.gmra.mxu3 %vm560_vm1, %v5993_v30  ;;  %v6020_v31 = vsel %vm354_vm0, %v519_v32, %v520_v2 }
 0x105   : > { %v859_v51 = vadd.f32 %v858_v58, %v681_v9 }
 0x107   : > { %v984_v59 = vpop.f32.mrf.mxu2  ;;  %4483 = vmatmul.msk.f32.gmra.mxu0 %vm560_vm1, %v5956_v10  ;;  %4515 = vmatmul.msk.f32.gmra.mxu1 %vm560_vm1, %v5928_v62  ;;  %v1142_v23 = vpop.f32.mrf.mxu3 }
 0x108   : > { %v1054_v50 = vadd.f32 %v984_v59, %v859_v51  ;;  %v6036_v59 = vsel %vm354_vm0, %v520_v2, %v522_v27  ;;  %v437_v2 = vrot.slane %v5399_v35, 2 }
 0x10a   : > { %v6022_v29 = vadd.f32 %v1142_v23, %v1054_v50 }
 0x10c   : > { %9561 = vst [vmem:[#allocation29_spill] sm:$0xff] %v6022_v29  ;;  %4556 = vmatmul.msk.f32.gmra.mxu2 %vm560_vm1, %v300_v18  ;;  %v684_v9 = vpop.f32.mrf.mxu0  ;;  %v861_v58 = vpop.f32.mrf.mxu1  ;;  %4596 = vmatmul.msk.f32.gmra.mxu3 %vm560_vm1, %v6020_v31  ;;  %v442_v29 = vrot.slane %v5380_v28, 2 }
 0x10d   : > { %v862_v10 = vadd.f32 %v861_v58, %v684_v9  ;;  %v441_v58 = vrot.slane %v5370_v24, 2 }
 0x10f   : > { %v987_v62 = vpop.f32.mrf.mxu2  ;;  %4484 = vmatmul.msk.f32.gmra.mxu0 %vm560_vm1, %v5977_v3  ;;  %4516 = vmatmul.msk.f32.gmra.mxu1 %vm560_vm1, %v5961_v39  ;;  %v1145_v51 = vpop.f32.mrf.mxu3 }
 0x110   : > { %v1055_v32 = vadd.f32 %v987_v62, %v862_v10  ;;  %v436_v10 = vrot.slane %v5396_v34, 2  ;;  %v6052_v62 = vsel %vm435_vm2, %v441_v58, %v442_v29  ;;  %v444_v34 = vrot.slane %v5413_v41, 2  ;;  %v4884_v41 = vld [vmem:[%s9337_s1 + $0x2f0] sm:$0xff] }
 0x111   : > { %9563 = vst [vmem:[#allocation31_spill] sm:$0xff] %v6052_v62  ;;  %2342 = vmatpush.msra.mxu3 %v4884_v41 }
 0x112   : > { %v6038_v18 = vadd.f32 %v1145_v51, %v1055_v32  ;;  %v6067_v58 = vsel %vm435_vm2, %v442_v29, %v444_v34 }
 0x113   : > { %9565 = vst [vmem:[#allocation33_spill] sm:$0xff] %v6067_v58 }
 0x114   : > { %9562 = vst [vmem:[#allocation30_spill] sm:$0xff] %v6038_v18  ;;  %4557 = vmatmul.msk.f32.gmra.mxu2 %vm560_vm1, %v301_v40  ;;  %v687_v23 = vpop.f32.mrf.mxu0  ;;  %v864_v50 = vpop.f32.mrf.mxu1  ;;  %4597 = vmatmul.msk.f32.gmra.mxu3 %vm560_vm1, %v6036_v59  ;;  %v5202_v18 = vld [vmem:[%s5349_s16 + $0x118] sm:$0x3] }
 0x115   : > { %v865_v9 = vadd.f32 %v864_v50, %v687_v23 }
 0x117   : > { %v990_v39 = vpop.f32.mrf.mxu2  ;;  %4485 = vmatmul.msk.f32.gmra.mxu0 %vm560_vm1, %v5993_v30  ;;  %4517 = vmatmul.msk.f32.gmra.mxu1 %vm560_vm1, %v5964_v45  ;;  %v1148_v27 = vpop.f32.mrf.mxu3  ;;  %v438_v45 = vsel %vm435_vm2, %v436_v10, %v437_v2 }
 0x118   : > { %v1056_v40 = vadd.f32 %v990_v39, %v865_v9  ;;  %v439_v9 = vrot.slane %v5436_v48, 2  ;;  %v4844_v39 = vld [vmem:[%s9337_s1 + $0x2b0] sm:$0xff] }
 0x119   : > { %2184 = vmatpush.msra.mxu2 %v4844_v39  ;;  %v4764_v48 = vld [vmem:[%s9337_s1 + $0x230] sm:$0xff] }
 0x11a   : > { %v6054_v24 = vadd.f32 %v1148_v27, %v1056_v40  ;;  %v4772_v27 = vld [vmem:[%s9337_s1 + $0x270] sm:$0xff]  ;;  %2058 = vmatpush.msra.mxu1 %v4764_v48  ;;  %v440_v10 = vsel %vm435_vm2, %v437_v2, %v439_v9  ;;  %v449_v9 = vrot.slane %v5481_v61, 2 }
 0x11b   : > { %1945 = vmatpush.msra.mxu0 %v4772_v27 }
 0x11c   : > { %9564 = vst [vmem:[#allocation32_spill] sm:$0xff] %v6054_v24  ;;  %4686 = vmatmul.msk.f32.vlgmr.msrb.gmra.mxu2 %vm560_vm1, %v5402_v36  ;;  %v690_v28 = vpop.f32.mrf.mxu0  ;;  %v867_v51 = vpop.f32.mrf.mxu1  ;;  %4726 = vmatmul.msk.f32.vlgmr.msrb.gmra.mxu3 %vm560_vm1, %v6052_v62 }
 0x11d   : > { %v868_v32 = vadd.f32 %v867_v51, %v690_v28  ;;  %v446_v51 = vrot.slane %v5459_v55, 2 }
 0x11f   : > { %v993_v23 = vpop.f32.mrf.mxu2  ;;  %4614 = vmatmul.msk.f32.vlgmr.msrb.gmra.mxu0 %vm560_vm1, %v438_v45  ;;  %4646 = vmatmul.msk.f32.vlgmr.msrb.gmra.mxu1 %vm560_vm1, %v5426_v44  ;;  %v1151_v35 = vpop.f32.mrf.mxu3  ;;  %v447_v45 = vrot.slane %v5462_v56, 2 }
 0x120   : > { %v1057_v50 = vadd.f32 %v993_v23, %v868_v32 }
 0x121   : > { %v6108_v27 = vsel %vm435_vm2, %v447_v45, %v449_v9 }
 0x122   : > { %v6078_v44 = vadd.f32 %v1151_v35, %v1057_v50  ;;  %v6094_v35 = vsel %vm435_vm2, %v446_v51, %v447_v45  ;;  %9569 = vst [vmem:[#allocation37_spill] sm:$0xff] %v6108_v27 }
 0x123   : > { %9567 = vst [vmem:[#allocation35_spill] sm:$0xff] %v6094_v35 }
 0x124   : > { %9566 = vst [vmem:[#allocation34_spill] sm:$0xff] %v6078_v44  ;;  %4687 = vmatmul.msk.f32.gmra.mxu2 %vm560_vm1, %v5456_v54  ;;  %v693_v29 = vpop.f32.mrf.mxu0  ;;  %v870_v40 = vpop.f32.mrf.mxu1  ;;  %4727 = vmatmul.msk.f32.gmra.mxu3 %vm560_vm1, %v6067_v58 }
 0x125   : > { %v871_v28 = vadd.f32 %v870_v40, %v693_v29 }
 0x127   : > { %v996_v32 = vpop.f32.mrf.mxu2  ;;  %4615 = vmatmul.msk.f32.gmra.mxu0 %vm560_vm1, %v440_v10  ;;  %4647 = vmatmul.msk.f32.gmra.mxu1 %vm560_vm1, %v5469_v57  ;;  %v1154_v34 = vpop.f32.mrf.mxu3  ;;  %v451_v10 = vrot.slane %v5496_v0, 2 }
 0x128   : > { %v1058_v23 = vadd.f32 %v996_v32, %v871_v28  ;;  %v452_v28 = vrot.slane %v5499_v1, 2 }
 0x12a   : > { %v6096_v50 = vadd.f32 %v1154_v34, %v1058_v23  ;;  %v6123_v34 = vsel %vm435_vm2, %v451_v10, %v452_v28 }
 0x12b   : > { %9571 = vst [vmem:[#allocation39_spill] sm:$0xff] %v6123_v34 }
 0x12c   : > { %9568 = vst [vmem:[#allocation36_spill] sm:$0xff] %v6096_v50  ;;  %4688 = vmatmul.msk.f32.gmra.mxu2 %vm560_vm1, %v5478_v60  ;;  %v696_v2 = vpop.f32.mrf.mxu0  ;;  %v873_v55 = vpop.f32.mrf.mxu1  ;;  %4728 = vmatmul.msk.f32.gmra.mxu3 %vm560_vm1, %v6094_v35 }
 0x12d   : > { %v874_v56 = vadd.f32 %v873_v55, %v696_v2  ;;  %v454_v55 = vrot.slane %v5515_v5, 2  ;;  %v4883_v5 = vld [vmem:[%s9337_s1 + $0x2e8] sm:$0xff] }
 0x12e   : > { %2343 = vmatpush.msra.mxu3 %v4883_v5 }
 0x12f   : > { %v999_v39 = vpop.f32.mrf.mxu2  ;;  %4616 = vmatmul.msk.f32.gmra.mxu0 %vm560_vm1, %v6052_v62  ;;  %4648 = vmatmul.msk.f32.gmra.mxu1 %vm560_vm1, %v5402_v36  ;;  %v1157_v57 = vpop.f32.mrf.mxu3 }
 0x130   : > { %v1059_v41 = vadd.f32 %v999_v39, %v874_v56 }
 0x132   : > { %v6110_v48 = vadd.f32 %v1157_v57, %v1059_v41  ;;  %v6137_v57 = vsel %vm435_vm2, %v452_v28, %v454_v55  ;;  %v4843_v41 = vld [vmem:[%s9337_s1 + $0x2a8] sm:$0xff] }
 0x133   : > { %9573 = vst [vmem:[#allocation41_spill] sm:$0xff] %v6137_v57  ;;  %2185 = vmatpush.msra.mxu2 %v4843_v41 }
 0x134   : > { %9570 = vst [vmem:[#allocation38_spill] sm:$0xff] %v6110_v48  ;;  %4689 = vmatmul.msk.f32.gmra.mxu2 %vm560_vm1, %v5493_v63  ;;  %v699_v29 = vpop.f32.mrf.mxu0  ;;  %v876_v40 = vpop.f32.mrf.mxu1  ;;  %4729 = vmatmul.msk.f32.gmra.mxu3 %vm560_vm1, %v6108_v27 }
 0x135   : > { %v877_v61 = vadd.f32 %v876_v40, %v699_v29  ;;  %v4771_v29 = vld [vmem:[%s9337_s1 + $0x268] sm:$0xff] }
 0x136   : > { %1946 = vmatpush.msra.mxu0 %v4771_v29 }
 0x137   : > { %v1002_v51 = vpop.f32.mrf.mxu2  ;;  %4617 = vmatmul.msk.f32.gmra.mxu0 %vm560_vm1, %v6067_v58  ;;  %4649 = vmatmul.msk.f32.gmra.mxu1 %vm560_vm1, %v5456_v54  ;;  %v1160_v45 = vpop.f32.mrf.mxu3  ;;  %v6577_v58 = vld [vmem:[%s5349_s16 + $0x170] sm:$0xff] }
 0x138   : > { %v1060_v32 = vadd.f32 %v1002_v51, %v877_v61  ;;  %v4763_v61 = vld [vmem:[%s9337_s1 + $0x228] sm:$0xff] }
 0x139   : > { %2059 = vmatpush.msra.mxu1 %v4763_v61 }
 0x13a   : > { %v6125_v23 = vadd.f32 %v1160_v45, %v1060_v32  ;;  %v456_v45 = vrot.slane %v5542_v12, 2  ;;  %v457_v32 = vrot.slane %v5545_v13, 2 }
 0x13c   : > { %9572 = vst [vmem:[#allocation40_spill] sm:$0xff] %v6125_v23  ;;  %4690 = vmatmul.msk.f32.gmra.mxu2 %vm560_vm1, %v5512_v4  ;;  %v702_v0 = vpop.f32.mrf.mxu0  ;;  %v879_v2 = vpop.f32.mrf.mxu1  ;;  %4730 = vmatmul.msk.f32.gmra.mxu3 %vm560_vm1, %v6123_v34  ;;  %v6164_v55 = vsel %vm435_vm2, %v456_v45, %v457_v32  ;;  %v461_v45 = vrot.slane %v5576_v20, 2 }
 0x13d   : > { %v880_v1 = vadd.f32 %v879_v2, %v702_v0  ;;  %9575 = vst [vmem:[#allocation43_spill] sm:$0xff] %v6164_v55 }
 0x13f   : > { %v1005_v56 = vpop.f32.mrf.mxu2  ;;  %4618 = vmatmul.msk.f32.gmra.mxu0 %vm560_vm1, %v6094_v35  ;;  %4650 = vmatmul.msk.f32.gmra.mxu1 %vm560_vm1, %v5478_v60  ;;  %v1163_v9 = vpop.f32.mrf.mxu3 }
 0x140   : > { %v1061_v39 = vadd.f32 %v1005_v56, %v880_v1 }
 0x142   : > { %v6148_v40 = vadd.f32 %v1163_v9, %v1061_v39  ;;  %v459_v39 = vrot.slane %v5561_v17, 2 }
 0x144   : > { %9574 = vst [vmem:[#allocation42_spill] sm:$0xff] %v6148_v40  ;;  %4691 = vmatmul.msk.f32.gmra.mxu2 %vm560_vm1, %v5539_v11  ;;  %v705_v10 = vpop.f32.mrf.mxu0  ;;  %v882_v28 = vpop.f32.mrf.mxu1  ;;  %4731 = vmatmul.msk.f32.gmra.mxu3 %vm560_vm1, %v6137_v57  ;;  %v6178_v61 = vsel %vm435_vm2, %v457_v32, %v459_v39  ;;  %v464_v39 = vrot.slane %v5595_v26, 2  ;;  %v4882_v26 = vld [vmem:[%s9337_s1 + $0x2e0] sm:$0xff] }
 0x145   : > { %v883_v51 = vadd.f32 %v882_v28, %v705_v10  ;;  %9577 = vst [vmem:[#allocation45_spill] sm:$0xff] %v6178_v61  ;;  %2344 = vmatpush.msra.mxu3 %v4882_v26  ;;  %v469_v26 = vrot.slane %v5641_v43, 2  ;;  %v5199_v40 = vld [vmem:[%s5349_s16 + $0x100] sm:$0x3] }
 0x146   : > { %v489_v23 = vrot.slane %v5199_v40, 2 }
 0x147   : > { %v1008_v0 = vpop.f32.mrf.mxu2  ;;  %4619 = vmatmul.msk.f32.gmra.mxu0 %vm560_vm1, %v6108_v27  ;;  %4651 = vmatmul.msk.f32.gmra.mxu1 %vm560_vm1, %v5493_v63  ;;  %v1166_v2 = vpop.f32.mrf.mxu3 }
 0x148   : > { %v1062_v1 = vadd.f32 %v1008_v0, %v883_v51  ;;  %v462_v0 = vrot.slane %v5579_v21, 2 }
 0x14a   : > { %v6166_v56 = vadd.f32 %v1166_v2, %v1062_v1 }
 0x14c   : > { %9576 = vst [vmem:[#allocation44_spill] sm:$0xff] %v6166_v56  ;;  %4692 = vmatmul.msk.f32.gmra.mxu2 %vm560_vm1, %v5558_v16  ;;  %v708_v12 = vpop.f32.mrf.mxu0  ;;  %v885_v9 = vpop.f32.mrf.mxu1  ;;  %4732 = vmatmul.msk.f32.gmra.mxu3 %vm560_vm1, %v6164_v55 }
 0x14d   : > { %v886_v13 = vadd.f32 %v885_v9, %v708_v12  ;;  %v6193_v12 = vsel %vm435_vm2, %v461_v45, %v462_v0 }
 0x14e   : > { %9579 = vst [vmem:[#allocation47_spill] sm:$0xff] %v6193_v12 }
 0x14f   : > { %v1011_v41 = vpop.f32.mrf.mxu2  ;;  %4620 = vmatmul.msk.f32.gmra.mxu0 %vm560_vm1, %v6123_v34  ;;  %4652 = vmatmul.msk.f32.gmra.mxu1 %vm560_vm1, %v5512_v4  ;;  %v1169_v5 = vpop.f32.mrf.mxu3 }
 0x150   : > { %v1063_v29 = vadd.f32 %v1011_v41, %v886_v13 }
 0x152   : > { %v6180_v10 = vadd.f32 %v1169_v5, %v1063_v29 }
 0x154   : > { %9578 = vst [vmem:[#allocation46_spill] sm:$0xff] %v6180_v10  ;;  %4693 = vmatmul.msk.f32.gmra.mxu2 %vm560_vm1, %v5573_v19  ;;  %v711_v28 = vpop.f32.mrf.mxu0  ;;  %v888_v51 = vpop.f32.mrf.mxu1  ;;  %4733 = vmatmul.msk.f32.gmra.mxu3 %vm560_vm1, %v6178_v61 }
 0x155   : > { %v889_v17 = vadd.f32 %v888_v51, %v711_v28  ;;  %v6207_v28 = vsel %vm435_vm2, %v462_v0, %v464_v39  ;;  %v4842_v51 = vld [vmem:[%s9337_s1 + $0x2a0] sm:$0xff] }
 0x156   : > { %9581 = vst [vmem:[#allocation49_spill] sm:$0xff] %v6207_v28  ;;  %2186 = vmatpush.msra.mxu2 %v4842_v51  ;;  %v4762_v0 = vld [vmem:[%s9337_s1 + $0x220] sm:$0xff] }
 0x157   : > { %v1014_v2 = vpop.f32.mrf.mxu2  ;;  %4621 = vmatmul.msk.f32.gmra.mxu0 %vm560_vm1, %v6137_v57  ;;  %4653 = vmatmul.msk.f32.gmra.mxu1 %vm560_vm1, %v5539_v11  ;;  %v1172_v32 = vpop.f32.mrf.mxu3 }
 0x158   : > { %v1064_v1 = vadd.f32 %v1014_v2, %v889_v17  ;;  %v4770_v17 = vld [vmem:[%s9337_s1 + $0x260] sm:$0xff]  ;;  %2060 = vmatpush.msra.mxu1 %v4762_v0 }
 0x159   : > { %1947 = vmatpush.msra.mxu0 %v4770_v17 }
 0x15a   : > { %v6195_v9 = vadd.f32 %v1172_v32, %v1064_v1 }
 0x15c   : > { %9580 = vst [vmem:[#allocation48_spill] sm:$0xff] %v6195_v9  ;;  %4694 = vmatmul.msk.f32.gmra.mxu2 %vm560_vm1, %v5592_v25  ;;  %v714_v20 = vpop.f32.mrf.mxu0  ;;  %v891_v13 = vpop.f32.mrf.mxu1  ;;  %4734 = vmatmul.msk.f32.gmra.mxu3 %vm560_vm1, %v6193_v12 }
 0x15d   : > { %v892_v21 = vadd.f32 %v891_v13, %v714_v20  ;;  %v466_v20 = vrot.slane %v5622_v37, 2  ;;  %v467_v13 = vrot.slane %v5625_v38, 2 }
 0x15f   : > { %v1017_v41 = vpop.f32.mrf.mxu2  ;;  %4622 = vmatmul.msk.f32.gmra.mxu0 %vm560_vm1, %v6164_v55  ;;  %4654 = vmatmul.msk.f32.gmra.mxu1 %vm560_vm1, %v5558_v16  ;;  %v1175_v5 = vpop.f32.mrf.mxu3  ;;  %v5211_v55 = vld [vmem:[%s5349_s16 + $0x160] sm:$0x3] }
 0x160   : > { %v1065_v29 = vadd.f32 %v1017_v41, %v892_v21  ;;  %v509_v57 = vrot.slane %v5211_v55, 2 }
 0x162   : > { %v6218_v45 = vadd.f32 %v1175_v5, %v1065_v29  ;;  %v6234_v5 = vsel %vm435_vm2, %v466_v20, %v467_v13 }
 0x163   : > { %9583 = vst [vmem:[#allocation51_spill] sm:$0xff] %v6234_v5 }
 0x164   : > { %9582 = vst [vmem:[#allocation50_spill] sm:$0xff] %v6218_v45  ;;  %4695 = vmatmul.msk.f32.gmra.mxu2 %vm560_vm1, %v5619_v33  ;;  %v717_v2 = vpop.f32.mrf.mxu0  ;;  %v894_v32 = vpop.f32.mrf.mxu1  ;;  %4735 = vmatmul.msk.f32.gmra.mxu3 %vm560_vm1, %v6207_v28 }
 0x165   : > { %v895_v1 = vadd.f32 %v894_v32, %v717_v2  ;;  %v6248_v32 = vsel %vm435_vm2, %v467_v13, %v469_v26 }
 0x166   : > { %9585 = vst [vmem:[#allocation53_spill] sm:$0xff] %v6248_v32 }
 0x167   : > { %v1020_v21 = vpop.f32.mrf.mxu2  ;;  %4623 = vmatmul.msk.f32.gmra.mxu0 %vm560_vm1, %v6178_v61  ;;  %4655 = vmatmul.msk.f32.gmra.mxu1 %vm560_vm1, %v5573_v19  ;;  %v1178_v39 = vpop.f32.mrf.mxu3 }
 0x168   : > { %v1066_v41 = vadd.f32 %v1020_v21, %v895_v1 }
 0x16a   : > { %v6236_v29 = vadd.f32 %v1178_v39, %v1066_v41  ;;  %v471_v39 = vrot.slane %v5656_v47, 2  ;;  %v472_v41 = vrot.slane %v5659_v49, 2 }
 0x16c   : > { %9584 = vst [vmem:[#allocation52_spill] sm:$0xff] %v6236_v29  ;;  %4696 = vmatmul.msk.f32.gmra.mxu2 %vm560_vm1, %v5638_v42  ;;  %v720_v37 = vpop.f32.mrf.mxu0  ;;  %v897_v51 = vpop.f32.mrf.mxu1  ;;  %4736 = vmatmul.msk.f32.gmra.mxu3 %vm560_vm1, %v6234_v5 }
 0x16d   : > { %v898_v38 = vadd.f32 %v897_v51, %v720_v37 }
 0x16f   : > { %v1023_v17 = vpop.f32.mrf.mxu2  ;;  %4624 = vmatmul.msk.f32.gmra.mxu0 %vm560_vm1, %v6193_v12  ;;  %4656 = vmatmul.msk.f32.gmra.mxu1 %vm560_vm1, %v5592_v25  ;;  %v1181_v0 = vpop.f32.mrf.mxu3 }
 0x170   : > { %v1067_v2 = vadd.f32 %v1023_v17, %v898_v38  ;;  %v6263_v38 = vsel %vm435_vm2, %v471_v39, %v472_v41 }
 0x171   : > { %9587 = vst [vmem:[#allocation55_spill] sm:$0xff] %v6263_v38 }
 0x172   : > { %v6250_v1 = vadd.f32 %v1181_v0, %v1067_v2  ;;  %v474_v0 = vrot.slane %v5675_v53, 2 }
 0x174   : > { %9586 = vst [vmem:[#allocation54_spill] sm:$0xff] %v6250_v1  ;;  %4697 = vmatmul.msk.f32.gmra.mxu2 %vm560_vm1, %v5653_v46  ;;  %v723_v20 = vpop.f32.mrf.mxu0  ;;  %v900_v21 = vpop.f32.mrf.mxu1  ;;  %4737 = vmatmul.msk.f32.gmra.mxu3 %vm560_vm1, %v6248_v32  ;;  %v5196_v1 = vld [vmem:[%s5349_s16 + $0xe8] sm:$0x3] }
 0x175   : > { %v901_v43 = vadd.f32 %v900_v21, %v723_v20  ;;  %v484_v29 = vrot.slane %v5196_v1, 2  ;;  %v4880_v1 = vld [vmem:[%s9337_s1 + $0x2d0] sm:$0xff] }
 0x177   : > { %v1026_v37 = vpop.f32.mrf.mxu2  ;;  %4625 = vmatmul.msk.f32.gmra.mxu0 %vm560_vm1, %v6207_v28  ;;  %4657 = vmatmul.msk.f32.gmra.mxu1 %vm560_vm1, %v5619_v33  ;;  %v1184_v13 = vpop.f32.mrf.mxu3 }
 0x178   : > { %v1068_v51 = vadd.f32 %v1026_v37, %v901_v43  ;;  %v6277_v43 = vsel %vm435_vm2, %v472_v41, %v474_v0 }
 0x179   : > { %9589 = vst [vmem:[#allocation57_spill] sm:$0xff] %v6277_v43 }
 0x17a   : > { %v6265_v26 = vadd.f32 %v1184_v13, %v1068_v51  ;;  %v476_v51 = vrot.slane %v5702_v7, 2 }
 0x17c   : > { %9588 = vst [vmem:[#allocation56_spill] sm:$0xff] %v6265_v26  ;;  %4698 = vmatmul.msk.f32.gmra.mxu2 %vm560_vm1, %v5672_v52  ;;  %v726_v47 = vpop.f32.mrf.mxu0  ;;  %v903_v17 = vpop.f32.mrf.mxu1  ;;  %4738 = vmatmul.msk.f32.gmra.mxu3 %vm560_vm1, %v6263_v38 }
 0x17d   : > { %v904_v49 = vadd.f32 %v903_v17, %v726_v47  ;;  %v477_v47 = vrot.slane %v5705_v8, 2 }
 0x17f   : > { %v1029_v2 = vpop.f32.mrf.mxu2  ;;  %4626 = vmatmul.msk.f32.gmra.mxu0 %vm560_vm1, %v6234_v5  ;;  %4658 = vmatmul.msk.f32.gmra.mxu1 %vm560_vm1, %v5638_v42  ;;  %v1187_v20 = vpop.f32.mrf.mxu3  ;;  %v6292_v0 = vsel %vm435_vm2, %v476_v51, %v477_v47  ;;  %v4761_v51 = vld [vmem:[%s9337_s1 + $0x218] sm:$0xff] }
 0x180   : > { %v1069_v21 = vadd.f32 %v1029_v2, %v904_v49  ;;  %9591 = vst [vmem:[#allocation59_spill] sm:$0xff] %v6292_v0  ;;  %2061 = vmatpush.msra.mxu1 %v4761_v51 }
 0x182   : > { %v6279_v39 = vadd.f32 %v1187_v20, %v1069_v21  ;;  %v479_v21 = vrot.slane %v5721_v15, 2 }
 0x184   : > { %9590 = vst [vmem:[#allocation58_spill] sm:$0xff] %v6279_v39  ;;  %4699 = vmatmul.msk.f32.gmra.mxu2 %vm560_vm1, %v5699_v6  ;;  %v729_v37 = vpop.f32.mrf.mxu0  ;;  %v906_v13 = vpop.f32.mrf.mxu1  ;;  %4739 = vmatmul.msk.f32.gmra.mxu3 %vm560_vm1, %v6277_v43  ;;  %v6327_v39 = vld [vmem:[%s5349_s16 + $0xd8] sm:$0xff] }
 0x185   : > { %v907_v53 = vadd.f32 %v906_v13, %v729_v37  ;;  %v4841_v37 = vld [vmem:[%s9337_s1 + $0x298] sm:$0xff] }
 0x186   : > { %v4881_v13 = vld [vmem:[%s9337_s1 + $0x2d8] sm:$0xff]  ;;  %2187 = vmatpush.msra.mxu2 %v4841_v37 }
 0x187   : > { %v1032_v17 = vpop.f32.mrf.mxu2  ;;  %4627 = vmatmul.msk.f32.gmra.mxu0 %vm560_vm1, %v6248_v32  ;;  %4659 = vmatmul.msk.f32.gmra.mxu1 %vm560_vm1, %v5653_v46  ;;  %v1190_v41 = vpop.f32.mrf.mxu3 }
 0x188   : > { %v1070_v49 = vadd.f32 %v1032_v17, %v907_v53  ;;  %v4769_v53 = vld [vmem:[%s9337_s1 + $0x258] sm:$0xff]  ;;  %2345 = vmatpush.msra.mxu3 %v4881_v13 }
 0x189   : > { %1948 = vmatpush.msra.mxu0 %v4769_v53  ;;  %v6331_v53 = vld [vmem:[%s5349_s16 + $0xe0] sm:$0xff] }
 0x18a   : > { %v6294_v2 = vadd.f32 %v1190_v41, %v1070_v49  ;;  %v6318_v49 = vsel %vm435_vm2, %v477_v47, %v479_v21  ;;  %v482_v47 = vrot.slane %v6331_v53, 2  ;;  %2346 = vmatpush.msra.mxu3 %v4880_v1 }
 0x18b   : > { %9593 = vst [vmem:[#allocation61_spill] sm:$0xff] %v6318_v49 }
 0x18c   : > { %9592 = vst [vmem:[#allocation60_spill] sm:$0xff] %v6294_v2  ;;  %4700 = vmatmul.msk.f32.gmra.mxu2 %vm560_vm1, %v5718_v14  ;;  %v732_v7 = vpop.f32.mrf.mxu0  ;;  %v909_v20 = vpop.f32.mrf.mxu1  ;;  %4740 = vmatmul.msk.f32.gmra.mxu3 %vm560_vm1, %v6292_v0 }
 0x18d   : > { %v910_v8 = vadd.f32 %v909_v20, %v732_v7  ;;  %v9595_v20 = vld [vmem:[#allocation2_spill] sm:$0xff] }
 0x18f   : > { %v1035_v15 = vpop.f32.mrf.mxu2  ;;  %4628 = vmatmul.msk.f32.gmra.mxu0 %vm560_vm1, %v6263_v38  ;;  %4660 = vmatmul.msk.f32.gmra.mxu1 %vm560_vm1, %v5672_v52  ;;  %v1193_v17 = vpop.f32.mrf.mxu3 }
 0x190   : > { %v1071_v41 = vadd.f32 %v1035_v15, %v910_v8  ;;  %v481_v8 = vrot.slane %v6327_v39, 2 }
 0x192   : > { %v6320_v7 = vadd.f32 %v1193_v17, %v1071_v41  ;;  %v6339_v17 = vsel %vm435_vm2, %v481_v8, %v482_v47 }
 0x193   : > { %9596 = vst [vmem:[#allocation2_spill] sm:$0xff] %v6339_v17 }
 0x194   : > { %9594 = vst [vmem:[#allocation62_spill] sm:$0xff] %v6320_v7  ;;  %4701 = vmatmul.msk.f32.gmra.mxu2 %vm560_vm1, %v9595_v20  ;;  %v735_v37 = vpop.f32.mrf.mxu0  ;;  %v912_v13 = vpop.f32.mrf.mxu1  ;;  %4741 = vmatmul.msk.f32.gmra.mxu3 %vm560_vm1, %v6318_v49 }
 0x195   : > { %v913_v2 = vadd.f32 %v912_v13, %v735_v37  ;;  %v9598_v37 = vld [vmem:[#allocation3_spill] sm:$0xff] }
 0x197   : > { %v1038_v21 = vpop.f32.mrf.mxu2  ;;  %4629 = vmatmul.msk.f32.gmra.mxu0 %vm560_vm1, %v6277_v43  ;;  %4661 = vmatmul.msk.f32.gmra.mxu1 %vm560_vm1, %v5699_v6  ;;  %v1196_v51 = vpop.f32.mrf.mxu3 }
 0x198   : > { %v1072_v15 = vadd.f32 %v1038_v21, %v913_v2  ;;  %v6353_v21 = vsel %vm435_vm2, %v482_v47, %v484_v29  ;;  %v9601_v29 = vld [vmem:[#allocation4_spill] sm:$0xff] }
 0x199   : > { %9599 = vst [vmem:[#allocation3_spill] sm:$0xff] %v6353_v21 }
 0x19a   : > { %v6341_v41 = vadd.f32 %v1196_v51, %v1072_v15  ;;  %v4840_v51 = vld [vmem:[%s9337_s1 + $0x290] sm:$0xff] }
 0x19b   : > { %2188 = vmatpush.msra.mxu2 %v4840_v51 }
 0x19c   : > { %9597 = vst [vmem:[#allocation63_spill] sm:$0xff] %v6341_v41  ;;  %4702 = vmatmul.msk.f32.gmra.mxu2 %vm560_vm1, %v9598_v37  ;;  %v1365_v13 = vpop.f32.mrf.mxu0  ;;  %v1478_v7 = vpop.f32.mrf.mxu1  ;;  %4742 = vmatmul.msk.f32.gmra.mxu3 %vm560_vm1, %v6339_v17  ;;  %v6374_v41 = vld [vmem:[%s5349_s16 + $0xf0] sm:$0xff] }
 0x19d   : > { %v1479_v26 = vadd.f32 %v1478_v7, %v1365_v13  ;;  %v4768_v7 = vld [vmem:[%s9337_s1 + $0x250] sm:$0xff] }
 0x19e   : > { %1949 = vmatpush.msra.mxu0 %v4768_v7 }
 0x19f   : > { %v1600_v45 = vpop.f32.mrf.mxu2  ;;  %4630 = vmatmul.msk.f32.gmra.mxu0 %vm560_vm1, %v6292_v0  ;;  %4662 = vmatmul.msk.f32.gmra.mxu1 %vm560_vm1, %v5718_v14  ;;  %v1758_v2 = vpop.f32.mrf.mxu3  ;;  %v5205_v0 = vld [vmem:[%s5349_s16 + $0x130] sm:$0x3] }
 0x1a0   : > { %v1696_v8 = vadd.f32 %v1600_v45, %v1479_v26  ;;  %v4760_v45 = vld [vmem:[%s9337_s1 + $0x210] sm:$0xff]  ;;  %v499_v43 = vrot.slane %v5205_v0, 2 }
 0x1a1   : > { %2062 = vmatpush.msra.mxu1 %v4760_v45 }
 0x1a2   : > { %v6364_v15 = vadd.f32 %v1758_v2, %v1696_v8  ;;  %v486_v2 = vrot.slane %v6374_v41, 2  ;;  %v6378_v8 = vld [vmem:[%s5349_s16 + $0xf8] sm:$0xff] }
 0x1a3   : > { %v487_v51 = vrot.slane %v6378_v8, 2 }
 0x1a4   : > { %9600 = vst [vmem:[#allocation64_spill] sm:$0xff] %v6364_v15  ;;  %4703 = vmatmul.msk.f32.gmra.mxu2 %vm560_vm1, %v9601_v29  ;;  %v1368_v26 = vpop.f32.mrf.mxu0  ;;  %v1481_v47 = vpop.f32.mrf.mxu1  ;;  %4743 = vmatmul.msk.f32.gmra.mxu3 %vm560_vm1, %v6353_v21  ;;  %v9604_v15 = vld [vmem:[#allocation6_spill] sm:$0xff] }
 0x1a5   : > { %v1482_v13 = vadd.f32 %v1481_v47, %v1368_v26  ;;  %v6386_v26 = vsel %vm435_vm2, %v486_v2, %v487_v51 }
 0x1a6   : > { %9602 = vst [vmem:[#allocation4_spill] sm:$0xff] %v6386_v26 }
 0x1a7   : > { %v1603_v1 = vpop.f32.mrf.mxu2  ;;  %4631 = vmatmul.msk.f32.gmra.mxu0 %vm560_vm1, %v6318_v49  ;;  %4663 = vmatmul.msk.f32.gmra.mxu1 %vm560_vm1, %v9595_v20  ;;  %v1761_v7 = vpop.f32.mrf.mxu3 }
 0x1a8   : > { %v1697_v45 = vadd.f32 %v1603_v1, %v1482_v13  ;;  %v6400_v1 = vsel %vm435_vm2, %v487_v51, %v489_v23 }
 0x1a9   : > { %9605 = vst [vmem:[#allocation6_spill] sm:$0xff] %v6400_v1 }
 0x1aa   : > { %v6388_v47 = vadd.f32 %v1761_v7, %v1697_v45  ;;  %v9607_v45 = vld [vmem:[#allocation8_spill] sm:$0xff] }
 0x1ac   : > { %9603 = vst [vmem:[#allocation65_spill] sm:$0xff] %v6388_v47  ;;  %4704 = vmatmul.msk.f32.gmra.mxu2 %vm560_vm1, %v9604_v15  ;;  %v1371_v9 = vpop.f32.mrf.mxu0  ;;  %v1484_v10 = vpop.f32.mrf.mxu1  ;;  %4744 = vmatmul.msk.f32.gmra.mxu3 %vm560_vm1, %v6386_v26  ;;  %v6409_v47 = vld [vmem:[%s5349_s16 + $0x108] sm:$0xff] }
 0x1ad   : > { %v1485_v56 = vadd.f32 %v1484_v10, %v1371_v9  ;;  %v491_v50 = vrot.slane %v6409_v47, 2 }
 0x1af   : > { %v1606_v48 = vpop.f32.mrf.mxu2  ;;  %4632 = vmatmul.msk.f32.gmra.mxu0 %vm560_vm1, %v6339_v17  ;;  %4664 = vmatmul.msk.f32.gmra.mxu1 %vm560_vm1, %v9598_v37  ;;  %v1764_v13 = vpop.f32.mrf.mxu3 }
 0x1b0   : > { %v1698_v2 = vadd.f32 %v1606_v48, %v1485_v56  ;;  %v6413_v48 = vld [vmem:[%s5349_s16 + $0x110] sm:$0xff] }
 0x1b1   : > { %v492_v23 = vrot.slane %v6413_v48, 2 }
 0x1b2   : > { %v6402_v7 = vadd.f32 %v1764_v13, %v1698_v2 }
 0x1b3   : > { %v6421_v2 = vsel %vm435_vm2, %v491_v50, %v492_v23 }
 0x1b4   : > { %9606 = vst [vmem:[#allocation66_spill] sm:$0xff] %v6402_v7  ;;  %4705 = vmatmul.msk.f32.gmra.mxu2 %vm560_vm1, %v9607_v45  ;;  %v1374_v10 = vpop.f32.mrf.mxu0  ;;  %v1487_v9 = vpop.f32.mrf.mxu1  ;;  %4745 = vmatmul.msk.f32.gmra.mxu3 %vm560_vm1, %v6400_v1 }
 0x1b5   : > { %v1488_v40 = vadd.f32 %v1487_v9, %v1374_v10  ;;  %9608 = vst [vmem:[#allocation8_spill] sm:$0xff] %v6421_v2  ;;  %v9610_v9 = vld [vmem:[#allocation10_spill] sm:$0xff] }
 0x1b7   : > { %v1609_v56 = vpop.f32.mrf.mxu2  ;;  %4633 = vmatmul.msk.f32.gmra.mxu0 %vm560_vm1, %v6353_v21  ;;  %4665 = vmatmul.msk.f32.gmra.mxu1 %vm560_vm1, %v9601_v29  ;;  %v1767_v51 = vpop.f32.mrf.mxu3  ;;  %v494_v21 = vrot.slane %v5202_v18, 2  ;;  %v4879_v18 = vld [vmem:[%s9337_s1 + $0x2c8] sm:$0xff] }
 0x1b8   : > { %v1699_v13 = vadd.f32 %v1609_v56, %v1488_v40  ;;  %2347 = vmatpush.msra.mxu3 %v4879_v18 }
 0x1b9   : > { %v6435_v56 = vsel %vm435_vm2, %v492_v23, %v494_v21 }
 0x1ba   : > { %v6423_v10 = vadd.f32 %v1767_v51, %v1699_v13  ;;  %9611 = vst [vmem:[#allocation10_spill] sm:$0xff] %v6435_v56  ;;  %v4839_v51 = vld [vmem:[%s9337_s1 + $0x288] sm:$0xff] }
 0x1bb   : > { %2189 = vmatpush.msra.mxu2 %v4839_v51 }
 0x1bc   : > { %9609 = vst [vmem:[#allocation67_spill] sm:$0xff] %v6423_v10  ;;  %4706 = vmatmul.msk.f32.gmra.mxu2 %vm560_vm1, %v9610_v9  ;;  %v1377_v7 = vpop.f32.mrf.mxu0  ;;  %v1490_v44 = vpop.f32.mrf.mxu1  ;;  %4746 = vmatmul.msk.f32.gmra.mxu3 %vm560_vm1, %v6421_v2  ;;  %v6456_v10 = vld [vmem:[%s5349_s16 + $0x120] sm:$0xff] }
 0x1bd   : > { %v1491_v24 = vadd.f32 %v1490_v44, %v1377_v7  ;;  %v4767_v44 = vld [vmem:[%s9337_s1 + $0x248] sm:$0xff] }
 0x1be   : > { %1950 = vmatpush.msra.mxu0 %v4767_v44 }
 0x1bf   : > { %v1612_v17 = vpop.f32.mrf.mxu2  ;;  %4634 = vmatmul.msk.f32.gmra.mxu0 %vm560_vm1, %v6386_v26  ;;  %4666 = vmatmul.msk.f32.gmra.mxu1 %vm560_vm1, %v9604_v15  ;;  %v1770_v50 = vpop.f32.mrf.mxu3 }
 0x1c0   : > { %v1700_v40 = vadd.f32 %v1612_v17, %v1491_v24  ;;  %v4759_v24 = vld [vmem:[%s9337_s1 + $0x208] sm:$0xff]  ;;  %v9613_v17 = vld [vmem:[#allocation12_spill] sm:$0xff] }
 0x1c1   : > { %2063 = vmatpush.msra.mxu1 %v4759_v24 }
 0x1c2   : > { %v6446_v7 = vadd.f32 %v1770_v50, %v1700_v40  ;;  %v496_v50 = vrot.slane %v6456_v10, 2  ;;  %v6460_v40 = vld [vmem:[%s5349_s16 + $0x128] sm:$0xff] }
 0x1c3   : > { %v497_v51 = vrot.slane %v6460_v40, 2 }
 0x1c4   : > { %9612 = vst [vmem:[#allocation68_spill] sm:$0xff] %v6446_v7  ;;  %4707 = vmatmul.msk.f32.gmra.mxu2 %vm560_vm1, %v9613_v17  ;;  %v1380_v21 = vpop.f32.mrf.mxu0  ;;  %v1493_v23 = vpop.f32.mrf.mxu1  ;;  %4747 = vmatmul.msk.f32.gmra.mxu3 %vm560_vm1, %v6435_v56  ;;  %v9616_v7 = vld [vmem:[#allocation14_spill] sm:$0xff] }
 0x1c5   : > { %v1494_v13 = vadd.f32 %v1493_v23, %v1380_v21  ;;  %v6468_v21 = vsel %vm435_vm2, %v496_v50, %v497_v51 }
 0x1c6   : > { %9614 = vst [vmem:[#allocation12_spill] sm:$0xff] %v6468_v21 }
 0x1c7   : > { %v1615_v18 = vpop.f32.mrf.mxu2  ;;  %4635 = vmatmul.msk.f32.gmra.mxu0 %vm560_vm1, %v6400_v1  ;;  %4667 = vmatmul.msk.f32.gmra.mxu1 %vm560_vm1, %v9607_v45  ;;  %v1773_v44 = vpop.f32.mrf.mxu3 }
 0x1c8   : > { %v1701_v24 = vadd.f32 %v1615_v18, %v1494_v13  ;;  %v6482_v18 = vsel %vm435_vm2, %v497_v51, %v499_v43 }
 0x1c9   : > { %9617 = vst [vmem:[#allocation14_spill] sm:$0xff] %v6482_v18 }
 0x1ca   : > { %v6470_v23 = vadd.f32 %v1773_v44, %v1701_v24  ;;  %v9619_v24 = vld [vmem:[#allocation16_spill] sm:$0xff] }
 0x1cc   : > { %9615 = vst [vmem:[#allocation69_spill] sm:$0xff] %v6470_v23  ;;  %4708 = vmatmul.msk.f32.gmra.mxu2 %vm560_vm1, %v9616_v7  ;;  %v1383_v26 = vpop.f32.mrf.mxu0  ;;  %v1496_v49 = vpop.f32.mrf.mxu1  ;;  %4748 = vmatmul.msk.f32.gmra.mxu3 %vm560_vm1, %v6468_v21  ;;  %v6491_v23 = vld [vmem:[%s5349_s16 + $0x138] sm:$0xff] }
 0x1cd   : > { %v1497_v1 = vadd.f32 %v1496_v49, %v1383_v26 }
 0x1cf   : > { %v1618_v38 = vpop.f32.mrf.mxu2  ;;  %4636 = vmatmul.msk.f32.gmra.mxu0 %vm560_vm1, %v6421_v2  ;;  %4668 = vmatmul.msk.f32.gmra.mxu1 %vm560_vm1, %v9610_v9  ;;  %v1776_v13 = vpop.f32.mrf.mxu3  ;;  %v501_v2 = vrot.slane %v6491_v23, 2 }
 0x1d0   : > { %v1702_v50 = vadd.f32 %v1618_v38, %v1497_v1  ;;  %v6495_v38 = vld [vmem:[%s5349_s16 + $0x140] sm:$0xff] }
 0x1d1   : > { %v502_v43 = vrot.slane %v6495_v38, 2 }
 0x1d2   : > { %v6484_v44 = vadd.f32 %v1776_v13, %v1702_v50 }
 0x1d3   : > { %v6503_v50 = vsel %vm435_vm2, %v501_v2, %v502_v43 }
 0x1d4   : > { %9618 = vst [vmem:[#allocation70_spill] sm:$0xff] %v6484_v44  ;;  %4709 = vmatmul.msk.f32.gmra.mxu2 %vm560_vm1, %v9619_v24  ;;  %v1386_v49 = vpop.f32.mrf.mxu0  ;;  %v1499_v26 = vpop.f32.mrf.mxu1  ;;  %4749 = vmatmul.msk.f32.gmra.mxu3 %vm560_vm1, %v6482_v18 }
 0x1d5   : > { %v1500_v0 = vadd.f32 %v1499_v26, %v1386_v49  ;;  %9620 = vst [vmem:[#allocation16_spill] sm:$0xff] %v6503_v50  ;;  %v9622_v26 = vld [vmem:[#allocation18_spill] sm:$0xff] }
 0x1d7   : > { %v1621_v1 = vpop.f32.mrf.mxu2  ;;  %4637 = vmatmul.msk.f32.gmra.mxu0 %vm560_vm1, %v6435_v56  ;;  %4669 = vmatmul.msk.f32.gmra.mxu1 %vm560_vm1, %v9613_v17  ;;  %v1779_v51 = vpop.f32.mrf.mxu3  ;;  %v5208_v56 = vld [vmem:[%s5349_s16 + $0x148] sm:$0x3] }
 0x1d8   : > { %v1703_v13 = vadd.f32 %v1621_v1, %v1500_v0  ;;  %v504_v28 = vrot.slane %v5208_v56, 2  ;;  %v4766_v56 = vld [vmem:[%s9337_s1 + $0x240] sm:$0xff] }
 0x1d9   : > { %1951 = vmatpush.msra.mxu0 %v4766_v56 }
 0x1da   : > { %v6505_v49 = vadd.f32 %v1779_v51, %v1703_v13  ;;  %v6517_v1 = vsel %vm435_vm2, %v502_v43, %v504_v28  ;;  %v4838_v51 = vld [vmem:[%s9337_s1 + $0x280] sm:$0xff]  ;;  %v9625_v28 = vld [vmem:[#allocation20_spill] sm:$0xff] }
 0x1db   : > { %9623 = vst [vmem:[#allocation18_spill] sm:$0xff] %v6517_v1  ;;  %2190 = vmatpush.msra.mxu2 %v4838_v51 }
 0x1dc   : > { %9621 = vst [vmem:[#allocation71_spill] sm:$0xff] %v6505_v49  ;;  %4710 = vmatmul.msk.f32.gmra.mxu2 %vm560_vm1, %v9622_v26  ;;  %v1389_v44 = vpop.f32.mrf.mxu0  ;;  %v1502_v32 = vpop.f32.mrf.mxu1  ;;  %4750 = vmatmul.msk.f32.gmra.mxu3 %vm560_vm1, %v6503_v50  ;;  %v6538_v49 = vld [vmem:[%s5349_s16 + $0x150] sm:$0xff] }
 0x1dd   : > { %v1503_v5 = vadd.f32 %v1502_v32, %v1389_v44  ;;  %v4878_v32 = vld [vmem:[%s9337_s1 + $0x2c0] sm:$0xff] }
 0x1de   : > { %2348 = vmatpush.msra.mxu3 %v4878_v32 }
 0x1df   : > { %v1624_v12 = vpop.f32.mrf.mxu2  ;;  %4638 = vmatmul.msk.f32.gmra.mxu0 %vm560_vm1, %v6468_v21  ;;  %4670 = vmatmul.msk.f32.gmra.mxu1 %vm560_vm1, %v9616_v7  ;;  %v1782_v2 = vpop.f32.mrf.mxu3 }
 0x1e0   : > { %v1704_v0 = vadd.f32 %v1624_v12, %v1503_v5  ;;  %v4758_v12 = vld [vmem:[%s9337_s1 + $0x200] sm:$0xff] }
 0x1e1   : > { %2064 = vmatpush.msra.mxu1 %v4758_v12 }
 0x1e2   : > { %v6528_v44 = vadd.f32 %v1782_v2, %v1704_v0  ;;  %v506_v2 = vrot.slane %v6538_v49, 2  ;;  %v6542_v0 = vld [vmem:[%s5349_s16 + $0x158] sm:$0xff] }
 0x1e3   : > { %v507_v51 = vrot.slane %v6542_v0, 2 }
 0x1e4   : > { %9624 = vst [vmem:[#allocation72_spill] sm:$0xff] %v6528_v44  ;;  %4711 = vmatmul.msk.f32.gmra.mxu2 %vm560_vm1, %v9625_v28  ;;  %v1392_v5 = vpop.f32.mrf.mxu0  ;;  %v1505_v43 = vpop.f32.mrf.mxu1  ;;  %4751 = vmatmul.msk.f32.gmra.mxu3 %vm560_vm1, %v6517_v1  ;;  %v9628_v44 = vld [vmem:[#allocation22_spill] sm:$0xff] }
 0x1e5   : > { %v1506_v13 = vadd.f32 %v1505_v43, %v1392_v5  ;;  %v6550_v5 = vsel %vm435_vm2, %v506_v2, %v507_v51 }
 0x1e6   : > { %9626 = vst [vmem:[#allocation20_spill] sm:$0xff] %v6550_v5 }
 0x1e7   : > { %v1627_v32 = vpop.f32.mrf.mxu2  ;;  %4639 = vmatmul.msk.f32.gmra.mxu0 %vm560_vm1, %v6482_v18  ;;  %4671 = vmatmul.msk.f32.gmra.mxu1 %vm560_vm1, %v9619_v24  ;;  %v1785_v56 = vpop.f32.mrf.mxu3 }
 0x1e8   : > { %v1705_v12 = vadd.f32 %v1627_v32, %v1506_v13  ;;  %v6564_v32 = vsel %vm435_vm2, %v507_v51, %v509_v57 }
 0x1e9   : > { %9629 = vst [vmem:[#allocation22_spill] sm:$0xff] %v6564_v32 }
 0x1ea   : > { %v6552_v43 = vadd.f32 %v1785_v56, %v1705_v12  ;;  %v9631_v12 = vld [vmem:[#allocation24_spill] sm:$0xff] }
 0x1ec   : > { %9627 = vst [vmem:[#allocation73_spill] sm:$0xff] %v6552_v43  ;;  %4712 = vmatmul.msk.f32.gmra.mxu2 %vm560_vm1, %v9628_v44  ;;  %v1395_v21 = vpop.f32.mrf.mxu0  ;;  %v1508_v61 = vpop.f32.mrf.mxu1  ;;  %4752 = vmatmul.msk.f32.gmra.mxu3 %vm560_vm1, %v6550_v5  ;;  %v6573_v43 = vld [vmem:[%s5349_s16 + $0x168] sm:$0xff] }
 0x1ed   : > { %v1509_v18 = vadd.f32 %v1508_v61, %v1395_v21 }
 0x1ef   : > { %v1630_v34 = vpop.f32.mrf.mxu2  ;;  %4640 = vmatmul.msk.f32.gmra.mxu0 %vm560_vm1, %v6503_v50  ;;  %4672 = vmatmul.msk.f32.gmra.mxu1 %vm560_vm1, %v9622_v26  ;;  %v1788_v13 = vpop.f32.mrf.mxu3  ;;  %v511_v50 = vrot.slane %v6573_v43, 2 }
 0x1f0   : > { %v1706_v2 = vadd.f32 %v1630_v34, %v1509_v18  ;;  %v512_v34 = vrot.slane %v6577_v58, 2 }
 0x1f2   : > { %v6566_v56 = vadd.f32 %v1788_v13, %v1706_v2  ;;  %v6585_v13 = vsel %vm435_vm2, %v511_v50, %v512_v34 }
 0x1f4   : > { %9630 = vst [vmem:[#allocation74_spill] sm:$0xff] %v6566_v56  ;;  %4713 = vmatmul.msk.f32.gmra.mxu2 %vm560_vm1, %v9631_v12  ;;  %v1398_v61 = vpop.f32.mrf.mxu0  ;;  %v1511_v21 = vpop.f32.mrf.mxu1  ;;  %4753 = vmatmul.msk.f32.gmra.mxu3 %vm560_vm1, %v6564_v32 }
 0x1f5   : > { %v1512_v55 = vadd.f32 %v1511_v21, %v1398_v61 }
 0x1f7   : > { %v1633_v57 = vpop.f32.mrf.mxu2  ;;  %4641 = vmatmul.msk.f32.gmra.mxu0 %vm560_vm1, %v6517_v1  ;;  %4673 = vmatmul.msk.f32.gmra.mxu1 %vm560_vm1, %v9625_v28  ;;  %v1791_v18 = vpop.f32.mrf.mxu3  ;;  %v9633_v1 = vld [vmem:[#allocation27_spill] sm:$0xff] }
 0x1f8   : > { %v1707_v51 = vadd.f32 %v1633_v57, %v1512_v55  ;;  %v514_v27 = vrot.slane %v9633_v1, 2  ;;  %v5045_v1 = vld [vmem:[%s9337_s1 + $0x3f8] sm:$0xff] }
 0x1f9   : > { %2929 = vmatpush.msrb.mxu3 %v5045_v1 }
 0x1fa   : > { %v6587_v2 = vadd.f32 %v1791_v18, %v1707_v51  ;;  %v6599_v57 = vsel %vm435_vm2, %v512_v34, %v514_v27  ;;  %v5005_v18 = vld [vmem:[%s9337_s1 + $0x3b8] sm:$0xff] }
 0x1fb   : > { %v4933_v51 = vld [vmem:[%s9337_s1 + $0x378] sm:$0xff]  ;;  %2771 = vmatpush.msrb.mxu2 %v5005_v18 }
 0x1fc   : > { %9632 = vst [vmem:[#allocation24_spill] sm:$0xff] %v6587_v2  ;;  %4714 = vmatmul.msk.f32.gmra.mxu2 %vm560_vm1, %v5977_v3  ;;  %v1401_v61 = vpop.f32.mrf.mxu0  ;;  %v1514_v21 = vpop.f32.mrf.mxu1  ;;  %4754 = vmatmul.msk.f32.gmra.mxu3 %vm560_vm1, %v6585_v13 }
 0x1fd   : > { %v1515_v56 = vadd.f32 %v1514_v21, %v1401_v61  ;;  %2536 = vmatpush.msrb.mxu0 %v4933_v51  ;;  %v6620_v21 = vld [vmem:[%s5349_s16 + $0x180] sm:$0xff] }
 0x1ff   : > { %v1636_v62 = vpop.f32.mrf.mxu2  ;;  %4642 = vmatmul.msk.f32.gmra.mxu0 %vm560_vm1, %v6550_v5  ;;  %4674 = vmatmul.msk.f32.gmra.mxu1 %vm560_vm1, %v9628_v44  ;;  %v1794_v50 = vpop.f32.mrf.mxu3 }
 0x200   : > { %v1708_v55 = vadd.f32 %v1636_v62, %v1515_v56  ;;  %v4925_v62 = vld [vmem:[%s9337_s1 + $0x338] sm:$0xff] }
 0x201   : > { %2649 = vmatpush.msrb.mxu1 %v4925_v62 }
 0x202   : > { %v6610_v61 = vadd.f32 %v1794_v50, %v1708_v55  ;;  %v524_v50 = vrot.slane %v6620_v21, 2  ;;  %v6624_v55 = vld [vmem:[%s5349_s16 + $0x188] sm:$0xff] }
 0x203   : > { %v525_v18 = vrot.slane %v6624_v55, 2 }
 0x204   : > { %9634 = vst [vmem:[#allocation27_spill] sm:$0xff] %v6610_v61  ;;  %4715 = vmatmul.msk.f32.gmra.mxu2 %vm560_vm1, %v5993_v30  ;;  %v1404_v27 = vpop.f32.mrf.mxu0  ;;  %v1517_v56 = vpop.f32.mrf.mxu1  ;;  %4755 = vmatmul.msk.f32.gmra.mxu3 %vm560_vm1, %v6599_v57 }
 0x205   : > { %v1518_v34 = vadd.f32 %v1517_v56, %v1404_v27  ;;  %v6632_v61 = vsel %vm435_vm2, %v524_v50, %v525_v18 }
 0x206   : > { %9635 = vst [vmem:[#allocation75_spill] sm:$0xff] %v6632_v61 }
 0x207   : > { %v1639_v1 = vpop.f32.mrf.mxu2  ;;  %4643 = vmatmul.msk.f32.gmra.mxu0 %vm560_vm1, %v6564_v32  ;;  %4675 = vmatmul.msk.f32.gmra.mxu1 %vm560_vm1, %v9631_v12  ;;  %v1797_v51 = vpop.f32.mrf.mxu3  ;;  %v527_v32 = vrot.slane %v6025_v22, 2 }
 0x208   : > { %v1709_v62 = vadd.f32 %v1639_v1, %v1518_v34 }
 0x209   : > { %v6646_v1 = vsel %vm435_vm2, %v525_v18, %v527_v32  ;;  %v5216_v18 = vld [vmem:[%s5349_s16 + $0x30] sm:$0xff] }
 0x20a   : > { %v6634_v27 = vadd.f32 %v1797_v51, %v1709_v62  ;;  %9637 = vst [vmem:[#allocation77_spill] sm:$0xff] %v6646_v1 }
 0x20c   : > { %9636 = vst [vmem:[#allocation76_spill] sm:$0xff] %v6634_v27  ;;  %4716 = vmatmul.msk.f32.gmra.mxu2 %vm560_vm1, %v6020_v31  ;;  %v1407_v56 = vpop.f32.mrf.mxu0  ;;  %v1520_v2 = vpop.f32.mrf.mxu1  ;;  %4756 = vmatmul.msk.f32.gmra.mxu3 %vm560_vm1, %v6632_v61 }
 0x20d   : > { %v1521_v5 = vadd.f32 %v1520_v2, %v1407_v56 }
 0x20f   : > { %v1642_v35 = vpop.f32.mrf.mxu2  ;;  %4644 = vmatmul.msk.f32.gmra.mxu0 %vm560_vm1, %v6585_v13  ;;  %4676 = vmatmul.msk.f32.gmra.mxu1 %vm560_vm1, %v5977_v3  ;;  %v1800_v34 = vpop.f32.mrf.mxu3 }
 0x210   : > { %v1710_v50 = vadd.f32 %v1642_v35, %v1521_v5 }
 0x212   : > { %v6648_v51 = vadd.f32 %v1800_v34, %v1710_v50 }
 0x214   : > { %9638 = vst [vmem:[#allocation78_spill] sm:$0xff] %v6648_v51  ;;  %4717 = vmatmul.msk.f32.gmra.mxu2 %vm560_vm1, %v6036_v59  ;;  %v1410_v2 = vpop.f32.mrf.mxu0  ;;  %v1523_v22 = vpop.f32.mrf.mxu1  ;;  %4757 = vmatmul.msk.f32.gmra.mxu3 %vm560_vm1, %v6646_v1  ;;  %v5217_v51 = vld [vmem:[%s5349_s16 + $0x18] sm:$0xff] }
 0x215   : > { %v1524_v62 = vadd.f32 %v1523_v22, %v1410_v2 }
 0x217   : > { %v1645_v56 = vpop.f32.mrf.mxu2  ;;  %4645 = vmatmul.msk.f32.gmra.mxu0 %vm560_vm1, %v6599_v57  ;;  %4677 = vmatmul.msk.f32.gmra.mxu1 %vm560_vm1, %v5993_v30  ;;  %v1803_v35 = vpop.f32.mrf.mxu3 }
 0x218   : > { %v1711_v5 = vadd.f32 %v1645_v56, %v1524_v62 }
 0x21a   : > { %v6658_v32 = vadd.f32 %v1803_v35, %v1711_v5  ;;  %v5004_v35 = vld [vmem:[%s9337_s1 + $0x3b0] sm:$0xff] }
 0x21b   : > { %v5044_v5 = vld [vmem:[%s9337_s1 + $0x3f0] sm:$0xff]  ;;  %2772 = vmatpush.msrb.mxu2 %v5004_v35 }
 0x21c   : > { %9639 = vst [vmem:[#allocation79_spill] sm:$0xff] %v6658_v32  ;;  %4846 = vmatmul.msk.f32.vlgmr.msra.gmra.mxu2 %vm560_vm1, %v5216_v18  ;;  %v1413_v34 = vpop.f32.mrf.mxu0  ;;  %v1526_v50 = vpop.f32.mrf.mxu1  ;;  %4886 = vmatmul.msk.f32.vlgmr.msra.gmra.mxu3 %vm560_vm1, %v5478_v60 }
 0x21d   : > { %v1527_v2 = vadd.f32 %v1526_v50, %v1413_v34  ;;  %v4932_v34 = vld [vmem:[%s9337_s1 + $0x370] sm:$0xff]  ;;  %2930 = vmatpush.msrb.mxu3 %v5044_v5 }
 0x21e   : > { %2537 = vmatpush.msrb.mxu0 %v4932_v34 }
 0x21f   : > { %v1648_v22 = vpop.f32.mrf.mxu2  ;;  %4774 = vmatmul.msk.f32.vlgmr.msra.gmra.mxu0 %vm560_vm1, %v5402_v36  ;;  %4806 = vmatmul.msk.f32.vlgmr.msra.gmra.mxu1 %vm560_vm1, %v5217_v51  ;;  %v1806_v62 = vpop.f32.mrf.mxu3  ;;  %v4924_v51 = vld [vmem:[%s9337_s1 + $0x330] sm:$0xff] }
 0x220   : > { %v1712_v56 = vadd.f32 %v1648_v22, %v1527_v2  ;;  %2650 = vmatpush.msrb.mxu1 %v4924_v51  ;;  %v5218_v2 = vld [vmem:[%s5349_s16 + $0x38] sm:$0xff]  ;;  %v5220_v51 = vld [vmem:[%s5349_s16 + $0x48] sm:$0xff] }
 0x222   : > { %v6677_v50 = vadd.f32 %v1806_v62, %v1712_v56  ;;  %v5219_v56 = vld [vmem:[%s5349_s16 + $0x20] sm:$0xff] }
 0x224   : > { %9640 = vst [vmem:[#allocation80_spill] sm:$0xff] %v6677_v50  ;;  %4847 = vmatmul.msk.f32.gmra.mxu2 %vm560_vm1, %v5218_v2  ;;  %v1416_v22 = vpop.f32.mrf.mxu0  ;;  %v1529_v32 = vpop.f32.mrf.mxu1  ;;  %4887 = vmatmul.msk.f32.gmra.mxu3 %vm560_vm1, %v5493_v63 }
 0x225   : > { %v1530_v27 = vadd.f32 %v1529_v32, %v1416_v22 }
 0x227   : > { %v1651_v62 = vpop.f32.mrf.mxu2  ;;  %4775 = vmatmul.msk.f32.gmra.mxu0 %vm560_vm1, %v5456_v54  ;;  %4807 = vmatmul.msk.f32.gmra.mxu1 %vm560_vm1, %v5219_v56  ;;  %v1809_v35 = vpop.f32.mrf.mxu3 }
 0x228   : > { %v1713_v5 = vadd.f32 %v1651_v62, %v1530_v27 }
 0x22a   : > { %v6690_v34 = vadd.f32 %v1809_v35, %v1713_v5  ;;  %v5221_v35 = vld [vmem:[%s5349_s16 + $0x50] sm:$0xff] }
 0x22c   : > { %9641 = vst [vmem:[#allocation81_spill] sm:$0xff] %v6690_v34  ;;  %4848 = vmatmul.msk.f32.gmra.mxu2 %vm560_vm1, %v5220_v51  ;;  %v1419_v50 = vpop.f32.mrf.mxu0  ;;  %v1532_v1 = vpop.f32.mrf.mxu1  ;;  %4888 = vmatmul.msk.f32.gmra.mxu3 %vm560_vm1, %v5512_v4 }
 0x22d   : > { %v1533_v32 = vadd.f32 %v1532_v1, %v1419_v50 }
 0x22f   : > { %v1654_v22 = vpop.f32.mrf.mxu2  ;;  %4776 = vmatmul.msk.f32.gmra.mxu0 %vm560_vm1, %v5478_v60  ;;  %4808 = vmatmul.msk.f32.gmra.mxu1 %vm560_vm1, %v5216_v18  ;;  %v1812_v56 = vpop.f32.mrf.mxu3 }
 0x230   : > { %v1714_v27 = vadd.f32 %v1654_v22, %v1533_v32  ;;  %v5222_v22 = vld [vmem:[%s5349_s16 + $0x60] sm:$0xff] }
 0x232   : > { %v6699_v62 = vadd.f32 %v1812_v56, %v1714_v27 }
 0x234   : > { %9642 = vst [vmem:[#allocation82_spill] sm:$0xff] %v6699_v62  ;;  %4849 = vmatmul.msk.f32.gmra.mxu2 %vm560_vm1, %v5221_v35  ;;  %v1422_v5 = vpop.f32.mrf.mxu0  ;;  %v1535_v34 = vpop.f32.mrf.mxu1  ;;  %4889 = vmatmul.msk.f32.gmra.mxu3 %vm560_vm1, %v5539_v11 }
 0x235   : > { %v1536_v1 = vadd.f32 %v1535_v34, %v1422_v5 }
 0x237   : > { %v1657_v50 = vpop.f32.mrf.mxu2  ;;  %4777 = vmatmul.msk.f32.gmra.mxu0 %vm560_vm1, %v5493_v63  ;;  %4809 = vmatmul.msk.f32.gmra.mxu1 %vm560_vm1, %v5218_v2  ;;  %v1815_v18 = vpop.f32.mrf.mxu3 }
 0x238   : > { %v1715_v61 = vadd.f32 %v1657_v50, %v1536_v1  ;;  %v5043_v50 = vld [vmem:[%s9337_s1 + $0x3e8] sm:$0xff] }
 0x239   : > { %2931 = vmatpush.msrb.mxu3 %v5043_v50 }
 0x23a   : > { %v6708_v32 = vadd.f32 %v1815_v18, %v1715_v61  ;;  %v5003_v61 = vld [vmem:[%s9337_s1 + $0x3a8] sm:$0xff] }
 0x23b   : > { %v4931_v18 = vld [vmem:[%s9337_s1 + $0x368] sm:$0xff]  ;;  %2773 = vmatpush.msrb.mxu2 %v5003_v61 }
 0x23c   : > { %9643 = vst [vmem:[#allocation83_spill] sm:$0xff] %v6708_v32  ;;  %4850 = vmatmul.msk.f32.gmra.mxu2 %vm560_vm1, %v5222_v22  ;;  %v1425_v56 = vpop.f32.mrf.mxu0  ;;  %v1538_v27 = vpop.f32.mrf.mxu1  ;;  %4890 = vmatmul.msk.f32.gmra.mxu3 %vm560_vm1, %v5558_v16 }
 0x23d   : > { %v1539_v34 = vadd.f32 %v1538_v27, %v1425_v56  ;;  %2538 = vmatpush.msrb.mxu0 %v4931_v18  ;;  %v5223_v27 = vld [vmem:[%s5349_s16 + $0x68] sm:$0xff]  ;;  %v5224_v18 = vld [vmem:[%s5349_s16 + $0x78] sm:$0xff] }
 0x23f   : > { %v1660_v5 = vpop.f32.mrf.mxu2  ;;  %4778 = vmatmul.msk.f32.gmra.mxu0 %vm560_vm1, %v5512_v4  ;;  %4810 = vmatmul.msk.f32.gmra.mxu1 %vm560_vm1, %v5220_v51  ;;  %v1818_v2 = vpop.f32.mrf.mxu3  ;;  %v4923_v51 = vld [vmem:[%s9337_s1 + $0x328] sm:$0xff] }
 0x240   : > { %v1716_v1 = vadd.f32 %v1660_v5, %v1539_v34  ;;  %2651 = vmatpush.msrb.mxu1 %v4923_v51 }
 0x242   : > { %v6726_v56 = vadd.f32 %v1818_v2, %v1716_v1 }
 0x244   : > { %9644 = vst [vmem:[#allocation84_spill] sm:$0xff] %v6726_v56  ;;  %4851 = vmatmul.msk.f32.gmra.mxu2 %vm560_vm1, %v5223_v27  ;;  %v1428_v34 = vpop.f32.mrf.mxu0  ;;  %v1541_v5 = vpop.f32.mrf.mxu1  ;;  %4891 = vmatmul.msk.f32.gmra.mxu3 %vm560_vm1, %v5573_v19 }
 0x245   : > { %v1542_v32 = vadd.f32 %v1541_v5, %v1428_v34 }
 0x247   : > { %v1663_v2 = vpop.f32.mrf.mxu2  ;;  %4779 = vmatmul.msk.f32.gmra.mxu0 %vm560_vm1, %v5539_v11  ;;  %4811 = vmatmul.msk.f32.gmra.mxu1 %vm560_vm1, %v5221_v35  ;;  %v1821_v1 = vpop.f32.mrf.mxu3 }
 0x248   : > { %v1717_v61 = vadd.f32 %v1663_v2, %v1542_v32 }
 0x24a   : > { %v6738_v50 = vadd.f32 %v1821_v1, %v1717_v61  ;;  %v5225_v1 = vld [vmem:[%s5349_s16 + $0x80] sm:$0xff] }
 0x24c   : > { %9645 = vst [vmem:[#allocation85_spill] sm:$0xff] %v6738_v50  ;;  %4852 = vmatmul.msk.f32.gmra.mxu2 %vm560_vm1, %v5224_v18  ;;  %v1431_v51 = vpop.f32.mrf.mxu0  ;;  %v1544_v56 = vpop.f32.mrf.mxu1  ;;  %4892 = vmatmul.msk.f32.gmra.mxu3 %vm560_vm1, %v5592_v25 }
 0x24d   : > { %v1545_v34 = vadd.f32 %v1544_v56, %v1431_v51 }
 0x24f   : > { %v1666_v5 = vpop.f32.mrf.mxu2  ;;  %4780 = vmatmul.msk.f32.gmra.mxu0 %vm560_vm1, %v5558_v16  ;;  %4812 = vmatmul.msk.f32.gmra.mxu1 %vm560_vm1, %v5222_v22  ;;  %v1824_v35 = vpop.f32.mrf.mxu3 }
 0x250   : > { %v1718_v32 = vadd.f32 %v1666_v5, %v1545_v34  ;;  %v5226_v5 = vld [vmem:[%s5349_s16 + $0x90] sm:$0xff] }
 0x252   : > { %v6747_v2 = vadd.f32 %v1824_v35, %v1718_v32 }
 0x254   : > { %9646 = vst [vmem:[#allocation86_spill] sm:$0xff] %v6747_v2  ;;  %4853 = vmatmul.msk.f32.gmra.mxu2 %vm560_vm1, %v5225_v1  ;;  %v1434_v61 = vpop.f32.mrf.mxu0  ;;  %v1547_v50 = vpop.f32.mrf.mxu1  ;;  %4893 = vmatmul.msk.f32.gmra.mxu3 %vm560_vm1, %v5619_v33 }
 0x255   : > { %v1548_v56 = vadd.f32 %v1547_v50, %v1434_v61 }
 0x257   : > { %v1669_v51 = vpop.f32.mrf.mxu2  ;;  %4781 = vmatmul.msk.f32.gmra.mxu0 %vm560_vm1, %v5573_v19  ;;  %4813 = vmatmul.msk.f32.gmra.mxu1 %vm560_vm1, %v5223_v27  ;;  %v1827_v22 = vpop.f32.mrf.mxu3 }
 0x258   : > { %v1719_v62 = vadd.f32 %v1669_v51, %v1548_v56  ;;  %v5042_v51 = vld [vmem:[%s9337_s1 + $0x3e0] sm:$0xff] }
 0x259   : > { %2932 = vmatpush.msrb.mxu3 %v5042_v51 }
 0x25a   : > { %v6756_v34 = vadd.f32 %v1827_v22, %v1719_v62  ;;  %v5002_v62 = vld [vmem:[%s9337_s1 + $0x3a0] sm:$0xff] }
 0x25b   : > { %v4930_v22 = vld [vmem:[%s9337_s1 + $0x360] sm:$0xff]  ;;  %2774 = vmatpush.msrb.mxu2 %v5002_v62 }
 0x25c   : > { %9647 = vst [vmem:[#allocation87_spill] sm:$0xff] %v6756_v34  ;;  %4854 = vmatmul.msk.f32.gmra.mxu2 %vm560_vm1, %v5226_v5  ;;  %v1437_v35 = vpop.f32.mrf.mxu0  ;;  %v1550_v32 = vpop.f32.mrf.mxu1  ;;  %4894 = vmatmul.msk.f32.gmra.mxu3 %vm560_vm1, %v5638_v42 }
 0x25d   : > { %v1551_v50 = vadd.f32 %v1550_v32, %v1437_v35  ;;  %2539 = vmatpush.msrb.mxu0 %v4930_v22  ;;  %v5227_v32 = vld [vmem:[%s5349_s16 + $0x98] sm:$0xff]  ;;  %v5228_v22 = vld [vmem:[%s5349_s16 + $0xa8] sm:$0xff] }
 0x25f   : > { %v1672_v61 = vpop.f32.mrf.mxu2  ;;  %4782 = vmatmul.msk.f32.gmra.mxu0 %vm560_vm1, %v5592_v25  ;;  %4814 = vmatmul.msk.f32.gmra.mxu1 %vm560_vm1, %v5224_v18  ;;  %v1830_v27 = vpop.f32.mrf.mxu3  ;;  %v4922_v18 = vld [vmem:[%s9337_s1 + $0x320] sm:$0xff] }
 0x260   : > { %v1720_v56 = vadd.f32 %v1672_v61, %v1551_v50  ;;  %2652 = vmatpush.msrb.mxu1 %v4922_v18 }
 0x262   : > { %v6774_v35 = vadd.f32 %v1830_v27, %v1720_v56 }
 0x264   : > { %9648 = vst [vmem:[#allocation88_spill] sm:$0xff] %v6774_v35  ;;  %4855 = vmatmul.msk.f32.gmra.mxu2 %vm560_vm1, %v5227_v32  ;;  %v1440_v50 = vpop.f32.mrf.mxu0  ;;  %v1553_v61 = vpop.f32.mrf.mxu1  ;;  %4895 = vmatmul.msk.f32.gmra.mxu3 %vm560_vm1, %v5653_v46 }
 0x265   : > { %v1554_v34 = vadd.f32 %v1553_v61, %v1440_v50 }
 0x267   : > { %v1675_v27 = vpop.f32.mrf.mxu2  ;;  %4783 = vmatmul.msk.f32.gmra.mxu0 %vm560_vm1, %v5619_v33  ;;  %4815 = vmatmul.msk.f32.gmra.mxu1 %vm560_vm1, %v5225_v1  ;;  %v1833_v56 = vpop.f32.mrf.mxu3 }
 0x268   : > { %v1721_v62 = vadd.f32 %v1675_v27, %v1554_v34 }
 0x26a   : > { %v6786_v51 = vadd.f32 %v1833_v56, %v1721_v62  ;;  %v5229_v56 = vld [vmem:[%s5349_s16 + $0xb0] sm:$0xff] }
 0x26c   : > { %9649 = vst [vmem:[#allocation89_spill] sm:$0xff] %v6786_v51  ;;  %4856 = vmatmul.msk.f32.gmra.mxu2 %vm560_vm1, %v5228_v22  ;;  %v1443_v18 = vpop.f32.mrf.mxu0  ;;  %v1556_v35 = vpop.f32.mrf.mxu1  ;;  %4896 = vmatmul.msk.f32.gmra.mxu3 %vm560_vm1, %v5672_v52 }
 0x26d   : > { %v1557_v50 = vadd.f32 %v1556_v35, %v1443_v18 }
 0x26f   : > { %v1678_v61 = vpop.f32.mrf.mxu2  ;;  %4784 = vmatmul.msk.f32.gmra.mxu0 %vm560_vm1, %v5638_v42  ;;  %4816 = vmatmul.msk.f32.gmra.mxu1 %vm560_vm1, %v5226_v5  ;;  %v1836_v1 = vpop.f32.mrf.mxu3 }
 0x270   : > { %v1722_v34 = vadd.f32 %v1678_v61, %v1557_v50 }
 0x272   : > { %v6795_v27 = vadd.f32 %v1836_v1, %v1722_v34  ;;  %v5230_v1 = vld [vmem:[%s5349_s16 + $0xc0] sm:$0xff] }
 0x274   : > { %9650 = vst [vmem:[#allocation90_spill] sm:$0xff] %v6795_v27  ;;  %4857 = vmatmul.msk.f32.gmra.mxu2 %vm560_vm1, %v5229_v56  ;;  %v1446_v62 = vpop.f32.mrf.mxu0  ;;  %v1559_v51 = vpop.f32.mrf.mxu1  ;;  %4897 = vmatmul.msk.f32.gmra.mxu3 %vm560_vm1, %v5699_v6 }
 0x275   : > { %v1560_v35 = vadd.f32 %v1559_v51, %v1446_v62 }
 0x277   : > { %v1681_v18 = vpop.f32.mrf.mxu2  ;;  %4785 = vmatmul.msk.f32.gmra.mxu0 %vm560_vm1, %v5653_v46  ;;  %4817 = vmatmul.msk.f32.gmra.mxu1 %vm560_vm1, %v5227_v32  ;;  %v1839_v5 = vpop.f32.mrf.mxu3 }
 0x278   : > { %v1723_v50 = vadd.f32 %v1681_v18, %v1560_v35  ;;  %v5231_v18 = vld [vmem:[%s5349_s16 + $0xc8] sm:$0xff] }
 0x27a   : > { %v6804_v61 = vadd.f32 %v1839_v5, %v1723_v50 }
 0x27c   : > { %9651 = vst [vmem:[#allocation91_spill] sm:$0xff] %v6804_v61  ;;  %4858 = vmatmul.msk.f32.gmra.mxu2 %vm560_vm1, %v5230_v1  ;;  %v1449_v34 = vpop.f32.mrf.mxu0  ;;  %v1562_v27 = vpop.f32.mrf.mxu1  ;;  %4898 = vmatmul.msk.f32.gmra.mxu3 %vm560_vm1, %v5718_v14 }
 0x27d   : > { %v1563_v51 = vadd.f32 %v1562_v27, %v1449_v34 }
 0x27f   : > { %v1684_v62 = vpop.f32.mrf.mxu2  ;;  %4786 = vmatmul.msk.f32.gmra.mxu0 %vm560_vm1, %v5672_v52  ;;  %4818 = vmatmul.msk.f32.gmra.mxu1 %vm560_vm1, %v5228_v22  ;;  %v1842_v32 = vpop.f32.mrf.mxu3 }
 0x280   : > { %v1724_v2 = vadd.f32 %v1684_v62, %v1563_v51 }
 0x282   : > { %v6813_v35 = vadd.f32 %v1842_v32, %v1724_v2 }
 0x284   : > { %9652 = vst [vmem:[#allocation92_spill] sm:$0xff] %v6813_v35  ;;  %4859 = vmatmul.msk.f32.gmra.mxu2 %vm560_vm1, %v5231_v18  ;;  %v1452_v5 = vpop.f32.mrf.mxu0  ;;  %v1565_v50 = vpop.f32.mrf.mxu1  ;;  %4899 = vmatmul.msk.f32.gmra.mxu3 %vm560_vm1, %v9595_v20 }
 0x285   : > { %v1566_v61 = vadd.f32 %v1565_v50, %v1452_v5  ;;  %v5041_v50 = vld [vmem:[%s9337_s1 + $0x3d8] sm:$0xff] }
 0x286   : > { %2933 = vmatpush.msrb.mxu3 %v5041_v50 }
 0x287   : > { %v1687_v27 = vpop.f32.mrf.mxu2  ;;  %4787 = vmatmul.msk.f32.gmra.mxu0 %vm560_vm1, %v5699_v6  ;;  %4819 = vmatmul.msk.f32.gmra.mxu1 %vm560_vm1, %v5229_v56  ;;  %v1845_v22 = vpop.f32.mrf.mxu3 }
 0x288   : > { %v1725_v34 = vadd.f32 %v1687_v27, %v1566_v61  ;;  %v5001_v61 = vld [vmem:[%s9337_s1 + $0x398] sm:$0xff] }
 0x289   : > { %v4929_v27 = vld [vmem:[%s9337_s1 + $0x358] sm:$0xff]  ;;  %2775 = vmatpush.msrb.mxu2 %v5001_v61 }
 0x28a   : > { %v6822_v51 = vadd.f32 %v1845_v22, %v1725_v34  ;;  %2540 = vmatpush.msrb.mxu0 %v4929_v27 }
 0x28c   : > { %9653 = vst [vmem:[#allocation93_spill] sm:$0xff] %v6822_v51  ;;  %4860 = vmatmul.msk.f32.gmra.mxu2 %vm560_vm1, %v6327_v39  ;;  %v1455_v2 = vpop.f32.mrf.mxu0  ;;  %v1568_v62 = vpop.f32.mrf.mxu1  ;;  %4900 = vmatmul.msk.f32.gmra.mxu3 %vm560_vm1, %v9598_v37 }
 0x28d   : > { %v1569_v32 = vadd.f32 %v1568_v62, %v1455_v2 }
 0x28f   : > { %v1690_v5 = vpop.f32.mrf.mxu2  ;;  %4788 = vmatmul.msk.f32.gmra.mxu0 %vm560_vm1, %v5718_v14  ;;  %4820 = vmatmul.msk.f32.gmra.mxu1 %vm560_vm1, %v5230_v1  ;;  %v1848_v56 = vpop.f32.mrf.mxu3  ;;  %v4921_v1 = vld [vmem:[%s9337_s1 + $0x318] sm:$0xff] }
 0x290   : > { %v1726_v22 = vadd.f32 %v1690_v5, %v1569_v32  ;;  %2653 = vmatpush.msrb.mxu1 %v4921_v1 }
 0x292   : > { %v6843_v34 = vadd.f32 %v1848_v56, %v1726_v22 }
 0x294   : > { %9654 = vst [vmem:[#allocation94_spill] sm:$0xff] %v6843_v34  ;;  %4861 = vmatmul.msk.f32.gmra.mxu2 %vm560_vm1, %v6331_v53  ;;  %v1458_v2 = vpop.f32.mrf.mxu0  ;;  %v1571_v62 = vpop.f32.mrf.mxu1  ;;  %4901 = vmatmul.msk.f32.gmra.mxu3 %vm560_vm1, %v9601_v29 }
 0x295   : > { %v1572_v51 = vadd.f32 %v1571_v62, %v1458_v2  ;;  %v5000_v2 = vld [vmem:[%s9337_s1 + $0x390] sm:$0xff] }
 0x296   : > { %v5040_v62 = vld [vmem:[%s9337_s1 + $0x3d0] sm:$0xff]  ;;  %2776 = vmatpush.msrb.mxu2 %v5000_v2 }
 0x297   : > { %v1693_v32 = vpop.f32.mrf.mxu2  ;;  %4789 = vmatmul.msk.f32.gmra.mxu0 %vm560_vm1, %v9595_v20  ;;  %4821 = vmatmul.msk.f32.gmra.mxu1 %vm560_vm1, %v5231_v18  ;;  %v1851_v5 = vpop.f32.mrf.mxu3 }
 0x298   : > { %v1727_v61 = vadd.f32 %v1693_v32, %v1572_v51  ;;  %v4928_v32 = vld [vmem:[%s9337_s1 + $0x350] sm:$0xff]  ;;  %2934 = vmatpush.msrb.mxu3 %v5040_v62 }
 0x299   : > { %2541 = vmatpush.msrb.mxu0 %v4928_v32 }
 0x29a   : > { %v6852_v50 = vadd.f32 %v1851_v5, %v1727_v61 }
 0x29c   : > { %9655 = vst [vmem:[#allocation95_spill] sm:$0xff] %v6852_v50  ;;  %4862 = vmatmul.msk.f32.gmra.mxu2 %vm560_vm1, %v6374_v41  ;;  %v1953_v56 = vpop.f32.mrf.mxu0  ;;  %v2066_v27 = vpop.f32.mrf.mxu1  ;;  %4902 = vmatmul.msk.f32.gmra.mxu3 %vm560_vm1, %v9604_v15 }
 0x29d   : > { %v2067_v22 = vadd.f32 %v2066_v27, %v1953_v56 }
 0x29f   : > { %v2192_v1 = vpop.f32.mrf.mxu2  ;;  %4790 = vmatmul.msk.f32.gmra.mxu0 %vm560_vm1, %v9598_v37  ;;  %4822 = vmatmul.msk.f32.gmra.mxu1 %vm560_vm1, %v6327_v39  ;;  %v2350_v18 = vpop.f32.mrf.mxu3  ;;  %v4920_v39 = vld [vmem:[%s9337_s1 + $0x310] sm:$0xff] }
 0x2a0   : > { %v2288_v51 = vadd.f32 %v2192_v1, %v2067_v22  ;;  %2654 = vmatpush.msrb.mxu1 %v4920_v39 }
 0x2a2   : > { %v6871_v5 = vadd.f32 %v2350_v18, %v2288_v51 }
 0x2a4   : > { %4863 = vmatmul.msk.f32.gmra.mxu2 %vm560_vm1, %v6378_v8  ;;  %v1956_v61 = vpop.f32.mrf.mxu0  ;;  %v2069_v56 = vpop.f32.mrf.mxu1  ;;  %4903 = vmatmul.msk.f32.gmra.mxu3 %vm560_vm1, %v9607_v45 }
 0x2a5   : > { %v2070_v27 = vadd.f32 %v2069_v56, %v1956_v61 }
 0x2a7   : > { %v2195_v22 = vpop.f32.mrf.mxu2  ;;  %4791 = vmatmul.msk.f32.gmra.mxu0 %vm560_vm1, %v9601_v29  ;;  %4823 = vmatmul.msk.f32.gmra.mxu1 %vm560_vm1, %v6331_v53  ;;  %v2353_v1 = vpop.f32.mrf.mxu3 }
 0x2a8   : > { %v2289_v18 = vadd.f32 %v2195_v22, %v2070_v27 }
 0x2aa   : > { %v6884_v51 = vadd.f32 %v2353_v1, %v2289_v18 }
 0x2ac   : > { %4864 = vmatmul.msk.f32.gmra.mxu2 %vm560_vm1, %v6409_v47  ;;  %v1959_v2 = vpop.f32.mrf.mxu0  ;;  %v2072_v62 = vpop.f32.mrf.mxu1  ;;  %4904 = vmatmul.msk.f32.gmra.mxu3 %vm560_vm1, %v9610_v9 }
 0x2ad   : > { %v2073_v32 = vadd.f32 %v2072_v62, %v1959_v2 }
 0x2af   : > { %v2198_v39 = vpop.f32.mrf.mxu2  ;;  %4792 = vmatmul.msk.f32.gmra.mxu0 %vm560_vm1, %v9604_v15  ;;  %4824 = vmatmul.msk.f32.gmra.mxu1 %vm560_vm1, %v6374_v41  ;;  %v2356_v53 = vpop.f32.mrf.mxu3 }
 0x2b0   : > { %v2290_v61 = vadd.f32 %v2198_v39, %v2073_v32 }
 0x2b2   : > { %v6894_v56 = vadd.f32 %v2356_v53, %v2290_v61 }
 0x2b4   : > { %4865 = vmatmul.msk.f32.gmra.mxu2 %vm560_vm1, %v6413_v48  ;;  %v1962_v27 = vpop.f32.mrf.mxu0  ;;  %v2075_v22 = vpop.f32.mrf.mxu1  ;;  %4905 = vmatmul.msk.f32.gmra.mxu3 %vm560_vm1, %v9613_v17 }
 0x2b5   : > { %v2076_v1 = vadd.f32 %v2075_v22, %v1962_v27  ;;  %v4999_v22 = vld [vmem:[%s9337_s1 + $0x388] sm:$0xff] }
 0x2b6   : > { %2777 = vmatpush.msrb.mxu2 %v4999_v22 }
 0x2b7   : > { %v2201_v18 = vpop.f32.mrf.mxu2  ;;  %4793 = vmatmul.msk.f32.gmra.mxu0 %vm560_vm1, %v9607_v45  ;;  %4825 = vmatmul.msk.f32.gmra.mxu1 %vm560_vm1, %v6378_v8  ;;  %v2359_v41 = vpop.f32.mrf.mxu3 }
 0x2b8   : > { %v2291_v2 = vadd.f32 %v2201_v18, %v2076_v1  ;;  %v5039_v1 = vld [vmem:[%s9337_s1 + $0x3c8] sm:$0xff] }
 0x2b9   : > { %v4927_v18 = vld [vmem:[%s9337_s1 + $0x348] sm:$0xff]  ;;  %2935 = vmatpush.msrb.mxu3 %v5039_v1 }
 0x2ba   : > { %v6904_v62 = vadd.f32 %v2359_v41, %v2291_v2  ;;  %2542 = vmatpush.msrb.mxu0 %v4927_v18 }
 0x2bc   : > { %4866 = vmatmul.msk.f32.gmra.mxu2 %vm560_vm1, %v6456_v10  ;;  %v1965_v32 = vpop.f32.mrf.mxu0  ;;  %v2078_v39 = vpop.f32.mrf.mxu1  ;;  %4906 = vmatmul.msk.f32.gmra.mxu3 %vm560_vm1, %v9616_v7 }
 0x2bd   : > { %v2079_v53 = vadd.f32 %v2078_v39, %v1965_v32 }
 0x2bf   : > { %v2204_v61 = vpop.f32.mrf.mxu2  ;;  %4794 = vmatmul.msk.f32.gmra.mxu0 %vm560_vm1, %v9610_v9  ;;  %4826 = vmatmul.msk.f32.gmra.mxu1 %vm560_vm1, %v6409_v47  ;;  %v2362_v8 = vpop.f32.mrf.mxu3  ;;  %v4919_v47 = vld [vmem:[%s9337_s1 + $0x308] sm:$0xff] }
 0x2c0   : > { %v2292_v27 = vadd.f32 %v2204_v61, %v2079_v53  ;;  %2655 = vmatpush.msrb.mxu1 %v4919_v47 }
 0x2c2   : > { %v6923_v41 = vadd.f32 %v2362_v8, %v2292_v27 }
 0x2c4   : > { %4867 = vmatmul.msk.f32.gmra.mxu2 %vm560_vm1, %v6460_v40  ;;  %v1968_v2 = vpop.f32.mrf.mxu0  ;;  %v2081_v32 = vpop.f32.mrf.mxu1  ;;  %4907 = vmatmul.msk.f32.gmra.mxu3 %vm560_vm1, %v9619_v24 }
 0x2c5   : > { %v2082_v39 = vadd.f32 %v2081_v32, %v1968_v2 }
 0x2c7   : > { %v2207_v53 = vpop.f32.mrf.mxu2  ;;  %4795 = vmatmul.msk.f32.gmra.mxu0 %vm560_vm1, %v9613_v17  ;;  %4827 = vmatmul.msk.f32.gmra.mxu1 %vm560_vm1, %v6413_v48  ;;  %v2365_v61 = vpop.f32.mrf.mxu3 }
 0x2c8   : > { %v2293_v8 = vadd.f32 %v2207_v53, %v2082_v39 }
 0x2ca   : > { %v6936_v27 = vadd.f32 %v2365_v61, %v2293_v8 }
 0x2cc   : > { %4868 = vmatmul.msk.f32.gmra.mxu2 %vm560_vm1, %v6491_v23  ;;  %v1971_v22 = vpop.f32.mrf.mxu0  ;;  %v2084_v1 = vpop.f32.mrf.mxu1  ;;  %4908 = vmatmul.msk.f32.gmra.mxu3 %vm560_vm1, %v9622_v26 }
 0x2cd   : > { %v2085_v18 = vadd.f32 %v2084_v1, %v1971_v22 }
 0x2cf   : > { %v2210_v47 = vpop.f32.mrf.mxu2  ;;  %4796 = vmatmul.msk.f32.gmra.mxu0 %vm560_vm1, %v9616_v7  ;;  %4828 = vmatmul.msk.f32.gmra.mxu1 %vm560_vm1, %v6456_v10  ;;  %v2368_v48 = vpop.f32.mrf.mxu3 }
 0x2d0   : > { %v2294_v2 = vadd.f32 %v2210_v47, %v2085_v18 }
 0x2d2   : > { %v6946_v32 = vadd.f32 %v2368_v48, %v2294_v2 }
 0x2d4   : > { %4869 = vmatmul.msk.f32.gmra.mxu2 %vm560_vm1, %v6495_v38  ;;  %v1974_v39 = vpop.f32.mrf.mxu0  ;;  %v2087_v53 = vpop.f32.mrf.mxu1  ;;  %4909 = vmatmul.msk.f32.gmra.mxu3 %vm560_vm1, %v9625_v28 }
 0x2d5   : > { %v2088_v61 = vadd.f32 %v2087_v53, %v1974_v39  ;;  %v4998_v53 = vld [vmem:[%s9337_s1 + $0x380] sm:$0xff] }
 0x2d6   : > { %2778 = vmatpush.msrb.mxu2 %v4998_v53 }
 0x2d7   : > { %v2213_v8 = vpop.f32.mrf.mxu2  ;;  %4797 = vmatmul.msk.f32.gmra.mxu0 %vm560_vm1, %v9619_v24  ;;  %4829 = vmatmul.msk.f32.gmra.mxu1 %vm560_vm1, %v6460_v40  ;;  %v2371_v10 = vpop.f32.mrf.mxu3 }
 0x2d8   : > { %v2295_v22 = vadd.f32 %v2213_v8, %v2088_v61  ;;  %v5038_v61 = vld [vmem:[%s9337_s1 + $0x3c0] sm:$0xff] }
 0x2d9   : > { %v4926_v8 = vld [vmem:[%s9337_s1 + $0x340] sm:$0xff]  ;;  %2936 = vmatpush.msrb.mxu3 %v5038_v61 }
 0x2da   : > { %v6956_v1 = vadd.f32 %v2371_v10, %v2295_v22  ;;  %2543 = vmatpush.msrb.mxu0 %v4926_v8 }
 0x2dc   : > { %4870 = vmatmul.msk.f32.gmra.mxu2 %vm560_vm1, %v6538_v49  ;;  %v1977_v18 = vpop.f32.mrf.mxu0  ;;  %v2090_v47 = vpop.f32.mrf.mxu1  ;;  %4910 = vmatmul.msk.f32.gmra.mxu3 %vm560_vm1, %v9628_v44 }
 0x2dd   : > { %v2091_v48 = vadd.f32 %v2090_v47, %v1977_v18 }
 0x2df   : > { %v2216_v2 = vpop.f32.mrf.mxu2  ;;  %4798 = vmatmul.msk.f32.gmra.mxu0 %vm560_vm1, %v9622_v26  ;;  %4830 = vmatmul.msk.f32.gmra.mxu1 %vm560_vm1, %v6491_v23  ;;  %v2374_v40 = vpop.f32.mrf.mxu3  ;;  %v4918_v23 = vld [vmem:[%s9337_s1 + $0x300] sm:$0xff] }
 0x2e0   : > { %v2296_v39 = vadd.f32 %v2216_v2, %v2091_v48  ;;  %2656 = vmatpush.msrb.mxu1 %v4918_v23 }
 0x2e2   : > { %v6975_v10 = vadd.f32 %v2374_v40, %v2296_v39 }
 0x2e4   : > { %4871 = vmatmul.msk.f32.gmra.mxu2 %vm560_vm1, %v6542_v0  ;;  %v1980_v22 = vpop.f32.mrf.mxu0  ;;  %v2093_v18 = vpop.f32.mrf.mxu1  ;;  %4911 = vmatmul.msk.f32.gmra.mxu3 %vm560_vm1, %v9631_v12 }
 0x2e5   : > { %v2094_v47 = vadd.f32 %v2093_v18, %v1980_v22 }
 0x2e7   : > { %v2219_v48 = vpop.f32.mrf.mxu2  ;;  %4799 = vmatmul.msk.f32.gmra.mxu0 %vm560_vm1, %v9625_v28  ;;  %4831 = vmatmul.msk.f32.gmra.mxu1 %vm560_vm1, %v6495_v38  ;;  %v2377_v2 = vpop.f32.mrf.mxu3 }
 0x2e8   : > { %v2297_v40 = vadd.f32 %v2219_v48, %v2094_v47 }
 0x2ea   : > { %v6988_v39 = vadd.f32 %v2377_v2, %v2297_v40 }
 0x2ec   : > { %4872 = vmatmul.msk.f32.gmra.mxu2 %vm560_vm1, %v6573_v43  ;;  %v1983_v53 = vpop.f32.mrf.mxu0  ;;  %v2096_v61 = vpop.f32.mrf.mxu1  ;;  %4912 = vmatmul.msk.f32.gmra.mxu3 %vm560_vm1, %v5977_v3 }
 0x2ed   : > { %v2097_v8 = vadd.f32 %v2096_v61, %v1983_v53 }
 0x2ef   : > { %v2222_v23 = vpop.f32.mrf.mxu2  ;;  %4800 = vmatmul.msk.f32.gmra.mxu0 %vm560_vm1, %v9628_v44  ;;  %4832 = vmatmul.msk.f32.gmra.mxu1 %vm560_vm1, %v6538_v49  ;;  %v2380_v38 = vpop.f32.mrf.mxu3 }
 0x2f0   : > { %v2298_v22 = vadd.f32 %v2222_v23, %v2097_v8 }
 0x2f2   : > { %v6998_v18 = vadd.f32 %v2380_v38, %v2298_v22 }
 0x2f4   : > { %4873 = vmatmul.msk.f32.gmra.mxu2 %vm560_vm1, %v6577_v58  ;;  %v1986_v47 = vpop.f32.mrf.mxu0  ;;  %v2099_v48 = vpop.f32.mrf.mxu1  ;;  %4913 = vmatmul.msk.f32.gmra.mxu3 %vm560_vm1, %v5993_v30 }
 0x2f5   : > { %v2100_v2 = vadd.f32 %v2099_v48, %v1986_v47 }
 0x2f7   : > { %v2225_v40 = vpop.f32.mrf.mxu2  ;;  %4801 = vmatmul.msk.f32.gmra.mxu0 %vm560_vm1, %v9631_v12  ;;  %4833 = vmatmul.msk.f32.gmra.mxu1 %vm560_vm1, %v6542_v0  ;;  %v2383_v49 = vpop.f32.mrf.mxu3 }
 0x2f8   : > { %v2299_v53 = vadd.f32 %v2225_v40, %v2100_v2  ;;  %v303_v2 = vld [vmem:[%s5349_s16 + $0x198] sm:$0xff]  ;;  %v304_v40 = vld [vmem:[%s5349_s16 + $0x1a0] sm:$0xff] }
 0x2f9   : > { %v533_v50 = vrot.slane %v304_v40, 1 }
 0x2fa   : > { %v7008_v61 = vadd.f32 %v2383_v49, %v2299_v53 }
 0x2fc   : > { %9656 = vst [vmem:[#allocation96_spill] sm:$0xff] %v7008_v61  ;;  %4874 = vmatmul.msk.f32.gmra.mxu2 %vm560_vm1, %v6620_v21  ;;  %v1989_v8 = vpop.f32.mrf.mxu0  ;;  %v2102_v23 = vpop.f32.mrf.mxu1  ;;  %4914 = vmatmul.msk.f32.gmra.mxu3 %vm560_vm1, %v6020_v31 }
 0x2fd   : > { %v2103_v38 = vadd.f32 %v2102_v23, %v1989_v8  ;;  %v532_v23 = vrot.slane %v303_v2, 1 }
 0x2ff   : > { %v2228_v22 = vpop.f32.mrf.mxu2  ;;  %4802 = vmatmul.msk.f32.gmra.mxu0 %vm560_vm1, %v5977_v3  ;;  %4834 = vmatmul.msk.f32.gmra.mxu1 %vm560_vm1, %v6573_v43  ;;  %v2386_v0 = vpop.f32.mrf.mxu3 }
 0x300   : > { %v2300_v47 = vadd.f32 %v2228_v22, %v2103_v38  ;;  %v7031_v22 = vsel %vm354_vm0, %v532_v23, %v533_v50 }
 0x302   : > { %v7018_v48 = vadd.f32 %v2386_v0, %v2300_v47  ;;  %v305_v47 = vld [vmem:[%s5349_s16 + $0x1a8] sm:$0x3] }
 0x304   : > { %9657 = vst [vmem:[#allocation97_spill] sm:$0xff] %v7018_v48  ;;  %4875 = vmatmul.msk.f32.gmra.mxu2 %vm560_vm1, %v6624_v55  ;;  %v1992_v49 = vpop.f32.mrf.mxu0  ;;  %v2105_v53 = vpop.f32.mrf.mxu1  ;;  %4915 = vmatmul.msk.f32.gmra.mxu3 %vm560_vm1, %v6036_v59  ;;  %v535_v48 = vrot.slane %v305_v47, 1 }
 0x305   : > { %v2106_v8 = vadd.f32 %v2105_v53, %v1992_v49 }
 0x307   : > { %v2231_v34 = vpop.f32.mrf.mxu2  ;;  %4803 = vmatmul.msk.f32.gmra.mxu0 %vm560_vm1, %v5993_v30  ;;  %4835 = vmatmul.msk.f32.gmra.mxu1 %vm560_vm1, %v6577_v58  ;;  %v2389_v43 = vpop.f32.mrf.mxu3 }
 0x308   : > { %v2301_v38 = vadd.f32 %v2231_v34, %v2106_v8  ;;  %v7044_v8 = vsel %vm354_vm0, %v533_v50, %v535_v48 }
 0x30a   : > { %v7033_v0 = vadd.f32 %v2389_v43, %v2301_v38 }
 0x30c   : > { %4876 = vmatmul.msk.f32.gmra.mxu2 %vm560_vm1, %v303_v2  ;;  %v1995_v49 = vpop.f32.mrf.mxu0  ;;  %v2108_v53 = vpop.f32.mrf.mxu1  ;;  %4916 = vmatmul.msk.f32.gmra.mxu3 %vm560_vm1, %v7031_v22 }
 0x30d   : > { %v2109_v35 = vadd.f32 %v2108_v53, %v1995_v49 }
 0x30f   : > { %v2234_v61 = vpop.f32.mrf.mxu2  ;;  %4804 = vmatmul.msk.f32.gmra.mxu0 %vm560_vm1, %v6020_v31  ;;  %4836 = vmatmul.msk.f32.gmra.mxu1 %vm560_vm1, %v6620_v21  ;;  %v2392_v58 = vpop.f32.mrf.mxu3 }
 0x310   : > { %v2302_v34 = vadd.f32 %v2234_v61, %v2109_v35 }
 0x312   : > { %v7046_v2 = vadd.f32 %v2392_v58, %v2302_v34  ;;  %v9659_v58 = vld [vmem:[#allocation31_spill] sm:$0xff] }
 0x314   : > { %4877 = vmatmul.msk.f32.gmra.mxu2 %vm560_vm1, %v304_v40  ;;  %v1998_v23 = vpop.f32.mrf.mxu0  ;;  %v2111_v43 = vpop.f32.mrf.mxu1  ;;  %4917 = vmatmul.msk.f32.gmra.mxu3 %vm560_vm1, %v7044_v8  ;;  %v9658_v40 = vld [vmem:[#allocation35_spill] sm:$0xff] }
 0x315   : > { %v2112_v38 = vadd.f32 %v2111_v43, %v1998_v23 }
 0x317   : > { %v2237_v47 = vpop.f32.mrf.mxu2  ;;  %4805 = vmatmul.msk.f32.gmra.mxu0 %vm560_vm1, %v6036_v59  ;;  %4837 = vmatmul.msk.f32.gmra.mxu1 %vm560_vm1, %v6624_v55  ;;  %v2395_v21 = vpop.f32.mrf.mxu3 }
 0x318   : > { %v2303_v35 = vadd.f32 %v2237_v47, %v2112_v38  ;;  %v9660_v47 = vld [vmem:[#allocation37_spill] sm:$0xff] }
 0x31a   : > { %v7055_v50 = vadd.f32 %v2395_v21, %v2303_v35 }
 0x31c   : > { %5006 = vmatmul.msk.f32.vlgmr.msrb.gmra.mxu2 %vm560_vm1, %v5478_v60  ;;  %v2001_v61 = vpop.f32.mrf.mxu0  ;;  %v2114_v48 = vpop.f32.mrf.mxu1  ;;  %5046 = vmatmul.msk.f32.vlgmr.msrb.gmra.mxu3 %vm560_vm1, %v9658_v40 }
 0x31d   : > { %v2115_v49 = vadd.f32 %v2114_v48, %v2001_v61  ;;  %v9661_v61 = vld [vmem:[#allocation33_spill] sm:$0xff] }
 0x31f   : > { %v2240_v53 = vpop.f32.mrf.mxu2  ;;  %4934 = vmatmul.msk.f32.vlgmr.msrb.gmra.mxu0 %vm560_vm1, %v9659_v58  ;;  %4966 = vmatmul.msk.f32.vlgmr.msrb.gmra.mxu1 %vm560_vm1, %v5402_v36  ;;  %v2398_v55 = vpop.f32.mrf.mxu3 }
 0x320   : > { %v2304_v34 = vadd.f32 %v2240_v53, %v2115_v49 }
 0x322   : > { %v7065_v23 = vadd.f32 %v2398_v55, %v2304_v34  ;;  %v9662_v55 = vld [vmem:[#allocation39_spill] sm:$0xff] }
 0x324   : > { %5007 = vmatmul.msk.f32.gmra.mxu2 %vm560_vm1, %v5493_v63  ;;  %v2004_v43 = vpop.f32.mrf.mxu0  ;;  %v2117_v38 = vpop.f32.mrf.mxu1  ;;  %5047 = vmatmul.msk.f32.gmra.mxu3 %vm560_vm1, %v9660_v47 }
 0x325   : > { %v2118_v21 = vadd.f32 %v2117_v38, %v2004_v43 }
 0x327   : > { %v2243_v35 = vpop.f32.mrf.mxu2  ;;  %4935 = vmatmul.msk.f32.gmra.mxu0 %vm560_vm1, %v9661_v61  ;;  %4967 = vmatmul.msk.f32.gmra.mxu1 %vm560_vm1, %v5456_v54  ;;  %v2401_v36 = vpop.f32.mrf.mxu3 }
 0x328   : > { %v2305_v48 = vadd.f32 %v2243_v35, %v2118_v21 }
 0x32a   : > { %v7075_v49 = vadd.f32 %v2401_v36, %v2305_v48  ;;  %v9663_v36 = vld [vmem:[#allocation41_spill] sm:$0xff] }
 0x32c   : > { %5008 = vmatmul.msk.f32.gmra.mxu2 %vm560_vm1, %v5512_v4  ;;  %v2007_v53 = vpop.f32.mrf.mxu0  ;;  %v2120_v58 = vpop.f32.mrf.mxu1  ;;  %5048 = vmatmul.msk.f32.gmra.mxu3 %vm560_vm1, %v9662_v55 }
 0x32d   : > { %v2121_v34 = vadd.f32 %v2120_v58, %v2007_v53 }
 0x32f   : > { %v2246_v43 = vpop.f32.mrf.mxu2  ;;  %4936 = vmatmul.msk.f32.gmra.mxu0 %vm560_vm1, %v9658_v40  ;;  %4968 = vmatmul.msk.f32.gmra.mxu1 %vm560_vm1, %v5478_v60  ;;  %v2404_v54 = vpop.f32.mrf.mxu3 }
 0x330   : > { %v2306_v38 = vadd.f32 %v2246_v43, %v2121_v34 }
 0x332   : > { %v7085_v21 = vadd.f32 %v2404_v54, %v2306_v38  ;;  %v9664_v54 = vld [vmem:[#allocation43_spill] sm:$0xff] }
 0x334   : > { %5009 = vmatmul.msk.f32.gmra.mxu2 %vm560_vm1, %v5539_v11  ;;  %v2010_v35 = vpop.f32.mrf.mxu0  ;;  %v2123_v61 = vpop.f32.mrf.mxu1  ;;  %5049 = vmatmul.msk.f32.gmra.mxu3 %vm560_vm1, %v9663_v36 }
 0x335   : > { %v2124_v48 = vadd.f32 %v2123_v61, %v2010_v35 }
 0x337   : > { %v2249_v53 = vpop.f32.mrf.mxu2  ;;  %4937 = vmatmul.msk.f32.gmra.mxu0 %vm560_vm1, %v9660_v47  ;;  %4969 = vmatmul.msk.f32.gmra.mxu1 %vm560_vm1, %v5493_v63  ;;  %v2407_v60 = vpop.f32.mrf.mxu3 }
 0x338   : > { %v2307_v40 = vadd.f32 %v2249_v53, %v2124_v48 }
 0x33a   : > { %v7095_v58 = vadd.f32 %v2407_v60, %v2307_v40  ;;  %v9665_v60 = vld [vmem:[#allocation45_spill] sm:$0xff] }
 0x33c   : > { %5010 = vmatmul.msk.f32.gmra.mxu2 %vm560_vm1, %v5558_v16  ;;  %v2013_v34 = vpop.f32.mrf.mxu0  ;;  %v2126_v43 = vpop.f32.mrf.mxu1  ;;  %5050 = vmatmul.msk.f32.gmra.mxu3 %vm560_vm1, %v9664_v54 }
 0x33d   : > { %v2127_v38 = vadd.f32 %v2126_v43, %v2013_v34 }
 0x33f   : > { %v2252_v35 = vpop.f32.mrf.mxu2  ;;  %4938 = vmatmul.msk.f32.gmra.mxu0 %vm560_vm1, %v9662_v55  ;;  %4970 = vmatmul.msk.f32.gmra.mxu1 %vm560_vm1, %v5512_v4  ;;  %v2410_v63 = vpop.f32.mrf.mxu3 }
 0x340   : > { %v2308_v47 = vadd.f32 %v2252_v35, %v2127_v38 }
 0x342   : > { %v7105_v61 = vadd.f32 %v2410_v63, %v2308_v47  ;;  %v9666_v63 = vld [vmem:[#allocation47_spill] sm:$0xff] }
 0x344   : > { %5011 = vmatmul.msk.f32.gmra.mxu2 %vm560_vm1, %v5573_v19  ;;  %v2016_v48 = vpop.f32.mrf.mxu0  ;;  %v2129_v53 = vpop.f32.mrf.mxu1  ;;  %5051 = vmatmul.msk.f32.gmra.mxu3 %vm560_vm1, %v9665_v60 }
 0x345   : > { %v2130_v40 = vadd.f32 %v2129_v53, %v2016_v48 }
 0x347   : > { %v2255_v34 = vpop.f32.mrf.mxu2  ;;  %4939 = vmatmul.msk.f32.gmra.mxu0 %vm560_vm1, %v9663_v36  ;;  %4971 = vmatmul.msk.f32.gmra.mxu1 %vm560_vm1, %v5539_v11  ;;  %v2413_v4 = vpop.f32.mrf.mxu3 }
 0x348   : > { %v2309_v55 = vadd.f32 %v2255_v34, %v2130_v40 }
 0x34a   : > { %v7115_v43 = vadd.f32 %v2413_v4, %v2309_v55  ;;  %v9668_v4 = vld [vmem:[#allocation49_spill] sm:$0xff] }
 0x34c   : > { %5012 = vmatmul.msk.f32.gmra.mxu2 %vm560_vm1, %v5592_v25  ;;  %v2019_v38 = vpop.f32.mrf.mxu0  ;;  %v2132_v35 = vpop.f32.mrf.mxu1  ;;  %5052 = vmatmul.msk.f32.gmra.mxu3 %vm560_vm1, %v9666_v63 }
 0x34d   : > { %v2133_v47 = vadd.f32 %v2132_v35, %v2019_v38 }
 0x34f   : > { %v2258_v48 = vpop.f32.mrf.mxu2  ;;  %4940 = vmatmul.msk.f32.gmra.mxu0 %vm560_vm1, %v9664_v54  ;;  %4972 = vmatmul.msk.f32.gmra.mxu1 %vm560_vm1, %v5558_v16  ;;  %v2416_v11 = vpop.f32.mrf.mxu3 }
 0x350   : > { %v2310_v36 = vadd.f32 %v2258_v48, %v2133_v47 }
 0x352   : > { %v7125_v53 = vadd.f32 %v2416_v11, %v2310_v36  ;;  %v9670_v11 = vld [vmem:[#allocation51_spill] sm:$0xff] }
 0x354   : > { %9667 = vst [vmem:[#allocation35_spill] sm:$0xff] %v7125_v53  ;;  %5013 = vmatmul.msk.f32.gmra.mxu2 %vm560_vm1, %v5619_v33  ;;  %v2022_v40 = vpop.f32.mrf.mxu0  ;;  %v2135_v34 = vpop.f32.mrf.mxu1  ;;  %5053 = vmatmul.msk.f32.gmra.mxu3 %vm560_vm1, %v9668_v4 }
 0x355   : > { %v2136_v55 = vadd.f32 %v2135_v34, %v2022_v40 }
 0x357   : > { %v2261_v38 = vpop.f32.mrf.mxu2  ;;  %4941 = vmatmul.msk.f32.gmra.mxu0 %vm560_vm1, %v9665_v60  ;;  %4973 = vmatmul.msk.f32.gmra.mxu1 %vm560_vm1, %v5573_v19  ;;  %v2419_v16 = vpop.f32.mrf.mxu3 }
 0x358   : > { %v2311_v54 = vadd.f32 %v2261_v38, %v2136_v55 }
 0x35a   : > { %v7135_v35 = vadd.f32 %v2419_v16, %v2311_v54  ;;  %v9672_v16 = vld [vmem:[#allocation53_spill] sm:$0xff] }
 0x35c   : > { %9669 = vst [vmem:[#allocation31_spill] sm:$0xff] %v7135_v35  ;;  %5014 = vmatmul.msk.f32.gmra.mxu2 %vm560_vm1, %v5638_v42  ;;  %v2025_v47 = vpop.f32.mrf.mxu0  ;;  %v2138_v48 = vpop.f32.mrf.mxu1  ;;  %5054 = vmatmul.msk.f32.gmra.mxu3 %vm560_vm1, %v9670_v11 }
 0x35d   : > { %v2139_v36 = vadd.f32 %v2138_v48, %v2025_v47 }
 0x35f   : > { %v2264_v40 = vpop.f32.mrf.mxu2  ;;  %4942 = vmatmul.msk.f32.gmra.mxu0 %vm560_vm1, %v9666_v63  ;;  %4974 = vmatmul.msk.f32.gmra.mxu1 %vm560_vm1, %v5592_v25  ;;  %v2422_v19 = vpop.f32.mrf.mxu3 }
 0x360   : > { %v2312_v60 = vadd.f32 %v2264_v40, %v2139_v36 }
 0x362   : > { %v7145_v34 = vadd.f32 %v2422_v19, %v2312_v60  ;;  %v9674_v19 = vld [vmem:[#allocation55_spill] sm:$0xff] }
 0x364   : > { %9671 = vst [vmem:[#allocation37_spill] sm:$0xff] %v7145_v34  ;;  %5015 = vmatmul.msk.f32.gmra.mxu2 %vm560_vm1, %v5653_v46  ;;  %v2028_v55 = vpop.f32.mrf.mxu0  ;;  %v2141_v38 = vpop.f32.mrf.mxu1  ;;  %5055 = vmatmul.msk.f32.gmra.mxu3 %vm560_vm1, %v9672_v16 }
 0x365   : > { %v2142_v54 = vadd.f32 %v2141_v38, %v2028_v55 }
 0x367   : > { %v2267_v47 = vpop.f32.mrf.mxu2  ;;  %4943 = vmatmul.msk.f32.gmra.mxu0 %vm560_vm1, %v9668_v4  ;;  %4975 = vmatmul.msk.f32.gmra.mxu1 %vm560_vm1, %v5619_v33  ;;  %v2425_v25 = vpop.f32.mrf.mxu3 }
 0x368   : > { %v2313_v63 = vadd.f32 %v2267_v47, %v2142_v54 }
 0x36a   : > { %v7155_v48 = vadd.f32 %v2425_v25, %v2313_v63  ;;  %v9676_v25 = vld [vmem:[#allocation57_spill] sm:$0xff] }
 0x36c   : > { %9673 = vst [vmem:[#allocation33_spill] sm:$0xff] %v7155_v48  ;;  %5016 = vmatmul.msk.f32.gmra.mxu2 %vm560_vm1, %v5672_v52  ;;  %v2031_v36 = vpop.f32.mrf.mxu0  ;;  %v2144_v40 = vpop.f32.mrf.mxu1  ;;  %5056 = vmatmul.msk.f32.gmra.mxu3 %vm560_vm1, %v9674_v19 }
 0x36d   : > { %v2145_v60 = vadd.f32 %v2144_v40, %v2031_v36 }
 0x36f   : > { %v2270_v55 = vpop.f32.mrf.mxu2  ;;  %4944 = vmatmul.msk.f32.gmra.mxu0 %vm560_vm1, %v9670_v11  ;;  %4976 = vmatmul.msk.f32.gmra.mxu1 %vm560_vm1, %v5638_v42  ;;  %v2428_v33 = vpop.f32.mrf.mxu3 }
 0x370   : > { %v2314_v4 = vadd.f32 %v2270_v55, %v2145_v60 }
 0x372   : > { %v7165_v38 = vadd.f32 %v2428_v33, %v2314_v4  ;;  %v9678_v33 = vld [vmem:[#allocation59_spill] sm:$0xff] }
 0x374   : > { %9675 = vst [vmem:[#allocation39_spill] sm:$0xff] %v7165_v38  ;;  %5017 = vmatmul.msk.f32.gmra.mxu2 %vm560_vm1, %v5699_v6  ;;  %v2034_v54 = vpop.f32.mrf.mxu0  ;;  %v2147_v47 = vpop.f32.mrf.mxu1  ;;  %5057 = vmatmul.msk.f32.gmra.mxu3 %vm560_vm1, %v9676_v25 }
 0x375   : > { %v2148_v63 = vadd.f32 %v2147_v47, %v2034_v54 }
 0x377   : > { %v2273_v36 = vpop.f32.mrf.mxu2  ;;  %4945 = vmatmul.msk.f32.gmra.mxu0 %vm560_vm1, %v9672_v16  ;;  %4977 = vmatmul.msk.f32.gmra.mxu1 %vm560_vm1, %v5653_v46  ;;  %v2431_v42 = vpop.f32.mrf.mxu3 }
 0x378   : > { %v2315_v11 = vadd.f32 %v2273_v36, %v2148_v63 }
 0x37a   : > { %v7175_v40 = vadd.f32 %v2431_v42, %v2315_v11  ;;  %v9680_v42 = vld [vmem:[#allocation61_spill] sm:$0xff] }
 0x37c   : > { %9677 = vst [vmem:[#allocation41_spill] sm:$0xff] %v7175_v40  ;;  %5018 = vmatmul.msk.f32.gmra.mxu2 %vm560_vm1, %v5718_v14  ;;  %v2037_v60 = vpop.f32.mrf.mxu0  ;;  %v2150_v55 = vpop.f32.mrf.mxu1  ;;  %5058 = vmatmul.msk.f32.gmra.mxu3 %vm560_vm1, %v9678_v33  ;;  %v9705_v40 = vld [vmem:[#allocation15_spill] sm:$0xff] }
 0x37d   : > { %v2151_v4 = vadd.f32 %v2150_v55, %v2037_v60 }
 0x37f   : > { %v2276_v54 = vpop.f32.mrf.mxu2  ;;  %4946 = vmatmul.msk.f32.gmra.mxu0 %vm560_vm1, %v9674_v19  ;;  %4978 = vmatmul.msk.f32.gmra.mxu1 %vm560_vm1, %v5672_v52  ;;  %v2434_v46 = vpop.f32.mrf.mxu3 }
 0x380   : > { %v2316_v16 = vadd.f32 %v2276_v54, %v2151_v4 }
 0x382   : > { %v7185_v47 = vadd.f32 %v2434_v46, %v2316_v16  ;;  %v9682_v46 = vld [vmem:[#allocation2_spill] sm:$0xff] }
 0x384   : > { %9679 = vst [vmem:[#allocation43_spill] sm:$0xff] %v7185_v47  ;;  %5019 = vmatmul.msk.f32.gmra.mxu2 %vm560_vm1, %v9595_v20  ;;  %v2040_v63 = vpop.f32.mrf.mxu0  ;;  %v2153_v36 = vpop.f32.mrf.mxu1  ;;  %5059 = vmatmul.msk.f32.gmra.mxu3 %vm560_vm1, %v9680_v42 }
 0x385   : > { %v2154_v11 = vadd.f32 %v2153_v36, %v2040_v63  ;;  %v3788_v36 = vld [vmem:[%s9341_s5 + $0x18] sm:$0xff] }
 0x386   : > { %3804 = vmatpush.msra.mxu0 %v3788_v36  ;;  %3827 = vmatpush.msra.mxu1 %v3788_v36 }
 0x387   : > { %v2279_v60 = vpop.f32.mrf.mxu2  ;;  %4947 = vmatmul.msk.f32.gmra.mxu0 %vm560_vm1, %v9676_v25  ;;  %4979 = vmatmul.msk.f32.gmra.mxu1 %vm560_vm1, %v5699_v6  ;;  %v2437_v52 = vpop.f32.mrf.mxu3 }
 0x388   : > { %v2317_v19 = vadd.f32 %v2279_v60, %v2154_v11 }
 0x38a   : > { %v7195_v55 = vadd.f32 %v2437_v52, %v2317_v19  ;;  %v9684_v19 = vld [vmem:[#allocation3_spill] sm:$0xff] }
 0x38c   : > { %9681 = vst [vmem:[#allocation45_spill] sm:$0xff] %v7195_v55  ;;  %5020 = vmatmul.msk.f32.gmra.mxu2 %vm560_vm1, %v9598_v37  ;;  %v2043_v4 = vpop.f32.mrf.mxu0  ;;  %v2156_v54 = vpop.f32.mrf.mxu1  ;;  %5060 = vmatmul.msk.f32.gmra.mxu3 %vm560_vm1, %v9682_v46 }
 0x38d   : > { %v2157_v16 = vadd.f32 %v2156_v54, %v2043_v4 }
 0x38f   : > { %v2282_v63 = vpop.f32.mrf.mxu2  ;;  %4948 = vmatmul.msk.f32.gmra.mxu0 %vm560_vm1, %v9678_v33  ;;  %4980 = vmatmul.msk.f32.gmra.mxu1 %vm560_vm1, %v5718_v14  ;;  %v2440_v6 = vpop.f32.mrf.mxu3 }
 0x390   : > { %v2318_v25 = vadd.f32 %v2282_v63, %v2157_v16 }
 0x392   : > { %v7208_v11 = vadd.f32 %v2440_v6, %v2318_v25  ;;  %v9686_v25 = vld [vmem:[#allocation4_spill] sm:$0xff] }
 0x394   : > { %9683 = vst [vmem:[#allocation47_spill] sm:$0xff] %v7208_v11  ;;  %5021 = vmatmul.msk.f32.gmra.mxu2 %vm560_vm1, %v9601_v29  ;;  %v2046_v60 = vpop.f32.mrf.mxu0  ;;  %v2159_v52 = vpop.f32.mrf.mxu1  ;;  %5061 = vmatmul.msk.f32.gmra.mxu3 %vm560_vm1, %v9684_v19 }
 0x395   : > { %v2160_v33 = vadd.f32 %v2159_v52, %v2046_v60 }
 0x397   : > { %v2285_v14 = vpop.f32.mrf.mxu2  ;;  %4949 = vmatmul.msk.f32.gmra.mxu0 %vm560_vm1, %v9680_v42  ;;  %4981 = vmatmul.msk.f32.gmra.mxu1 %vm560_vm1, %v9595_v20  ;;  %v2443_v4 = vpop.f32.mrf.mxu3 }
 0x398   : > { %v2319_v54 = vadd.f32 %v2285_v14, %v2160_v33 }
 0x39a   : > { %v7218_v16 = vadd.f32 %v2443_v4, %v2319_v54  ;;  %v9688_v4 = vld [vmem:[#allocation6_spill] sm:$0xff] }
 0x39c   : > { %9685 = vst [vmem:[#allocation49_spill] sm:$0xff] %v7218_v16  ;;  %5022 = vmatmul.msk.f32.gmra.mxu2 %vm560_vm1, %v9604_v15  ;;  %v2545_v63 = vpop.f32.mrf.mxu0  ;;  %v2658_v6 = vpop.f32.mrf.mxu1  ;;  %5062 = vmatmul.msk.f32.gmra.mxu3 %vm560_vm1, %v9686_v25  ;;  %v9697_v16 = vld [vmem:[#allocation9_spill] sm:$0xff] }
 0x39d   : > { %v2659_v36 = vadd.f32 %v2658_v6, %v2545_v63 }
 0x39f   : > { %v2780_v60 = vpop.f32.mrf.mxu2  ;;  %4950 = vmatmul.msk.f32.gmra.mxu0 %vm560_vm1, %v9682_v46  ;;  %4982 = vmatmul.msk.f32.gmra.mxu1 %vm560_vm1, %v9598_v37  ;;  %v2938_v20 = vpop.f32.mrf.mxu3 }
 0x3a0   : > { %v2876_v42 = vadd.f32 %v2780_v60, %v2659_v36 }
 0x3a2   : > { %v7228_v52 = vadd.f32 %v2938_v20, %v2876_v42  ;;  %v9690_v20 = vld [vmem:[#allocation8_spill] sm:$0xff] }
 0x3a4   : > { %9687 = vst [vmem:[#allocation51_spill] sm:$0xff] %v7228_v52  ;;  %5023 = vmatmul.msk.f32.gmra.mxu2 %vm560_vm1, %v9607_v45  ;;  %v2548_v33 = vpop.f32.mrf.mxu0  ;;  %v2661_v14 = vpop.f32.mrf.mxu1  ;;  %5063 = vmatmul.msk.f32.gmra.mxu3 %vm560_vm1, %v9688_v4 }
 0x3a5   : > { %v2662_v54 = vadd.f32 %v2661_v14, %v2548_v33 }
 0x3a7   : > { %v2783_v63 = vpop.f32.mrf.mxu2  ;;  %4951 = vmatmul.msk.f32.gmra.mxu0 %vm560_vm1, %v9684_v19  ;;  %4983 = vmatmul.msk.f32.gmra.mxu1 %vm560_vm1, %v9601_v29  ;;  %v2941_v37 = vpop.f32.mrf.mxu3 }
 0x3a8   : > { %v2877_v46 = vadd.f32 %v2783_v63, %v2662_v54 }
 0x3aa   : > { %v7238_v6 = vadd.f32 %v2941_v37, %v2877_v46  ;;  %v9692_v37 = vld [vmem:[#allocation10_spill] sm:$0xff] }
 0x3ab   : > { %v7257_v46 = vld [vmem:[%s9338_s2] ss:$0 sm:$0xff] }
 0x3ac   : > { %9689 = vst [vmem:[#allocation53_spill] sm:$0xff] %v7238_v6  ;;  %5024 = vmatmul.msk.f32.gmra.mxu2 %vm560_vm1, %v9610_v9  ;;  %v2551_v36 = vpop.f32.mrf.mxu0  ;;  %v2664_v60 = vpop.f32.mrf.mxu1  ;;  %5064 = vmatmul.msk.f32.gmra.mxu3 %vm560_vm1, %v9690_v20  ;;  %v9707_v6 = vld [vmem:[#allocation17_spill] sm:$0xff] }
 0x3ad   : > { %v2665_v42 = vadd.f32 %v2664_v60, %v2551_v36  ;;  %v9693_v60 = vld [vmem:[#allocation7_spill] sm:$0xff]  ;;  %v7318_v38 = vadd.f32 %v7257_v46, %v9707_v6 }
 0x3af   : > { %v2786_v33 = vpop.f32.mrf.mxu2  ;;  %4952 = vmatmul.msk.f32.gmra.mxu0 %vm560_vm1, %v9686_v25  ;;  %4984 = vmatmul.msk.f32.gmra.mxu1 %vm560_vm1, %v9604_v15  ;;  %v2944_v29 = vpop.f32.mrf.mxu3  ;;  %9708 = vst [vmem:[#allocation8_spill] sm:$0xff] %v7318_v38 }
 0x3b0   : > { %v2878_v19 = vadd.f32 %v2786_v33, %v2665_v42  ;;  %v7265_v42 = vadd.f32 %v7257_v46, %v9693_v60  ;;  %v9702_v60 = vld [vmem:[#allocation12_spill] sm:$0xff] }
 0x3b2   : > { %v7248_v14 = vadd.f32 %v2944_v29, %v2878_v19  ;;  %9694 = vst [vmem:[#allocation57_spill] sm:$0xff] %v7265_v42  ;;  %v9695_v29 = vld [vmem:[#allocation5_spill] sm:$0xff]  ;;  %v3100_v55 = vsel %vm3098_vm3, %v7265_v42, 0.0 }
 0x3b3   : > { %v7269_v19 = vadd.f32 %v7257_v46, %v9695_v29  ;;  %v9703_v29 = vld [vmem:[#allocation13_spill] sm:$0xff] }
 0x3b4   : > { %9691 = vst [vmem:[#allocation55_spill] sm:$0xff] %v7248_v14  ;;  %5025 = vmatmul.msk.f32.gmra.mxu2 %vm560_vm1, %v9613_v17  ;;  %v2554_v54 = vpop.f32.mrf.mxu0  ;;  %v2667_v63 = vpop.f32.mrf.mxu1  ;;  %5065 = vmatmul.msk.f32.gmra.mxu3 %vm560_vm1, %v9692_v37 }
 0x3b5   : > { %v2668_v25 = vadd.f32 %v2667_v63, %v2554_v54  ;;  %9696 = vst [vmem:[#allocation59_spill] sm:$0xff] %v7269_v19  ;;  %v7273_v54 = vadd.f32 %v7257_v46, %v9697_v16  ;;  %v3168_v16 = vmul.f32 %v7269_v19, %v7269_v19 }
 0x3b7   : > { %v2789_v36 = vpop.f32.mrf.mxu2  ;;  %4953 = vmatmul.msk.f32.gmra.mxu0 %vm560_vm1, %v9688_v4  ;;  %4985 = vmatmul.msk.f32.gmra.mxu1 %vm560_vm1, %v9607_v45  ;;  %v2947_v15 = vpop.f32.mrf.mxu3  ;;  %9698 = vst [vmem:[#allocation61_spill] sm:$0xff] %v7273_v54  ;;  %v3169_v4 = vmul.f32 %v7265_v42, %v7265_v42  ;;  %v9700_v45 = vld [vmem:[#allocation11_spill] sm:$0xff]  ;;  %v3099_v42 = vsel %vm3098_vm3, %v7269_v19, 0.0  ;;  %v3200_v52 = vsel %vm3098_vm3, %v3168_v16, 0.0 }
 0x3b8   : > { %v2879_v33 = vadd.f32 %v2789_v36, %v2668_v25  ;;  %v7281_v11 = vadd.f32 %v7257_v46, %v9700_v45  ;;  %v7293_v45 = vadd.f32 %v7257_v46, %v9703_v29  ;;  %v7306_v29 = vadd.f32 %v7257_v46, %v9705_v40 }
 0x3ba   : > { %v7275_v63 = vadd.f32 %v2947_v15, %v2879_v33  ;;  %9701 = vst [vmem:[#allocation3_spill] sm:$0xff] %v7281_v11  ;;  %v3170_v33 = vmul.f32 %v7273_v54, %v7273_v54  ;;  %v3104_v19 = vsel %vm3098_vm3, %v7281_v11, 0.0  ;;  %v3108_v53 = vsel %vm3098_vm3, %v7306_v29, 0.0 }
 0x3bb   : > { %9704 = vst [vmem:[#allocation4_spill] sm:$0xff] %v7293_v45 }
 0x3bc   : > { %9699 = vst [vmem:[#allocation2_spill] sm:$0xff] %v7275_v63  ;;  %5026 = vmatmul.msk.f32.gmra.mxu2 %vm560_vm1, %v9616_v7  ;;  %v2557_v25 = vpop.f32.mrf.mxu0  ;;  %v2670_v36 = vpop.f32.mrf.mxu1  ;;  %5066 = vmatmul.msk.f32.gmra.mxu3 %vm560_vm1, %v9702_v60 }
 0x3bd   : > { %v2671_v15 = vadd.f32 %v2670_v36, %v2557_v25  ;;  %v3201_v25 = vsel %vm3098_vm3, %v3169_v4, 0.0  ;;  %v3171_v36 = vmul.f32 %v7281_v11, %v7281_v11  ;;  %9706 = vst [vmem:[#allocation6_spill] sm:$0xff] %v7306_v29  ;;  %v3172_v4 = vmul.f32 %v7293_v45, %v7293_v45  ;;  %v9713_v11 = vld [vmem:[#allocation21_spill] sm:$0xff] }
 0x3bf   : > { %v2792_v47 = vpop.f32.mrf.mxu2  ;;  %4954 = vmatmul.msk.f32.gmra.mxu0 %vm560_vm1, %v9690_v20  ;;  %4986 = vmatmul.msk.f32.gmra.mxu1 %vm560_vm1, %v9610_v9  ;;  %v2950_v63 = vpop.f32.mrf.mxu3  ;;  %v3102_v20 = vsel %vm3098_vm3, %v7273_v54, 0.0  ;;  %v3203_v9 = vsel %vm3098_vm3, %v3170_v33, 0.0  ;;  %v3205_v16 = vsel %vm3098_vm3, %v3171_v36, 0.0  ;;  %v3173_v54 = vmul.f32 %v7306_v29, %v7306_v29  ;;  %v9710_v33 = vld [vmem:[#allocation19_spill] sm:$0xff] }
 0x3c0   : > { %v2880_v14 = vadd.f32 %v2792_v47, %v2671_v15  ;;  %v3101_v47 = vadd.f32 %v3100_v55, %v3099_v42  ;;  %v3202_v15 = vadd.f32 %v3201_v25, %v3200_v52  ;;  %v7329_v48 = vadd.f32 %v7257_v46, %v9710_v33 }
 0x3c1   : > { %v3106_v25 = vsel %vm3098_vm3, %v7293_v45, 0.0  ;;  %v3207_v36 = vsel %vm3098_vm3, %v3172_v4, 0.0  ;;  %v3174_v33 = vmul.f32 %v7318_v38, %v7318_v38  ;;  %v3209_v4 = vsel %vm3098_vm3, %v3173_v54, 0.0 }
 0x3c2   : > { %v7320_v40 = vadd.f32 %v2950_v63, %v2880_v14  ;;  %9711 = vst [vmem:[#allocation7_spill] sm:$0xff] %v7329_v48  ;;  %v9712_v63 = vld [vmem:[#allocation14_spill] sm:$0xff]  ;;  %v3103_v55 = vadd.f32 %v3102_v20, %v3101_v47  ;;  %v3204_v52 = vadd.f32 %v3203_v9, %v3202_v15  ;;  %v3175_v47 = vmul.f32 %v7329_v48, %v7329_v48 }
 0x3c4   : > { %9709 = vst [vmem:[#allocation10_spill] sm:$0xff] %v7320_v40  ;;  %5027 = vmatmul.msk.f32.gmra.mxu2 %vm560_vm1, %v9619_v24  ;;  %v2560_v6 = vpop.f32.mrf.mxu0  ;;  %v2673_v14 = vpop.f32.mrf.mxu1  ;;  %5067 = vmatmul.msk.f32.gmra.mxu3 %vm560_vm1, %v9712_v63  ;;  %v7342_v40 = vadd.f32 %v7257_v46, %v9713_v11  ;;  %v3105_v34 = vadd.f32 %v3104_v19, %v3103_v55  ;;  %v9715_v11 = vld [vmem:[#allocation23_spill] sm:$0xff]  ;;  %v9717_v55 = vld [vmem:[#allocation25_spill] sm:$0xff] }
 0x3c5   : > { %v2674_v42 = vadd.f32 %v2673_v14, %v2560_v6  ;;  %v3206_v35 = vadd.f32 %v3205_v16, %v3204_v52  ;;  %v7355_v19 = vadd.f32 %v7257_v46, %v9715_v11  ;;  %v3110_v14 = vsel %vm3098_vm3, %v7318_v38, 0.0 }
 0x3c6   : > { %9714 = vst [vmem:[#allocation5_spill] sm:$0xff] %v7342_v40  ;;  %v3107_v16 = vadd.f32 %v3106_v25, %v3105_v34  ;;  %v7364_v54 = vadd.f32 %v7257_v46, %v9717_v55  ;;  %v3112_v34 = vsel %vm3098_vm3, %v7329_v48, 0.0  ;;  %v9719_v25 = vld [vmem:[#allocation26_spill] sm:$0xff]  ;;  %v9722_v55 = vld [vmem:[#allocation28_spill] sm:$0xff] }
 0x3c7   : > { %v2795_v20 = vpop.f32.mrf.mxu2  ;;  %4955 = vmatmul.msk.f32.gmra.mxu0 %vm560_vm1, %v9692_v37  ;;  %4987 = vmatmul.msk.f32.gmra.mxu1 %vm560_vm1, %v9613_v17  ;;  %v2953_v9 = vpop.f32.mrf.mxu3  ;;  %9716 = vst [vmem:[#allocation9_spill] sm:$0xff] %v7355_v19  ;;  %v3208_v6 = vadd.f32 %v3207_v36, %v3206_v35  ;;  %v3211_v37 = vsel %vm3098_vm3, %v3174_v33, 0.0  ;;  %v3176_v17 = vmul.f32 %v7342_v40, %v7342_v40  ;;  %v3213_v35 = vsel %vm3098_vm3, %v3175_v47, 0.0 }
 0x3c8   : > { %v2881_v15 = vadd.f32 %v2795_v20, %v2674_v42  ;;  %9718 = vst [vmem:[#allocation11_spill] sm:$0xff] %v7364_v54  ;;  %v3109_v29 = vadd.f32 %v3108_v53, %v3107_v16  ;;  %v3177_v42 = vmul.f32 %v7355_v19, %v7355_v19  ;;  %v7375_v36 = vadd.f32 %v7257_v46, %v9719_v25 }
 0x3c9   : > { %v3210_v11 = vadd.f32 %v3209_v4, %v3208_v6  ;;  %v3114_v47 = vsel %vm3098_vm3, %v7342_v40, 0.0  ;;  %v3215_v16 = vsel %vm3098_vm3, %v3176_v17, 0.0  ;;  %v3178_v6 = vmul.f32 %v7364_v54, %v7364_v54 }
 0x3ca   : > { %v7366_v52 = vadd.f32 %v2953_v9, %v2881_v15  ;;  %9720 = vst [vmem:[#allocation12_spill] sm:$0xff] %v7375_v36  ;;  %v9721_v9 = vld [vmem:[#allocation16_spill] sm:$0xff]  ;;  %v3111_v53 = vadd.f32 %v3110_v14, %v3109_v29  ;;  %v7388_v25 = vadd.f32 %v7257_v46, %v9722_v55  ;;  %v3116_v45 = vsel %vm3098_vm3, %v7355_v19, 0.0 }
 0x3cb   : > { %v3212_v4 = vadd.f32 %v3211_v37, %v3210_v11  ;;  %v3217_v37 = vsel %vm3098_vm3, %v3177_v42, 0.0  ;;  %v3179_v17 = vmul.f32 %v7375_v36, %v7375_v36  ;;  %v9724_v11 = vld [vmem:[#allocation29_spill] sm:$0xff] }
 0x3cc   : > { %5028 = vmatmul.msk.f32.gmra.mxu2 %vm560_vm1, %v9622_v26  ;;  %v2563_v33 = vpop.f32.mrf.mxu0  ;;  %v2676_v20 = vpop.f32.mrf.mxu1  ;;  %5068 = vmatmul.msk.f32.gmra.mxu3 %vm560_vm1, %v9721_v9  ;;  %9723 = vst [vmem:[#allocation13_spill] sm:$0xff] %v7388_v25  ;;  %v3113_v48 = vadd.f32 %v3112_v34, %v3111_v53  ;;  %v7401_v34 = vadd.f32 %v7257_v46, %v9724_v11  ;;  %v3118_v53 = vsel %vm3098_vm3, %v7364_v54, 0.0 }
 0x3cd   : > { %v2677_v15 = vadd.f32 %v2676_v20, %v2563_v33  ;;  %v3214_v38 = vadd.f32 %v3213_v35, %v3212_v4  ;;  %v3180_v42 = vmul.f32 %v7388_v25, %v7388_v25  ;;  %v9726_v4 = vld [vmem:[#allocation30_spill] sm:$0xff] }
 0x3ce   : > { %9725 = vst [vmem:[#allocation15_spill] sm:$0xff] %v7401_v34  ;;  %v3115_v33 = vadd.f32 %v3114_v47, %v3113_v48  ;;  %v7413_v55 = vadd.f32 %v7257_v46, %v9726_v4  ;;  %v3221_v47 = vsel %vm3098_vm3, %v3179_v17, 0.0  ;;  %v3122_v17 = vsel %vm3098_vm3, %v7388_v25, 0.0 }
 0x3cf   : > { %v2798_v29 = vpop.f32.mrf.mxu2  ;;  %4956 = vmatmul.msk.f32.gmra.mxu0 %vm560_vm1, %v9702_v60  ;;  %4988 = vmatmul.msk.f32.gmra.mxu1 %vm560_vm1, %v9616_v7  ;;  %v2956_v14 = vpop.f32.mrf.mxu3  ;;  %v3216_v20 = vadd.f32 %v3215_v16, %v3214_v38  ;;  %v3787_v7 = vld [vmem:[%s9341_s5 + $0x10] sm:$0xff]  ;;  %v3219_v60 = vsel %vm3098_vm3, %v3178_v6, 0.0  ;;  %v3181_v16 = vmul.f32 %v7401_v34, %v7401_v34  ;;  %v3124_v40 = vsel %vm3098_vm3, %v7401_v34, 0.0 }
 0x3d0   : > { %v2882_v35 = vadd.f32 %v2798_v29, %v2677_v15  ;;  %9727 = vst [vmem:[#allocation17_spill] sm:$0xff] %v7413_v55  ;;  %3805 = vmatpush.msra.mxu0 %v3787_v7  ;;  %3828 = vmatpush.msra.mxu1 %v3787_v7  ;;  %v3117_v48 = vadd.f32 %v3116_v45, %v3115_v33  ;;  %v3120_v15 = vsel %vm3098_vm3, %v7375_v36, 0.0  ;;  %v9728_v6 = vld [vmem:[#allocation32_spill] sm:$0xff]  ;;  %v9730_v7 = vld [vmem:[#allocation18_spill] sm:$0xff] }
 0x3d1   : > { %v3218_v38 = vadd.f32 %v3217_v37, %v3216_v20  ;;  %v7424_v29 = vadd.f32 %v7257_v46, %v9728_v6  ;;  %v3223_v20 = vsel %vm3098_vm3, %v3180_v42, 0.0  ;;  %v3182_v4 = vmul.f32 %v7413_v55, %v7413_v55  ;;  %v9731_v6 = vld [vmem:[#allocation34_spill] sm:$0xff] }
 0x3d2   : > { %v7415_v11 = vadd.f32 %v2956_v14, %v2882_v35  ;;  %v3119_v45 = vadd.f32 %v3118_v53, %v3117_v48  ;;  %v7437_v36 = vadd.f32 %v7257_v46, %v9731_v6  ;;  %v3225_v42 = vsel %vm3098_vm3, %v3181_v16, 0.0 }
 0x3d3   : > { %9729 = vst [vmem:[#allocation19_spill] sm:$0xff] %v7424_v29  ;;  %v3220_v37 = vadd.f32 %v3219_v60, %v3218_v38  ;;  %v3183_v48 = vmul.f32 %v7424_v29, %v7424_v29  ;;  %v9733_v38 = vld [vmem:[#allocation36_spill] sm:$0xff] }
 0x3d4   : > { %5029 = vmatmul.msk.f32.gmra.mxu2 %vm560_vm1, %v9625_v28  ;;  %v2566_v14 = vpop.f32.mrf.mxu0  ;;  %v2679_v35 = vpop.f32.mrf.mxu1  ;;  %5069 = vmatmul.msk.f32.gmra.mxu3 %vm560_vm1, %v9730_v7  ;;  %9732 = vst [vmem:[#allocation14_spill] sm:$0xff] %v7437_v36  ;;  %v3121_v54 = vadd.f32 %v3120_v15, %v3119_v45  ;;  %v7450_v15 = vadd.f32 %v7257_v46, %v9733_v38  ;;  %v3126_v45 = vsel %vm3098_vm3, %v7413_v55, 0.0 }
 0x3d5   : > { %v2680_v33 = vadd.f32 %v2679_v35, %v2566_v14  ;;  %v3222_v19 = vadd.f32 %v3221_v47, %v3220_v37  ;;  %v9735_v37 = vld [vmem:[#allocation38_spill] sm:$0xff] }
 0x3d6   : > { %9734 = vst [vmem:[#allocation21_spill] sm:$0xff] %v7450_v15  ;;  %v3123_v14 = vadd.f32 %v3122_v17, %v3121_v54  ;;  %v7459_v16 = vadd.f32 %v7257_v46, %v9735_v37  ;;  %v3128_v54 = vsel %vm3098_vm3, %v7424_v29, 0.0  ;;  %v9737_v17 = vld [vmem:[#allocation40_spill] sm:$0xff]  ;;  %v9740_v37 = vld [vmem:[#allocation42_spill] sm:$0xff]  ;;  %v3132_v25 = vsel %vm3098_vm3, %v7450_v15, 0.0 }
 0x3d7   : > { %v2801_v53 = vpop.f32.mrf.mxu2  ;;  %4957 = vmatmul.msk.f32.gmra.mxu0 %vm560_vm1, %v9712_v63  ;;  %4989 = vmatmul.msk.f32.gmra.mxu1 %vm560_vm1, %v9619_v24  ;;  %v2959_v60 = vpop.f32.mrf.mxu3  ;;  %v3224_v35 = vadd.f32 %v3223_v20, %v3222_v19  ;;  %v3227_v63 = vsel %vm3098_vm3, %v3182_v4, 0.0  ;;  %v3184_v24 = vmul.f32 %v7437_v36, %v7437_v36  ;;  %v3229_v19 = vsel %vm3098_vm3, %v3183_v48, 0.0 }
 0x3d8   : > { %v2883_v47 = vadd.f32 %v2801_v53, %v2680_v33  ;;  %9736 = vst [vmem:[#allocation23_spill] sm:$0xff] %v7459_v16  ;;  %v3125_v34 = vadd.f32 %v3124_v40, %v3123_v14  ;;  %v3185_v33 = vmul.f32 %v7450_v15, %v7450_v15  ;;  %v7470_v20 = vadd.f32 %v7257_v46, %v9737_v17 }
 0x3d9   : > { %v3226_v38 = vadd.f32 %v3225_v42, %v3224_v35  ;;  %v3130_v48 = vsel %vm3098_vm3, %v7437_v36, 0.0  ;;  %v3231_v14 = vsel %vm3098_vm3, %v3184_v24, 0.0  ;;  %v3186_v35 = vmul.f32 %v7459_v16, %v7459_v16 }
 0x3da   : > { %v7461_v6 = vadd.f32 %v2959_v60, %v2883_v47  ;;  %9738 = vst [vmem:[#allocation25_spill] sm:$0xff] %v7470_v20  ;;  %v9739_v60 = vld [vmem:[#allocation20_spill] sm:$0xff]  ;;  %v3127_v40 = vadd.f32 %v3126_v45, %v3125_v34  ;;  %v7483_v17 = vadd.f32 %v7257_v46, %v9740_v37  ;;  %v3187_v24 = vmul.f32 %v7470_v20, %v7470_v20 }
 0x3db   : > { %v3228_v42 = vadd.f32 %v3227_v63, %v3226_v38  ;;  %v3233_v63 = vsel %vm3098_vm3, %v3185_v33, 0.0  ;;  %v9742_v38 = vld [vmem:[#allocation44_spill] sm:$0xff] }
 0x3dc   : > { %5030 = vmatmul.msk.f32.gmra.mxu2 %vm560_vm1, %v9628_v44  ;;  %v2569_v4 = vpop.f32.mrf.mxu0  ;;  %v2682_v53 = vpop.f32.mrf.mxu1  ;;  %5070 = vmatmul.msk.f32.gmra.mxu3 %vm560_vm1, %v9739_v60  ;;  %9741 = vst [vmem:[#allocation26_spill] sm:$0xff] %v7483_v17  ;;  %v3129_v29 = vadd.f32 %v3128_v54, %v3127_v40  ;;  %v7496_v54 = vadd.f32 %v7257_v46, %v9742_v38  ;;  %v3134_v40 = vsel %vm3098_vm3, %v7459_v16, 0.0 }
 0x3dd   : > { %v2683_v47 = vadd.f32 %v2682_v53, %v2569_v4  ;;  %v3230_v55 = vadd.f32 %v3229_v19, %v3228_v42  ;;  %v9744_v42 = vld [vmem:[#allocation46_spill] sm:$0xff] }
 0x3de   : > { %9743 = vst [vmem:[#allocation16_spill] sm:$0xff] %v7496_v54  ;;  %v3131_v4 = vadd.f32 %v3130_v48, %v3129_v29  ;;  %v7505_v33 = vadd.f32 %v7257_v46, %v9744_v42  ;;  %v3136_v29 = vsel %vm3098_vm3, %v7470_v20, 0.0  ;;  %v9746_v48 = vld [vmem:[#allocation48_spill] sm:$0xff]  ;;  %v9749_v42 = vld [vmem:[#allocation50_spill] sm:$0xff]  ;;  %v3140_v36 = vsel %vm3098_vm3, %v7496_v54, 0.0 }
 0x3df   : > { %v2804_v34 = vpop.f32.mrf.mxu2  ;;  %4958 = vmatmul.msk.f32.gmra.mxu0 %vm560_vm1, %v9721_v9  ;;  %4990 = vmatmul.msk.f32.gmra.mxu1 %vm560_vm1, %v9622_v26  ;;  %v2962_v45 = vpop.f32.mrf.mxu3  ;;  %v3232_v53 = vadd.f32 %v3231_v14, %v3230_v55  ;;  %v3235_v9 = vsel %vm3098_vm3, %v3186_v35, 0.0  ;;  %v3188_v26 = vmul.f32 %v7483_v17, %v7483_v17  ;;  %v3237_v55 = vsel %vm3098_vm3, %v3187_v24, 0.0 }
 0x3e0   : > { %v2884_v19 = vadd.f32 %v2804_v34, %v2683_v47  ;;  %9745 = vst [vmem:[#allocation28_spill] sm:$0xff] %v7505_v33  ;;  %v3133_v15 = vadd.f32 %v3132_v25, %v3131_v4  ;;  %v3189_v47 = vmul.f32 %v7496_v54, %v7496_v54  ;;  %v7516_v14 = vadd.f32 %v7257_v46, %v9746_v48 }
 0x3e1   : > { %v3234_v38 = vadd.f32 %v3233_v63, %v3232_v53  ;;  %v3138_v24 = vsel %vm3098_vm3, %v7483_v17, 0.0  ;;  %v3239_v4 = vsel %vm3098_vm3, %v3188_v26, 0.0  ;;  %v3190_v53 = vmul.f32 %v7505_v33, %v7505_v33 }
 0x3e2   : > { %v7507_v37 = vadd.f32 %v2962_v45, %v2884_v19  ;;  %9747 = vst [vmem:[#allocation29_spill] sm:$0xff] %v7516_v14  ;;  %v9748_v45 = vld [vmem:[#allocation22_spill] sm:$0xff]  ;;  %v3135_v25 = vadd.f32 %v3134_v40, %v3133_v15  ;;  %v7529_v48 = vadd.f32 %v7257_v46, %v9749_v42  ;;  %v3191_v26 = vmul.f32 %v7516_v14, %v7516_v14 }
 0x3e3   : > { %v3236_v63 = vadd.f32 %v3235_v9, %v3234_v38  ;;  %v3241_v9 = vsel %vm3098_vm3, %v3189_v47, 0.0  ;;  %v9751_v38 = vld [vmem:[#allocation52_spill] sm:$0xff] }
 0x3e4   : > { %5031 = vmatmul.msk.f32.gmra.mxu2 %vm560_vm1, %v9631_v12  ;;  %v2572_v35 = vpop.f32.mrf.mxu0  ;;  %v2685_v34 = vpop.f32.mrf.mxu1  ;;  %5071 = vmatmul.msk.f32.gmra.mxu3 %vm560_vm1, %v9748_v45  ;;  %9750 = vst [vmem:[#allocation30_spill] sm:$0xff] %v7529_v48  ;;  %v3137_v20 = vadd.f32 %v3136_v29, %v3135_v25  ;;  %v7542_v29 = vadd.f32 %v7257_v46, %v9751_v38  ;;  %v3142_v25 = vsel %vm3098_vm3, %v7505_v33, 0.0 }
 0x3e5   : > { %v2686_v19 = vadd.f32 %v2685_v34, %v2572_v35  ;;  %v3238_v16 = vadd.f32 %v3237_v55, %v3236_v63  ;;  %v9753_v63 = vld [vmem:[#allocation54_spill] sm:$0xff] }
 0x3e6   : > { %9752 = vst [vmem:[#allocation32_spill] sm:$0xff] %v7542_v29  ;;  %v3139_v35 = vadd.f32 %v3138_v24, %v3137_v20  ;;  %v7551_v47 = vadd.f32 %v7257_v46, %v9753_v63  ;;  %v3144_v20 = vsel %vm3098_vm3, %v7516_v14, 0.0  ;;  %v9758_v14 = vld [vmem:[#allocation64_spill] sm:$0xff] }
 0x3e7   : > { %v2807_v15 = vpop.f32.mrf.mxu2  ;;  %4959 = vmatmul.msk.f32.gmra.mxu0 %vm560_vm1, %v9730_v7  ;;  %4991 = vmatmul.msk.f32.gmra.mxu1 %vm560_vm1, %v9625_v28  ;;  %v2965_v40 = vpop.f32.mrf.mxu3  ;;  %v3240_v34 = vadd.f32 %v3239_v4, %v3238_v16  ;;  %v3243_v7 = vsel %vm3098_vm3, %v3190_v53, 0.0  ;;  %v3192_v28 = vmul.f32 %v7529_v48, %v7529_v48  ;;  %v3245_v16 = vsel %vm3098_vm3, %v3191_v26, 0.0 }
 0x3e8   : > { %v2885_v55 = vadd.f32 %v2807_v15, %v2686_v19  ;;  %9754 = vst [vmem:[#allocation18_spill] sm:$0xff] %v7551_v47  ;;  %v3141_v54 = vadd.f32 %v3140_v36, %v3139_v35  ;;  %v3193_v19 = vmul.f32 %v7542_v29, %v7542_v29  ;;  %v3194_v26 = vmul.f32 %v7551_v47, %v7551_v47 }
 0x3e9   : > { %v3242_v38 = vadd.f32 %v3241_v9, %v3240_v34  ;;  %v3247_v9 = vsel %vm3098_vm3, %v3192_v28, 0.0  ;;  %v7575_v33 = vadd.f32 %v7257_v46, %v9758_v14 }
 0x3ea   : > { %v7553_v42 = vadd.f32 %v2965_v40, %v2885_v55  ;;  %v3143_v53 = vadd.f32 %v3142_v25, %v3141_v54  ;;  %v3146_v40 = vsel %vm3098_vm3, %v7529_v48, 0.0  ;;  %v9756_v55 = vld [vmem:[#allocation65_spill] sm:$0xff]  ;;  %v3249_v28 = vsel %vm3098_vm3, %v3193_v19, 0.0  ;;  %v9775_v48 = vld [vmem:[#allocation71_spill] sm:$0xff] }
 0x3eb   : > { %v3244_v15 = vadd.f32 %v3243_v7, %v3242_v38  ;;  %v7571_v35 = vadd.f32 %v7257_v46, %v9756_v55  ;;  %9759 = vst [vmem:[#allocation38_spill] sm:$0xff] %v7575_v33  ;;  %v3148_v7 = vsel %vm3098_vm3, %v7542_v29, 0.0  ;;  %v9760_v38 = vld [vmem:[#allocation66_spill] sm:$0xff]  ;;  %v9765_v29 = vld [vmem:[#allocation56_spill] sm:$0xff] }
 0x3ec   : > { %9755 = vst [vmem:[#allocation34_spill] sm:$0xff] %v7553_v42  ;;  %5032 = vmatmul.msk.f32.gmra.mxu2 %vm560_vm1, %v5977_v3  ;;  %v2575_v24 = vpop.f32.mrf.mxu0  ;;  %v2688_v4 = vpop.f32.mrf.mxu1  ;;  %5072 = vmatmul.msk.f32.gmra.mxu3 %vm560_vm1, %v6585_v13  ;;  %v3145_v34 = vadd.f32 %v3144_v20, %v3143_v53  ;;  %v7586_v20 = vadd.f32 %v7257_v46, %v9760_v38 }
 0x3ed   : > { %v2689_v36 = vadd.f32 %v2688_v4, %v2575_v24  ;;  %9757 = vst [vmem:[#allocation36_spill] sm:$0xff] %v7571_v35  ;;  %v3246_v63 = vadd.f32 %v3245_v16, %v3244_v15  ;;  %v9762_v4 = vld [vmem:[#allocation67_spill] sm:$0xff]  ;;  %v3340_v15 = vmul.f32 %v7571_v35, %v7571_v35 }
 0x3ee   : > { %9761 = vst [vmem:[#allocation40_spill] sm:$0xff] %v7586_v20  ;;  %v3147_v14 = vadd.f32 %v3146_v40, %v3145_v34  ;;  %v7590_v53 = vadd.f32 %v7257_v46, %v9762_v4  ;;  %v3339_v40 = vmul.f32 %v7575_v33, %v7575_v33  ;;  %v9767_v34 = vld [vmem:[#allocation68_spill] sm:$0xff]  ;;  %v3272_v4 = vsel %vm3098_vm3, %v7586_v20, 0.0 }
 0x3ef   : > { %v2810_v54 = vpop.f32.mrf.mxu2  ;;  %4960 = vmatmul.msk.f32.gmra.mxu0 %vm560_vm1, %v9739_v60  ;;  %4992 = vmatmul.msk.f32.gmra.mxu1 %vm560_vm1, %v9628_v44  ;;  %v2968_v25 = vpop.f32.mrf.mxu3  ;;  %v3248_v24 = vadd.f32 %v3247_v9, %v3246_v63  ;;  %v3150_v44 = vsel %vm3098_vm3, %v7551_v47, 0.0  ;;  %v3251_v60 = vsel %vm3098_vm3, %v3194_v26, 0.0  ;;  %v3270_v9 = vsel %vm3098_vm3, %v7571_v35, 0.0 }
 0x3f0   : > { %v2886_v16 = vadd.f32 %v2810_v54, %v2689_v36  ;;  %9763 = vst [vmem:[#allocation20_spill] sm:$0xff] %v7590_v53  ;;  %v3149_v55 = vadd.f32 %v3148_v7, %v3147_v14  ;;  %v7601_v36 = vadd.f32 %v7257_v46, %v9765_v29  ;;  %v3341_v26 = vmul.f32 %v7586_v20, %v7586_v20 }
 0x3f1   : > { %v3250_v38 = vadd.f32 %v3249_v28, %v3248_v24  ;;  %v7611_v63 = vadd.f32 %v7257_v46, %v9767_v34  ;;  %v3342_v28 = vmul.f32 %v7590_v53, %v7590_v53  ;;  %v3269_v14 = vsel %vm3098_vm3, %v7575_v33, 0.0  ;;  %v9769_v34 = vld [vmem:[#allocation69_spill] sm:$0xff] }
 0x3f2   : > { %v7597_v19 = vadd.f32 %v2968_v25, %v2886_v16  ;;  %9766 = vst [vmem:[#allocation44_spill] sm:$0xff] %v7601_v36  ;;  %v3151_v29 = vadd.f32 %v3150_v44, %v3149_v55  ;;  %v3372_v24 = vsel %vm3098_vm3, %v3340_v15, 0.0  ;;  %v7626_v35 = vadd.f32 %v7257_v46, %v9769_v34 }
 0x3f3   : > { %9768 = vst [vmem:[#allocation46_spill] sm:$0xff] %v7611_v63  ;;  %v3252_v7 = vadd.f32 %v3251_v60, %v3250_v38  ;;  %v3195_v44 = vmul.f32 %v7601_v36, %v7601_v36  ;;  %v3371_v60 = vsel %vm3098_vm3, %v3339_v40, 0.0  ;;  %v3271_v55 = vadd.f32 %v3270_v9, %v3269_v14  ;;  %v9771_v38 = vld [vmem:[#allocation70_spill] sm:$0xff] }
 0x3f4   : > { %9764 = vst [vmem:[#allocation42_spill] sm:$0xff] %v7597_v19  ;;  %5033 = vmatmul.msk.f32.gmra.mxu2 %vm560_vm1, %v5993_v30  ;;  %v2578_v54 = vpop.f32.mrf.mxu0  ;;  %v2691_v25 = vpop.f32.mrf.mxu1  ;;  %5073 = vmatmul.msk.f32.gmra.mxu3 %vm560_vm1, %v6599_v57  ;;  %v3374_v34 = vsel %vm3098_vm3, %v3341_v26, 0.0  ;;  %v3274_v20 = vsel %vm3098_vm3, %v7590_v53, 0.0  ;;  %v3343_v40 = vmul.f32 %v7611_v63, %v7611_v63  ;;  %v9773_v14 = vld [vmem:[#allocation58_spill] sm:$0xff]  ;;  %v3373_v33 = vadd.f32 %v3372_v24, %v3371_v60 }
 0x3f5   : > { %v2692_v16 = vadd.f32 %v2691_v25, %v2578_v54  ;;  %9770 = vst [vmem:[#allocation48_spill] sm:$0xff] %v7626_v35  ;;  %v7633_v54 = vadd.f32 %v7257_v46, %v9771_v38  ;;  %v7646_v38 = vadd.f32 %v7257_v46, %v9773_v14  ;;  %v3273_v47 = vadd.f32 %v3272_v4, %v3271_v55  ;;  %v9778_v14 = vld [vmem:[#allocation72_spill] sm:$0xff] }
 0x3f6   : > { %v3344_v26 = vmul.f32 %v7626_v35, %v7626_v35  ;;  %v7655_v53 = vadd.f32 %v7257_v46, %v9775_v48  ;;  %v3253_v4 = vsel %vm3098_vm3, %v3195_v44, 0.0  ;;  %v3378_v60 = vsel %vm3098_vm3, %v3343_v40, 0.0 }
 0x3f7   : > { %9772 = vst [vmem:[#allocation22_spill] sm:$0xff] %v7633_v54  ;;  %v2813_v25 = vpop.f32.mrf.mxu2  ;;  %4961 = vmatmul.msk.f32.gmra.mxu0 %vm560_vm1, %v9748_v45  ;;  %4993 = vmatmul.msk.f32.gmra.mxu1 %vm560_vm1, %v9631_v12  ;;  %v2971_v15 = vpop.f32.mrf.mxu3  ;;  %v3376_v45 = vsel %vm3098_vm3, %v3342_v28, 0.0  ;;  %v3276_v12 = vsel %vm3098_vm3, %v7611_v63, 0.0  ;;  %v3275_v24 = vadd.f32 %v3274_v20, %v3273_v47  ;;  %v3345_v28 = vmul.f32 %v7633_v54, %v7633_v54  ;;  %v9780_v47 = vld [vmem:[#allocation75_spill] sm:$0xff]  ;;  %v9781_v63 = vld [vmem:[#allocation73_spill] sm:$0xff] }
 0x3f8   : > { %v2887_v9 = vadd.f32 %v2813_v25, %v2692_v16  ;;  %9774 = vst [vmem:[#allocation50_spill] sm:$0xff] %v7646_v38  ;;  %v3152_v16 = vsel %vm3098_vm3, %v7601_v36, 0.0  ;;  %v3375_v25 = vadd.f32 %v3374_v34, %v3373_v33  ;;  %v3278_v55 = vsel %vm3098_vm3, %v7626_v35, 0.0 }
 0x3f9   : > { %9776 = vst [vmem:[#allocation52_spill] sm:$0xff] %v7655_v53  ;;  %v7669_v48 = vadd.f32 %v7257_v46, %v9778_v14  ;;  %v3154_v20 = vsel %vm3098_vm3, %v7646_v38, 0.0  ;;  %v3277_v34 = vadd.f32 %v3276_v12, %v3275_v24  ;;  %v3280_v14 = vsel %vm3098_vm3, %v7633_v54, 0.0  ;;  %v9783_v24 = vld [vmem:[#allocation74_spill] sm:$0xff] }
 0x3fa   : > { %v7657_v17 = vadd.f32 %v2971_v15, %v2887_v9  ;;  %v3377_v44 = vadd.f32 %v3376_v45, %v3375_v25  ;;  %v3380_v9 = vsel %vm3098_vm3, %v3344_v26, 0.0  ;;  %v3346_v35 = vmul.f32 %v7655_v53, %v7655_v53 }
 0x3fb   : > { %9779 = vst [vmem:[#allocation65_spill] sm:$0xff] %v7669_v48  ;;  %v7684_v36 = vadd.f32 %v7257_v46, %v9781_v63  ;;  %v3279_v42 = vadd.f32 %v3278_v55, %v3277_v34  ;;  %v3382_v45 = vsel %vm3098_vm3, %v3345_v28, 0.0  ;;  %v3282_v25 = vsel %vm3098_vm3, %v7655_v53, 0.0  ;;  %v9785_v34 = vld [vmem:[#allocation24_spill] sm:$0xff] }
 0x3fc   : > { %9777 = vst [vmem:[#allocation54_spill] sm:$0xff] %v7657_v17  ;;  %5034 = vmatmul.msk.f32.gmra.mxu2 %vm560_vm1, %v6020_v31  ;;  %v2581_v15 = vpop.f32.mrf.mxu0  ;;  %v2694_v33 = vpop.f32.mrf.mxu1  ;;  %5074 = vmatmul.msk.f32.gmra.mxu3 %vm560_vm1, %v9780_v47  ;;  %v3196_v17 = vmul.f32 %v7646_v38, %v7646_v38  ;;  %v3379_v19 = vadd.f32 %v3378_v60, %v3377_v44 }
 0x3fd   : > { %v2695_v40 = vadd.f32 %v2694_v33, %v2581_v15  ;;  %9782 = vst [vmem:[#allocation64_spill] sm:$0xff] %v7684_v36  ;;  %v3347_v63 = vmul.f32 %v7669_v48, %v7669_v48  ;;  %v7699_v60 = vadd.f32 %v7257_v46, %v9783_v24  ;;  %v3153_v28 = vadd.f32 %v3152_v16, %v3151_v29 }
 0x3fe   : > { %v3254_v15 = vadd.f32 %v3253_v4, %v3252_v7  ;;  %v3381_v33 = vadd.f32 %v3380_v9, %v3379_v19  ;;  %v3281_v44 = vadd.f32 %v3280_v14, %v3279_v42  ;;  %v7706_v53 = vadd.f32 %v7257_v46, %v9785_v34  ;;  %v9787_v4 = vld [vmem:[#allocation27_spill] sm:$0xff] }
 0x3ff   : > { %v2816_v12 = vpop.f32.mrf.mxu2  ;;  %4962 = vmatmul.msk.f32.gmra.mxu0 %vm560_vm1, %v6585_v13  ;;  %4994 = vmatmul.msk.f32.gmra.mxu1 %vm560_vm1, %v5977_v3  ;;  %v2974_v26 = vpop.f32.mrf.mxu3  ;;  %9784 = vst [vmem:[#allocation66_spill] sm:$0xff] %v7699_v60  ;;  %v3384_v13 = vsel %vm3098_vm3, %v3346_v35, 0.0  ;;  %v3348_v3 = vmul.f32 %v7684_v36, %v7684_v36  ;;  %v7710_v38 = vadd.f32 %v3154_v20, %v3153_v28  ;;  %v3255_v29 = vsel %vm3098_vm3, %v3196_v17, 0.0  ;;  %v9789_v17 = vld [vmem:[#allocation77_spill] sm:$0xff] }
 0x400   : > { %v2888_v55 = vadd.f32 %v2816_v12, %v2695_v40  ;;  %9786 = vst [vmem:[#allocation67_spill] sm:$0xff] %v7706_v53  ;;  %v3383_v7 = vadd.f32 %v3382_v45, %v3381_v33  ;;  %v3283_v19 = vadd.f32 %v3282_v25, %v3281_v44  ;;  %v3284_v42 = vsel %vm3098_vm3, %v7669_v48, 0.0  ;;  %v5232_v45 = vld [vmem:[%s5349_s16 + $0x198] sm:$0xff]  ;;  %v7728_v25 = vld [vmem:[%s5349_s16 + $0x1a0] sm:$0xff]  ;;  %v9790_v33 = vld [vmem:[#allocation76_spill] sm:$0xff] }
 0x401   : > { %v3386_v35 = vsel %vm3098_vm3, %v3347_v63, 0.0  ;;  %v3349_v16 = vmul.f32 %v7699_v60, %v7699_v60  ;;  %v7720_v40 = vadd.f32 %v7257_v46, %v9787_v4  ;;  %v537_v12 = vrot.slane %v5232_v45, 2 }
 0x402   : > { %v7708_v54 = vadd.f32 %v2974_v26, %v2888_v55  ;;  %v3385_v14 = vadd.f32 %v3384_v13, %v3383_v7  ;;  %v538_v63 = vrot.slane %v7728_v25, 2  ;;  %v3286_v24 = vsel %vm3098_vm3, %v7684_v36, 0.0  ;;  %v9792_v13 = vld [vmem:[#allocation60_spill] sm:$0xff] }
 0x403   : > { %9788 = vst [vmem:[#allocation56_spill] sm:$0xff] %v7720_v40  ;;  %v3388_v55 = vsel %vm3098_vm3, %v3348_v3, 0.0  ;;  %v3350_v28 = vmul.f32 %v7706_v53, %v7706_v53  ;;  %v7738_v44 = vadd.f32 %v7257_v46, %v9790_v33  ;;  %v7742_v34 = vadd.f32 %v7257_v46, %v9792_v13  ;;  %v9794_v33 = vld [vmem:[#allocation78_spill] sm:$0xff] }
 0x404   : > { %5035 = vmatmul.msk.f32.gmra.mxu2 %vm560_vm1, %v6036_v59  ;;  %v2584_v20 = vpop.f32.mrf.mxu0  ;;  %v2697_v9 = vpop.f32.mrf.mxu1  ;;  %5075 = vmatmul.msk.f32.gmra.mxu3 %vm560_vm1, %v9789_v17  ;;  %v3285_v7 = vadd.f32 %v3284_v42, %v3283_v19  ;;  %v3387_v4 = vadd.f32 %v3386_v35, %v3385_v14  ;;  %v3390_v45 = vsel %vm3098_vm3, %v3349_v16, 0.0  ;;  %v3351_v25 = vmul.f32 %v7720_v40, %v7720_v40 }
 0x405   : > { %v2698_v26 = vadd.f32 %v2697_v9, %v2584_v20  ;;  %9791 = vst [vmem:[#allocation68_spill] sm:$0xff] %v7738_v44  ;;  %v3288_v20 = vsel %vm3098_vm3, %v7699_v60, 0.0  ;;  %v7755_v19 = vadd.f32 %v7257_v46, %v9794_v33  ;;  %v3290_v13 = vsel %vm3098_vm3, %v7706_v53, 0.0  ;;  %v9796_v60 = vld [vmem:[#allocation79_spill] sm:$0xff] }
 0x406   : > { %9793 = vst [vmem:[#allocation69_spill] sm:$0xff] %v7742_v34  ;;  %v3287_v35 = vadd.f32 %v3286_v24, %v3285_v7  ;;  %v3389_v14 = vadd.f32 %v3388_v55, %v3387_v4  ;;  %v3352_v16 = vmul.f32 %v7738_v44, %v7738_v44  ;;  %v7765_v36 = vadd.f32 %v7257_v46, %v9796_v60  ;;  %v9798_v60 = vld [vmem:[#allocation80_spill] sm:$0xff]  ;;  %v5234_v33 = vld [vmem:[%s5349_s16 + $0x1a8] sm:$0x3] }
 0x407   : > { %v2819_v9 = vpop.f32.mrf.mxu2  ;;  %4963 = vmatmul.msk.f32.gmra.mxu0 %vm560_vm1, %v6599_v57  ;;  %4995 = vmatmul.msk.f32.gmra.mxu1 %vm560_vm1, %v5993_v30  ;;  %v2977_v3 = vpop.f32.mrf.mxu3  ;;  %9795 = vst [vmem:[#allocation70_spill] sm:$0xff] %v7755_v19  ;;  %v539_v57 = vsel %vm435_vm2, %v537_v12, %v538_v63  ;;  %v3392_v30 = vsel %vm3098_vm3, %v3350_v28, 0.0  ;;  %v3156_v24 = vsel %vm3098_vm3, %v7742_v34, 0.0  ;;  %v3292_v12 = vsel %vm3098_vm3, %v7720_v40, 0.0 }
 0x408   : > { %v2889_v42 = vadd.f32 %v2819_v9, %v2698_v26  ;;  %9797 = vst [vmem:[#allocation58_spill] sm:$0xff] %v7765_v36  ;;  %v7769_v26 = vadd.f32 %v3255_v29, %v3254_v15  ;;  %v3289_v55 = vadd.f32 %v3288_v20, %v3287_v35  ;;  %v3391_v7 = vadd.f32 %v3390_v45, %v3389_v14 }
 0x409   : > { %v3394_v28 = vsel %vm3098_vm3, %v3351_v25, 0.0  ;;  %v3353_v4 = vmul.f32 %v7755_v19, %v7755_v19  ;;  %v7780_v9 = vadd.f32 %v7257_v46, %v9798_v60  ;;  %v3294_v25 = vsel %vm3098_vm3, %v7738_v44, 0.0  ;;  %v9800_v60 = vld [vmem:[#allocation81_spill] sm:$0xff]  ;;  %v9804_v44 = vld [vmem:[#allocation83_spill] sm:$0xff] }
 0x40a   : > { %v7767_v48 = vadd.f32 %v2977_v3, %v2889_v42  ;;  %v3291_v20 = vadd.f32 %v3290_v13, %v3289_v55  ;;  %v3393_v3 = vadd.f32 %v3392_v30, %v3391_v7  ;;  %v540_v42 = vrot.slane %v5234_v33, 2  ;;  %v9802_v33 = vld [vmem:[#allocation82_spill] sm:$0xff] }
 0x40b   : > { %9799 = vst [vmem:[#allocation71_spill] sm:$0xff] %v7780_v9  ;;  %v3396_v35 = vsel %vm3098_vm3, %v3352_v16, 0.0  ;;  %v3354_v14 = vmul.f32 %v7765_v36, %v7765_v36  ;;  %v3296_v55 = vsel %vm3098_vm3, %v7755_v19, 0.0 }
 0x40c   : > { %5036 = vmatmul.msk.f32.gmra.mxu2 %vm560_vm1, %v7031_v22  ;;  %v2587_v15 = vpop.f32.mrf.mxu0  ;;  %v2700_v29 = vpop.f32.mrf.mxu1  ;;  %5076 = vmatmul.msk.f32.gmra.mxu3 %vm560_vm1, %v539_v57  ;;  %v7793_v22 = vadd.f32 %v7257_v46, %v9800_v60  ;;  %v3197_v57 = vmul.f32 %v7742_v34, %v7742_v34  ;;  %v3293_v13 = vadd.f32 %v3292_v12, %v3291_v20  ;;  %v3298_v60 = vsel %vm3098_vm3, %v7765_v36, 0.0  ;;  %v9888_v36 = vld [vmem:[#allocation34_spill] sm:$0xff] }
 0x40d   : > { %v2701_v45 = vadd.f32 %v2700_v29, %v2587_v15  ;;  %v3395_v30 = vadd.f32 %v3394_v28, %v3393_v3  ;;  %v3398_v15 = vsel %vm3098_vm3, %v3353_v4, 0.0  ;;  %v3355_v29 = vmul.f32 %v7780_v9, %v7780_v9 }
 0x40e   : > { %9801 = vst [vmem:[#allocation72_spill] sm:$0xff] %v7793_v22  ;;  %v7808_v12 = vadd.f32 %v7257_v46, %v9802_v33  ;;  %v3295_v20 = vadd.f32 %v3294_v25, %v3293_v13  ;;  %v3400_v4 = vsel %vm3098_vm3, %v3354_v14, 0.0  ;;  %v3356_v19 = vmul.f32 %v7793_v22, %v7793_v22 }
 0x40f   : > { %v2822_v7 = vpop.f32.mrf.mxu2  ;;  %4964 = vmatmul.msk.f32.gmra.mxu0 %vm560_vm1, %v9780_v47  ;;  %4996 = vmatmul.msk.f32.gmra.mxu1 %vm560_vm1, %v6020_v31  ;;  %v2980_v16 = vpop.f32.mrf.mxu3  ;;  %v3397_v3 = vadd.f32 %v3396_v35, %v3395_v30  ;;  %v541_v47 = vsel %vm435_vm2, %v538_v63, %v540_v42  ;;  %v3786_v31 = vld [vmem:[%s9341_s5 + $0x8] sm:$0xff]  ;;  %v7821_v33 = vadd.f32 %v7257_v46, %v9804_v44  ;;  %v9806_v63 = vld [vmem:[#allocation62_spill] sm:$0xff]  ;;  %v3300_v14 = vsel %vm3098_vm3, %v7780_v9, 0.0 }
 0x410   : > { %9803 = vst [vmem:[#allocation75_spill] sm:$0xff] %v7808_v12  ;;  %v2890_v28 = vadd.f32 %v2822_v7, %v2701_v45  ;;  %3806 = vmatpush.msra.mxu0 %v3786_v31  ;;  %3829 = vmatpush.msra.mxu1 %v3786_v31  ;;  %v3157_v25 = vadd.f32 %v3156_v24, %v7710_v38  ;;  %v3402_v30 = vsel %vm3098_vm3, %v3355_v29, 0.0  ;;  %v9808_v7 = vld [vmem:[#allocation84_spill] sm:$0xff]  ;;  %v3302_v29 = vsel %vm3098_vm3, %v7793_v22, 0.0 }
 0x411   : > { %9805 = vst [vmem:[#allocation73_spill] sm:$0xff] %v7821_v33  ;;  %v7828_v42 = vadd.f32 %v7257_v46, %v9806_v63  ;;  %v3297_v35 = vadd.f32 %v3296_v55, %v3295_v20  ;;  %v3399_v13 = vadd.f32 %v3398_v15, %v3397_v3  ;;  %v3357_v44 = vmul.f32 %v7808_v12, %v7808_v12  ;;  %v9810_v63 = vld [vmem:[#allocation85_spill] sm:$0xff] }
 0x412   : > { %v7823_v45 = vadd.f32 %v2980_v16, %v2890_v28  ;;  %v7837_v16 = vadd.f32 %v7257_v46, %v9808_v7  ;;  %v3257_v55 = vsel %vm3098_vm3, %v3197_v57, 0.0  ;;  %v3404_v3 = vsel %vm3098_vm3, %v3356_v19, 0.0 }
 0x413   : > { %9807 = vst [vmem:[#allocation74_spill] sm:$0xff] %v7828_v42  ;;  %v3299_v15 = vadd.f32 %v3298_v60, %v3297_v35  ;;  %v3401_v28 = vadd.f32 %v3400_v4, %v3399_v13  ;;  %v3358_v31 = vmul.f32 %v7821_v33, %v7821_v33  ;;  %v3198_v57 = vmul.f32 %v7828_v42, %v7828_v42 }
 0x414   : > { %9809 = vst [vmem:[#allocation24_spill] sm:$0xff] %v7837_v16  ;;  %5037 = vmatmul.msk.f32.gmra.mxu2 %vm560_vm1, %v7044_v8  ;;  %v2590_v38 = vpop.f32.mrf.mxu0  ;;  %v2703_v24 = vpop.f32.mrf.mxu1  ;;  %5077 = vmatmul.msk.f32.gmra.mxu3 %vm560_vm1, %v541_v47  ;;  %v7850_v8 = vadd.f32 %v7257_v46, %v9810_v63  ;;  %v3158_v47 = vsel %vm3098_vm3, %v7828_v42, 0.0  ;;  %v3304_v13 = vsel %vm3098_vm3, %v7808_v12, 0.0  ;;  %v3406_v7 = vsel %vm3098_vm3, %v3357_v44, 0.0  ;;  %v9812_v63 = vld [vmem:[#allocation63_spill] sm:$0xff] }
 0x415   : > { %v2704_v20 = vadd.f32 %v2703_v24, %v2590_v38  ;;  %v3301_v60 = vadd.f32 %v3300_v14, %v3299_v15  ;;  %v3403_v4 = vadd.f32 %v3402_v30, %v3401_v28  ;;  %v3359_v38 = vmul.f32 %v7837_v16, %v7837_v16 }
 0x416   : > { %9811 = vst [vmem:[#allocation27_spill] sm:$0xff] %v7850_v8  ;;  %v7867_v14 = vadd.f32 %v7257_v46, %v9812_v63  ;;  %v3408_v12 = vsel %vm3098_vm3, %v3358_v31, 0.0  ;;  %v3360_v44 = vmul.f32 %v7850_v8, %v7850_v8 }
 0x417   : > { %v2825_v35 = vpop.f32.mrf.mxu2  ;;  %4965 = vmatmul.msk.f32.gmra.mxu0 %vm560_vm1, %v9789_v17  ;;  %4997 = vmatmul.msk.f32.gmra.mxu1 %vm560_vm1, %v6036_v59  ;;  %v2983_v19 = vpop.f32.mrf.mxu3  ;;  %v3303_v30 = vadd.f32 %v3302_v29, %v3301_v60  ;;  %v3405_v15 = vadd.f32 %v3404_v3, %v3403_v4  ;;  %v9814_v17 = vld [vmem:[#allocation86_spill] sm:$0xff]  ;;  %v3306_v59 = vsel %vm3098_vm3, %v7821_v33, 0.0  ;;  %v9816_v29 = vld [vmem:[#allocation87_spill] sm:$0xff]  ;;  %v3159_v60 = vadd.f32 %v3158_v47, %v3157_v25 }
 0x418   : > { %v2891_v24 = vadd.f32 %v2825_v35, %v2704_v20  ;;  %9813 = vst [vmem:[#allocation77_spill] sm:$0xff] %v7867_v14  ;;  %v7871_v28 = vadd.f32 %v7257_v46, %v9814_v17  ;;  %v3258_v20 = vadd.f32 %v3257_v55, %v7769_v26  ;;  %v7883_v3 = vadd.f32 %v7257_v46, %v9816_v29 }
 0x419   : > { %v3305_v35 = vadd.f32 %v3304_v13, %v3303_v30  ;;  %v3407_v63 = vadd.f32 %v3406_v7, %v3405_v15  ;;  %v3259_v4 = vsel %vm3098_vm3, %v3198_v57, 0.0  ;;  %v3308_v17 = vsel %vm3098_vm3, %v7837_v16, 0.0  ;;  %v9818_v57 = vld [vmem:[#allocation88_spill] sm:$0xff] }
 0x41a   : > { %9815 = vst [vmem:[#allocation76_spill] sm:$0xff] %v7871_v28  ;;  %v7878_v22 = vadd.f32 %v2983_v19, %v2891_v24  ;;  %v3410_v31 = vsel %vm3098_vm3, %v3359_v38, 0.0  ;;  %v3361_v26 = vmul.f32 %v7871_v28, %v7871_v28  ;;  %v3160_v13 = vsel %vm3098_vm3, %v7867_v14, 0.0 }
 0x41b   : > { %9817 = vst [vmem:[#allocation60_spill] sm:$0xff] %v7883_v3  ;;  %v3307_v19 = vadd.f32 %v3306_v59, %v3305_v35  ;;  %v3409_v24 = vadd.f32 %v3408_v12, %v3407_v63  ;;  %v3310_v25 = vsel %vm3098_vm3, %v7850_v8, 0.0  ;;  %v3412_v47 = vsel %vm3098_vm3, %v3360_v44, 0.0 }
 0x41c   : > { %v2593_v33 = vpop.f32.mrf.mxu0  ;;  %v2706_v9 = vpop.f32.mrf.mxu1  ;;  %v7898_v7 = vadd.f32 %v7257_v46, %v9818_v57  ;;  %v3199_v38 = vmul.f32 %v7867_v14, %v7867_v14  ;;  %v3260_v59 = vadd.f32 %v3259_v4, %v3258_v20  ;;  %v3312_v35 = vsel %vm3098_vm3, %v7871_v28, 0.0 }
 0x41d   : > { %v2707_v55 = vadd.f32 %v2706_v9, %v2593_v33  ;;  %v3309_v12 = vadd.f32 %v3308_v17, %v3307_v19  ;;  %v3411_v30 = vadd.f32 %v3410_v31, %v3409_v24  ;;  %v3362_v9 = vmul.f32 %v7883_v3, %v7883_v3  ;;  %v9820_v31 = vld [vmem:[#allocation89_spill] sm:$0xff] }
 0x41e   : > { %9819 = vst [vmem:[#allocation78_spill] sm:$0xff] %v7898_v7  ;;  %v3161_v44 = vadd.f32 %v3160_v13, %v3159_v60  ;;  %v3414_v57 = vsel %vm3098_vm3, %v3361_v26, 0.0  ;;  %v3314_v16 = vsel %vm3098_vm3, %v7883_v3, 0.0  ;;  %v3363_v17 = vmul.f32 %v7898_v7, %v7898_v7 }
 0x41f   : > { %v2828_v33 = vpop.f32.mrf.mxu2  ;;  %v2986_v15 = vpop.f32.mrf.mxu3  ;;  %v3311_v29 = vadd.f32 %v3310_v25, %v3309_v12  ;;  %v3413_v8 = vadd.f32 %v3412_v47, %v3411_v30  ;;  %v7913_v19 = vadd.f32 %v7257_v46, %v9820_v31  ;;  %v3261_v4 = vsel %vm3098_vm3, %v3199_v38, 0.0 }
 0x420   : > { %v2892_v63 = vadd.f32 %v2828_v33, %v2707_v55  ;;  %v3416_v60 = vsel %vm3098_vm3, %v3362_v9, 0.0  ;;  %v7921_v26 = vadd.f32 %v7257_v46, %v6884_v51  ;;  %v3316_v13 = vsel %vm3098_vm3, %v7898_v7, 0.0 }
 0x421   : > { %9821 = vst [vmem:[#allocation79_spill] sm:$0xff] %v7913_v19  ;;  %v3313_v24 = vadd.f32 %v3312_v35, %v3311_v29  ;;  %v3415_v55 = vadd.f32 %v3414_v57, %v3413_v8  ;;  %v7927_v25 = vadd.f32 %v7257_v46, %v6871_v5  ;;  %v7931_v47 = vadd.f32 %v7257_v46, %v6894_v56  ;;  %v9826_v57 = vld [vmem:[#allocation90_spill] sm:$0xff] }
 0x422   : > { %v7915_v20 = vadd.f32 %v2986_v15, %v2892_v63  ;;  %9822 = vst [vmem:[#allocation80_spill] sm:$0xff] %v7921_v26  ;;  %v3162_v30 = vrot.slane %v3161_v44, 4  ;;  %v7933_v15 = vadd.f32 %v3261_v4, %v3260_v59  ;;  %v3418_v8 = vsel %vm3098_vm3, %v3363_v17, 0.0 }
 0x423   : > { %9823 = vst [vmem:[#allocation81_spill] sm:$0xff] %v7927_v25  ;;  %v3315_v9 = vadd.f32 %v3314_v16, %v3313_v24  ;;  %v3417_v51 = vadd.f32 %v3416_v60, %v3415_v55  ;;  %v3364_v35 = vmul.f32 %v7913_v19, %v7913_v19  ;;  %v3318_v5 = vsel %vm3098_vm3, %v7913_v19, 0.0 }
 0x424   : > { %9824 = vst [vmem:[#allocation82_spill] sm:$0xff] %v7931_v47  ;;  %v2596_v38 = vpop.f32.mrf.mxu0  ;;  %v2709_v12 = vpop.f32.mrf.mxu1  ;;  %v3512_v56 = vmul.f32 %v7921_v26, %v7921_v26  ;;  %v7944_v29 = vadd.f32 %v7257_v46, %v6904_v62  ;;  %v7948_v31 = vadd.f32 %v7257_v46, %v9826_v57  ;;  %v3511_v17 = vmul.f32 %v7927_v25, %v7927_v25 }
 0x425   : > { %v2710_v33 = vadd.f32 %v2709_v12, %v2596_v38  ;;  %v3317_v63 = vadd.f32 %v3316_v13, %v3315_v9  ;;  %v3513_v4 = vmul.f32 %v7931_v47, %v7931_v47  ;;  %v7954_v60 = vadd.f32 %v3162_v30, %v3161_v44  ;;  %v7961_v13 = vld [vmem:[%s9338_s2] ss:$0 sm:$0xff] }
 0x426   : > { %9825 = vst [vmem:[#allocation83_spill] sm:$0xff] %v7944_v29  ;;  %v3419_v55 = vadd.f32 %v3418_v8, %v3417_v51  ;;  %v3442_v62 = vsel %vm3098_vm3, %v7921_v26, 0.0  ;;  %v7965_v46 = vadd.f32 %v7961_v13, %v6923_v41  ;;  %v3420_v12 = vsel %vm3098_vm3, %v3364_v35, 0.0 }
 0x427   : > { %v2831_v16 = vpop.f32.mrf.mxu2  ;;  %v2989_v59 = vpop.f32.mrf.mxu3  ;;  %9827 = vst [vmem:[#allocation62_spill] sm:$0xff] %v7948_v31  ;;  %v3319_v38 = vadd.f32 %v3318_v5, %v3317_v63  ;;  %v3441_v44 = vsel %vm3098_vm3, %v7927_v25, 0.0  ;;  %v3544_v9 = vsel %vm3098_vm3, %v3512_v56, 0.0  ;;  %v3514_v51 = vmul.f32 %v7944_v29, %v7944_v29 }
 0x428   : > { %v2893_v24 = vadd.f32 %v2831_v16, %v2710_v33  ;;  %9828 = vst [vmem:[#allocation84_spill] sm:$0xff] %v7965_v46  ;;  %v3444_v33 = vsel %vm3098_vm3, %v7931_v47, 0.0  ;;  %v7979_v41 = vadd.f32 %v7961_v13, %v6936_v27  ;;  %v3365_v8 = vmul.f32 %v7948_v31, %v7948_v31 }
 0x429   : > { %v3543_v35 = vsel %vm3098_vm3, %v3511_v17, 0.0  ;;  %v3443_v63 = vadd.f32 %v3442_v62, %v3441_v44  ;;  %v3546_v5 = vsel %vm3098_vm3, %v3513_v4, 0.0  ;;  %v3515_v57 = vmul.f32 %v7965_v46, %v7965_v46 }
 0x42a   : > { %v7970_v30 = vadd.f32 %v2989_v59, %v2893_v24  ;;  %9829 = vst [vmem:[#allocation85_spill] sm:$0xff] %v7979_v41  ;;  %v3446_v59 = vsel %vm3098_vm3, %v7944_v29, 0.0  ;;  %v7991_v27 = vadd.f32 %v7961_v13, %v6946_v32  ;;  %v3421_v47 = vadd.f32 %v3420_v12, %v3419_v55 }
 0x42b   : > { %v3320_v17 = vsel %vm3098_vm3, %v7948_v31, 0.0  ;;  %v3545_v62 = vadd.f32 %v3544_v9, %v3543_v35  ;;  %v3445_v44 = vadd.f32 %v3444_v33, %v3443_v63  ;;  %v3548_v4 = vsel %vm3098_vm3, %v3514_v51, 0.0 }
 0x42c   : > { %v2599_v16 = vpop.f32.mrf.mxu0  ;;  %v2712_v56 = vpop.f32.mrf.mxu1  ;;  %9830 = vst [vmem:[#allocation63_spill] sm:$0xff] %v7991_v27  ;;  %v3448_v26 = vsel %vm3098_vm3, %v7965_v46, 0.0  ;;  %v3516_v29 = vmul.f32 %v7979_v41, %v7979_v41  ;;  %v8002_v25 = vadd.f32 %v7961_v13, %v6956_v1  ;;  %v3422_v55 = vsel %vm3098_vm3, %v3365_v8, 0.0  ;;  %v9833_v1 = vld [vmem:[#allocation91_spill] sm:$0xff] }
 0x42d   : > { %v2713_v24 = vadd.f32 %v2712_v56, %v2599_v16  ;;  %v3547_v12 = vadd.f32 %v3546_v5, %v3545_v62  ;;  %v3447_v56 = vadd.f32 %v3446_v59, %v3445_v44  ;;  %v3550_v33 = vsel %vm3098_vm3, %v3515_v57, 0.0 }
 0x42e   : > { %9831 = vst [vmem:[#allocation86_spill] sm:$0xff] %v8002_v25  ;;  %v3450_v51 = vsel %vm3098_vm3, %v7979_v41, 0.0  ;;  %v3517_v35 = vmul.f32 %v7991_v27, %v7991_v27  ;;  %v8012_v63 = vadd.f32 %v7961_v13, %v6975_v10  ;;  %v8016_v46 = vadd.f32 %v7961_v13, %v9833_v1 }
 0x42f   : > { %v2834_v32 = vpop.f32.mrf.mxu2  ;;  %v2992_v16 = vpop.f32.mrf.mxu3  ;;  %v3549_v8 = vadd.f32 %v3548_v4, %v3547_v12  ;;  %v3449_v5 = vadd.f32 %v3448_v26, %v3447_v56  ;;  %v3552_v57 = vsel %vm3098_vm3, %v3516_v29, 0.0  ;;  %v3518_v62 = vmul.f32 %v8002_v25, %v8002_v25 }
 0x430   : > { %v2894_v9 = vadd.f32 %v2834_v32, %v2713_v24  ;;  %9832 = vst [vmem:[#allocation87_spill] sm:$0xff] %v8012_v63  ;;  %v3452_v24 = vsel %vm3098_vm3, %v7991_v27, 0.0  ;;  %v8027_v10 = vadd.f32 %v7961_v13, %v6988_v39  ;;  %v3321_v44 = vadd.f32 %v3320_v17, %v3319_v38 }
 0x431   : > { %9834 = vst [vmem:[#allocation88_spill] sm:$0xff] %v8016_v46  ;;  %v3551_v32 = vadd.f32 %v3550_v33, %v3549_v8  ;;  %v3451_v1 = vadd.f32 %v3450_v51, %v3449_v5  ;;  %v8031_v26 = vadd.f32 %v7961_v13, %v6998_v18  ;;  %v3554_v29 = vsel %vm3098_vm3, %v3517_v35, 0.0  ;;  %v9837_v8 = vld [vmem:[#allocation96_spill] sm:$0xff] }
 0x432   : > { %v8018_v59 = vadd.f32 %v2992_v16, %v2894_v9  ;;  %9835 = vst [vmem:[#allocation89_spill] sm:$0xff] %v8027_v10  ;;  %v3454_v12 = vsel %vm3098_vm3, %v8002_v25, 0.0  ;;  %v3519_v56 = vmul.f32 %v8012_v63, %v8012_v63  ;;  %v3423_v39 = vadd.f32 %v3422_v55, %v3421_v47 }
 0x433   : > { %9836 = vst [vmem:[#allocation90_spill] sm:$0xff] %v8031_v26  ;;  %v3322_v38 = vsel %vm3098_vm3, %v8016_v46, 0.0  ;;  %v3553_v17 = vadd.f32 %v3552_v57, %v3551_v32  ;;  %v3453_v33 = vadd.f32 %v3452_v24, %v3451_v1  ;;  %v3556_v18 = vsel %vm3098_vm3, %v3518_v62, 0.0 }
 0x434   : > { %v2602_v4 = vpop.f32.mrf.mxu0  ;;  %v2715_v16 = vpop.f32.mrf.mxu1  ;;  %v3456_v51 = vsel %vm3098_vm3, %v8012_v63, 0.0  ;;  %v3520_v35 = vmul.f32 %v8027_v10, %v8027_v10  ;;  %v8047_v5 = vadd.f32 %v7961_v13, %v9837_v8  ;;  %v3521_v57 = vmul.f32 %v8031_v26, %v8031_v26  ;;  %v9841_v63 = vld [vmem:[#allocation92_spill] sm:$0xff] }
 0x435   : > { %v2716_v9 = vadd.f32 %v2715_v16, %v2602_v4  ;;  %v3555_v47 = vadd.f32 %v3554_v29, %v3553_v17  ;;  %v3455_v55 = vadd.f32 %v3454_v12, %v3453_v33  ;;  %v3366_v62 = vmul.f32 %v8016_v46, %v8016_v46  ;;  %v9839_v16 = vld [vmem:[#allocation97_spill] sm:$0xff] }
 0x436   : > { %9838 = vst [vmem:[#allocation91_spill] sm:$0xff] %v8047_v5  ;;  %v3558_v32 = vsel %vm3098_vm3, %v3519_v56, 0.0  ;;  %v3458_v1 = vsel %vm3098_vm3, %v8027_v10, 0.0  ;;  %v8058_v8 = vadd.f32 %v7961_v13, %v9839_v16  ;;  %v8062_v29 = vadd.f32 %v7961_v13, %v9841_v63 }
 0x437   : > { %v2837_v25 = vpop.f32.mrf.mxu2  ;;  %v2995_v4 = vpop.f32.mrf.mxu3  ;;  %v3557_v12 = vadd.f32 %v3556_v18, %v3555_v47  ;;  %v3457_v17 = vadd.f32 %v3456_v51, %v3455_v55  ;;  %v3460_v56 = vsel %vm3098_vm3, %v8031_v26, 0.0  ;;  %v8073_v16 = vadd.f32 %v7961_v13, %v7033_v0 }
 0x438   : > { %v2895_v24 = vadd.f32 %v2837_v25, %v2716_v9  ;;  %9840 = vst [vmem:[#allocation96_spill] sm:$0xff] %v8058_v8  ;;  %v3560_v25 = vsel %vm3098_vm3, %v3520_v35, 0.0  ;;  %v3522_v9 = vmul.f32 %v8047_v5, %v8047_v5  ;;  %v3323_v10 = vadd.f32 %v3322_v38, %v3321_v44 }
 0x439   : > { %9842 = vst [vmem:[#allocation97_spill] sm:$0xff] %v8062_v29  ;;  %v3559_v27 = vadd.f32 %v3558_v32, %v3557_v12  ;;  %v3459_v63 = vadd.f32 %v3458_v1, %v3457_v17  ;;  %v3562_v18 = vsel %vm3098_vm3, %v3521_v57, 0.0  ;;  %v3462_v35 = vsel %vm3098_vm3, %v8047_v5, 0.0 }
 0x43a   : > { %v8064_v33 = vadd.f32 %v2995_v4, %v2895_v24  ;;  %9843 = vst [vmem:[#allocation92_spill] sm:$0xff] %v8073_v16  ;;  %v3523_v47 = vmul.f32 %v8058_v8, %v8058_v8  ;;  %v8082_v55 = vadd.f32 %v7961_v13, %v7046_v2  ;;  %v3424_v0 = vsel %vm3098_vm3, %v3366_v62, 0.0 }
 0x43b   : > { %v3324_v44 = vsel %vm3098_vm3, %v8062_v29, 0.0  ;;  %v3561_v38 = vadd.f32 %v3560_v25, %v3559_v27  ;;  %v3461_v57 = vadd.f32 %v3460_v56, %v3459_v63  ;;  %v3564_v32 = vsel %vm3098_vm3, %v3522_v9, 0.0 }
 0x43c   : > { %v2605_v51 = vpop.f32.mrf.mxu0  ;;  %v2718_v4 = vpop.f32.mrf.mxu1  ;;  %9844 = vst [vmem:[#allocation98_spill] sm:$0xff] %v8082_v55  ;;  %v3464_v1 = vsel %vm3098_vm3, %v8058_v8, 0.0  ;;  %v3524_v12 = vmul.f32 %v8073_v16, %v8073_v16  ;;  %v8094_v2 = vadd.f32 %v7961_v13, %v7055_v50  ;;  %v3367_v62 = vmul.f32 %v8062_v29, %v8062_v29  ;;  %v9847_v8 = vld [vmem:[#allocation93_spill] sm:$0xff] }
 0x43d   : > { %v2719_v24 = vadd.f32 %v2718_v4, %v2605_v51  ;;  %v3563_v4 = vadd.f32 %v3562_v18, %v3561_v38  ;;  %v3463_v27 = vadd.f32 %v3462_v35, %v3461_v57  ;;  %v3566_v56 = vsel %vm3098_vm3, %v3523_v47, 0.0 }
 0x43e   : > { %9845 = vst [vmem:[#allocation99_spill] sm:$0xff] %v8094_v2  ;;  %v3466_v9 = vsel %vm3098_vm3, %v8073_v16, 0.0  ;;  %v3525_v63 = vmul.f32 %v8082_v55, %v8082_v55  ;;  %v8105_v50 = vadd.f32 %v7961_v13, %v7065_v23  ;;  %v8109_v5 = vadd.f32 %v7961_v13, %v9847_v8 }
 0x43f   : > { %v2840_v17 = vpop.f32.mrf.mxu2  ;;  %v2998_v51 = vpop.f32.mrf.mxu3  ;;  %v3565_v26 = vadd.f32 %v3564_v32, %v3563_v4  ;;  %v3465_v18 = vadd.f32 %v3464_v1, %v3463_v27  ;;  %v3568_v47 = vsel %vm3098_vm3, %v3524_v12, 0.0  ;;  %v3526_v38 = vmul.f32 %v8094_v2, %v8094_v2 }
 0x440   : > { %v2896_v25 = vadd.f32 %v2840_v17, %v2719_v24  ;;  %9846 = vst [vmem:[#allocation100_spill] sm:$0xff] %v8105_v50  ;;  %v3468_v24 = vsel %vm3098_vm3, %v8082_v55, 0.0  ;;  %v8120_v23 = vadd.f32 %v7961_v13, %v7075_v49  ;;  %v3425_v57 = vadd.f32 %v3424_v0, %v3423_v39  ;;  %v9860_v55 = vld [vmem:[#allocation31_spill] sm:$0xff] }
 0x441   : > { %9848 = vst [vmem:[#allocation93_spill] sm:$0xff] %v8109_v5  ;;  %v3426_v8 = vsel %vm3098_vm3, %v3367_v62, 0.0  ;;  %v3567_v17 = vadd.f32 %v3566_v56, %v3565_v26  ;;  %v3467_v32 = vadd.f32 %v3466_v9, %v3465_v18  ;;  %v3570_v12 = vsel %vm3098_vm3, %v3525_v63, 0.0  ;;  %v9852_v18 = vld [vmem:[#allocation94_spill] sm:$0xff] }
 0x442   : > { %v8111_v35 = vadd.f32 %v2998_v51, %v2896_v25  ;;  %9849 = vst [vmem:[#allocation101_spill] sm:$0xff] %v8120_v23  ;;  %v3470_v4 = vsel %vm3098_vm3, %v8094_v2, 0.0  ;;  %v3527_v27 = vmul.f32 %v8105_v50, %v8105_v50  ;;  %v8134_v49 = vadd.f32 %v7961_v13, %v7085_v21 }
 0x443   : > { %v3325_v39 = vadd.f32 %v3324_v44, %v3323_v10  ;;  %v3326_v26 = vsel %vm3098_vm3, %v8109_v5, 0.0  ;;  %v3569_v0 = vadd.f32 %v3568_v47, %v3567_v17  ;;  %v3469_v62 = vadd.f32 %v3468_v24, %v3467_v32 }
 0x444   : > { %v8123_v1 = vpop.f32.mrf.mxu0  ;;  %v8125_v51 = vpop.f32.mrf.mxu1  ;;  %9850 = vst [vmem:[#allocation102_spill] sm:$0xff] %v8134_v49  ;;  %v3572_v25 = vsel %vm3098_vm3, %v3526_v38, 0.0  ;;  %v3472_v56 = vsel %vm3098_vm3, %v8105_v50, 0.0  ;;  %v3528_v9 = vmul.f32 %v8120_v23, %v8120_v23  ;;  %v8145_v63 = vadd.f32 %v7961_v13, %v7095_v58 }
 0x445   : > { %v3427_v44 = vadd.f32 %v3426_v8, %v3425_v57  ;;  %v8153_v47 = vadd.f32 %v7961_v13, %v9852_v18  ;;  %v3571_v24 = vadd.f32 %v3570_v12, %v3569_v0  ;;  %v3471_v38 = vadd.f32 %v3470_v4, %v3469_v62 }
 0x446   : > { %9851 = vst [vmem:[#allocation103_spill] sm:$0xff] %v8145_v63  ;;  %v3574_v17 = vsel %vm3098_vm3, %v3527_v27, 0.0  ;;  %v3474_v32 = vsel %vm3098_vm3, %v8120_v23, 0.0  ;;  %v3529_v58 = vmul.f32 %v8134_v49, %v8134_v49  ;;  %v8162_v50 = vadd.f32 %v7961_v13, %v7105_v61 }
 0x447   : > { %v8147_v21 = vpop.f32.mrf.mxu2  ;;  %v8149_v10 = vpop.f32.mrf.mxu3  ;;  %9853 = vst [vmem:[#allocation94_spill] sm:$0xff] %v8153_v47  ;;  %v3327_v2 = vadd.f32 %v3326_v26, %v3325_v39  ;;  %v3368_v57 = vmul.f32 %v8109_v5, %v8109_v5  ;;  %v3573_v8 = vadd.f32 %v3572_v25, %v3571_v24  ;;  %v3473_v18 = vadd.f32 %v3472_v56, %v3471_v38  ;;  %v9856_v39 = vld [vmem:[#allocation95_spill] sm:$0xff] }
 0x448   : > { %9854 = vst [vmem:[#allocation104_spill] sm:$0xff] %v8162_v50  ;;  %v3576_v12 = vsel %vm3098_vm3, %v3528_v9, 0.0  ;;  %v3476_v4 = vsel %vm3098_vm3, %v8134_v49, 0.0  ;;  %v3530_v27 = vmul.f32 %v8145_v63, %v8145_v63  ;;  %v8173_v0 = vadd.f32 %v7961_v13, %v7115_v43  ;;  %v9858_v49 = vld [vmem:[#allocation35_spill] sm:$0xff] }
 0x449   : > { %v3328_v61 = vsel %vm3098_vm3, %v8153_v47, 0.0  ;;  %v8179_v26 = vadd.f32 %v7961_v13, %v9856_v39  ;;  %v3575_v62 = vadd.f32 %v3574_v17, %v3573_v8  ;;  %v3475_v25 = vadd.f32 %v3474_v32, %v3473_v18 }
 0x44a   : > { %9855 = vst [vmem:[#allocation105_spill] sm:$0xff] %v8173_v0  ;;  %v3578_v24 = vsel %vm3098_vm3, %v3529_v58, 0.0  ;;  %v3478_v38 = vsel %vm3098_vm3, %v8145_v63, 0.0  ;;  %v3531_v43 = vmul.f32 %v8162_v50, %v8162_v50  ;;  %v8192_v23 = vadd.f32 %v7961_v13, %v9858_v49 }
 0x44b   : > { %9857 = vst [vmem:[#allocation95_spill] sm:$0xff] %v8179_v26  ;;  %v3428_v39 = vsel %vm3098_vm3, %v3368_v57, 0.0  ;;  %v3369_v17 = vmul.f32 %v8153_v47, %v8153_v47  ;;  %v3577_v32 = vadd.f32 %v3576_v12, %v3575_v62  ;;  %v3477_v8 = vadd.f32 %v3476_v4, %v3475_v25 }
 0x44c   : > { %v8181_v56 = vpop.f32.mrf.mxu0  ;;  %v8183_v9 = vpop.f32.mrf.mxu1  ;;  %9859 = vst [vmem:[#allocation35_spill] sm:$0xff] %v8192_v23  ;;  %v3580_v18 = vsel %vm3098_vm3, %v3530_v27, 0.0  ;;  %v3480_v58 = vsel %vm3098_vm3, %v8162_v50, 0.0  ;;  %v3532_v63 = vmul.f32 %v8173_v0, %v8173_v0  ;;  %v8204_v16 = vadd.f32 %v7961_v13, %v9860_v55  ;;  %v9862_v55 = vld [vmem:[#allocation37_spill] sm:$0xff] }
 0x44d   : > { %v3329_v41 = vadd.f32 %v3328_v61, %v3327_v2  ;;  %v3330_v12 = vsel %vm3098_vm3, %v8179_v26, 0.0  ;;  %v3579_v4 = vadd.f32 %v3578_v24, %v3577_v32  ;;  %v3479_v27 = vadd.f32 %v3478_v38, %v3477_v8  ;;  %v3785_v2 = vld [vmem:[%s9341_s5] sm:$0xff] }
 0x44e   : > { %9861 = vst [vmem:[#allocation31_spill] sm:$0xff] %v8204_v16  ;;  %v3582_v62 = vsel %vm3098_vm3, %v3531_v43, 0.0  ;;  %v3482_v25 = vsel %vm3098_vm3, %v8173_v0, 0.0  ;;  %v3533_v50 = vmul.f32 %v8192_v23, %v8192_v23  ;;  %v8219_v47 = vadd.f32 %v7961_v13, %v9862_v55  ;;  %3807 = vmatpush.msra.mxu0 %v3785_v2  ;;  %3830 = vmatpush.msra.mxu1 %v3785_v2  ;;  %v9864_v0 = vld [vmem:[#allocation33_spill] sm:$0xff]  ;;  %v9866_v2 = vld [vmem:[#allocation39_spill] sm:$0xff] }
 0x44f   : > { %v8206_v49 = vpop.f32.mrf.mxu2  ;;  %v8208_v57 = vpop.f32.mrf.mxu3  ;;  %v3370_v24 = vmul.f32 %v8179_v26, %v8179_v26  ;;  %v3581_v38 = vadd.f32 %v3580_v18, %v3579_v4  ;;  %v3481_v43 = vadd.f32 %v3480_v58, %v3479_v27  ;;  %v3584_v32 = vsel %vm3098_vm3, %v3532_v63, 0.0 }
 0x450   : > { %9863 = vst [vmem:[#allocation37_spill] sm:$0xff] %v8219_v47  ;;  %v3484_v8 = vsel %vm3098_vm3, %v8192_v23, 0.0  ;;  %v3534_v55 = vmul.f32 %v8204_v16, %v8204_v16  ;;  %v8234_v5 = vadd.f32 %v7961_v13, %v9864_v0  ;;  %v3429_v61 = vadd.f32 %v3428_v39, %v3427_v44 }
 0x451   : > { %v3331_v29 = vadd.f32 %v3330_v12, %v3329_v41  ;;  %v3583_v46 = vadd.f32 %v3582_v62, %v3581_v38  ;;  %v3483_v26 = vadd.f32 %v3482_v25, %v3481_v43  ;;  %v3586_v63 = vsel %vm3098_vm3, %v3533_v50, 0.0  ;;  %v9868_v38 = vld [vmem:[#allocation53_spill] sm:$0xff] }
 0x452   : > { %9865 = vst [vmem:[#allocation33_spill] sm:$0xff] %v8234_v5  ;;  %v3486_v4 = vsel %vm3098_vm3, %v8204_v16, 0.0  ;;  %v3535_v27 = vmul.f32 %v8219_v47, %v8219_v47  ;;  %v8247_v0 = vadd.f32 %v7961_v13, %v9866_v2  ;;  %v3430_v41 = vsel %vm3098_vm3, %v3369_v17, 0.0 }
 0x453   : > { %v3432_v44 = vsel %vm3098_vm3, %v3370_v24, 0.0  ;;  %v3585_v39 = vadd.f32 %v3584_v32, %v3583_v46  ;;  %v3485_v12 = vadd.f32 %v3484_v8, %v3483_v26  ;;  %v3588_v62 = vsel %vm3098_vm3, %v3534_v55, 0.0  ;;  %v9870_v26 = vld [vmem:[#allocation51_spill] sm:$0xff] }
 0x454   : > { %v8236_v18 = vpop.f32.mrf.mxu0  ;;  %v8238_v58 = vpop.f32.mrf.mxu1  ;;  %9867 = vst [vmem:[#allocation39_spill] sm:$0xff] %v8247_v0  ;;  %v3488_v50 = vsel %vm3098_vm3, %v8219_v47, 0.0  ;;  %v3536_v25 = vmul.f32 %v8234_v5, %v8234_v5  ;;  %v8258_v43 = vadd.f32 %v7961_v13, %v9868_v38  ;;  %v3332_v17 = vrot.slane %v3331_v29, 4  ;;  %v9872_v47 = vld [vmem:[#allocation55_spill] sm:$0xff] }
 0x455   : > { %v3587_v24 = vadd.f32 %v3586_v63, %v3585_v39  ;;  %v3487_v46 = vadd.f32 %v3486_v4, %v3485_v12  ;;  %v8266_v32 = vadd.f32 %v7961_v13, %v9870_v26  ;;  %v3590_v8 = vsel %vm3098_vm3, %v3535_v27, 0.0  ;;  %v9874_v4 = vld [vmem:[#allocation41_spill] sm:$0xff] }
 0x456   : > { %9869 = vst [vmem:[#allocation53_spill] sm:$0xff] %v8258_v43  ;;  %v3490_v55 = vsel %vm3098_vm3, %v8234_v5, 0.0  ;;  %v3537_v38 = vmul.f32 %v8247_v0, %v8247_v0  ;;  %v8275_v23 = vadd.f32 %v7961_v13, %v9872_v47  ;;  %v3431_v31 = vadd.f32 %v3430_v41, %v3429_v61  ;;  %v9876_v5 = vld [vmem:[#allocation2_spill] sm:$0xff] }
 0x457   : > { %v8260_v2 = vpop.f32.mrf.mxu2  ;;  %v8262_v16 = vpop.f32.mrf.mxu3  ;;  %9871 = vst [vmem:[#allocation51_spill] sm:$0xff] %v8266_v32  ;;  %v3589_v19 = vadd.f32 %v3588_v62, %v3587_v24  ;;  %v3489_v63 = vadd.f32 %v3488_v50, %v3487_v46  ;;  %v8279_v39 = vadd.f32 %v7961_v13, %v9874_v4  ;;  %v3592_v12 = vsel %vm3098_vm3, %v3536_v25, 0.0 }
 0x458   : > { %9873 = vst [vmem:[#allocation55_spill] sm:$0xff] %v8275_v23  ;;  %v3492_v27 = vsel %vm3098_vm3, %v8247_v0, 0.0  ;;  %v3684_v26 = vmul.f32 %v8258_v43, %v8258_v43  ;;  %v8288_v7 = vadd.f32 %v7961_v13, %v9876_v5  ;;  %v8290_v47 = vadd.f32 %v3432_v44, %v3431_v31  ;;  %v9878_v5 = vld [vmem:[#allocation10_spill] sm:$0xff] }
 0x459   : > { %9875 = vst [vmem:[#allocation41_spill] sm:$0xff] %v8279_v39  ;;  %v3591_v61 = vadd.f32 %v3590_v8, %v3589_v19  ;;  %v3491_v41 = vadd.f32 %v3490_v55, %v3489_v63  ;;  %v3683_v62 = vmul.f32 %v8266_v32, %v8266_v32  ;;  %v8298_v24 = vadd.f32 %v3332_v17, %v3331_v29 }
 0x45a   : > { %9877 = vst [vmem:[#allocation2_spill] sm:$0xff] %v8288_v7  ;;  %v3594_v46 = vsel %vm3098_vm3, %v3537_v38, 0.0  ;;  %v3685_v4 = vmul.f32 %v8275_v23, %v8275_v23  ;;  %v8305_v31 = vadd.f32 %v7961_v13, %v9878_v5  ;;  %v3494_v8 = vsel %vm3098_vm3, %v8279_v39, 0.0 }
 0x45b   : > { %v3593_v19 = vadd.f32 %v3592_v12, %v3591_v61  ;;  %v3493_v44 = vadd.f32 %v3492_v27, %v3491_v41  ;;  %v3538_v55 = vmul.f32 %v8279_v39, %v8279_v39  ;;  %v3614_v29 = vsel %vm3098_vm3, %v8258_v43, 0.0  ;;  %v9881_v41 = vld [vmem:[#allocation43_spill] sm:$0xff] }
 0x45c   : > { %v8294_v50 = vpop.f32.mrf.mxu0  ;;  %v8296_v25 = vpop.f32.mrf.mxu1  ;;  %9879 = vst [vmem:[#allocation10_spill] sm:$0xff] %v8305_v31  ;;  %v3716_v17 = vsel %vm3098_vm3, %v3684_v26, 0.0  ;;  %v3686_v38 = vmul.f32 %v8288_v7, %v8288_v7  ;;  %v8318_v63 = vadd.f32 %v7961_v13, %v7366_v52  ;;  %v8326_v5 = vadd.f32 %v7961_v13, %v9881_v41 }
 0x45d   : > { %v3595_v61 = vadd.f32 %v3594_v46, %v3593_v19  ;;  %v3613_v43 = vsel %vm3098_vm3, %v8266_v32, 0.0  ;;  %v3715_v26 = vsel %vm3098_vm3, %v3683_v62, 0.0  ;;  %v3616_v39 = vsel %vm3098_vm3, %v8275_v23, 0.0 }
 0x45e   : > { %9880 = vst [vmem:[#allocation106_spill] sm:$0xff] %v8318_v63  ;;  %v3718_v52 = vsel %vm3098_vm3, %v3685_v4, 0.0  ;;  %v3687_v0 = vmul.f32 %v8305_v31, %v8305_v31  ;;  %v8338_v46 = vadd.f32 %v7961_v13, %v7415_v11  ;;  %v3495_v19 = vadd.f32 %v3494_v8, %v3493_v44 }
 0x45f   : > { %v8320_v12 = vpop.f32.mrf.mxu2  ;;  %v8322_v27 = vpop.f32.mrf.mxu3  ;;  %9882 = vst [vmem:[#allocation43_spill] sm:$0xff] %v8326_v5  ;;  %v3596_v41 = vsel %vm3098_vm3, %v3538_v55, 0.0  ;;  %v3615_v3 = vadd.f32 %v3614_v29, %v3613_v43  ;;  %v3717_v28 = vadd.f32 %v3716_v17, %v3715_v26  ;;  %v3618_v62 = vsel %vm3098_vm3, %v8288_v7, 0.0 }
 0x460   : > { %9883 = vst [vmem:[#allocation107_spill] sm:$0xff] %v8338_v46  ;;  %v3720_v32 = vsel %vm3098_vm3, %v3686_v38, 0.0  ;;  %v3688_v4 = vmul.f32 %v8318_v63, %v8318_v63  ;;  %v8348_v23 = vadd.f32 %v7961_v13, %v7461_v6  ;;  %v3496_v11 = vsel %vm3098_vm3, %v8326_v5, 0.0 }
 0x461   : > { %v3539_v44 = vmul.f32 %v8326_v5, %v8326_v5  ;;  %v3617_v43 = vadd.f32 %v3616_v39, %v3615_v3  ;;  %v3719_v8 = vadd.f32 %v3718_v52, %v3717_v28  ;;  %v3620_v17 = vsel %vm3098_vm3, %v8305_v31, 0.0  ;;  %v9886_v5 = vld [vmem:[#allocation45_spill] sm:$0xff] }
 0x462   : > { %9884 = vst [vmem:[#allocation108_spill] sm:$0xff] %v8348_v23  ;;  %v3722_v38 = vsel %vm3098_vm3, %v3687_v0, 0.0  ;;  %v3689_v6 = vmul.f32 %v8338_v46, %v8338_v46  ;;  %v8365_v26 = vadd.f32 %v7961_v13, %v7507_v37  ;;  %v3597_v7 = vadd.f32 %v3596_v41, %v3595_v61 }
 0x463   : > { %v8369_v28 = vadd.f32 %v7961_v13, %v9886_v5  ;;  %v3619_v3 = vadd.f32 %v3618_v62, %v3617_v43  ;;  %v3721_v39 = vadd.f32 %v3720_v32, %v3719_v8  ;;  %v3622_v52 = vsel %vm3098_vm3, %v8318_v63, 0.0  ;;  %v9890_v63 = vld [vmem:[#allocation42_spill] sm:$0xff] }
 0x464   : > { %v8354_v55 = vpop.f32.mrf.mxu0  ;;  %v8356_v29 = vpop.f32.mrf.mxu1  ;;  %9885 = vst [vmem:[#allocation109_spill] sm:$0xff] %v8365_v26  ;;  %v3724_v31 = vsel %vm3098_vm3, %v3688_v4, 0.0  ;;  %v3690_v0 = vmul.f32 %v8348_v23, %v8348_v23  ;;  %v8378_v40 = vadd.f32 %v7961_v13, %v9888_v36  ;;  %v3497_v5 = vadd.f32 %v3496_v11, %v3495_v19  ;;  %v9892_v19 = vld [vmem:[#allocation47_spill] sm:$0xff] }
 0x465   : > { %9887 = vst [vmem:[#allocation45_spill] sm:$0xff] %v8369_v28  ;;  %v3598_v41 = vsel %vm3098_vm3, %v3539_v44, 0.0  ;;  %v3621_v32 = vadd.f32 %v3620_v17, %v3619_v3  ;;  %v3723_v62 = vadd.f32 %v3722_v38, %v3721_v39  ;;  %v3624_v43 = vsel %vm3098_vm3, %v8338_v46, 0.0  ;;  %v9894_v39 = vld [vmem:[#allocation54_spill] sm:$0xff] }
 0x466   : > { %9889 = vst [vmem:[#allocation34_spill] sm:$0xff] %v8378_v40  ;;  %v3726_v4 = vsel %vm3098_vm3, %v3689_v6, 0.0  ;;  %v3691_v8 = vmul.f32 %v8365_v26, %v8365_v26  ;;  %v8392_v36 = vadd.f32 %v7961_v13, %v9890_v63  ;;  %v3498_v53 = vsel %vm3098_vm3, %v8369_v28, 0.0 }
 0x467   : > { %v8380_v37 = vpop.f32.mrf.mxu2  ;;  %v8382_v61 = vpop.f32.mrf.mxu3  ;;  %v8398_v11 = vadd.f32 %v7961_v13, %v9892_v19  ;;  %v3623_v44 = vadd.f32 %v3622_v52, %v3621_v32  ;;  %v3725_v17 = vadd.f32 %v3724_v31, %v3723_v62  ;;  %v3626_v38 = vsel %vm3098_vm3, %v8348_v23, 0.0 }
 0x468   : > { %9891 = vst [vmem:[#allocation42_spill] sm:$0xff] %v8392_v36  ;;  %v3728_v6 = vsel %vm3098_vm3, %v3690_v0, 0.0  ;;  %v3692_v3 = vmul.f32 %v8378_v40, %v8378_v40  ;;  %v8407_v63 = vadd.f32 %v7961_v13, %v9894_v39  ;;  %v3599_v46 = vadd.f32 %v3598_v41, %v3597_v7 }
 0x469   : > { %9893 = vst [vmem:[#allocation47_spill] sm:$0xff] %v8398_v11  ;;  %v3540_v14 = vmul.f32 %v8369_v28, %v8369_v28  ;;  %v3625_v19 = vadd.f32 %v3624_v43, %v3623_v44  ;;  %v3727_v42 = vadd.f32 %v3726_v4, %v3725_v17  ;;  %v3628_v0 = vsel %vm3098_vm3, %v8365_v26, 0.0 }
 0x46a   : > { %v3730_v32 = vsel %vm3098_vm3, %v3691_v8, 0.0  ;;  %v3693_v62 = vmul.f32 %v8392_v36, %v8392_v36  ;;  %v8422_v7 = vadd.f32 %v7961_v13, %v7708_v54  ;;  %v3499_v41 = vadd.f32 %v3498_v53, %v3497_v5 }
 0x46b   : > { %v3541_v43 = vmul.f32 %v8398_v11, %v8398_v11  ;;  %v3627_v4 = vadd.f32 %v3626_v38, %v3625_v19  ;;  %v3729_v44 = vadd.f32 %v3728_v6, %v3727_v42  ;;  %v3630_v17 = vsel %vm3098_vm3, %v8378_v40, 0.0 }
 0x46c   : > { %v8411_v52 = vpop.f32.mrf.mxu0  ;;  %v8413_v31 = vpop.f32.mrf.mxu1  ;;  %v3732_v39 = vsel %vm3098_vm3, %v3692_v3, 0.0  ;;  %v3694_v8 = vmul.f32 %v8407_v63, %v8407_v63  ;;  %v8433_v26 = vadd.f32 %v7961_v13, %v7767_v48  ;;  %v3600_v5 = vsel %vm3098_vm3, %v3540_v14, 0.0  ;;  %v9895_v14 = vld [vmem:[#allocation49_spill] sm:$0xff] }
 0x46d   : > { %v3500_v42 = vsel %vm3098_vm3, %v8398_v11, 0.0  ;;  %v3629_v38 = vadd.f32 %v3628_v0, %v3627_v4  ;;  %v3731_v6 = vadd.f32 %v3730_v32, %v3729_v44  ;;  %v3632_v3 = vsel %vm3098_vm3, %v8392_v36, 0.0 }
 0x46e   : > { %v3734_v19 = vsel %vm3098_vm3, %v3693_v62, 0.0  ;;  %v3695_v48 = vmul.f32 %v8422_v7, %v8422_v7  ;;  %v8449_v40 = vadd.f32 %v7961_v13, %v7823_v45  ;;  %v3602_v23 = vsel %vm3098_vm3, %v3541_v43, 0.0 }
 0x46f   : > { %v8435_v54 = vpop.f32.mrf.mxu2  ;;  %v8437_v53 = vpop.f32.mrf.mxu3  ;;  %v8454_v28 = vadd.f32 %v7961_v13, %v9895_v14  ;;  %v3631_v0 = vadd.f32 %v3630_v17, %v3629_v38  ;;  %v3733_v32 = vadd.f32 %v3732_v39, %v3731_v6  ;;  %v3634_v4 = vsel %vm3098_vm3, %v8407_v63, 0.0 }
 0x470   : > { %v3736_v62 = vsel %vm3098_vm3, %v3694_v8, 0.0  ;;  %v3696_v44 = vmul.f32 %v8433_v26, %v8433_v26  ;;  %v8463_v45 = vadd.f32 %v7961_v13, %v7878_v22  ;;  %v3601_v36 = vadd.f32 %v3600_v5, %v3599_v46 }
 0x471   : > { %v8465_v43 = vadd.f32 %v3500_v42, %v3499_v41  ;;  %v3633_v11 = vadd.f32 %v3632_v3, %v3631_v0  ;;  %v3735_v14 = vadd.f32 %v3734_v19, %v3733_v32  ;;  %v3636_v39 = vsel %vm3098_vm3, %v8422_v7, 0.0 }
 0x472   : > { %v3738_v8 = vsel %vm3098_vm3, %v3695_v48, 0.0  ;;  %v3697_v38 = vmul.f32 %v8449_v40, %v8449_v40  ;;  %v2722_v22 = vadd.f32 %v8125_v51, %v8123_v1  ;;  %v8476_v6 = vadd.f32 %v3602_v23, %v3601_v36 }
 0x473   : > { %v3635_v46 = vadd.f32 %v3634_v4, %v3633_v11  ;;  %v3737_v41 = vadd.f32 %v3736_v62, %v3735_v14  ;;  %v8480_v5 = vadd.f32 %v7961_v13, %v7915_v20  ;;  %v8484_v42 = vsel %vm3098_vm3, %v8454_v28, 0.0 }
 0x474   : > { %v8467_v34 = vpop.f32.mrf.mxu0  ;;  %v2739_v17 = vpop.f32.mrf.mxu1  ;;  %v3638_v3 = vsel %vm3098_vm3, %v8433_v26, 0.0  ;;  %v3740_v19 = vsel %vm3098_vm3, %v3696_v44, 0.0  ;;  %v3698_v1 = vmul.f32 %v8463_v45, %v8463_v45  ;;  %v8497_v20 = vadd.f32 %v7961_v13, %v7970_v30 }
 0x475   : > { %v3637_v36 = vadd.f32 %v3636_v39, %v3635_v46  ;;  %v3739_v11 = vadd.f32 %v3738_v8, %v3737_v41  ;;  %v2725_v48 = vadd.f32 %v8183_v9, %v8181_v56  ;;  %v8503_v0 = vmul.f32 %v8454_v28, %v8454_v28 }
 0x476   : > { %v3640_v32 = vsel %vm3098_vm3, %v8449_v40, 0.0  ;;  %v3742_v4 = vsel %vm3098_vm3, %v3697_v38, 0.0  ;;  %v2897_v62 = vadd.f32 %v8147_v21, %v2722_v22  ;;  %v3699_v30 = vmul.f32 %v8480_v5, %v8480_v5 }
 0x477   : > { %v8491_v23 = vpop.f32.mrf.mxu2  ;;  %v8493_v51 = vpop.f32.mrf.mxu3  ;;  %v3639_v44 = vadd.f32 %v3638_v3, %v3637_v36  ;;  %v3741_v14 = vadd.f32 %v3740_v19, %v3739_v11  ;;  %v2728_v39 = vadd.f32 %v8238_v58, %v8236_v18  ;;  %v3642_v56 = vsel %vm3098_vm3, %v8463_v45, 0.0 }
 0x478   : > { %v3744_v9 = vsel %vm3098_vm3, %v3698_v1, 0.0  ;;  %v8518_v8 = vadd.f32 %v7961_v13, %v8018_v59  ;;  %v2731_v21 = vadd.f32 %v8296_v25, %v8294_v50  ;;  %v3700_v46 = vmul.f32 %v8497_v20, %v8497_v20 }
 0x479   : > { %v3641_v38 = vadd.f32 %v3640_v32, %v3639_v44  ;;  %v3743_v22 = vadd.f32 %v3742_v4, %v3741_v14  ;;  %v2898_v41 = vadd.f32 %v8206_v49, %v2725_v48  ;;  %v3644_v3 = vsel %vm3098_vm3, %v8480_v5, 0.0 }
 0x47a   : > { %v8529_v19 = vadd.f32 %v7961_v13, %v8064_v33  ;;  %v3055_v59 = vadd.f32 %v8149_v10, %v2897_v62  ;;  %v2734_v50 = vadd.f32 %v8356_v29, %v8354_v55  ;;  %v3746_v36 = vsel %vm3098_vm3, %v3699_v30, 0.0 }
 0x47b   : > { %v3643_v25 = vadd.f32 %v3642_v56, %v3641_v38  ;;  %v3745_v1 = vadd.f32 %v3744_v9, %v3743_v22  ;;  %v2899_v49 = vadd.f32 %v8260_v2, %v2728_v39  ;;  %v3646_v11 = vsel %vm3098_vm3, %v8497_v20, 0.0 }
 0x47c   : > { %v2629_v18 = vpop.f32.mrf.mxu0  ;;  %v2742_v58 = vpop.f32.mrf.mxu1  ;;  %v3701_v48 = vmul.f32 %v8518_v8, %v8518_v8  ;;  %v8542_v33 = vadd.f32 %v7961_v13, %v8111_v35  ;;  %v2900_v10 = vadd.f32 %v8320_v12, %v2731_v21  ;;  %v3748_v4 = vsel %vm3098_vm3, %v3700_v46, 0.0 }
 0x47d   : > { %v3645_v29 = vadd.f32 %v3644_v3, %v3643_v25  ;;  %v3056_v62 = vadd.f32 %v8208_v57, %v2898_v41  ;;  %v2737_v2 = vadd.f32 %v8413_v31, %v8411_v52  ;;  %v3747_v44 = vadd.f32 %v3746_v36, %v3745_v1 }
 0x47e   : > { %v3702_v14 = vmul.f32 %v8529_v19, %v8529_v19  ;;  %v8552_v30 = vadd.f32 %v7961_v13, %v3055_v59  ;;  %v2901_v35 = vadd.f32 %v8380_v37, %v2734_v50  ;;  %v3648_v39 = vsel %vm3098_vm3, %v8518_v8, 0.0 }
 0x47f   : > { %v2864_v32 = vpop.f32.mrf.mxu2  ;;  %v3022_v55 = vpop.f32.mrf.mxu3  ;;  %v3647_v12 = vadd.f32 %v3646_v11, %v3645_v29  ;;  %v3057_v56 = vadd.f32 %v8262_v16, %v2899_v49  ;;  %v2740_v57 = vadd.f32 %v2739_v17, %v8467_v34  ;;  %v3749_v9 = vadd.f32 %v3748_v4, %v3747_v44 }
 0x480   : > { %v3750_v52 = vsel %vm3098_vm3, %v3701_v48, 0.0  ;;  %v3703_v31 = vmul.f32 %v8542_v33, %v8542_v33  ;;  %v3058_v21 = vadd.f32 %v8322_v27, %v2900_v10  ;;  %v3650_v38 = vsel %vm3098_vm3, %v8529_v19, 0.0 }
 0x481   : > { %v8566_v37 = vadd.f32 %v7961_v13, %v3056_v62  ;;  %v2902_v22 = vadd.f32 %v8435_v54, %v2737_v2  ;;  %v2743_v46 = vadd.f32 %v2742_v58, %v2629_v18  ;;  %v3649_v34 = vadd.f32 %v3648_v39, %v3647_v12 }
 0x482   : > { %v3752_v17 = vsel %vm3098_vm3, %v3702_v14, 0.0  ;;  %v3704_v3 = vmul.f32 %v8552_v30, %v8552_v30  ;;  %v3059_v59 = vadd.f32 %v8382_v61, %v2901_v35  ;;  %v3652_v27 = vsel %vm3098_vm3, %v8542_v33, 0.0 }
 0x483   : > { %v8576_v50 = vadd.f32 %v7961_v13, %v3057_v56  ;;  %v2903_v25 = vadd.f32 %v8491_v23, %v2740_v57  ;;  %v3751_v18 = vadd.f32 %v3750_v52, %v3749_v9  ;;  %v3651_v58 = vadd.f32 %v3650_v38, %v3649_v34 }
 0x484   : > { %v2632_v16 = vpop.f32.mrf.mxu0  ;;  %v2745_v41 = vpop.f32.mrf.mxu1  ;;  %v3754_v1 = vsel %vm3098_vm3, %v3703_v31, 0.0  ;;  %v8581_v36 = vadd.f32 %v7961_v13, %v3058_v21  ;;  %v3654_v61 = vsel %vm3098_vm3, %v8552_v30, 0.0  ;;  %v3705_v48 = vmul.f32 %v8566_v37, %v8566_v37 }
 0x485   : > { %v2746_v54 = vadd.f32 %v2745_v41, %v2632_v16  ;;  %v3060_v10 = vadd.f32 %v8437_v53, %v2902_v22  ;;  %v2904_v29 = vadd.f32 %v2864_v32, %v2743_v46  ;;  %v3753_v23 = vadd.f32 %v3752_v17, %v3751_v18 }
 0x486   : > { %v3653_v4 = vadd.f32 %v3652_v27, %v3651_v58  ;;  %v3756_v62 = vsel %vm3098_vm3, %v3704_v3, 0.0  ;;  %v8590_v2 = vadd.f32 %v7961_v13, %v3059_v59  ;;  %v3656_v44 = vsel %vm3098_vm3, %v8566_v37, 0.0 }
 0x487   : > { %v2867_v49 = vpop.f32.mrf.mxu2  ;;  %v3025_v11 = vpop.f32.mrf.mxu3  ;;  %v3706_v14 = vmul.f32 %v8576_v50, %v8576_v50  ;;  %v3061_v35 = vadd.f32 %v8493_v51, %v2903_v25  ;;  %v3604_v53 = vsel %vm3098_vm3, %v8503_v0, 0.0  ;;  %v3755_v32 = vadd.f32 %v3754_v1, %v3753_v23 }
 0x488   : > { %v2905_v12 = vadd.f32 %v2867_v49, %v2746_v54  ;;  %v3655_v39 = vadd.f32 %v3654_v61, %v3653_v4  ;;  %v3707_v56 = vmul.f32 %v8581_v36, %v8581_v36  ;;  %v3758_v57 = vsel %vm3098_vm3, %v3705_v48, 0.0 }
 0x489   : > { %v3658_v9 = vsel %vm3098_vm3, %v8576_v50, 0.0  ;;  %v8605_v52 = vadd.f32 %v7961_v13, %v3060_v10  ;;  %v3062_v31 = vadd.f32 %v3022_v55, %v2904_v29  ;;  %v3757_v38 = vadd.f32 %v3756_v62, %v3755_v32 }
 0x48a   : > { %v3657_v22 = vadd.f32 %v3656_v44, %v3655_v39  ;;  %v3708_v0 = vmul.f32 %v8590_v2, %v8590_v2  ;;  %v3760_v16 = vsel %vm3098_vm3, %v3706_v14, 0.0  ;;  %v3660_v41 = vsel %vm3098_vm3, %v8581_v36, 0.0 }
 0x48b   : > { %v8613_v34 = vadd.f32 %v7961_v13, %v3061_v35  ;;  %v3063_v17 = vadd.f32 %v3025_v11, %v2905_v12  ;;  %v3503_v55 = vadd.f32 %v8484_v42, %v8465_v43  ;;  %v3759_v3 = vadd.f32 %v3758_v57, %v3757_v38 }
 0x48c   : > { %v2635_v21 = vpop.f32.mrf.mxu0  ;;  %v2748_v51 = vpop.f32.mrf.mxu1  ;;  %v3659_v59 = vadd.f32 %v3658_v9, %v3657_v22  ;;  %v3762_v27 = vsel %vm3098_vm3, %v3707_v56, 0.0  ;;  %v3662_v18 = vsel %vm3098_vm3, %v8590_v2, 0.0  ;;  %v3709_v58 = vmul.f32 %v8605_v52, %v8605_v52 }
 0x48d   : > { %v2749_v46 = vadd.f32 %v2748_v51, %v2635_v21  ;;  %v8623_v1 = vadd.f32 %v7961_v13, %v3062_v31  ;;  %v3605_v11 = vadd.f32 %v3604_v53, %v8476_v6  ;;  %v3761_v61 = vadd.f32 %v3760_v16, %v3759_v3 }
 0x48e   : > { %v3661_v43 = vadd.f32 %v3660_v41, %v3659_v59  ;;  %v3764_v42 = vsel %vm3098_vm3, %v3708_v0, 0.0  ;;  %v3664_v48 = vsel %vm3098_vm3, %v8605_v52, 0.0  ;;  %v3710_v10 = vmul.f32 %v8613_v34, %v8613_v34 }
 0x48f   : > { %v2870_v25 = vpop.f32.mrf.mxu2  ;;  %v3028_v54 = vpop.f32.mrf.mxu3  ;;  %v8632_v29 = vadd.f32 %v7961_v13, %v3063_v17  ;;  %v3434_v4 = vrot.slane %v8290_v47, 4  ;;  %v3504_v62 = vrot.slane %v3503_v55, 4  ;;  %v3763_v44 = vadd.f32 %v3762_v27, %v3761_v61 }
 0x490   : > { %v2906_v49 = vadd.f32 %v2870_v25, %v2749_v46  ;;  %v3663_v14 = vadd.f32 %v3662_v18, %v3661_v43  ;;  %v3766_v6 = vsel %vm3098_vm3, %v3709_v58, 0.0  ;;  %v3666_v35 = vsel %vm3098_vm3, %v8613_v34, 0.0 }
 0x491   : > { %v3711_v12 = vmul.f32 %v8623_v1, %v8623_v1  ;;  %v3606_v56 = vrot.slane %v3605_v11, 4  ;;  %v3765_v57 = vadd.f32 %v3764_v42, %v3763_v44  ;;  %v9896_v21 = vrot.slane %v7933_v15, 4 }
 0x492   : > { %v3064_v23 = vadd.f32 %v3028_v54, %v2906_v49  ;;  %v3665_v9 = vadd.f32 %v3664_v48, %v3663_v14  ;;  %v3768_v38 = vsel %vm3098_vm3, %v3710_v10, 0.0  ;;  %v3668_v22 = vsel %vm3098_vm3, %v8623_v1, 0.0 }
 0x493   : > { %v3264_v51 = vadd.f32 %v9896_v21, %v7933_v15  ;;  %v3712_v0 = vmul.f32 %v8632_v29, %v8632_v29  ;;  %v3505_v46 = vadd.f32 %v3504_v62, %v3503_v55  ;;  %v3767_v16 = vadd.f32 %v3766_v6, %v3765_v57 }
 0x494   : > { %v8641_v53 = vadd.f32 %v7961_v13, %v3064_v23  ;;  %v2638_v32 = vpop.f32.mrf.mxu0  ;;  %v2751_v39 = vpop.f32.mrf.mxu1  ;;  %v3435_v13 = vadd.f32 %v3434_v4, %v8290_v47  ;;  %v3667_v41 = vadd.f32 %v3666_v35, %v3665_v9  ;;  %v3770_v59 = vsel %vm3098_vm3, %v3711_v12, 0.0 }
 0x495   : > { %v2752_v31 = vadd.f32 %v2751_v39, %v2638_v32  ;;  %v3670_v15 = vsel %vm3098_vm3, %v8632_v29, 0.0  ;;  %v3334_v54 = vrot.slane %v8298_v24, 2  ;;  %v3607_v18 = vadd.f32 %v3606_v56, %v3605_v11  ;;  %v5236_v11 = vld [vmem:[%s9338_s2] ss:$0 sm:$0xff] }
 0x496   : > { %v3713_v27 = vmul.f32 %v8641_v53, %v8641_v53  ;;  %v3769_v58 = vadd.f32 %v3768_v38, %v3767_v16  ;;  %v3669_v49 = vadd.f32 %v3668_v22, %v3667_v41  ;;  %v3164_v47 = vrot.slane %v7954_v60, 2 }
 0x497   : > { %v2873_v17 = vpop.f32.mrf.mxu2  ;;  %v3031_v3 = vpop.f32.mrf.mxu3  ;;  %v3772_v55 = vsel %vm3098_vm3, %v3712_v0, 0.0  ;;  %v3672_v61 = vsel %vm3098_vm3, %v8641_v53, 0.0  ;;  %v3436_v42 = vrot.slane %v3435_v13, 2  ;;  %v3506_v48 = vrot.slane %v3505_v46, 2 }
 0x498   : > { %v2907_v25 = vadd.f32 %v2873_v17, %v2752_v31  ;;  %v3771_v10 = vadd.f32 %v3770_v59, %v3769_v58  ;;  %v3671_v23 = vadd.f32 %v3670_v15, %v3669_v49  ;;  %v3265_v4 = vrot.slane %v3264_v51, 2 }
 0x499   : > { %v3774_v62 = vsel %vm3098_vm3, %v3713_v27, 0.0  ;;  %v3335_v14 = vadd.f32 %v3334_v54, %v8298_v24  ;;  %v3608_v6 = vrot.slane %v3607_v18, 2  ;;  %v3165_v32 = vadd.f32 %v3164_v47, %v7954_v60 }
 0x49a   : > { %v3065_v43 = vadd.f32 %v3031_v3, %v2907_v25  ;;  %v3773_v35 = vadd.f32 %v3772_v55, %v3771_v10  ;;  %v3673_v12 = vadd.f32 %v3672_v61, %v3671_v23  ;;  %v3437_v57 = vadd.f32 %v3436_v42, %v3435_v13 }
 0x49b   : > { %v3507_v9 = vadd.f32 %v3506_v48, %v3505_v46  ;;  %v3266_v38 = vadd.f32 %v3265_v4, %v3264_v51  ;;  %v3336_v0 = vrot.slane %v3335_v14, 1  ;;  %v3609_v24 = vadd.f32 %v3608_v6, %v3607_v18 }
 0x49c   : > { %v8666_v44 = vadd.f32 %v5236_v11, %v3065_v43  ;;  %v3775_v31 = vadd.f32 %v3774_v62, %v3773_v35  ;;  %v3166_v17 = vrot.slane %v3165_v32, 1  ;;  %v3438_v3 = vrot.slane %v3437_v57, 1 }
 0x49d   : > { %v3508_v60 = vrot.slane %v3507_v9, 1  ;;  %v3267_v27 = vrot.slane %v3266_v38, 1  ;;  %v3337_v25 = vadd.f32 %v3336_v0, %v3335_v14  ;;  %v3610_v54 = vrot.slane %v3609_v24, 1 }
 0x49e   : > { %v3674_v39 = vsel %vm3098_vm3, %v8666_v44, 0.0  ;;  %v3714_v56 = vmul.f32 %v8666_v44, %v8666_v44  ;;  %v3167_v46 = vadd.f32 %v3166_v17, %v3165_v32  ;;  %v3439_v49 = vadd.f32 %v3438_v3, %v3437_v57 }
 0x49f   : > { %v3675_v21 = vadd.f32 %v3674_v39, %v3673_v12  ;;  %v3509_v47 = vadd.f32 %v3508_v60, %v3507_v9  ;;  %v3268_v61 = vadd.f32 %v3267_v27, %v3266_v38  ;;  %v3611_v18 = vadd.f32 %v3610_v54, %v3609_v24 }
 0x4a0   : > { %v3776_v22 = vsel %vm3098_vm3, %v3714_v56, 0.0  ;;  %v3338_v43 = vadd.f32 %v3337_v25, %v3167_v46  ;;  %v5245_v12 = vmov 1024.0   ;;  %v3846_v25 = vld [vmem:[%s9339_s3] sm:$0x1] }
 0x4a1   : > { %v3676_v16 = vrot.slane %v3675_v21, 4  ;;  %v3777_v41 = vadd.f32 %v3776_v22, %v3775_v31  ;;  %v3440_v10 = vadd.f32 %v3439_v49, %v3268_v61  ;;  %5190 = vrcp.f32 %v5245_v12  ;;  %v3859_v46 = vld [vmem:[%s9340_s4] sm:$0x1] }
 0x4a2   : > { %v3510_v23 = vadd.f32 %v3509_v47, %v3338_v43  ;;  %v9898_v43 = vld [vmem:[#allocation57_spill] sm:$0xff] }
 0x4a3   : > { %v3677_v59 = vadd.f32 %v3676_v16, %v3675_v21  ;;  %v3778_v15 = vrot.slane %v3777_v41, 4  ;;  %v3612_v11 = vadd.f32 %v3611_v18, %v3440_v10  ;;  %v9900_v10 = vld [vmem:[#allocation3_spill] sm:$0xff] }
 0x4a5   : > { %v3678_v58 = vrot.slane %v3677_v59, 2  ;;  %v3779_v13 = vadd.f32 %v3778_v15, %v3777_v41 }
 0x4a7   : > { %v3679_v51 = vadd.f32 %v3678_v58, %v3677_v59  ;;  %v3780_v55 = vrot.slane %v3779_v13, 2  ;;  %v5191_v32 = vpop.eup %5190 }
 0x4a8   : > { %v3836_v39 = vmul.f32 1024.0, %v5191_v32  ;;  %vm3840_vm4 = vweird.f32 %v5191_v32 }
 0x4a9   : > { %v3680_v42 = vrot.slane %v3679_v51, 1  ;;  %v3781_v48 = vadd.f32 %v3780_v55, %v3779_v13  ;;  %v9897_v55 = vld [vmem:[#allocation59_spill] sm:$0xff] }
 0x4aa   : > { %v3837_v56 = vsub.f32 1.0, %v3836_v39  ;;  %v9903_v39 = vld [vmem:[#allocation8_spill] sm:$0xff] }
 0x4ab   : > { %v3681_v4 = vadd.f32 %v3680_v42, %v3679_v51  ;;  %v3782_v62 = vrot.slane %v3781_v48, 1  ;;  %v9899_v42 = vld [vmem:[#allocation61_spill] sm:$0xff] }
 0x4ac   : > { %v3838_v57 = vmul.f32 %v5191_v32, %v3837_v56 }
 0x4ad   : > { %v3682_v6 = vadd.f32 %v3681_v4, %v3510_v23  ;;  %v3783_v14 = vadd.f32 %v3782_v62, %v3781_v48  ;;  %v9901_v4 = vld [vmem:[#allocation4_spill] sm:$0xff] }
 0x4ae   : > { %v3839_v9 = vadd.f32 %v5191_v32, %v3838_v57 }
 0x4af   : > { %5078 = vmatmul.msk.f32.vlgmr.msra.gmra.mxu0 %vm3098_vm3, %v3682_v6  ;;  %v3784_v35 = vadd.f32 %v3783_v14, %v3612_v11 }
 0x4b0   : > { %v3841_v31 = vsel %vm3840_vm4, %v5191_v32, %v3839_v9  ;;  %v9904_v9 = vld [vmem:[#allocation7_spill] sm:$0xff] }
 0x4b1   : > { %5079 = vmatmul.msk.f32.vlgmr.msra.gmra.mxu1 %vm3098_vm3, %v3784_v35  ;;  %v9902_v35 = vld [vmem:[#allocation6_spill] sm:$0xff] }
 0x52c   : > { %v3809_v21 = vpop.f32.mrf.mxu0 }
 0x52d   : > { %v3842_v38 = vmul.f32 %v3841_v31, %v3809_v21  ;;  %v9905_v21 = vld [vmem:[#allocation5_spill] sm:$0xff] }
 0x52e   : > { %v3832_v22 = vpop.f32.mrf.mxu1 }
 0x52f   : > { %v3844_v0 = vmul.f32 %v3842_v38, %v3842_v38  ;;  %v3843_v24 = vmul.f32 %v3841_v31, %v3832_v22 }
 0x531   : > { %v3845_v16 = vsub.f32 %v3843_v24, %v3844_v0 }
 0x533   : > { %v3847_v41 = vadd.f32 1e-05, %v3845_v16 }
 0x535   : > { %5192 = vrsqrt.f32 %v3847_v41  ;;  %vm3854_vm6 = vweird.f32 %v3847_v41 }
 0x53b   : > { %v5193_v17 = vpop.eup %5192 }
 0x53c   : > { %v3849_v3 = vmul.f32 %v5193_v17, %v3847_v41  ;;  %vm3855_vm5 = vweird.f32 %v5193_v17 }
 0x53d   : > { %vm3856_vm7 = vmor %vm3854_vm6, %vm3855_vm5 }
 0x53e   : > { %v3850_v60 = vmul.f32 %v5193_v17, %v3849_v3 }
 0x540   : > { %v3851_v59 = vmul.f32 0.5, %v3850_v60 }
 0x542   : > { %v3852_v15 = vsub.f32 1.5, %v3851_v59 }
 0x544   : > { %v3853_v27 = vmul.f32 %v5193_v17, %v3852_v15  ;;  %v9907_v15 = vld [vmem:[#allocation11_spill] sm:$0xff] }
 0x546   : > { %v3857_v54 = vsel %vm3856_vm7, %v5193_v17, %v3853_v27  ;;  %v9906_v17 = vld [vmem:[#allocation9_spill] sm:$0xff] }
 0x547   : > { %v3858_v58 = vmul.f32 %v3857_v54, %v3846_v25 }
 0x549   : > { %v3860_v13 = vmul.f32 %v3858_v58, %v3842_v38  ;;  %v8683_v47 = vperm.slane %v3858_v58, 0  ;;  %v9908_v58 = vld [vmem:[#allocation12_spill] sm:$0xff] }
 0x54b   : > { %v3861_v49 = vsub.f32 %v3859_v46, %v3860_v13  ;;  %v3865_v61 = vmul.f32 %v8683_v47, %v9897_v55  ;;  %v3866_v18 = vmul.f32 %v8683_v47, %v9898_v43  ;;  %v3867_v48 = vmul.f32 %v8683_v47, %v9899_v42  ;;  %v9909_v55 = vld [vmem:[#allocation13_spill] sm:$0xff]  ;;  %v9910_v42 = vld [vmem:[#allocation15_spill] sm:$0xff] }
 0x54c   : > { %v3868_v23 = vmul.f32 %v8683_v47, %v9900_v10  ;;  %v3869_v62 = vmul.f32 %v8683_v47, %v9901_v4  ;;  %v3870_v12 = vmul.f32 %v8683_v47, %v9902_v35  ;;  %v3871_v56 = vmul.f32 %v8683_v47, %v9903_v39  ;;  %v9911_v4 = vld [vmem:[#allocation17_spill] sm:$0xff]  ;;  %v9913_v39 = vld [vmem:[#allocation14_spill] sm:$0xff] }
 0x54d   : > { %v8685_v51 = vperm.slane %v3861_v49, 0  ;;  %v3872_v31 = vmul.f32 %v8683_v47, %v9904_v9  ;;  %v3873_v38 = vmul.f32 %v8683_v47, %v9905_v21  ;;  %v3874_v3 = vmul.f32 %v8683_v47, %v9906_v17  ;;  %v9916_v17 = vld [vmem:[#allocation25_spill] sm:$0xff] }
 0x54e   : > { %v3875_v27 = vmul.f32 %v8683_v47, %v9907_v15  ;;  %v3876_v13 = vmul.f32 %v8683_v47, %v9908_v58  ;;  %v9917_v15 = vld [vmem:[#allocation26_spill] sm:$0xff]  ;;  %v9918_v58 = vld [vmem:[#allocation16_spill] sm:$0xff] }
 0x54f   : > { %v3900_v11 = vadd.f32 %v8685_v51, %v3865_v61  ;;  %v3901_v6 = vadd.f32 %v8685_v51, %v3866_v18  ;;  %v3902_v14 = vadd.f32 %v8685_v51, %v3867_v48  ;;  %v3903_v32 = vadd.f32 %v8685_v51, %v3868_v23 }
 0x550   : > { %v3904_v57 = vadd.f32 %v8685_v51, %v3869_v62  ;;  %v3905_v22 = vadd.f32 %v8685_v51, %v3870_v12  ;;  %v3906_v0 = vadd.f32 %v8685_v51, %v3871_v56  ;;  %v3907_v60 = vadd.f32 %v8685_v51, %v3872_v31  ;;  %v9914_v31 = vld [vmem:[#allocation21_spill] sm:$0xff] }
 0x551   : > { %v3932_v24 = vmax.f32 %v3900_v11, 0.0  ;;  %v3933_v16 = vmax.f32 %v3901_v6, 0.0  ;;  %v3934_v41 = vmax.f32 %v3902_v14, 0.0  ;;  %v3935_v59 = vmax.f32 %v3903_v32, 0.0  ;;  %v9912_v14 = vld [vmem:[#allocation19_spill] sm:$0xff] }
 0x552   : > { %v3908_v25 = vadd.f32 %v8685_v51, %v3873_v38  ;;  %v3936_v54 = vmax.f32 %v3904_v57, 0.0  ;;  %v3909_v46 = vadd.f32 %v8685_v51, %v3874_v3  ;;  %v3937_v49 = vmax.f32 %v3905_v22, 0.0 }
 0x553   : > { %3964 = vst.msk [vmem:[%s8710_s27] sm:$0xff] %vm3098_vm3, %v3932_v24  ;;  %v3877_v61 = vmul.f32 %v8683_v47, %v9909_v55  ;;  %v3910_v43 = vadd.f32 %v8685_v51, %v3875_v27  ;;  %v3938_v18 = vmax.f32 %v3906_v0, 0.0  ;;  %v3878_v48 = vmul.f32 %v8683_v47, %v9910_v42  ;;  %v9915_v0 = vld [vmem:[#allocation23_spill] sm:$0xff]  ;;  %v9919_v55 = vld [vmem:[#allocation28_spill] sm:$0xff]  ;;  %v9920_v42 = vld [vmem:[#allocation29_spill] sm:$0xff] }
 0x554   : > { %3965 = vst.msk [vmem:[%s8710_s27 + $0x8] sm:$0xff] %vm3098_vm3, %v3933_v16  ;;  %v3911_v10 = vadd.f32 %v8685_v51, %v3876_v13  ;;  %v3939_v23 = vmax.f32 %v3907_v60, 0.0  ;;  %v3879_v62 = vmul.f32 %v8683_v47, %v9911_v4  ;;  %v3940_v6 = vmax.f32 %v3908_v25, 0.0  ;;  %v9921_v4 = vld [vmem:[#allocation30_spill] sm:$0xff] }
 0x555   : > { %3966 = vst.msk [vmem:[%s8710_s27 + $0x10] sm:$0xff] %vm3098_vm3, %v3934_v41  ;;  %v3912_v11 = vadd.f32 %v8685_v51, %v3877_v61  ;;  %v3880_v35 = vmul.f32 %v8683_v47, %v9912_v14  ;;  %v3913_v12 = vadd.f32 %v8685_v51, %v3878_v48  ;;  %v3941_v32 = vmax.f32 %v3909_v46, 0.0  ;;  %v9922_v14 = vld [vmem:[#allocation32_spill] sm:$0xff] }
 0x556   : > { %3967 = vst.msk [vmem:[%s8710_s27 + $0x18] sm:$0xff] %vm3098_vm3, %v3935_v59  ;;  %v3881_v56 = vmul.f32 %v8683_v47, %v9913_v39  ;;  %v3914_v57 = vadd.f32 %v8685_v51, %v3879_v62  ;;  %v3942_v9 = vmax.f32 %v3910_v43, 0.0  ;;  %v3882_v21 = vmul.f32 %v8683_v47, %v9914_v31  ;;  %v9923_v39 = vld [vmem:[#allocation18_spill] sm:$0xff]  ;;  %v9924_v31 = vld [vmem:[#allocation44_spill] sm:$0xff] }
 0x557   : > { %3968 = vst.msk [vmem:[%s8710_s27 + $0x20] sm:$0xff] %vm3098_vm3, %v3936_v54  ;;  %v3915_v38 = vadd.f32 %v8685_v51, %v3880_v35  ;;  %v3943_v22 = vmax.f32 %v3911_v10, 0.0  ;;  %v3883_v24 = vmul.f32 %v8683_v47, %v9915_v0  ;;  %v3944_v41 = vmax.f32 %v3912_v11, 0.0  ;;  %v9925_v0 = vld [vmem:[#allocation50_spill] sm:$0xff] }
 0x558   : > { %3969 = vst.msk [vmem:[%s8710_s27 + $0x28] sm:$0xff] %vm3098_vm3, %v3937_v49  ;;  %v3916_v16 = vadd.f32 %v8685_v51, %v3881_v56  ;;  %v3884_v3 = vmul.f32 %v8683_v47, %v9916_v17  ;;  %v3917_v60 = vadd.f32 %v8685_v51, %v3882_v21  ;;  %v3945_v59 = vmax.f32 %v3913_v12, 0.0  ;;  %v9926_v17 = vld [vmem:[#allocation69_spill] sm:$0xff] }
 0x559   : > { %3970 = vst.msk [vmem:[%s8710_s27 + $0x30] sm:$0xff] %vm3098_vm3, %v3938_v18  ;;  %v3885_v27 = vmul.f32 %v8683_v47, %v9917_v15  ;;  %v3918_v25 = vadd.f32 %v8685_v51, %v3883_v24  ;;  %v3946_v54 = vmax.f32 %v3914_v57, 0.0  ;;  %v3886_v13 = vmul.f32 %v8683_v47, %v9918_v58  ;;  %v9927_v15 = vld [vmem:[#allocation74_spill] sm:$0xff]  ;;  %v9928_v58 = vld [vmem:[#allocation77_spill] sm:$0xff] }
 0x55a   : > { %3971 = vst.msk [vmem:[%s8710_s27 + $0x38] sm:$0xff] %vm3098_vm3, %v3939_v23  ;;  %v3919_v46 = vadd.f32 %v8685_v51, %v3884_v3  ;;  %v3947_v49 = vmax.f32 %v3915_v38, 0.0  ;;  %v3887_v61 = vmul.f32 %v8683_v47, %v9919_v55  ;;  %v3948_v18 = vmax.f32 %v3916_v16, 0.0 }
 0x55b   : > { %3972 = vst.msk [vmem:[%s8710_s27 + $0x40] sm:$0xff] %vm3098_vm3, %v3940_v6  ;;  %v3920_v43 = vadd.f32 %v8685_v51, %v3885_v27  ;;  %v3888_v48 = vmul.f32 %v8683_v47, %v9920_v42  ;;  %v3921_v10 = vadd.f32 %v8685_v51, %v3886_v13  ;;  %v3949_v23 = vmax.f32 %v3917_v60, 0.0 }
 0x55c   : > { %3973 = vst.msk [vmem:[%s8710_s27 + $0x48] sm:$0xff] %vm3098_vm3, %v3941_v32  ;;  %v3889_v62 = vmul.f32 %v8683_v47, %v9921_v4  ;;  %v3922_v11 = vadd.f32 %v8685_v51, %v3887_v61  ;;  %v3950_v6 = vmax.f32 %v3918_v25, 0.0  ;;  %v3890_v35 = vmul.f32 %v8683_v47, %v9922_v14 }
 0x55d   : > { %3974 = vst.msk [vmem:[%s8710_s27 + $0x50] sm:$0xff] %vm3098_vm3, %v3942_v9  ;;  %v3923_v12 = vadd.f32 %v8685_v51, %v3888_v48  ;;  %v3951_v32 = vmax.f32 %v3919_v46, 0.0  ;;  %v3891_v56 = vmul.f32 %v8683_v47, %v9923_v39  ;;  %v3952_v9 = vmax.f32 %v3920_v43, 0.0  ;;  %v9929_v43 = vld [vmem:[#allocation38_spill] sm:$0xff] }
 0x55e   : > { %3975 = vst.msk [vmem:[%s8710_s27 + $0x58] sm:$0xff] %vm3098_vm3, %v3943_v22  ;;  %v3924_v57 = vadd.f32 %v8685_v51, %v3889_v62  ;;  %v3892_v21 = vmul.f32 %v8683_v47, %v9924_v31  ;;  %v3925_v38 = vadd.f32 %v8685_v51, %v3890_v35  ;;  %v3953_v22 = vmax.f32 %v3921_v10, 0.0  ;;  %v9930_v10 = vld [vmem:[#allocation36_spill] sm:$0xff] }
 0x55f   : > { %3976 = vst.msk [vmem:[%s8710_s27 + $0x60] sm:$0xff] %vm3098_vm3, %v3944_v41  ;;  %v3893_v24 = vmul.f32 %v8683_v47, %v9925_v0  ;;  %v3926_v16 = vadd.f32 %v8685_v51, %v3891_v56  ;;  %v3954_v41 = vmax.f32 %v3922_v11, 0.0  ;;  %v3894_v3 = vmul.f32 %v8683_v47, %v9926_v17  ;;  %v9931_v62 = vld [vmem:[#allocation40_spill] sm:$0xff]  ;;  %v9933_v56 = vld [vmem:[#allocation46_spill] sm:$0xff] }
 0x560   : > { %3977 = vst.msk [vmem:[%s8710_s27 + $0x68] sm:$0xff] %vm3098_vm3, %v3945_v59  ;;  %v3927_v60 = vadd.f32 %v8685_v51, %v3892_v21  ;;  %v3955_v59 = vmax.f32 %v3923_v12, 0.0  ;;  %v3895_v27 = vmul.f32 %v8683_v47, %v9927_v15  ;;  %v3896_v13 = vmul.f32 %v8683_v47, %v9928_v58  ;;  %v9932_v35 = vld [vmem:[#allocation20_spill] sm:$0xff]  ;;  %v9935_v0 = vld [vmem:[#allocation22_spill] sm:$0xff]  ;;  %v9937_v15 = vld [vmem:[#allocation65_spill] sm:$0xff] }
 0x561   : > { %3978 = vst.msk [vmem:[%s8710_s27 + $0x70] sm:$0xff] %vm3098_vm3, %v3946_v54  ;;  %v3928_v25 = vadd.f32 %v8685_v51, %v3893_v24  ;;  %v3956_v54 = vmax.f32 %v3924_v57, 0.0  ;;  %v3929_v46 = vadd.f32 %v8685_v51, %v3894_v3  ;;  %v3958_v61 = vmax.f32 %v3926_v16, 0.0  ;;  %v9934_v21 = vld [vmem:[#allocation48_spill] sm:$0xff] }
 0x562   : > { %3979 = vst.msk [vmem:[%s8710_s27 + $0x78] sm:$0xff] %vm3098_vm3, %v3947_v49  ;;  %v3957_v49 = vmax.f32 %v3925_v38, 0.0  ;;  %v3930_v55 = vadd.f32 %v8685_v51, %v3895_v27  ;;  %v3931_v42 = vadd.f32 %v8685_v51, %v3896_v13  ;;  %v3959_v48 = vmax.f32 %v3927_v60, 0.0  ;;  %v9936_v17 = vld [vmem:[#allocation52_spill] sm:$0xff] }
 0x563   : > { %3980 = vst.msk [vmem:[%s8710_s27 + $0x80] sm:$0xff] %vm3098_vm3, %v3948_v18  ;;  %v3996_v18 = vmul.f32 %v8683_v47, %v9929_v43  ;;  %v3960_v4 = vmax.f32 %v3928_v25, 0.0  ;;  %v3998_v11 = vmul.f32 %v8683_v47, %v9931_v62  ;;  %v3961_v14 = vmax.f32 %v3929_v46, 0.0  ;;  %v9938_v58 = vld [vmem:[#allocation64_spill] sm:$0xff] }
 0x564   : > { %3981 = vst.msk [vmem:[%s8710_s27 + $0x88] sm:$0xff] %vm3098_vm3, %v3949_v23  ;;  %v3997_v23 = vmul.f32 %v8683_v47, %v9930_v10  ;;  %v3999_v12 = vmul.f32 %v8683_v47, %v9932_v35  ;;  %v3962_v39 = vmax.f32 %v3930_v55, 0.0  ;;  %v4000_v57 = vmul.f32 %v8683_v47, %v9933_v56  ;;  %v9939_v55 = vld [vmem:[#allocation66_spill] sm:$0xff] }
 0x565   : > { %3982 = vst.msk [vmem:[%s8710_s27 + $0x90] sm:$0xff] %vm3098_vm3, %v3950_v6  ;;  %v4028_v6 = vadd.f32 %v3996_v18, %v8685_v51  ;;  %v3963_v31 = vmax.f32 %v3931_v42, 0.0  ;;  %v4001_v38 = vmul.f32 %v8683_v47, %v9934_v21  ;;  %v4002_v24 = vmul.f32 %v8683_v47, %v9935_v0  ;;  %v9940_v42 = vld [vmem:[#allocation67_spill] sm:$0xff] }
 0x566   : > { %3983 = vst.msk [vmem:[%s8710_s27 + $0x98] sm:$0xff] %vm3098_vm3, %v3951_v32  ;;  %v4029_v32 = vadd.f32 %v3997_v23, %v8685_v51  ;;  %v4032_v16 = vadd.f32 %v4000_v57, %v8685_v51  ;;  %v4003_v3 = vmul.f32 %v8683_v47, %v9936_v17  ;;  %v4004_v27 = vmul.f32 %v8683_v47, %v9937_v15  ;;  %v9945_v0 = vld [vmem:[#allocation71_spill] sm:$0xff]  ;;  %v9946_v17 = vld [vmem:[#allocation72_spill] sm:$0xff] }
 0x567   : > { %3984 = vst.msk [vmem:[%s8710_s27 + $0xa0] sm:$0xff] %vm3098_vm3, %v3952_v9  ;;  %v4030_v9 = vadd.f32 %v3998_v11, %v8685_v51  ;;  %v4033_v60 = vadd.f32 %v4001_v38, %v8685_v51  ;;  %v4034_v25 = vadd.f32 %v4002_v24, %v8685_v51  ;;  %v4005_v13 = vmul.f32 %v8683_v47, %v9938_v58  ;;  %v9947_v15 = vld [vmem:[#allocation75_spill] sm:$0xff]  ;;  %v9948_v58 = vld [vmem:[#allocation73_spill] sm:$0xff] }
 0x568   : > { %3985 = vst.msk [vmem:[%s8710_s27 + $0xa8] sm:$0xff] %vm3098_vm3, %v3953_v22  ;;  %v4031_v22 = vadd.f32 %v3999_v12, %v8685_v51  ;;  %v4035_v46 = vadd.f32 %v4003_v3, %v8685_v51  ;;  %v4036_v43 = vadd.f32 %v4004_v27, %v8685_v51  ;;  %v4064_v18 = vmax.f32 %v4032_v16, 0.0 }
 0x569   : > { %3986 = vst.msk [vmem:[%s8710_s27 + $0xb0] sm:$0xff] %vm3098_vm3, %v3954_v41  ;;  %v4060_v41 = vmax.f32 %v4028_v6, 0.0  ;;  %v4037_v10 = vadd.f32 %v4005_v13, %v8685_v51  ;;  %v4065_v23 = vmax.f32 %v4033_v60, 0.0  ;;  %v4066_v6 = vmax.f32 %v4034_v25, 0.0 }
 0x56a   : > { %3987 = vst.msk [vmem:[%s8710_s27 + $0xb8] sm:$0xff] %vm3098_vm3, %v3955_v59  ;;  %v4061_v59 = vmax.f32 %v4029_v32, 0.0  ;;  %v4067_v32 = vmax.f32 %v4035_v46, 0.0  ;;  %v4012_v24 = vmul.f32 %v8683_v47, %v9945_v0  ;;  %v4013_v3 = vmul.f32 %v8683_v47, %v9946_v17  ;;  %v9955_v0 = vld [vmem:[#allocation62_spill] sm:$0xff]  ;;  %v9956_v17 = vld [vmem:[#allocation88_spill] sm:$0xff] }
 0x56b   : > { %3988 = vst.msk [vmem:[%s8710_s27 + $0xc0] sm:$0xff] %vm3098_vm3, %v3956_v54  ;;  %v4062_v54 = vmax.f32 %v4030_v9, 0.0  ;;  %v4068_v9 = vmax.f32 %v4036_v43, 0.0  ;;  %v4014_v27 = vmul.f32 %v8683_v47, %v9947_v15  ;;  %v4015_v13 = vmul.f32 %v8683_v47, %v9948_v58  ;;  %v9957_v15 = vld [vmem:[#allocation97_spill] sm:$0xff] }
 0x56c   : > { %3989 = vst.msk [vmem:[%s8710_s27 + $0xc8] sm:$0xff] %vm3098_vm3, %v3957_v49  ;;  %v4063_v49 = vmax.f32 %v4031_v22, 0.0  ;;  %v4069_v22 = vmax.f32 %v4037_v10, 0.0  ;;  %v4044_v25 = vadd.f32 %v4012_v24, %v8685_v51  ;;  %v4045_v46 = vadd.f32 %v4013_v3, %v8685_v51  ;;  %v9958_v58 = vld [vmem:[#allocation93_spill] sm:$0xff] }
 0x56d   : > { %3990 = vst.msk [vmem:[%s8710_s27 + $0xd0] sm:$0xff] %vm3098_vm3, %v3958_v61  ;;  %v4006_v61 = vmul.f32 %v8683_v47, %v9939_v55  ;;  %v9949_v55 = vld [vmem:[#allocation24_spill] sm:$0xff]  ;;  %v4046_v43 = vadd.f32 %v4014_v27, %v8685_v51  ;;  %v4047_v10 = vadd.f32 %v4015_v13, %v8685_v51  ;;  %v4022_v24 = vmul.f32 %v8683_v47, %v9955_v0 }
 0x56e   : > { %3991 = vst.msk [vmem:[%s8710_s27 + $0xd8] sm:$0xff] %vm3098_vm3, %v3959_v48  ;;  %v4007_v48 = vmul.f32 %v8683_v47, %v9940_v42  ;;  %v9950_v42 = vld [vmem:[#allocation27_spill] sm:$0xff]  ;;  %v4023_v3 = vmul.f32 %v8683_v47, %v9956_v17  ;;  %v4024_v27 = vmul.f32 %v8683_v47, %v9957_v15  ;;  %v4025_v13 = vmul.f32 %v8683_v47, %v9958_v58  ;;  %v9968_v58 = vld [vmem:[#allocation86_spill] sm:$0xff] }
 0x56f   : > { %3992 = vst.msk [vmem:[%s8710_s27 + $0xe0] sm:$0xff] %vm3098_vm3, %v3960_v4  ;;  %v9941_v4 = vld [vmem:[#allocation56_spill] sm:$0xff]  ;;  %v4038_v11 = vadd.f32 %v4006_v61, %v8685_v51  ;;  %v4016_v61 = vmul.f32 %v8683_v47, %v9949_v55  ;;  %v9959_v55 = vld [vmem:[#allocation94_spill] sm:$0xff]  ;;  %v9967_v15 = vld [vmem:[#allocation63_spill] sm:$0xff] }
 0x570   : > { %3993 = vst.msk [vmem:[%s8710_s27 + $0xe8] sm:$0xff] %vm3098_vm3, %v3961_v14  ;;  %v4008_v62 = vmul.f32 %v8683_v47, %v9941_v4  ;;  %v9942_v14 = vld [vmem:[#allocation68_spill] sm:$0xff]  ;;  %v4039_v12 = vadd.f32 %v4007_v48, %v8685_v51  ;;  %v4017_v48 = vmul.f32 %v8683_v47, %v9950_v42  ;;  %v9960_v42 = vld [vmem:[#allocation95_spill] sm:$0xff] }
 0x571   : > { %3994 = vst.msk [vmem:[%s8710_s27 + $0xf0] sm:$0xff] %vm3098_vm3, %v3962_v39  ;;  %v4009_v35 = vmul.f32 %v8683_v47, %v9942_v14  ;;  %v9943_v39 = vld [vmem:[#allocation70_spill] sm:$0xff]  ;;  %v9951_v4 = vld [vmem:[#allocation76_spill] sm:$0xff] }
 0x572   : > { %3995 = vst.msk [vmem:[%s8710_s27 + $0xf8] sm:$0xff] %vm3098_vm3, %v3963_v31  ;;  %v4010_v56 = vmul.f32 %v8683_v47, %v9943_v39  ;;  %v4040_v57 = vadd.f32 %v4008_v62, %v8685_v51  ;;  %v9944_v31 = vld [vmem:[#allocation58_spill] sm:$0xff]  ;;  %v4018_v62 = vmul.f32 %v8683_v47, %v9951_v4  ;;  %v9952_v14 = vld [vmem:[#allocation60_spill] sm:$0xff] }
 0x573   : > { %5080 = vst.msk [vmem:[%s8710_s27 + $0x100] sm:$0xff] %vm3098_vm3, %v4060_v41  ;;  %v4011_v21 = vmul.f32 %v8683_v47, %v9944_v31  ;;  %v4041_v38 = vadd.f32 %v4009_v35, %v8685_v51  ;;  %v4070_v41 = vmax.f32 %v4038_v11, 0.0  ;;  %v4048_v11 = vadd.f32 %v4016_v61, %v8685_v51  ;;  %v9953_v39 = vld [vmem:[#allocation78_spill] sm:$0xff]  ;;  %v9954_v31 = vld [vmem:[#allocation79_spill] sm:$0xff] }
 0x574   : > { %5081 = vst.msk [vmem:[%s8710_s27 + $0x108] sm:$0xff] %vm3098_vm3, %v4061_v59  ;;  %v4042_v16 = vadd.f32 %v4010_v56, %v8685_v51  ;;  %v4071_v59 = vmax.f32 %v4039_v12, 0.0  ;;  %v4019_v35 = vmul.f32 %v8683_v47, %v9952_v14  ;;  %v4049_v12 = vadd.f32 %v4017_v48, %v8685_v51 }
 0x575   : > { %5082 = vst.msk [vmem:[%s8710_s27 + $0x110] sm:$0xff] %vm3098_vm3, %v4062_v54  ;;  %v4043_v60 = vadd.f32 %v4011_v21, %v8685_v51  ;;  %v4072_v54 = vmax.f32 %v4040_v57, 0.0  ;;  %v4020_v56 = vmul.f32 %v8683_v47, %v9953_v39  ;;  %v4050_v57 = vadd.f32 %v4018_v62, %v8685_v51 }
 0x576   : > { %5083 = vst.msk [vmem:[%s8710_s27 + $0x118] sm:$0xff] %vm3098_vm3, %v4063_v49  ;;  %v4073_v49 = vmax.f32 %v4041_v38, 0.0  ;;  %v4021_v21 = vmul.f32 %v8683_v47, %v9954_v31  ;;  %v4051_v38 = vadd.f32 %v4019_v35, %v8685_v51  ;;  %v4026_v61 = vmul.f32 %v8683_v47, %v9959_v55  ;;  %v9969_v55 = vld [vmem:[#allocation87_spill] sm:$0xff] }
 0x577   : > { %5084 = vst.msk [vmem:[%s8710_s27 + $0x120] sm:$0xff] %vm3098_vm3, %v4064_v18  ;;  %v4074_v18 = vmax.f32 %v4042_v16, 0.0  ;;  %v4052_v16 = vadd.f32 %v4020_v56, %v8685_v51  ;;  %v4027_v48 = vmul.f32 %v8683_v47, %v9960_v42  ;;  %v9963_v56 = vld [vmem:[#allocation82_spill] sm:$0xff]  ;;  %v9970_v42 = vld [vmem:[#allocation89_spill] sm:$0xff] }
 0x578   : > { %5085 = vst.msk [vmem:[%s8710_s27 + $0x128] sm:$0xff] %vm3098_vm3, %v4065_v23  ;;  %v4075_v23 = vmax.f32 %v4043_v60, 0.0  ;;  %v4053_v60 = vadd.f32 %v4021_v21, %v8685_v51  ;;  %v4058_v4 = vadd.f32 %v4026_v61, %v8685_v51  ;;  %v9964_v21 = vld [vmem:[#allocation83_spill] sm:$0xff]  ;;  %v4133_v61 = vmul.f32 %v8683_v47, %v9969_v55  ;;  %v9979_v55 = vld [vmem:[#allocation102_spill] sm:$0xff] }
 0x579   : > { %5086 = vst.msk [vmem:[%s8710_s27 + $0x130] sm:$0xff] %vm3098_vm3, %v4066_v6  ;;  %v4076_v6 = vmax.f32 %v4044_v25, 0.0  ;;  %v4054_v25 = vadd.f32 %v4022_v24, %v8685_v51  ;;  %v4059_v14 = vadd.f32 %v4027_v48, %v8685_v51  ;;  %v9965_v24 = vld [vmem:[#allocation84_spill] sm:$0xff]  ;;  %v4134_v48 = vmul.f32 %v8683_v47, %v9970_v42  ;;  %v9980_v42 = vld [vmem:[#allocation103_spill] sm:$0xff] }
 0x57a   : > { %5087 = vst.msk [vmem:[%s8710_s27 + $0x138] sm:$0xff] %vm3098_vm3, %v4067_v32  ;;  %v4077_v32 = vmax.f32 %v4045_v46, 0.0  ;;  %v4055_v46 = vadd.f32 %v4023_v3, %v8685_v51  ;;  %v4090_v0 = vmax.f32 %v4058_v4, 0.0  ;;  %v9966_v3 = vld [vmem:[#allocation85_spill] sm:$0xff]  ;;  %v9971_v4 = vld [vmem:[#allocation90_spill] sm:$0xff] }
 0x57b   : > { %5088 = vst.msk [vmem:[%s8710_s27 + $0x140] sm:$0xff] %vm3098_vm3, %v4068_v9  ;;  %v4078_v9 = vmax.f32 %v4046_v43, 0.0  ;;  %v4056_v43 = vadd.f32 %v4024_v27, %v8685_v51  ;;  %v4086_v62 = vmax.f32 %v4054_v25, 0.0  ;;  %v4091_v17 = vmax.f32 %v4059_v14, 0.0  ;;  %v9972_v14 = vld [vmem:[#allocation91_spill] sm:$0xff] }
 0x57c   : > { %5089 = vst.msk [vmem:[%s8710_s27 + $0x148] sm:$0xff] %vm3098_vm3, %v4069_v22  ;;  %v4079_v22 = vmax.f32 %v4047_v10, 0.0  ;;  %v4057_v10 = vadd.f32 %v4025_v13, %v8685_v51  ;;  %v4087_v35 = vmax.f32 %v4055_v46, 0.0  ;;  %v4131_v27 = vmul.f32 %v8683_v47, %v9967_v15  ;;  %v9977_v15 = vld [vmem:[#allocation100_spill] sm:$0xff] }
 0x57d   : > { %5090 = vst.msk [vmem:[%s8710_s27 + $0x150] sm:$0xff] %vm3098_vm3, %v4070_v41  ;;  %v4080_v41 = vmax.f32 %v4048_v11, 0.0  ;;  %v9961_v11 = vld [vmem:[#allocation81_spill] sm:$0xff]  ;;  %v4088_v39 = vmax.f32 %v4056_v43, 0.0  ;;  %v4132_v13 = vmul.f32 %v8683_v47, %v9968_v58 }
 0x57e   : > { %5091 = vst.msk [vmem:[%s8710_s27 + $0x158] sm:$0xff] %vm3098_vm3, %v4071_v59  ;;  %v4081_v59 = vmax.f32 %v4049_v12, 0.0  ;;  %v9962_v12 = vld [vmem:[#allocation80_spill] sm:$0xff]  ;;  %v4089_v31 = vmax.f32 %v4057_v10, 0.0  ;;  %v4163_v43 = vadd.f32 %v4131_v27, %v8685_v51  ;;  %v4141_v27 = vmul.f32 %v8683_v47, %v9977_v15  ;;  %v9978_v58 = vld [vmem:[#allocation101_spill] sm:$0xff]  ;;  %v9987_v15 = vld [vmem:[#allocation39_spill] sm:$0xff] }
 0x57f   : > { %5092 = vst.msk [vmem:[%s8710_s27 + $0x160] sm:$0xff] %vm3098_vm3, %v4072_v54  ;;  %v4082_v54 = vmax.f32 %v4050_v57, 0.0  ;;  %v4127_v57 = vmul.f32 %v8683_v47, %v9963_v56  ;;  %v4164_v10 = vadd.f32 %v4132_v13, %v8685_v51  ;;  %v4142_v13 = vmul.f32 %v8683_v47, %v9978_v58  ;;  %v9988_v58 = vld [vmem:[#allocation41_spill] sm:$0xff] }
 0x580   : > { %5093 = vst.msk [vmem:[%s8710_s27 + $0x168] sm:$0xff] %vm3098_vm3, %v4073_v49  ;;  %v4083_v49 = vmax.f32 %v4051_v38, 0.0  ;;  %v4128_v38 = vmul.f32 %v8683_v47, %v9964_v21 }
 0x581   : > { %5094 = vst.msk [vmem:[%s8710_s27 + $0x170] sm:$0xff] %vm3098_vm3, %v4074_v18  ;;  %v4084_v18 = vmax.f32 %v4052_v16, 0.0  ;;  %v4129_v16 = vmul.f32 %v8683_v47, %v9965_v24 }
 0x582   : > { %5095 = vst.msk [vmem:[%s8710_s27 + $0x178] sm:$0xff] %vm3098_vm3, %v4075_v23  ;;  %v4085_v23 = vmax.f32 %v4053_v60, 0.0  ;;  %v4130_v60 = vmul.f32 %v8683_v47, %v9966_v3 }
 0x583   : > { %5096 = vst.msk [vmem:[%s8710_s27 + $0x180] sm:$0xff] %vm3098_vm3, %v4076_v6  ;;  %v4125_v6 = vmul.f32 %v8683_v47, %v9961_v11  ;;  %v4161_v25 = vadd.f32 %v4129_v16, %v8685_v51  ;;  %v4165_v11 = vadd.f32 %v4133_v61, %v8685_v51  ;;  %v4143_v61 = vmul.f32 %v8683_v47, %v9979_v55  ;;  %v9989_v55 = vld [vmem:[#allocation43_spill] sm:$0xff] }
 0x584   : > { %5097 = vst.msk [vmem:[%s8710_s27 + $0x188] sm:$0xff] %vm3098_vm3, %v4077_v32  ;;  %v4126_v32 = vmul.f32 %v8683_v47, %v9962_v12  ;;  %v4162_v46 = vadd.f32 %v4130_v60, %v8685_v51  ;;  %v4166_v12 = vadd.f32 %v4134_v48, %v8685_v51  ;;  %v4144_v48 = vmul.f32 %v8683_v47, %v9980_v42  ;;  %v9990_v42 = vld [vmem:[#allocation45_spill] sm:$0xff] }
 0x585   : > { %5098 = vst.msk [vmem:[%s8710_s27 + $0x190] sm:$0xff] %vm3098_vm3, %v4078_v9  ;;  %v4157_v9 = vadd.f32 %v4125_v6, %v8685_v51  ;;  %v4193_v6 = vmax.f32 %v4161_v25, 0.0 }
 0x586   : > { %5099 = vst.msk [vmem:[%s8710_s27 + $0x198] sm:$0xff] %vm3098_vm3, %v4079_v22  ;;  %v4158_v22 = vadd.f32 %v4126_v32, %v8685_v51  ;;  %v4194_v32 = vmax.f32 %v4162_v46, 0.0 }
 0x587   : > { %5100 = vst.msk [vmem:[%s8710_s27 + $0x1a0] sm:$0xff] %vm3098_vm3, %v4080_v41  ;;  %v4159_v41 = vadd.f32 %v4127_v57, %v8685_v51 }
 0x588   : > { %5101 = vst.msk [vmem:[%s8710_s27 + $0x1a8] sm:$0xff] %vm3098_vm3, %v4081_v59  ;;  %v4160_v59 = vadd.f32 %v4128_v38, %v8685_v51 }
 0x589   : > { %5102 = vst.msk [vmem:[%s8710_s27 + $0x1b0] sm:$0xff] %vm3098_vm3, %v4082_v54  ;;  %v4189_v54 = vmax.f32 %v4157_v9, 0.0  ;;  %v4195_v9 = vmax.f32 %v4163_v43, 0.0  ;;  %v4173_v43 = vadd.f32 %v4141_v27, %v8685_v51  ;;  %v4151_v27 = vmul.f32 %v8683_v47, %v9987_v15 }
 0x58a   : > { %5103 = vst.msk [vmem:[%s8710_s27 + $0x1b8] sm:$0xff] %vm3098_vm3, %v4083_v49  ;;  %v4190_v49 = vmax.f32 %v4158_v22, 0.0  ;;  %v4196_v22 = vmax.f32 %v4164_v10, 0.0  ;;  %v4174_v10 = vadd.f32 %v4142_v13, %v8685_v51  ;;  %v4152_v13 = vmul.f32 %v8683_v47, %v9988_v58 }
 0x58b   : > { %5104 = vst.msk [vmem:[%s8710_s27 + $0x1c0] sm:$0xff] %vm3098_vm3, %v4084_v18  ;;  %v4191_v18 = vmax.f32 %v4159_v41, 0.0  ;;  %v4197_v41 = vmax.f32 %v4165_v11, 0.0  ;;  %v4175_v11 = vadd.f32 %v4143_v61, %v8685_v51  ;;  %v4153_v61 = vmul.f32 %v8683_v47, %v9989_v55 }
 0x58c   : > { %5105 = vst.msk [vmem:[%s8710_s27 + $0x1c8] sm:$0xff] %vm3098_vm3, %v4085_v23  ;;  %v4192_v23 = vmax.f32 %v4160_v59, 0.0  ;;  %v4198_v59 = vmax.f32 %v4166_v12, 0.0  ;;  %v4176_v12 = vadd.f32 %v4144_v48, %v8685_v51  ;;  %v4154_v48 = vmul.f32 %v8683_v47, %v9990_v42 }
 0x58d   : > { %5106 = vst.msk [vmem:[%s8710_s27 + $0x1d0] sm:$0xff] %vm3098_vm3, %v4086_v62  ;;  %v4135_v62 = vmul.f32 %v8683_v47, %v9971_v4  ;;  %v9981_v4 = vld [vmem:[#allocation104_spill] sm:$0xff] }
 0x58e   : > { %5107 = vst.msk [vmem:[%s8710_s27 + $0x1d8] sm:$0xff] %vm3098_vm3, %v4087_v35  ;;  %v4136_v35 = vmul.f32 %v8683_v47, %v9972_v14  ;;  %v9982_v14 = vld [vmem:[#allocation105_spill] sm:$0xff] }
 0x58f   : > { %5108 = vst.msk [vmem:[%s8710_s27 + $0x1e0] sm:$0xff] %vm3098_vm3, %v4088_v39  ;;  %v9973_v39 = vld [vmem:[#allocation96_spill] sm:$0xff]  ;;  %v4167_v57 = vadd.f32 %v4135_v62, %v8685_v51  ;;  %v4145_v62 = vmul.f32 %v8683_v47, %v9981_v4  ;;  %v9991_v4 = vld [vmem:[#allocation47_spill] sm:$0xff] }
 0x590   : > { %5109 = vst.msk [vmem:[%s8710_s27 + $0x1e8] sm:$0xff] %vm3098_vm3, %v4089_v31  ;;  %v4137_v56 = vmul.f32 %v8683_v47, %v9973_v39  ;;  %v9974_v31 = vld [vmem:[#allocation92_spill] sm:$0xff]  ;;  %v4168_v38 = vadd.f32 %v4136_v35, %v8685_v51  ;;  %v4146_v35 = vmul.f32 %v8683_v47, %v9982_v14  ;;  %v9983_v39 = vld [vmem:[#allocation35_spill] sm:$0xff]  ;;  %v4156_v14 = vmul.f32 %v8683_v47, %v8454_v28  ;;  %v9993_v28 = vld [vmem:[#allocation53_spill] sm:$0xff] }
 0x591   : > { %5110 = vst.msk [vmem:[%s8710_s27 + $0x1f0] sm:$0xff] %vm3098_vm3, %v4090_v0  ;;  %v4138_v21 = vmul.f32 %v8683_v47, %v9974_v31  ;;  %v9975_v0 = vld [vmem:[#allocation98_spill] sm:$0xff]  ;;  %v9984_v31 = vld [vmem:[#allocation31_spill] sm:$0xff] }
 0x592   : > { %5111 = vst.msk [vmem:[%s8710_s27 + $0x1f8] sm:$0xff] %vm3098_vm3, %v4091_v17  ;;  %v4139_v24 = vmul.f32 %v8683_v47, %v9975_v0  ;;  %v4169_v16 = vadd.f32 %v4137_v56, %v8685_v51  ;;  %v9976_v17 = vld [vmem:[#allocation99_spill] sm:$0xff]  ;;  %v4147_v56 = vmul.f32 %v8683_v47, %v9983_v39  ;;  %v9985_v0 = vld [vmem:[#allocation37_spill] sm:$0xff] }
 0x593   : > { %5112 = vst.msk [vmem:[%s8710_s27 + $0x200] sm:$0xff] %vm3098_vm3, %v4189_v54  ;;  %v4140_v3 = vmul.f32 %v8683_v47, %v9976_v17  ;;  %v4170_v60 = vadd.f32 %v4138_v21, %v8685_v51  ;;  %v4199_v54 = vmax.f32 %v4167_v57, 0.0  ;;  %v4177_v57 = vadd.f32 %v4145_v62, %v8685_v51  ;;  %v9986_v17 = vld [vmem:[#allocation33_spill] sm:$0xff] }
 0x594   : > { %5113 = vst.msk [vmem:[%s8710_s27 + $0x208] sm:$0xff] %vm3098_vm3, %v4190_v49  ;;  %v4171_v25 = vadd.f32 %v4139_v24, %v8685_v51  ;;  %v4200_v49 = vmax.f32 %v4168_v38, 0.0  ;;  %v4148_v21 = vmul.f32 %v8683_v47, %v9984_v31  ;;  %v4178_v38 = vadd.f32 %v4146_v35, %v8685_v51 }
 0x595   : > { %5114 = vst.msk [vmem:[%s8710_s27 + $0x210] sm:$0xff] %vm3098_vm3, %v4191_v18  ;;  %v4172_v46 = vadd.f32 %v4140_v3, %v8685_v51  ;;  %v4201_v18 = vmax.f32 %v4169_v16, 0.0  ;;  %v4149_v24 = vmul.f32 %v8683_v47, %v9985_v0  ;;  %v4179_v16 = vadd.f32 %v4147_v56, %v8685_v51  ;;  %v9992_v56 = vld [vmem:[#allocation51_spill] sm:$0xff] }
 0x596   : > { %5115 = vst.msk [vmem:[%s8710_s27 + $0x218] sm:$0xff] %vm3098_vm3, %v4192_v23  ;;  %v4202_v23 = vmax.f32 %v4170_v60, 0.0  ;;  %v4150_v3 = vmul.f32 %v8683_v47, %v9986_v17  ;;  %v4180_v60 = vadd.f32 %v4148_v21, %v8685_v51  ;;  %v4155_v62 = vmul.f32 %v8683_v47, %v9991_v4 }
 0x597   : > { %5116 = vst.msk [vmem:[%s8710_s27 + $0x220] sm:$0xff] %vm3098_vm3, %v4193_v6  ;;  %v4203_v6 = vmax.f32 %v4171_v25, 0.0  ;;  %v4181_v25 = vadd.f32 %v4149_v24, %v8685_v51  ;;  %v4186_v35 = vadd.f32 %v4154_v48, %v8685_v51  ;;  %v4255_v21 = vmul.f32 %v8683_v47, %v9993_v28 }
 0x598   : > { %5117 = vst.msk [vmem:[%s8710_s27 + $0x228] sm:$0xff] %vm3098_vm3, %v4194_v32  ;;  %v4204_v32 = vmax.f32 %v4172_v46, 0.0  ;;  %v4182_v46 = vadd.f32 %v4150_v3, %v8685_v51  ;;  %v4266_v28 = vmul.f32 %v8683_v47, %v8422_v7 }
 0x599   : > { %5118 = vst.msk [vmem:[%s8710_s27 + $0x230] sm:$0xff] %vm3098_vm3, %v4195_v9  ;;  %v4205_v9 = vmax.f32 %v4173_v43, 0.0  ;;  %v4183_v43 = vadd.f32 %v4151_v27, %v8685_v51  ;;  %v4287_v3 = vadd.f32 %v4255_v21, %v8685_v51 }
 0x59a   : > { %5119 = vst.msk [vmem:[%s8710_s27 + $0x238] sm:$0xff] %vm3098_vm3, %v4196_v22  ;;  %v4206_v22 = vmax.f32 %v4174_v10, 0.0  ;;  %v4184_v10 = vadd.f32 %v4152_v13, %v8685_v51  ;;  %v4298_v7 = vadd.f32 %v4266_v28, %v8685_v51 }
 0x59b   : > { %5120 = vst.msk [vmem:[%s8710_s27 + $0x240] sm:$0xff] %vm3098_vm3, %v4197_v41  ;;  %v4207_v41 = vmax.f32 %v4175_v11, 0.0  ;;  %v4185_v11 = vadd.f32 %v4153_v61, %v8685_v51  ;;  %v4215_v39 = vmax.f32 %v4183_v43, 0.0  ;;  %v9999_v43 = vld [vmem:[#allocation108_spill] sm:$0xff]  ;;  %v4319_v48 = vmax.f32 %v4287_v3, 0.0 }
 0x59c   : > { %5121 = vst.msk [vmem:[%s8710_s27 + $0x248] sm:$0xff] %vm3098_vm3, %v4198_v59  ;;  %v4208_v59 = vmax.f32 %v4176_v12, 0.0  ;;  %v4214_v12 = vmax.f32 %v4182_v46, 0.0  ;;  %v4216_v31 = vmax.f32 %v4184_v10, 0.0  ;;  %v9998_v46 = vld [vmem:[#allocation107_spill] sm:$0xff]  ;;  %v10000_v10 = vld [vmem:[#allocation109_spill] sm:$0xff]  ;;  %v4270_v3 = vmul.f32 %v8683_v47, %v8480_v5 }
 0x59d   : > { %5122 = vst.msk [vmem:[%s8710_s27 + $0x250] sm:$0xff] %vm3098_vm3, %v4199_v54  ;;  %v4209_v54 = vmax.f32 %v4177_v57, 0.0  ;;  %v4254_v57 = vmul.f32 %v8683_v47, %v9992_v56 }
 0x59e   : > { %5123 = vst.msk [vmem:[%s8710_s27 + $0x258] sm:$0xff] %vm3098_vm3, %v4200_v49  ;;  %v4210_v49 = vmax.f32 %v4178_v38, 0.0  ;;  %v4217_v38 = vmax.f32 %v4185_v11, 0.0  ;;  %v10001_v11 = vld [vmem:[#allocation34_spill] sm:$0xff]  ;;  %v4302_v5 = vadd.f32 %v4270_v3, %v8685_v51 }
 0x59f   : > { %5124 = vst.msk [vmem:[%s8710_s27 + $0x260] sm:$0xff] %vm3098_vm3, %v4201_v18  ;;  %v4211_v18 = vmax.f32 %v4179_v16, 0.0  ;;  %v4286_v24 = vadd.f32 %v4254_v57, %v8685_v51  ;;  %v4218_v16 = vmax.f32 %v4186_v35, 0.0  ;;  %v4265_v57 = vmul.f32 %v8683_v47, %v8407_v63 }
 0x5a0   : > { %5125 = vst.msk [vmem:[%s8710_s27 + $0x268] sm:$0xff] %vm3098_vm3, %v4202_v23  ;;  %v4212_v23 = vmax.f32 %v4180_v60, 0.0 }
 0x5a1   : > { %5126 = vst.msk [vmem:[%s8710_s27 + $0x270] sm:$0xff] %vm3098_vm3, %v4203_v6  ;;  %v4213_v6 = vmax.f32 %v4181_v25, 0.0  ;;  %v4318_v61 = vmax.f32 %v4286_v24, 0.0  ;;  %v4297_v63 = vadd.f32 %v4265_v57, %v8685_v51  ;;  %v4268_v24 = vmul.f32 %v8683_v47, %v8449_v40 }
 0x5a2   : > { %5127 = vst.msk [vmem:[%s8710_s27 + $0x278] sm:$0xff] %vm3098_vm3, %v4204_v32  ;;  %v4187_v32 = vadd.f32 %v4155_v62, %v8685_v51 }
 0x5a3   : > { %5128 = vst.msk [vmem:[%s8710_s27 + $0x280] sm:$0xff] %vm3098_vm3, %v4205_v9  ;;  %v4188_v9 = vadd.f32 %v4156_v14, %v8685_v51  ;;  %v4300_v40 = vadd.f32 %v4268_v24, %v8685_v51 }
 0x5a4   : > { %5129 = vst.msk [vmem:[%s8710_s27 + $0x288] sm:$0xff] %vm3098_vm3, %v4206_v22  ;;  %v9994_v22 = vld [vmem:[#allocation55_spill] sm:$0xff]  ;;  %v4219_v60 = vmax.f32 %v4187_v32, 0.0 }
 0x5a5   : > { %5130 = vst.msk [vmem:[%s8710_s27 + $0x290] sm:$0xff] %vm3098_vm3, %v4207_v41  ;;  %v4256_v0 = vmul.f32 %v8683_v47, %v9994_v22  ;;  %v9995_v41 = vld [vmem:[#allocation2_spill] sm:$0xff]  ;;  %v4220_v25 = vmax.f32 %v4188_v9, 0.0  ;;  %v4267_v22 = vmul.f32 %v8683_v47, %v8433_v26 }
 0x5a6   : > { %5131 = vst.msk [vmem:[%s8710_s27 + $0x298] sm:$0xff] %vm3098_vm3, %v4208_v59  ;;  %v4257_v17 = vmul.f32 %v8683_v47, %v9995_v41  ;;  %v9996_v59 = vld [vmem:[#allocation10_spill] sm:$0xff]  ;;  %v4269_v41 = vmul.f32 %v8683_v47, %v8463_v45 }
 0x5a7   : > { %5132 = vst.msk [vmem:[%s8710_s27 + $0x2a0] sm:$0xff] %vm3098_vm3, %v4209_v54  ;;  %v4258_v15 = vmul.f32 %v8683_v47, %v9996_v59  ;;  %v4288_v27 = vadd.f32 %v4256_v0, %v8685_v51  ;;  %v9997_v54 = vld [vmem:[#allocation106_spill] sm:$0xff]  ;;  %v4299_v26 = vadd.f32 %v4267_v22, %v8685_v51  ;;  %v4271_v59 = vmul.f32 %v8683_v47, %v8497_v20 }
 0x5a8   : > { %5133 = vst.msk [vmem:[%s8710_s27 + $0x2a8] sm:$0xff] %vm3098_vm3, %v4210_v49  ;;  %v4259_v58 = vmul.f32 %v8683_v47, %v9997_v54  ;;  %v4289_v13 = vadd.f32 %v4257_v17, %v8685_v51  ;;  %v4260_v49 = vmul.f32 %v8683_v47, %v9998_v46  ;;  %v4301_v45 = vadd.f32 %v4269_v41, %v8685_v51 }
 0x5a9   : > { %5134 = vst.msk [vmem:[%s8710_s27 + $0x2b0] sm:$0xff] %vm3098_vm3, %v4211_v18  ;;  %v4290_v55 = vadd.f32 %v4258_v15, %v8685_v51  ;;  %v4261_v18 = vmul.f32 %v8683_v47, %v9999_v43  ;;  %v4320_v62 = vmax.f32 %v4288_v27, 0.0  ;;  %v4329_v15 = vmax.f32 %v4297_v63, 0.0 }
 0x5aa   : > { %5135 = vst.msk [vmem:[%s8710_s27 + $0x2b8] sm:$0xff] %vm3098_vm3, %v4212_v23  ;;  %v4291_v42 = vadd.f32 %v4259_v58, %v8685_v51  ;;  %v4262_v23 = vmul.f32 %v8683_v47, %v10000_v10  ;;  %v4292_v4 = vadd.f32 %v4260_v49, %v8685_v51  ;;  %v4321_v35 = vmax.f32 %v4289_v13, 0.0 }
 0x5ab   : > { %5136 = vst.msk [vmem:[%s8710_s27 + $0x2c0] sm:$0xff] %vm3098_vm3, %v4213_v6  ;;  %v4263_v6 = vmul.f32 %v8683_v47, %v10001_v11  ;;  %v4293_v14 = vadd.f32 %v4261_v18, %v8685_v51  ;;  %v4322_v56 = vmax.f32 %v4290_v55, 0.0  ;;  %v4272_v27 = vmul.f32 %v8683_v47, %v8518_v8 }
 0x5ac   : > { %5137 = vst.msk [vmem:[%s8710_s27 + $0x2c8] sm:$0xff] %vm3098_vm3, %v4214_v12  ;;  %v10002_v12 = vld [vmem:[#allocation42_spill] sm:$0xff]  ;;  %v4273_v54 = vmul.f32 %v8683_v47, %v8529_v19  ;;  %v4303_v20 = vadd.f32 %v4271_v59, %v8685_v51  ;;  %v4331_v58 = vmax.f32 %v4299_v26, 0.0  ;;  %v4274_v13 = vmul.f32 %v8683_v47, %v8542_v33 }
 0x5ad   : > { %5138 = vst.msk [vmem:[%s8710_s27 + $0x2d0] sm:$0xff] %vm3098_vm3, %v4215_v39  ;;  %v4264_v32 = vmul.f32 %v8683_v47, %v10002_v12  ;;  %v4294_v39 = vadd.f32 %v4262_v23, %v8685_v51  ;;  %v4295_v9 = vadd.f32 %v4263_v6, %v8685_v51  ;;  %v4325_v0 = vmax.f32 %v4293_v14, 0.0 }
 0x5ae   : > { %5139 = vst.msk [vmem:[%s8710_s27 + $0x2d8] sm:$0xff] %vm3098_vm3, %v4216_v31  ;;  %v4323_v31 = vmax.f32 %v4291_v42, 0.0  ;;  %v4304_v8 = vadd.f32 %v4272_v27, %v8685_v51  ;;  %v4332_v46 = vmax.f32 %v4300_v40, 0.0  ;;  %v4275_v49 = vmul.f32 %v8683_v47, %v8552_v30 }
 0x5af   : > { %5140 = vst.msk [vmem:[%s8710_s27 + $0x2e0] sm:$0xff] %vm3098_vm3, %v4217_v38  ;;  %v4296_v21 = vadd.f32 %v4264_v32, %v8685_v51  ;;  %v4324_v38 = vmax.f32 %v4292_v4, 0.0  ;;  %v4327_v17 = vmax.f32 %v4295_v9, 0.0  ;;  %v4305_v19 = vadd.f32 %v4273_v54, %v8685_v51 }
 0x5b0   : > { %5141 = vst.msk [vmem:[%s8710_s27 + $0x2e8] sm:$0xff] %vm3098_vm3, %v4218_v16  ;;  %v4326_v16 = vmax.f32 %v4294_v39, 0.0  ;;  %v4333_v55 = vmax.f32 %v4301_v45, 0.0  ;;  %v4306_v33 = vadd.f32 %v4274_v13, %v8685_v51  ;;  %v4334_v43 = vmax.f32 %v4302_v5, 0.0 }
 0x5b1   : > { %5142 = vst.msk [vmem:[%s8710_s27 + $0x2f0] sm:$0xff] %vm3098_vm3, %v4219_v60  ;;  %v4328_v60 = vmax.f32 %v4296_v21, 0.0  ;;  %v4277_v18 = vmul.f32 %v8683_v47, %v8576_v50  ;;  %v4307_v30 = vadd.f32 %v4275_v49, %v8685_v51  ;;  %v4335_v42 = vmax.f32 %v4303_v20, 0.0 }
 0x5b2   : > { %5143 = vst.msk [vmem:[%s8710_s27 + $0x2f8] sm:$0xff] %vm3098_vm3, %v4220_v25  ;;  %v4330_v25 = vmax.f32 %v4298_v7, 0.0  ;;  %v4336_v10 = vmax.f32 %v4304_v8, 0.0  ;;  %v4279_v23 = vmul.f32 %v8683_v47, %v8590_v2  ;;  %v4337_v4 = vmax.f32 %v4305_v19, 0.0 }
 0x5b3   : > { %5144 = vst.msk [vmem:[%s8710_s27 + $0x300] sm:$0xff] %vm3098_vm3, %v4318_v61  ;;  %v4276_v61 = vmul.f32 %v8683_v47, %v8566_v37  ;;  %v4309_v50 = vadd.f32 %v4277_v18, %v8685_v51  ;;  %v4338_v11 = vmax.f32 %v4306_v33, 0.0  ;;  %v4281_v6 = vmul.f32 %v8683_v47, %v8613_v34 }
 0x5b4   : > { %5145 = vst.msk [vmem:[%s8710_s27 + $0x308] sm:$0xff] %vm3098_vm3, %v4319_v48  ;;  %v4278_v48 = vmul.f32 %v8683_v47, %v8581_v36  ;;  %v4311_v2 = vadd.f32 %v4279_v23, %v8685_v51  ;;  %v4339_v14 = vmax.f32 %v4307_v30, 0.0  ;;  %v4283_v32 = vmul.f32 %v8683_v47, %v8632_v29 }
 0x5b5   : > { %5146 = vst.msk [vmem:[%s8710_s27 + $0x310] sm:$0xff] %vm3098_vm3, %v4320_v62  ;;  %v4308_v37 = vadd.f32 %v4276_v61, %v8685_v51  ;;  %v4280_v62 = vmul.f32 %v8683_v47, %v8605_v52  ;;  %v4313_v34 = vadd.f32 %v4281_v6, %v8685_v51  ;;  %v4341_v39 = vmax.f32 %v4309_v50, 0.0 }
 0x5b6   : > { %5147 = vst.msk [vmem:[%s8710_s27 + $0x318] sm:$0xff] %vm3098_vm3, %v4321_v35  ;;  %v4310_v36 = vadd.f32 %v4278_v48, %v8685_v51  ;;  %v4282_v35 = vmul.f32 %v8683_v47, %v8623_v1  ;;  %v4285_v29 = vmul.f32 %v8683_v47, %v8666_v44  ;;  %v4315_v9 = vadd.f32 %v4283_v32, %v8685_v51 }
 0x5b7   : > { %5148 = vst.msk [vmem:[%s8710_s27 + $0x320] sm:$0xff] %vm3098_vm3, %v4322_v56  ;;  %v4312_v52 = vadd.f32 %v4280_v62, %v8685_v51  ;;  %v4340_v12 = vmax.f32 %v4308_v37, 0.0  ;;  %v4284_v56 = vmul.f32 %v8683_v47, %v8641_v53 }
 0x5b8   : > { %5149 = vst.msk [vmem:[%s8710_s27 + $0x328] sm:$0xff] %vm3098_vm3, %v4323_v31  ;;  %v4314_v1 = vadd.f32 %v4282_v35, %v8685_v51  ;;  %v4342_v57 = vmax.f32 %v4310_v36, 0.0  ;;  %v4343_v31 = vmax.f32 %v4311_v2, 0.0  ;;  %v4317_v21 = vadd.f32 %v4285_v29, %v8685_v51 }
 0x5b9   : > { %5150 = vst.msk [vmem:[%s8710_s27 + $0x330] sm:$0xff] %vm3098_vm3, %v4324_v38  ;;  %v4316_v53 = vadd.f32 %v4284_v56, %v8685_v51  ;;  %v4344_v28 = vmax.f32 %v4312_v52, 0.0  ;;  %v4345_v38 = vmax.f32 %v4313_v34, 0.0  ;;  %v4347_v47 = vmax.f32 %v4315_v9, 0.0 }
 0x5ba   : > { %5151 = vst.msk [vmem:[%s8710_s27 + $0x338] sm:$0xff] %vm3098_vm3, %v4325_v0  ;;  %v4346_v44 = vmax.f32 %v4314_v1, 0.0  ;;  %v4349_v63 = vmax.f32 %v4317_v21, 0.0 }
 0x5bb   : > { %5152 = vst.msk [vmem:[%s8710_s27 + $0x340] sm:$0xff] %vm3098_vm3, %v4326_v16  ;;  %v4348_v22 = vmax.f32 %v4316_v53, 0.0 }
 0x5bc   : > { %5153 = vst.msk [vmem:[%s8710_s27 + $0x348] sm:$0xff] %vm3098_vm3, %v4327_v17 }
 0x5bd   : > { %5154 = vst.msk [vmem:[%s8710_s27 + $0x350] sm:$0xff] %vm3098_vm3, %v4328_v60 }
 0x5be   : > { %5155 = vst.msk [vmem:[%s8710_s27 + $0x358] sm:$0xff] %vm3098_vm3, %v4329_v15 }
 0x5bf   : > { %5156 = vst.msk [vmem:[%s8710_s27 + $0x360] sm:$0xff] %vm3098_vm3, %v4330_v25 }
 0x5c0   : > { %5157 = vst.msk [vmem:[%s8710_s27 + $0x368] sm:$0xff] %vm3098_vm3, %v4331_v58 }
 0x5c1   : > { %5158 = vst.msk [vmem:[%s8710_s27 + $0x370] sm:$0xff] %vm3098_vm3, %v4332_v46 }
 0x5c2   : > { %5159 = vst.msk [vmem:[%s8710_s27 + $0x378] sm:$0xff] %vm3098_vm3, %v4333_v55 }
 0x5c3   : > { %5160 = vst.msk [vmem:[%s8710_s27 + $0x380] sm:$0xff] %vm3098_vm3, %v4334_v43 }
 0x5c4   : > { %5161 = vst.msk [vmem:[%s8710_s27 + $0x388] sm:$0xff] %vm3098_vm3, %v4335_v42 }
 0x5c5   : > { %5162 = vst.msk [vmem:[%s8710_s27 + $0x390] sm:$0xff] %vm3098_vm3, %v4336_v10 }
 0x5c6   : > { %5163 = vst.msk [vmem:[%s8710_s27 + $0x398] sm:$0xff] %vm3098_vm3, %v4337_v4 }
 0x5c7   : > { %5164 = vst.msk [vmem:[%s8710_s27 + $0x3a0] sm:$0xff] %vm3098_vm3, %v4338_v11 }
 0x5c8   : > { %5165 = vst.msk [vmem:[%s8710_s27 + $0x3a8] sm:$0xff] %vm3098_vm3, %v4339_v14 }
 0x5c9   : > { %5166 = vst.msk [vmem:[%s8710_s27 + $0x3b0] sm:$0xff] %vm3098_vm3, %v4340_v12 }
 0x5ca   : > { %5167 = vst.msk [vmem:[%s8710_s27 + $0x3b8] sm:$0xff] %vm3098_vm3, %v4341_v39 }
 0x5cb   : > { %5168 = vst.msk [vmem:[%s8710_s27 + $0x3c0] sm:$0xff] %vm3098_vm3, %v4342_v57 }
 0x5cc   : > { %5169 = vst.msk [vmem:[%s8710_s27 + $0x3c8] sm:$0xff] %vm3098_vm3, %v4343_v31 }
 0x5cd   : > { %5170 = vst.msk [vmem:[%s8710_s27 + $0x3d0] sm:$0xff] %vm3098_vm3, %v4344_v28 }
 0x5ce   : > { %5171 = vst.msk [vmem:[%s8710_s27 + $0x3d8] sm:$0xff] %vm3098_vm3, %v4345_v38 }
 0x5cf   : > { %5172 = vst.msk [vmem:[%s8710_s27 + $0x3e0] sm:$0xff] %vm3098_vm3, %v4346_v44 }
 0x5d0   : > { %5173 = vst.msk [vmem:[%s8710_s27 + $0x3e8] sm:$0xff] %vm3098_vm3, %v4347_v47 }
 0x5d1   : > { %5174 = vst.msk [vmem:[%s8710_s27 + $0x3f0] sm:$0xff] %vm3098_vm3, %v4348_v22 }
 0x5d2   : > { %5175 = vst.msk [vmem:[%s8710_s27 + $0x3f8] sm:$0xff] %vm3098_vm3, %v4349_v63 }
 0x5d3 PF: > { %s16_s21 = sadd.s32 1, %s5243_s21  }
 0x5d4   : > { %p13_p4 = scmp.ge.s32.totalorder %s16_s21, 4  }
 0x5d6   :  { %15 = sbr.rel (!%p13_p4) target bundleno = 1 (0x1), region = 92 }

</bundles_post_ra>
